<compile_context>
chip_gen: v6e
topology: v6e:2x2x1
jax: 0.10.0
libtpu: 0.0.40
codegen_flags: <defaults>
</compile_context>

<pallas_src>
import jax
import jax.numpy as jnp
from jax.experimental import pallas as pl
from jax.experimental.pallas import tpu as pltpu

# ---- static model dimensions (from the PyTorch spec) -----------------------
L_IN = 178          # input length  => 16 * 46 == 736 flattened features
PAD = 3
K = 5
C1 = 6              # conv1 out channels
C2 = 16             # conv2 out channels
LPHASE = (L_IN + 2 * PAD) // 4      # 46  (padded input split into 4 phases)
H1 = 45             # per-parity pool1 length  (pool1 output = 90 = 2 * 45)
L2P = 46            # pool2 output length
FLAT = C2 * L2P     # 736
HID = 128
N_CLASSES = 5
OUT_PAD = 128       # lane-dense padded logits width


def _round_up(n, m):
    return ((n + m - 1) // m) * m


def cnn_kernel(w1_ref, b1_ref, w2_ref, b2_ref,                  # SMEM (flat f32)
               x4_ref, wfc1_ref, bfc1_ref, wfc2_ref, bfc2_ref,  # VMEM
               out_ref):                                        # VMEM (TB, 128)
    x4 = x4_ref[...]                      # (4, TB, 46)
    TB = x4.shape[1]

    # hoisted conv1 input views: xs[q][d][b, m] = x_padded[b, 4*(m+d) + q]
    xs = [[x4[q, :, d:d + H1] for d in range(2)] for q in range(4)]

    # ---- conv1 (k=5,p=3) as 4 polyphase streams, fused ReLU + MaxPool(2) ----
    # phase r holds conv1 outputs at positions 4m + r; pool1 is a max of
    # adjacent phases.  max(relu(a+b), relu(c+b)) == relu(max(a,c)+b).
    p1e, p1o = [], []                     # per channel (TB, 45)
    for c in range(C1):
        acc = [None] * 4
        for k in range(K):
            w = w1_ref[c * K + k]         # SMEM scalar, broadcast on use
            for r in range(4):
                q, d = (r + k) % 4, (r + k) // 4
                t = xs[q][d] * w
                acc[r] = t if acc[r] is None else acc[r] + t
        bc = b1_ref[c]
        p1e.append(jnp.maximum(jnp.maximum(acc[0], acc[1]) + bc, 0.0))
        p1o.append(jnp.maximum(jnp.maximum(acc[2], acc[3]) + bc, 0.0))

    # ---- lane-fused conv2 tap sources --------------------------------------
    # pe/po are the parity streams of the zero-padded (pad=3) pool1 signal.
    # taps[k][ci] = [even-output window | odd-output window]  -> (TB, 92)
    zb1 = jnp.zeros((TB, 1), jnp.float32)
    zb2 = jnp.zeros((TB, 2), jnp.float32)
    taps = [[None] * C1 for _ in range(K)]
    for ci in range(C1):
        pe = jnp.concatenate([zb2, p1o[ci], zb1], axis=1)   # (TB, 48)
        po = jnp.concatenate([zb1, p1e[ci], zb2], axis=1)   # (TB, 48)
        pe0, pe1, pe2 = pe[:, 0:L2P], pe[:, 1:L2P + 1], pe[:, 2:L2P + 2]
        po0, po1, po2 = po[:, 0:L2P], po[:, 1:L2P + 1], po[:, 2:L2P + 2]
        taps[0][ci] = jnp.concatenate([pe0, po0], axis=1)   # (TB, 92)
        taps[1][ci] = jnp.concatenate([po0, pe1], axis=1)
        taps[2][ci] = jnp.concatenate([pe1, po1], axis=1)
        taps[3][ci] = jnp.concatenate([po1, pe2], axis=1)
        taps[4][ci] = jnp.concatenate([pe2, po2], axis=1)

    # ---- conv2 + ReLU + MaxPool(2) fused, then per-channel fc1 MXU dots -----
    parts = []
    for o in range(C2):
        acc = None
        for ci in range(C1):
            for k in range(K):
                w = w2_ref[o * (C1 * K) + ci * K + k]
                t = taps[k][ci] * w
                acc = t if acc is None else acc + t
        p2_o = jnp.maximum(
            jnp.maximum(acc[:, :L2P], acc[:, L2P:]) + b2_ref[o], 0.0)  # (TB,46)
        parts.append(jnp.dot(p2_o, wfc1_ref[o],                        # (TB,128)
                             preferred_element_type=jnp.float32))

    # balanced tree reduction of the 16 fc1 partial products (no serial chain)
    while len(parts) > 1:
        parts = [parts[i] + parts[i + 1] for i in range(0, len(parts), 2)]
    h = jnp.maximum(parts[0] + bfc1_ref[...], 0.0)                     # (TB,128)

    # ---- fc2 (128 -> 128 padded; only the first 5 columns are real) ---------
    out_ref[...] = (jnp.dot(h, wfc2_ref[...],
                            preferred_element_type=jnp.float32)
                    + bfc2_ref[...])


def my_cnn_forward(x, params, block_b=256):
    """x: (B, 1, 178) float32 (PyTorch NCL layout). Returns logits (B, 5)."""
    B = x.shape[0]
    x = x.astype(jnp.float32).reshape(B, L_IN)

    # batch block: multiple of 8 (f32 sublane count), capped at block_b
    tb = min(_round_up(int(block_b), 8), _round_up(B, 8))
    B_pad = _round_up(B, tb)
    nb = B_pad // tb

    # zero-pad batch + length (pad=3 each side), split into 4 phases:
    # x4[q, b, i] = xp[b, 4i + q]
    xp = jnp.pad(x, ((0, B_pad - B), (PAD, PAD)))            # (B_pad, 184)
    x4 = xp.reshape(B_pad, LPHASE, 4).transpose(2, 0, 1)     # (4, B_pad, 46)

    # flat SMEM conv parameters (scalar-read + broadcast inside the kernel)
    w1f = params["conv1_w"].reshape(C1 * K).astype(jnp.float32)          # (30,)
    b1f = params["conv1_b"].astype(jnp.float32)                          # (6,)
    w2f = params["conv2_w"].reshape(C2 * C1 * K).astype(jnp.float32)     # (480,)
    b2f = params["conv2_b"].astype(jnp.float32)                          # (16,)

    # lane-dense VMEM weights
    wfc1r = params["fc1_w"].reshape(HID, C2, L2P).transpose(1, 2, 0)     # (16,46,128)
    bfc1r = params["fc1_b"].reshape(1, HID)
    wfc2p = jnp.zeros((HID, OUT_PAD), jnp.float32).at[:, :N_CLASSES].set(
        params["fc2_w"].T)                                               # (128,128)
    bfc2p = jnp.zeros((1, OUT_PAD), jnp.float32).at[0, :N_CLASSES].set(
        params["fc2_b"])                                                 # (1,128)

    smem = pl.BlockSpec(memory_space=pltpu.MemorySpace.SMEM)
    out = pl.pallas_call(
        cnn_kernel,
        out_shape=jax.ShapeDtypeStruct((B_pad, OUT_PAD), jnp.float32),
        grid=(nb,),
        in_specs=[
            smem, smem, smem, smem,                                      # conv params
            pl.BlockSpec((4, tb, LPHASE), lambda i: (0, i, 0)),          # x4 (batch blocked)
            pl.BlockSpec((C2, L2P, HID), lambda i: (0, 0, 0)),           # fc1 w (resident)
            pl.BlockSpec((1, HID), lambda i: (0, 0)),                    # fc1 b
            pl.BlockSpec((HID, OUT_PAD), lambda i: (0, 0)),              # fc2 w (padded)
            pl.BlockSpec((1, OUT_PAD), lambda i: (0, 0)),                # fc2 b (padded)
        ],
        out_specs=pl.BlockSpec((tb, OUT_PAD), lambda i: (i, 0)),
        compiler_params=pltpu.CompilerParams(
            dimension_semantics=("parallel",),          # megacore sharding on v7x
            vmem_limit_bytes=48 * 1024 * 1024,          # fits v5e/v6e/v7x
        ),
    )(w1f, b1f, w2f, b2f, x4, wfc1r, bfc1r, wfc2p, bfc2p)
    return out[:B, :N_CLASSES]


# --------------------------- test harness -----------------------------------
def init_params(key):
    """PyTorch-style uniform(-1/sqrt(fan_in), 1/sqrt(fan_in)) init."""
    ks = jax.random.split(key, 8)

    def u(k, shape, fan_in):
        b = fan_in ** -0.5
        return jax.random.uniform(k, shape, jnp.float32, -b, b)

    return {
        "conv1_w": u(ks[0], (C1, 1, K), 1 * K),
        "conv1_b": u(ks[1], (C1,), 1 * K),
        "conv2_w": u(ks[2], (C2, C1, K), C1 * K),
        "conv2_b": u(ks[3], (C2,), C1 * K),
        "fc1_w":   u(ks[4], (HID, FLAT), FLAT),
        "fc1_b":   u(ks[5], (HID,), FLAT),
        "fc2_w":   u(ks[6], (N_CLASSES, HID), HID),
        "fc2_b":   u(ks[7], (N_CLASSES,), HID),
    }


def reference_forward(x, params):
    """Pure-JAX (XLA) reference matching torch semantics exactly."""
    B = x.shape[0]
    h = x.astype(jnp.float32)

    def conv1d(h, w, b, pad):
        Cout, Cin, Kk = w.shape
        hp = jnp.pad(h, ((0, 0), (0, 0), (pad, pad)))
        Lout = h.shape[2] + 2 * pad - Kk + 1
        out = jnp.zeros((h.shape[0], Cout, Lout), jnp.float32)
        for k in range(Kk):
            for ci in range(Cin):
                out = out + w[None, :, ci, k, None] * hp[:, ci:ci + 1, k:k + Lout]
        return out + b[None, :, None]

    def maxpool2(h):
        L2 = h.shape[2] // 2
        return jnp.max(h[:, :, :2 * L2].reshape(h.shape[0], h.shape[1], L2, 2),
                       axis=3)

    h = maxpool2(jax.nn.relu(conv1d(h, params["conv1_w"], params["conv1_b"], PAD)))
    h = maxpool2(jax.nn.relu(conv1d(h, params["conv2_w"], params["conv2_b"], PAD)))
    h = h.reshape(B, FLAT)                           # channel-major, as torch .view
    h = jax.nn.relu(h @ params["fc1_w"].T + params["fc1_b"])
    return h @ params["fc2_w"].T + params["fc2_b"]


if __name__ == "__main__":
    key = jax.random.PRNGKey(0)
    k_param, k_x1, k_x2 = jax.random.split(key, 3)
    params = init_params(k_param)

    # small batch (single grid step, batch padded to one 8-row block)
    x = jax.random.normal(k_x1, (2, 1, L_IN), jnp.float32)
    out = jax.block_until_ready(jax.jit(my_cnn_forward)(x, params))
    ref = reference_forward(x, params)
    assert out.shape == (2, N_CLASSES)
    assert jnp.allclose(out, ref, atol=2e-3, rtol=2e-3), (out, ref)

    # multi-block batch grid (padding + >1 grid step over the parallel axis)
    x2 = jax.random.normal(k_x2, (10, 1, L_IN), jnp.float32)
    fwd_small_block = jax.jit(lambda a, p: my_cnn_forward(a, p, block_b=8))
    out2 = jax.block_until_ready(fwd_small_block(x2, params))
    ref2 = reference_forward(x2, params)
    assert out2.shape == (10, N_CLASSES)
    assert jnp.allclose(out2, ref2, atol=2e-3, rtol=2e-3), (out2, ref2)

    print("KERNEL_OK")
</pallas_src>

<mosaic_0001>
module attributes {stable_mosaic.version = 11 : i64} {
  func.func @cnn_kernel(%arg0: i32, %arg1: memref<30xf32, #tpu.memory_space<smem>>, %arg2: memref<6xf32, #tpu.memory_space<smem>>, %arg3: memref<480xf32, #tpu.memory_space<smem>>, %arg4: memref<16xf32, #tpu.memory_space<smem>>, %arg5: memref<4x8x46xf32, #tpu.memory_space<vmem>>, %arg6: memref<16x46x128xf32, #tpu.memory_space<vmem>>, %arg7: memref<1x128xf32, #tpu.memory_space<vmem>>, %arg8: memref<128x128xf32, #tpu.memory_space<vmem>>, %arg9: memref<1x128xf32, #tpu.memory_space<vmem>>, %arg10: memref<8x128xf32, #tpu.memory_space<vmem>>) attributes {dimension_semantics = [#tpu.dimension_semantics<parallel>], iteration_bounds = array<i64: 1>, scalar_prefetch = 0 : i64, scratch_operands = 0 : i64, tpu.core_type = #tpu.core_type<tc>, window_params = [{transform_indices = @transform_0, window_bounds = array<i64: 30>}, {transform_indices = @transform_1, window_bounds = array<i64: 6>}, {transform_indices = @transform_2, window_bounds = array<i64: 480>}, {transform_indices = @transform_3, window_bounds = array<i64: 16>}, {transform_indices = @transform_4, window_bounds = array<i64: 4, 8, 46>}, {pipeline_mode = #tpu.pipeline_mode<synchronous>, transform_indices = @transform_5, window_bounds = array<i64: 16, 46, 128>}, {pipeline_mode = #tpu.pipeline_mode<synchronous>, transform_indices = @transform_6, window_bounds = array<i64: 1, 128>}, {pipeline_mode = #tpu.pipeline_mode<synchronous>, transform_indices = @transform_7, window_bounds = array<i64: 128, 128>}, {pipeline_mode = #tpu.pipeline_mode<synchronous>, transform_indices = @transform_8, window_bounds = array<i64: 1, 128>}, {transform_indices = @transform_9, window_bounds = array<i64: 8, 128>}]} {
    %c0 = arith.constant 0 : index
    %c0_0 = arith.constant 0 : index
    %c0_1 = arith.constant 0 : index
    %0 = vector.load %arg5[%c0, %c0_0, %c0_1] : memref<4x8x46xf32, #tpu.memory_space<vmem>>, vector<4x8x46xf32>
    %1 = vector.extract_strided_slice %0 {offsets = [0, 0, 0], sizes = [1, 8, 45], strides = [1, 1, 1]} : vector<4x8x46xf32> to vector<1x8x45xf32>
    %2 = vector.shape_cast %1 : vector<1x8x45xf32> to vector<8x45xf32>
    %3 = vector.extract_strided_slice %0 {offsets = [0, 0, 1], sizes = [1, 8, 45], strides = [1, 1, 1]} : vector<4x8x46xf32> to vector<1x8x45xf32>
    %4 = vector.shape_cast %3 : vector<1x8x45xf32> to vector<8x45xf32>
    %5 = vector.extract_strided_slice %0 {offsets = [1, 0, 0], sizes = [1, 8, 45], strides = [1, 1, 1]} : vector<4x8x46xf32> to vector<1x8x45xf32>
    %6 = vector.shape_cast %5 : vector<1x8x45xf32> to vector<8x45xf32>
    %7 = vector.extract_strided_slice %0 {offsets = [1, 0, 1], sizes = [1, 8, 45], strides = [1, 1, 1]} : vector<4x8x46xf32> to vector<1x8x45xf32>
    %8 = vector.shape_cast %7 : vector<1x8x45xf32> to vector<8x45xf32>
    %9 = vector.extract_strided_slice %0 {offsets = [2, 0, 0], sizes = [1, 8, 45], strides = [1, 1, 1]} : vector<4x8x46xf32> to vector<1x8x45xf32>
    %10 = vector.shape_cast %9 : vector<1x8x45xf32> to vector<8x45xf32>
    %11 = vector.extract_strided_slice %0 {offsets = [2, 0, 1], sizes = [1, 8, 45], strides = [1, 1, 1]} : vector<4x8x46xf32> to vector<1x8x45xf32>
    %12 = vector.shape_cast %11 : vector<1x8x45xf32> to vector<8x45xf32>
    %13 = vector.extract_strided_slice %0 {offsets = [3, 0, 0], sizes = [1, 8, 45], strides = [1, 1, 1]} : vector<4x8x46xf32> to vector<1x8x45xf32>
    %14 = vector.shape_cast %13 : vector<1x8x45xf32> to vector<8x45xf32>
    %15 = vector.extract_strided_slice %0 {offsets = [3, 0, 1], sizes = [1, 8, 45], strides = [1, 1, 1]} : vector<4x8x46xf32> to vector<1x8x45xf32>
    %16 = vector.shape_cast %15 : vector<1x8x45xf32> to vector<8x45xf32>
    %c0_2 = arith.constant 0 : index
    %17 = memref.load %arg1[%c0_2] : memref<30xf32, #tpu.memory_space<smem>>
    %18 = vector.broadcast %17 : f32 to vector<8x45xf32>
    %19 = arith.mulf %2, %18 : vector<8x45xf32>
    %20 = vector.broadcast %17 : f32 to vector<8x45xf32>
    %21 = arith.mulf %6, %20 : vector<8x45xf32>
    %22 = vector.broadcast %17 : f32 to vector<8x45xf32>
    %23 = arith.mulf %10, %22 : vector<8x45xf32>
    %24 = vector.broadcast %17 : f32 to vector<8x45xf32>
    %25 = arith.mulf %14, %24 : vector<8x45xf32>
    %c1 = arith.constant 1 : index
    %26 = memref.load %arg1[%c1] : memref<30xf32, #tpu.memory_space<smem>>
    %27 = vector.broadcast %26 : f32 to vector<8x45xf32>
    %28 = arith.mulf %6, %27 : vector<8x45xf32>
    %29 = arith.addf %19, %28 : vector<8x45xf32>
    %30 = vector.broadcast %26 : f32 to vector<8x45xf32>
    %31 = arith.mulf %10, %30 : vector<8x45xf32>
    %32 = arith.addf %21, %31 : vector<8x45xf32>
    %33 = vector.broadcast %26 : f32 to vector<8x45xf32>
    %34 = arith.mulf %14, %33 : vector<8x45xf32>
    %35 = arith.addf %23, %34 : vector<8x45xf32>
    %36 = vector.broadcast %26 : f32 to vector<8x45xf32>
    %37 = arith.mulf %4, %36 : vector<8x45xf32>
    %38 = arith.addf %25, %37 : vector<8x45xf32>
    %c2 = arith.constant 2 : index
    %39 = memref.load %arg1[%c2] : memref<30xf32, #tpu.memory_space<smem>>
    %40 = vector.broadcast %39 : f32 to vector<8x45xf32>
    %41 = arith.mulf %10, %40 : vector<8x45xf32>
    %42 = arith.addf %29, %41 : vector<8x45xf32>
    %43 = vector.broadcast %39 : f32 to vector<8x45xf32>
    %44 = arith.mulf %14, %43 : vector<8x45xf32>
    %45 = arith.addf %32, %44 : vector<8x45xf32>
    %46 = vector.broadcast %39 : f32 to vector<8x45xf32>
    %47 = arith.mulf %4, %46 : vector<8x45xf32>
    %48 = arith.addf %35, %47 : vector<8x45xf32>
    %49 = vector.broadcast %39 : f32 to vector<8x45xf32>
    %50 = arith.mulf %8, %49 : vector<8x45xf32>
    %51 = arith.addf %38, %50 : vector<8x45xf32>
    %c3 = arith.constant 3 : index
    %52 = memref.load %arg1[%c3] : memref<30xf32, #tpu.memory_space<smem>>
    %53 = vector.broadcast %52 : f32 to vector<8x45xf32>
    %54 = arith.mulf %14, %53 : vector<8x45xf32>
    %55 = arith.addf %42, %54 : vector<8x45xf32>
    %56 = vector.broadcast %52 : f32 to vector<8x45xf32>
    %57 = arith.mulf %4, %56 : vector<8x45xf32>
    %58 = arith.addf %45, %57 : vector<8x45xf32>
    %59 = vector.broadcast %52 : f32 to vector<8x45xf32>
    %60 = arith.mulf %8, %59 : vector<8x45xf32>
    %61 = arith.addf %48, %60 : vector<8x45xf32>
    %62 = vector.broadcast %52 : f32 to vector<8x45xf32>
    %63 = arith.mulf %12, %62 : vector<8x45xf32>
    %64 = arith.addf %51, %63 : vector<8x45xf32>
    %c4 = arith.constant 4 : index
    %65 = memref.load %arg1[%c4] : memref<30xf32, #tpu.memory_space<smem>>
    %66 = vector.broadcast %65 : f32 to vector<8x45xf32>
    %67 = arith.mulf %4, %66 : vector<8x45xf32>
    %68 = arith.addf %55, %67 : vector<8x45xf32>
    %69 = vector.broadcast %65 : f32 to vector<8x45xf32>
    %70 = arith.mulf %8, %69 : vector<8x45xf32>
    %71 = arith.addf %58, %70 : vector<8x45xf32>
    %72 = vector.broadcast %65 : f32 to vector<8x45xf32>
    %73 = arith.mulf %12, %72 : vector<8x45xf32>
    %74 = arith.addf %61, %73 : vector<8x45xf32>
    %75 = vector.broadcast %65 : f32 to vector<8x45xf32>
    %76 = arith.mulf %16, %75 : vector<8x45xf32>
    %77 = arith.addf %64, %76 : vector<8x45xf32>
    %c0_3 = arith.constant 0 : index
    %78 = memref.load %arg2[%c0_3] : memref<6xf32, #tpu.memory_space<smem>>
    %79 = arith.maximumf %68, %71 : vector<8x45xf32>
    %80 = vector.broadcast %78 : f32 to vector<8x45xf32>
    %81 = arith.addf %79, %80 : vector<8x45xf32>
    %cst = arith.constant 0.000000e+00 : f32
    %82 = vector.broadcast %cst : f32 to vector<8x45xf32>
    %83 = arith.maximumf %81, %82 : vector<8x45xf32>
    %84 = arith.maximumf %74, %77 : vector<8x45xf32>
    %85 = vector.broadcast %78 : f32 to vector<8x45xf32>
    %86 = arith.addf %84, %85 : vector<8x45xf32>
    %cst_4 = arith.constant 0.000000e+00 : f32
    %87 = vector.broadcast %cst_4 : f32 to vector<8x45xf32>
    %88 = arith.maximumf %86, %87 : vector<8x45xf32>
    %c5 = arith.constant 5 : index
    %89 = memref.load %arg1[%c5] : memref<30xf32, #tpu.memory_space<smem>>
    %90 = vector.broadcast %89 : f32 to vector<8x45xf32>
    %91 = arith.mulf %2, %90 : vector<8x45xf32>
    %92 = vector.broadcast %89 : f32 to vector<8x45xf32>
    %93 = arith.mulf %6, %92 : vector<8x45xf32>
    %94 = vector.broadcast %89 : f32 to vector<8x45xf32>
    %95 = arith.mulf %10, %94 : vector<8x45xf32>
    %96 = vector.broadcast %89 : f32 to vector<8x45xf32>
    %97 = arith.mulf %14, %96 : vector<8x45xf32>
    %c6 = arith.constant 6 : index
    %98 = memref.load %arg1[%c6] : memref<30xf32, #tpu.memory_space<smem>>
    %99 = vector.broadcast %98 : f32 to vector<8x45xf32>
    %100 = arith.mulf %6, %99 : vector<8x45xf32>
    %101 = arith.addf %91, %100 : vector<8x45xf32>
    %102 = vector.broadcast %98 : f32 to vector<8x45xf32>
    %103 = arith.mulf %10, %102 : vector<8x45xf32>
    %104 = arith.addf %93, %103 : vector<8x45xf32>
    %105 = vector.broadcast %98 : f32 to vector<8x45xf32>
    %106 = arith.mulf %14, %105 : vector<8x45xf32>
    %107 = arith.addf %95, %106 : vector<8x45xf32>
    %108 = vector.broadcast %98 : f32 to vector<8x45xf32>
    %109 = arith.mulf %4, %108 : vector<8x45xf32>
    %110 = arith.addf %97, %109 : vector<8x45xf32>
    %c7 = arith.constant 7 : index
    %111 = memref.load %arg1[%c7] : memref<30xf32, #tpu.memory_space<smem>>
    %112 = vector.broadcast %111 : f32 to vector<8x45xf32>
    %113 = arith.mulf %10, %112 : vector<8x45xf32>
    %114 = arith.addf %101, %113 : vector<8x45xf32>
    %115 = vector.broadcast %111 : f32 to vector<8x45xf32>
    %116 = arith.mulf %14, %115 : vector<8x45xf32>
    %117 = arith.addf %104, %116 : vector<8x45xf32>
    %118 = vector.broadcast %111 : f32 to vector<8x45xf32>
    %119 = arith.mulf %4, %118 : vector<8x45xf32>
    %120 = arith.addf %107, %119 : vector<8x45xf32>
    %121 = vector.broadcast %111 : f32 to vector<8x45xf32>
    %122 = arith.mulf %8, %121 : vector<8x45xf32>
    %123 = arith.addf %110, %122 : vector<8x45xf32>
    %c8 = arith.constant 8 : index
    %124 = memref.load %arg1[%c8] : memref<30xf32, #tpu.memory_space<smem>>
    %125 = vector.broadcast %124 : f32 to vector<8x45xf32>
    %126 = arith.mulf %14, %125 : vector<8x45xf32>
    %127 = arith.addf %114, %126 : vector<8x45xf32>
    %128 = vector.broadcast %124 : f32 to vector<8x45xf32>
    %129 = arith.mulf %4, %128 : vector<8x45xf32>
    %130 = arith.addf %117, %129 : vector<8x45xf32>
    %131 = vector.broadcast %124 : f32 to vector<8x45xf32>
    %132 = arith.mulf %8, %131 : vector<8x45xf32>
    %133 = arith.addf %120, %132 : vector<8x45xf32>
    %134 = vector.broadcast %124 : f32 to vector<8x45xf32>
    %135 = arith.mulf %12, %134 : vector<8x45xf32>
    %136 = arith.addf %123, %135 : vector<8x45xf32>
    %c9 = arith.constant 9 : index
    %137 = memref.load %arg1[%c9] : memref<30xf32, #tpu.memory_space<smem>>
    %138 = vector.broadcast %137 : f32 to vector<8x45xf32>
    %139 = arith.mulf %4, %138 : vector<8x45xf32>
    %140 = arith.addf %127, %139 : vector<8x45xf32>
    %141 = vector.broadcast %137 : f32 to vector<8x45xf32>
    %142 = arith.mulf %8, %141 : vector<8x45xf32>
    %143 = arith.addf %130, %142 : vector<8x45xf32>
    %144 = vector.broadcast %137 : f32 to vector<8x45xf32>
    %145 = arith.mulf %12, %144 : vector<8x45xf32>
    %146 = arith.addf %133, %145 : vector<8x45xf32>
    %147 = vector.broadcast %137 : f32 to vector<8x45xf32>
    %148 = arith.mulf %16, %147 : vector<8x45xf32>
    %149 = arith.addf %136, %148 : vector<8x45xf32>
    %c1_5 = arith.constant 1 : index
    %150 = memref.load %arg2[%c1_5] : memref<6xf32, #tpu.memory_space<smem>>
    %151 = arith.maximumf %140, %143 : vector<8x45xf32>
    %152 = vector.broadcast %150 : f32 to vector<8x45xf32>
    %153 = arith.addf %151, %152 : vector<8x45xf32>
    %cst_6 = arith.constant 0.000000e+00 : f32
    %154 = vector.broadcast %cst_6 : f32 to vector<8x45xf32>
    %155 = arith.maximumf %153, %154 : vector<8x45xf32>
    %156 = arith.maximumf %146, %149 : vector<8x45xf32>
    %157 = vector.broadcast %150 : f32 to vector<8x45xf32>
    %158 = arith.addf %156, %157 : vector<8x45xf32>
    %cst_7 = arith.constant 0.000000e+00 : f32
    %159 = vector.broadcast %cst_7 : f32 to vector<8x45xf32>
    %160 = arith.maximumf %158, %159 : vector<8x45xf32>
    %c10 = arith.constant 10 : index
    %161 = memref.load %arg1[%c10] : memref<30xf32, #tpu.memory_space<smem>>
    %162 = vector.broadcast %161 : f32 to vector<8x45xf32>
    %163 = arith.mulf %2, %162 : vector<8x45xf32>
    %164 = vector.broadcast %161 : f32 to vector<8x45xf32>
    %165 = arith.mulf %6, %164 : vector<8x45xf32>
    %166 = vector.broadcast %161 : f32 to vector<8x45xf32>
    %167 = arith.mulf %10, %166 : vector<8x45xf32>
    %168 = vector.broadcast %161 : f32 to vector<8x45xf32>
    %169 = arith.mulf %14, %168 : vector<8x45xf32>
    %c11 = arith.constant 11 : index
    %170 = memref.load %arg1[%c11] : memref<30xf32, #tpu.memory_space<smem>>
    %171 = vector.broadcast %170 : f32 to vector<8x45xf32>
    %172 = arith.mulf %6, %171 : vector<8x45xf32>
    %173 = arith.addf %163, %172 : vector<8x45xf32>
    %174 = vector.broadcast %170 : f32 to vector<8x45xf32>
    %175 = arith.mulf %10, %174 : vector<8x45xf32>
    %176 = arith.addf %165, %175 : vector<8x45xf32>
    %177 = vector.broadcast %170 : f32 to vector<8x45xf32>
    %178 = arith.mulf %14, %177 : vector<8x45xf32>
    %179 = arith.addf %167, %178 : vector<8x45xf32>
    %180 = vector.broadcast %170 : f32 to vector<8x45xf32>
    %181 = arith.mulf %4, %180 : vector<8x45xf32>
    %182 = arith.addf %169, %181 : vector<8x45xf32>
    %c12 = arith.constant 12 : index
    %183 = memref.load %arg1[%c12] : memref<30xf32, #tpu.memory_space<smem>>
    %184 = vector.broadcast %183 : f32 to vector<8x45xf32>
    %185 = arith.mulf %10, %184 : vector<8x45xf32>
    %186 = arith.addf %173, %185 : vector<8x45xf32>
    %187 = vector.broadcast %183 : f32 to vector<8x45xf32>
    %188 = arith.mulf %14, %187 : vector<8x45xf32>
    %189 = arith.addf %176, %188 : vector<8x45xf32>
    %190 = vector.broadcast %183 : f32 to vector<8x45xf32>
    %191 = arith.mulf %4, %190 : vector<8x45xf32>
    %192 = arith.addf %179, %191 : vector<8x45xf32>
    %193 = vector.broadcast %183 : f32 to vector<8x45xf32>
    %194 = arith.mulf %8, %193 : vector<8x45xf32>
    %195 = arith.addf %182, %194 : vector<8x45xf32>
    %c13 = arith.constant 13 : index
    %196 = memref.load %arg1[%c13] : memref<30xf32, #tpu.memory_space<smem>>
    %197 = vector.broadcast %196 : f32 to vector<8x45xf32>
    %198 = arith.mulf %14, %197 : vector<8x45xf32>
    %199 = arith.addf %186, %198 : vector<8x45xf32>
    %200 = vector.broadcast %196 : f32 to vector<8x45xf32>
    %201 = arith.mulf %4, %200 : vector<8x45xf32>
    %202 = arith.addf %189, %201 : vector<8x45xf32>
    %203 = vector.broadcast %196 : f32 to vector<8x45xf32>
    %204 = arith.mulf %8, %203 : vector<8x45xf32>
    %205 = arith.addf %192, %204 : vector<8x45xf32>
    %206 = vector.broadcast %196 : f32 to vector<8x45xf32>
    %207 = arith.mulf %12, %206 : vector<8x45xf32>
    %208 = arith.addf %195, %207 : vector<8x45xf32>
    %c14 = arith.constant 14 : index
    %209 = memref.load %arg1[%c14] : memref<30xf32, #tpu.memory_space<smem>>
    %210 = vector.broadcast %209 : f32 to vector<8x45xf32>
    %211 = arith.mulf %4, %210 : vector<8x45xf32>
    %212 = arith.addf %199, %211 : vector<8x45xf32>
    %213 = vector.broadcast %209 : f32 to vector<8x45xf32>
    %214 = arith.mulf %8, %213 : vector<8x45xf32>
    %215 = arith.addf %202, %214 : vector<8x45xf32>
    %216 = vector.broadcast %209 : f32 to vector<8x45xf32>
    %217 = arith.mulf %12, %216 : vector<8x45xf32>
    %218 = arith.addf %205, %217 : vector<8x45xf32>
    %219 = vector.broadcast %209 : f32 to vector<8x45xf32>
    %220 = arith.mulf %16, %219 : vector<8x45xf32>
    %221 = arith.addf %208, %220 : vector<8x45xf32>
    %c2_8 = arith.constant 2 : index
    %222 = memref.load %arg2[%c2_8] : memref<6xf32, #tpu.memory_space<smem>>
    %223 = arith.maximumf %212, %215 : vector<8x45xf32>
    %224 = vector.broadcast %222 : f32 to vector<8x45xf32>
    %225 = arith.addf %223, %224 : vector<8x45xf32>
    %cst_9 = arith.constant 0.000000e+00 : f32
    %226 = vector.broadcast %cst_9 : f32 to vector<8x45xf32>
    %227 = arith.maximumf %225, %226 : vector<8x45xf32>
    %228 = arith.maximumf %218, %221 : vector<8x45xf32>
    %229 = vector.broadcast %222 : f32 to vector<8x45xf32>
    %230 = arith.addf %228, %229 : vector<8x45xf32>
    %cst_10 = arith.constant 0.000000e+00 : f32
    %231 = vector.broadcast %cst_10 : f32 to vector<8x45xf32>
    %232 = arith.maximumf %230, %231 : vector<8x45xf32>
    %c15 = arith.constant 15 : index
    %233 = memref.load %arg1[%c15] : memref<30xf32, #tpu.memory_space<smem>>
    %234 = vector.broadcast %233 : f32 to vector<8x45xf32>
    %235 = arith.mulf %2, %234 : vector<8x45xf32>
    %236 = vector.broadcast %233 : f32 to vector<8x45xf32>
    %237 = arith.mulf %6, %236 : vector<8x45xf32>
    %238 = vector.broadcast %233 : f32 to vector<8x45xf32>
    %239 = arith.mulf %10, %238 : vector<8x45xf32>
    %240 = vector.broadcast %233 : f32 to vector<8x45xf32>
    %241 = arith.mulf %14, %240 : vector<8x45xf32>
    %c16 = arith.constant 16 : index
    %242 = memref.load %arg1[%c16] : memref<30xf32, #tpu.memory_space<smem>>
    %243 = vector.broadcast %242 : f32 to vector<8x45xf32>
    %244 = arith.mulf %6, %243 : vector<8x45xf32>
    %245 = arith.addf %235, %244 : vector<8x45xf32>
    %246 = vector.broadcast %242 : f32 to vector<8x45xf32>
    %247 = arith.mulf %10, %246 : vector<8x45xf32>
    %248 = arith.addf %237, %247 : vector<8x45xf32>
    %249 = vector.broadcast %242 : f32 to vector<8x45xf32>
    %250 = arith.mulf %14, %249 : vector<8x45xf32>
    %251 = arith.addf %239, %250 : vector<8x45xf32>
    %252 = vector.broadcast %242 : f32 to vector<8x45xf32>
    %253 = arith.mulf %4, %252 : vector<8x45xf32>
    %254 = arith.addf %241, %253 : vector<8x45xf32>
    %c17 = arith.constant 17 : index
    %255 = memref.load %arg1[%c17] : memref<30xf32, #tpu.memory_space<smem>>
    %256 = vector.broadcast %255 : f32 to vector<8x45xf32>
    %257 = arith.mulf %10, %256 : vector<8x45xf32>
    %258 = arith.addf %245, %257 : vector<8x45xf32>
    %259 = vector.broadcast %255 : f32 to vector<8x45xf32>
    %260 = arith.mulf %14, %259 : vector<8x45xf32>
    %261 = arith.addf %248, %260 : vector<8x45xf32>
    %262 = vector.broadcast %255 : f32 to vector<8x45xf32>
    %263 = arith.mulf %4, %262 : vector<8x45xf32>
    %264 = arith.addf %251, %263 : vector<8x45xf32>
    %265 = vector.broadcast %255 : f32 to vector<8x45xf32>
    %266 = arith.mulf %8, %265 : vector<8x45xf32>
    %267 = arith.addf %254, %266 : vector<8x45xf32>
    %c18 = arith.constant 18 : index
    %268 = memref.load %arg1[%c18] : memref<30xf32, #tpu.memory_space<smem>>
    %269 = vector.broadcast %268 : f32 to vector<8x45xf32>
    %270 = arith.mulf %14, %269 : vector<8x45xf32>
    %271 = arith.addf %258, %270 : vector<8x45xf32>
    %272 = vector.broadcast %268 : f32 to vector<8x45xf32>
    %273 = arith.mulf %4, %272 : vector<8x45xf32>
    %274 = arith.addf %261, %273 : vector<8x45xf32>
    %275 = vector.broadcast %268 : f32 to vector<8x45xf32>
    %276 = arith.mulf %8, %275 : vector<8x45xf32>
    %277 = arith.addf %264, %276 : vector<8x45xf32>
    %278 = vector.broadcast %268 : f32 to vector<8x45xf32>
    %279 = arith.mulf %12, %278 : vector<8x45xf32>
    %280 = arith.addf %267, %279 : vector<8x45xf32>
    %c19 = arith.constant 19 : index
    %281 = memref.load %arg1[%c19] : memref<30xf32, #tpu.memory_space<smem>>
    %282 = vector.broadcast %281 : f32 to vector<8x45xf32>
    %283 = arith.mulf %4, %282 : vector<8x45xf32>
    %284 = arith.addf %271, %283 : vector<8x45xf32>
    %285 = vector.broadcast %281 : f32 to vector<8x45xf32>
    %286 = arith.mulf %8, %285 : vector<8x45xf32>
    %287 = arith.addf %274, %286 : vector<8x45xf32>
    %288 = vector.broadcast %281 : f32 to vector<8x45xf32>
    %289 = arith.mulf %12, %288 : vector<8x45xf32>
    %290 = arith.addf %277, %289 : vector<8x45xf32>
    %291 = vector.broadcast %281 : f32 to vector<8x45xf32>
    %292 = arith.mulf %16, %291 : vector<8x45xf32>
    %293 = arith.addf %280, %292 : vector<8x45xf32>
    %c3_11 = arith.constant 3 : index
    %294 = memref.load %arg2[%c3_11] : memref<6xf32, #tpu.memory_space<smem>>
    %295 = arith.maximumf %284, %287 : vector<8x45xf32>
    %296 = vector.broadcast %294 : f32 to vector<8x45xf32>
    %297 = arith.addf %295, %296 : vector<8x45xf32>
    %cst_12 = arith.constant 0.000000e+00 : f32
    %298 = vector.broadcast %cst_12 : f32 to vector<8x45xf32>
    %299 = arith.maximumf %297, %298 : vector<8x45xf32>
    %300 = arith.maximumf %290, %293 : vector<8x45xf32>
    %301 = vector.broadcast %294 : f32 to vector<8x45xf32>
    %302 = arith.addf %300, %301 : vector<8x45xf32>
    %cst_13 = arith.constant 0.000000e+00 : f32
    %303 = vector.broadcast %cst_13 : f32 to vector<8x45xf32>
    %304 = arith.maximumf %302, %303 : vector<8x45xf32>
    %c20 = arith.constant 20 : index
    %305 = memref.load %arg1[%c20] : memref<30xf32, #tpu.memory_space<smem>>
    %306 = vector.broadcast %305 : f32 to vector<8x45xf32>
    %307 = arith.mulf %2, %306 : vector<8x45xf32>
    %308 = vector.broadcast %305 : f32 to vector<8x45xf32>
    %309 = arith.mulf %6, %308 : vector<8x45xf32>
    %310 = vector.broadcast %305 : f32 to vector<8x45xf32>
    %311 = arith.mulf %10, %310 : vector<8x45xf32>
    %312 = vector.broadcast %305 : f32 to vector<8x45xf32>
    %313 = arith.mulf %14, %312 : vector<8x45xf32>
    %c21 = arith.constant 21 : index
    %314 = memref.load %arg1[%c21] : memref<30xf32, #tpu.memory_space<smem>>
    %315 = vector.broadcast %314 : f32 to vector<8x45xf32>
    %316 = arith.mulf %6, %315 : vector<8x45xf32>
    %317 = arith.addf %307, %316 : vector<8x45xf32>
    %318 = vector.broadcast %314 : f32 to vector<8x45xf32>
    %319 = arith.mulf %10, %318 : vector<8x45xf32>
    %320 = arith.addf %309, %319 : vector<8x45xf32>
    %321 = vector.broadcast %314 : f32 to vector<8x45xf32>
    %322 = arith.mulf %14, %321 : vector<8x45xf32>
    %323 = arith.addf %311, %322 : vector<8x45xf32>
    %324 = vector.broadcast %314 : f32 to vector<8x45xf32>
    %325 = arith.mulf %4, %324 : vector<8x45xf32>
    %326 = arith.addf %313, %325 : vector<8x45xf32>
    %c22 = arith.constant 22 : index
    %327 = memref.load %arg1[%c22] : memref<30xf32, #tpu.memory_space<smem>>
    %328 = vector.broadcast %327 : f32 to vector<8x45xf32>
    %329 = arith.mulf %10, %328 : vector<8x45xf32>
    %330 = arith.addf %317, %329 : vector<8x45xf32>
    %331 = vector.broadcast %327 : f32 to vector<8x45xf32>
    %332 = arith.mulf %14, %331 : vector<8x45xf32>
    %333 = arith.addf %320, %332 : vector<8x45xf32>
    %334 = vector.broadcast %327 : f32 to vector<8x45xf32>
    %335 = arith.mulf %4, %334 : vector<8x45xf32>
    %336 = arith.addf %323, %335 : vector<8x45xf32>
    %337 = vector.broadcast %327 : f32 to vector<8x45xf32>
    %338 = arith.mulf %8, %337 : vector<8x45xf32>
    %339 = arith.addf %326, %338 : vector<8x45xf32>
    %c23 = arith.constant 23 : index
    %340 = memref.load %arg1[%c23] : memref<30xf32, #tpu.memory_space<smem>>
    %341 = vector.broadcast %340 : f32 to vector<8x45xf32>
    %342 = arith.mulf %14, %341 : vector<8x45xf32>
    %343 = arith.addf %330, %342 : vector<8x45xf32>
    %344 = vector.broadcast %340 : f32 to vector<8x45xf32>
    %345 = arith.mulf %4, %344 : vector<8x45xf32>
    %346 = arith.addf %333, %345 : vector<8x45xf32>
    %347 = vector.broadcast %340 : f32 to vector<8x45xf32>
    %348 = arith.mulf %8, %347 : vector<8x45xf32>
    %349 = arith.addf %336, %348 : vector<8x45xf32>
    %350 = vector.broadcast %340 : f32 to vector<8x45xf32>
    %351 = arith.mulf %12, %350 : vector<8x45xf32>
    %352 = arith.addf %339, %351 : vector<8x45xf32>
    %c24 = arith.constant 24 : index
    %353 = memref.load %arg1[%c24] : memref<30xf32, #tpu.memory_space<smem>>
    %354 = vector.broadcast %353 : f32 to vector<8x45xf32>
    %355 = arith.mulf %4, %354 : vector<8x45xf32>
    %356 = arith.addf %343, %355 : vector<8x45xf32>
    %357 = vector.broadcast %353 : f32 to vector<8x45xf32>
    %358 = arith.mulf %8, %357 : vector<8x45xf32>
    %359 = arith.addf %346, %358 : vector<8x45xf32>
    %360 = vector.broadcast %353 : f32 to vector<8x45xf32>
    %361 = arith.mulf %12, %360 : vector<8x45xf32>
    %362 = arith.addf %349, %361 : vector<8x45xf32>
    %363 = vector.broadcast %353 : f32 to vector<8x45xf32>
    %364 = arith.mulf %16, %363 : vector<8x45xf32>
    %365 = arith.addf %352, %364 : vector<8x45xf32>
    %c4_14 = arith.constant 4 : index
    %366 = memref.load %arg2[%c4_14] : memref<6xf32, #tpu.memory_space<smem>>
    %367 = arith.maximumf %356, %359 : vector<8x45xf32>
    %368 = vector.broadcast %366 : f32 to vector<8x45xf32>
    %369 = arith.addf %367, %368 : vector<8x45xf32>
    %cst_15 = arith.constant 0.000000e+00 : f32
    %370 = vector.broadcast %cst_15 : f32 to vector<8x45xf32>
    %371 = arith.maximumf %369, %370 : vector<8x45xf32>
    %372 = arith.maximumf %362, %365 : vector<8x45xf32>
    %373 = vector.broadcast %366 : f32 to vector<8x45xf32>
    %374 = arith.addf %372, %373 : vector<8x45xf32>
    %cst_16 = arith.constant 0.000000e+00 : f32
    %375 = vector.broadcast %cst_16 : f32 to vector<8x45xf32>
    %376 = arith.maximumf %374, %375 : vector<8x45xf32>
    %c25 = arith.constant 25 : index
    %377 = memref.load %arg1[%c25] : memref<30xf32, #tpu.memory_space<smem>>
    %378 = vector.broadcast %377 : f32 to vector<8x45xf32>
    %379 = arith.mulf %2, %378 : vector<8x45xf32>
    %380 = vector.broadcast %377 : f32 to vector<8x45xf32>
    %381 = arith.mulf %6, %380 : vector<8x45xf32>
    %382 = vector.broadcast %377 : f32 to vector<8x45xf32>
    %383 = arith.mulf %10, %382 : vector<8x45xf32>
    %384 = vector.broadcast %377 : f32 to vector<8x45xf32>
    %385 = arith.mulf %14, %384 : vector<8x45xf32>
    %c26 = arith.constant 26 : index
    %386 = memref.load %arg1[%c26] : memref<30xf32, #tpu.memory_space<smem>>
    %387 = vector.broadcast %386 : f32 to vector<8x45xf32>
    %388 = arith.mulf %6, %387 : vector<8x45xf32>
    %389 = arith.addf %379, %388 : vector<8x45xf32>
    %390 = vector.broadcast %386 : f32 to vector<8x45xf32>
    %391 = arith.mulf %10, %390 : vector<8x45xf32>
    %392 = arith.addf %381, %391 : vector<8x45xf32>
    %393 = vector.broadcast %386 : f32 to vector<8x45xf32>
    %394 = arith.mulf %14, %393 : vector<8x45xf32>
    %395 = arith.addf %383, %394 : vector<8x45xf32>
    %396 = vector.broadcast %386 : f32 to vector<8x45xf32>
    %397 = arith.mulf %4, %396 : vector<8x45xf32>
    %398 = arith.addf %385, %397 : vector<8x45xf32>
    %c27 = arith.constant 27 : index
    %399 = memref.load %arg1[%c27] : memref<30xf32, #tpu.memory_space<smem>>
    %400 = vector.broadcast %399 : f32 to vector<8x45xf32>
    %401 = arith.mulf %10, %400 : vector<8x45xf32>
    %402 = arith.addf %389, %401 : vector<8x45xf32>
    %403 = vector.broadcast %399 : f32 to vector<8x45xf32>
    %404 = arith.mulf %14, %403 : vector<8x45xf32>
    %405 = arith.addf %392, %404 : vector<8x45xf32>
    %406 = vector.broadcast %399 : f32 to vector<8x45xf32>
    %407 = arith.mulf %4, %406 : vector<8x45xf32>
    %408 = arith.addf %395, %407 : vector<8x45xf32>
    %409 = vector.broadcast %399 : f32 to vector<8x45xf32>
    %410 = arith.mulf %8, %409 : vector<8x45xf32>
    %411 = arith.addf %398, %410 : vector<8x45xf32>
    %c28 = arith.constant 28 : index
    %412 = memref.load %arg1[%c28] : memref<30xf32, #tpu.memory_space<smem>>
    %413 = vector.broadcast %412 : f32 to vector<8x45xf32>
    %414 = arith.mulf %14, %413 : vector<8x45xf32>
    %415 = arith.addf %402, %414 : vector<8x45xf32>
    %416 = vector.broadcast %412 : f32 to vector<8x45xf32>
    %417 = arith.mulf %4, %416 : vector<8x45xf32>
    %418 = arith.addf %405, %417 : vector<8x45xf32>
    %419 = vector.broadcast %412 : f32 to vector<8x45xf32>
    %420 = arith.mulf %8, %419 : vector<8x45xf32>
    %421 = arith.addf %408, %420 : vector<8x45xf32>
    %422 = vector.broadcast %412 : f32 to vector<8x45xf32>
    %423 = arith.mulf %12, %422 : vector<8x45xf32>
    %424 = arith.addf %411, %423 : vector<8x45xf32>
    %c29 = arith.constant 29 : index
    %425 = memref.load %arg1[%c29] : memref<30xf32, #tpu.memory_space<smem>>
    %426 = vector.broadcast %425 : f32 to vector<8x45xf32>
    %427 = arith.mulf %4, %426 : vector<8x45xf32>
    %428 = arith.addf %415, %427 : vector<8x45xf32>
    %429 = vector.broadcast %425 : f32 to vector<8x45xf32>
    %430 = arith.mulf %8, %429 : vector<8x45xf32>
    %431 = arith.addf %418, %430 : vector<8x45xf32>
    %432 = vector.broadcast %425 : f32 to vector<8x45xf32>
    %433 = arith.mulf %12, %432 : vector<8x45xf32>
    %434 = arith.addf %421, %433 : vector<8x45xf32>
    %435 = vector.broadcast %425 : f32 to vector<8x45xf32>
    %436 = arith.mulf %16, %435 : vector<8x45xf32>
    %437 = arith.addf %424, %436 : vector<8x45xf32>
    %c5_17 = arith.constant 5 : index
    %438 = memref.load %arg2[%c5_17] : memref<6xf32, #tpu.memory_space<smem>>
    %439 = arith.maximumf %428, %431 : vector<8x45xf32>
    %440 = vector.broadcast %438 : f32 to vector<8x45xf32>
    %441 = arith.addf %439, %440 : vector<8x45xf32>
    %cst_18 = arith.constant 0.000000e+00 : f32
    %442 = vector.broadcast %cst_18 : f32 to vector<8x45xf32>
    %443 = arith.maximumf %441, %442 : vector<8x45xf32>
    %444 = arith.maximumf %434, %437 : vector<8x45xf32>
    %445 = vector.broadcast %438 : f32 to vector<8x45xf32>
    %446 = arith.addf %444, %445 : vector<8x45xf32>
    %cst_19 = arith.constant 0.000000e+00 : f32
    %447 = vector.broadcast %cst_19 : f32 to vector<8x45xf32>
    %448 = arith.maximumf %446, %447 : vector<8x45xf32>
    %cst_20 = arith.constant 0.000000e+00 : f32
    %449 = vector.broadcast %cst_20 : f32 to vector<8x1xf32>
    %cst_21 = arith.constant 0.000000e+00 : f32
    %450 = vector.broadcast %cst_21 : f32 to vector<8x2xf32>
    %451 = tpu.concatenate %450, %88, %449 in 1 : vector<8x2xf32>, vector<8x45xf32>, vector<8x1xf32> -> vector<8x48xf32>
    %452 = tpu.concatenate %449, %83, %450 in 1 : vector<8x1xf32>, vector<8x45xf32>, vector<8x2xf32> -> vector<8x48xf32>
    %453 = vector.extract_strided_slice %451 {offsets = [0, 0], sizes = [8, 46], strides = [1, 1]} : vector<8x48xf32> to vector<8x46xf32>
    %454 = vector.extract_strided_slice %451 {offsets = [0, 1], sizes = [8, 46], strides = [1, 1]} : vector<8x48xf32> to vector<8x46xf32>
    %455 = vector.extract_strided_slice %451 {offsets = [0, 2], sizes = [8, 46], strides = [1, 1]} : vector<8x48xf32> to vector<8x46xf32>
    %456 = vector.extract_strided_slice %452 {offsets = [0, 0], sizes = [8, 46], strides = [1, 1]} : vector<8x48xf32> to vector<8x46xf32>
    %457 = vector.extract_strided_slice %452 {offsets = [0, 1], sizes = [8, 46], strides = [1, 1]} : vector<8x48xf32> to vector<8x46xf32>
    %458 = vector.extract_strided_slice %452 {offsets = [0, 2], sizes = [8, 46], strides = [1, 1]} : vector<8x48xf32> to vector<8x46xf32>
    %459 = tpu.concatenate %453, %456 in 1 : vector<8x46xf32>, vector<8x46xf32> -> vector<8x92xf32>
    %460 = tpu.concatenate %456, %454 in 1 : vector<8x46xf32>, vector<8x46xf32> -> vector<8x92xf32>
    %461 = tpu.concatenate %454, %457 in 1 : vector<8x46xf32>, vector<8x46xf32> -> vector<8x92xf32>
    %462 = tpu.concatenate %457, %455 in 1 : vector<8x46xf32>, vector<8x46xf32> -> vector<8x92xf32>
    %463 = tpu.concatenate %455, %458 in 1 : vector<8x46xf32>, vector<8x46xf32> -> vector<8x92xf32>
    %464 = tpu.concatenate %450, %160, %449 in 1 : vector<8x2xf32>, vector<8x45xf32>, vector<8x1xf32> -> vector<8x48xf32>
    %465 = tpu.concatenate %449, %155, %450 in 1 : vector<8x1xf32>, vector<8x45xf32>, vector<8x2xf32> -> vector<8x48xf32>
    %466 = vector.extract_strided_slice %464 {offsets = [0, 0], sizes = [8, 46], strides = [1, 1]} : vector<8x48xf32> to vector<8x46xf32>
    %467 = vector.extract_strided_slice %464 {offsets = [0, 1], sizes = [8, 46], strides = [1, 1]} : vector<8x48xf32> to vector<8x46xf32>
    %468 = vector.extract_strided_slice %464 {offsets = [0, 2], sizes = [8, 46], strides = [1, 1]} : vector<8x48xf32> to vector<8x46xf32>
    %469 = vector.extract_strided_slice %465 {offsets = [0, 0], sizes = [8, 46], strides = [1, 1]} : vector<8x48xf32> to vector<8x46xf32>
    %470 = vector.extract_strided_slice %465 {offsets = [0, 1], sizes = [8, 46], strides = [1, 1]} : vector<8x48xf32> to vector<8x46xf32>
    %471 = vector.extract_strided_slice %465 {offsets = [0, 2], sizes = [8, 46], strides = [1, 1]} : vector<8x48xf32> to vector<8x46xf32>
    %472 = tpu.concatenate %466, %469 in 1 : vector<8x46xf32>, vector<8x46xf32> -> vector<8x92xf32>
    %473 = tpu.concatenate %469, %467 in 1 : vector<8x46xf32>, vector<8x46xf32> -> vector<8x92xf32>
    %474 = tpu.concatenate %467, %470 in 1 : vector<8x46xf32>, vector<8x46xf32> -> vector<8x92xf32>
    %475 = tpu.concatenate %470, %468 in 1 : vector<8x46xf32>, vector<8x46xf32> -> vector<8x92xf32>
    %476 = tpu.concatenate %468, %471 in 1 : vector<8x46xf32>, vector<8x46xf32> -> vector<8x92xf32>
    %477 = tpu.concatenate %450, %232, %449 in 1 : vector<8x2xf32>, vector<8x45xf32>, vector<8x1xf32> -> vector<8x48xf32>
    %478 = tpu.concatenate %449, %227, %450 in 1 : vector<8x1xf32>, vector<8x45xf32>, vector<8x2xf32> -> vector<8x48xf32>
    %479 = vector.extract_strided_slice %477 {offsets = [0, 0], sizes = [8, 46], strides = [1, 1]} : vector<8x48xf32> to vector<8x46xf32>
    %480 = vector.extract_strided_slice %477 {offsets = [0, 1], sizes = [8, 46], strides = [1, 1]} : vector<8x48xf32> to vector<8x46xf32>
    %481 = vector.extract_strided_slice %477 {offsets = [0, 2], sizes = [8, 46], strides = [1, 1]} : vector<8x48xf32> to vector<8x46xf32>
    %482 = vector.extract_strided_slice %478 {offsets = [0, 0], sizes = [8, 46], strides = [1, 1]} : vector<8x48xf32> to vector<8x46xf32>
    %483 = vector.extract_strided_slice %478 {offsets = [0, 1], sizes = [8, 46], strides = [1, 1]} : vector<8x48xf32> to vector<8x46xf32>
    %484 = vector.extract_strided_slice %478 {offsets = [0, 2], sizes = [8, 46], strides = [1, 1]} : vector<8x48xf32> to vector<8x46xf32>
    %485 = tpu.concatenate %479, %482 in 1 : vector<8x46xf32>, vector<8x46xf32> -> vector<8x92xf32>
    %486 = tpu.concatenate %482, %480 in 1 : vector<8x46xf32>, vector<8x46xf32> -> vector<8x92xf32>
    %487 = tpu.concatenate %480, %483 in 1 : vector<8x46xf32>, vector<8x46xf32> -> vector<8x92xf32>
    %488 = tpu.concatenate %483, %481 in 1 : vector<8x46xf32>, vector<8x46xf32> -> vector<8x92xf32>
    %489 = tpu.concatenate %481, %484 in 1 : vector<8x46xf32>, vector<8x46xf32> -> vector<8x92xf32>
    %490 = tpu.concatenate %450, %304, %449 in 1 : vector<8x2xf32>, vector<8x45xf32>, vector<8x1xf32> -> vector<8x48xf32>
    %491 = tpu.concatenate %449, %299, %450 in 1 : vector<8x1xf32>, vector<8x45xf32>, vector<8x2xf32> -> vector<8x48xf32>
    %492 = vector.extract_strided_slice %490 {offsets = [0, 0], sizes = [8, 46], strides = [1, 1]} : vector<8x48xf32> to vector<8x46xf32>
    %493 = vector.extract_strided_slice %490 {offsets = [0, 1], sizes = [8, 46], strides = [1, 1]} : vector<8x48xf32> to vector<8x46xf32>
    %494 = vector.extract_strided_slice %490 {offsets = [0, 2], sizes = [8, 46], strides = [1, 1]} : vector<8x48xf32> to vector<8x46xf32>
    %495 = vector.extract_strided_slice %491 {offsets = [0, 0], sizes = [8, 46], strides = [1, 1]} : vector<8x48xf32> to vector<8x46xf32>
    %496 = vector.extract_strided_slice %491 {offsets = [0, 1], sizes = [8, 46], strides = [1, 1]} : vector<8x48xf32> to vector<8x46xf32>
    %497 = vector.extract_strided_slice %491 {offsets = [0, 2], sizes = [8, 46], strides = [1, 1]} : vector<8x48xf32> to vector<8x46xf32>
    %498 = tpu.concatenate %492, %495 in 1 : vector<8x46xf32>, vector<8x46xf32> -> vector<8x92xf32>
    %499 = tpu.concatenate %495, %493 in 1 : vector<8x46xf32>, vector<8x46xf32> -> vector<8x92xf32>
    %500 = tpu.concatenate %493, %496 in 1 : vector<8x46xf32>, vector<8x46xf32> -> vector<8x92xf32>
    %501 = tpu.concatenate %496, %494 in 1 : vector<8x46xf32>, vector<8x46xf32> -> vector<8x92xf32>
    %502 = tpu.concatenate %494, %497 in 1 : vector<8x46xf32>, vector<8x46xf32> -> vector<8x92xf32>
    %503 = tpu.concatenate %450, %376, %449 in 1 : vector<8x2xf32>, vector<8x45xf32>, vector<8x1xf32> -> vector<8x48xf32>
    %504 = tpu.concatenate %449, %371, %450 in 1 : vector<8x1xf32>, vector<8x45xf32>, vector<8x2xf32> -> vector<8x48xf32>
    %505 = vector.extract_strided_slice %503 {offsets = [0, 0], sizes = [8, 46], strides = [1, 1]} : vector<8x48xf32> to vector<8x46xf32>
    %506 = vector.extract_strided_slice %503 {offsets = [0, 1], sizes = [8, 46], strides = [1, 1]} : vector<8x48xf32> to vector<8x46xf32>
    %507 = vector.extract_strided_slice %503 {offsets = [0, 2], sizes = [8, 46], strides = [1, 1]} : vector<8x48xf32> to vector<8x46xf32>
    %508 = vector.extract_strided_slice %504 {offsets = [0, 0], sizes = [8, 46], strides = [1, 1]} : vector<8x48xf32> to vector<8x46xf32>
    %509 = vector.extract_strided_slice %504 {offsets = [0, 1], sizes = [8, 46], strides = [1, 1]} : vector<8x48xf32> to vector<8x46xf32>
    %510 = vector.extract_strided_slice %504 {offsets = [0, 2], sizes = [8, 46], strides = [1, 1]} : vector<8x48xf32> to vector<8x46xf32>
    %511 = tpu.concatenate %505, %508 in 1 : vector<8x46xf32>, vector<8x46xf32> -> vector<8x92xf32>
    %512 = tpu.concatenate %508, %506 in 1 : vector<8x46xf32>, vector<8x46xf32> -> vector<8x92xf32>
    %513 = tpu.concatenate %506, %509 in 1 : vector<8x46xf32>, vector<8x46xf32> -> vector<8x92xf32>
    %514 = tpu.concatenate %509, %507 in 1 : vector<8x46xf32>, vector<8x46xf32> -> vector<8x92xf32>
    %515 = tpu.concatenate %507, %510 in 1 : vector<8x46xf32>, vector<8x46xf32> -> vector<8x92xf32>
    %516 = tpu.concatenate %450, %448, %449 in 1 : vector<8x2xf32>, vector<8x45xf32>, vector<8x1xf32> -> vector<8x48xf32>
    %517 = tpu.concatenate %449, %443, %450 in 1 : vector<8x1xf32>, vector<8x45xf32>, vector<8x2xf32> -> vector<8x48xf32>
    %518 = vector.extract_strided_slice %516 {offsets = [0, 0], sizes = [8, 46], strides = [1, 1]} : vector<8x48xf32> to vector<8x46xf32>
    %519 = vector.extract_strided_slice %516 {offsets = [0, 1], sizes = [8, 46], strides = [1, 1]} : vector<8x48xf32> to vector<8x46xf32>
    %520 = vector.extract_strided_slice %516 {offsets = [0, 2], sizes = [8, 46], strides = [1, 1]} : vector<8x48xf32> to vector<8x46xf32>
    %521 = vector.extract_strided_slice %517 {offsets = [0, 0], sizes = [8, 46], strides = [1, 1]} : vector<8x48xf32> to vector<8x46xf32>
    %522 = vector.extract_strided_slice %517 {offsets = [0, 1], sizes = [8, 46], strides = [1, 1]} : vector<8x48xf32> to vector<8x46xf32>
    %523 = vector.extract_strided_slice %517 {offsets = [0, 2], sizes = [8, 46], strides = [1, 1]} : vector<8x48xf32> to vector<8x46xf32>
    %524 = tpu.concatenate %518, %521 in 1 : vector<8x46xf32>, vector<8x46xf32> -> vector<8x92xf32>
    %525 = tpu.concatenate %521, %519 in 1 : vector<8x46xf32>, vector<8x46xf32> -> vector<8x92xf32>
    %526 = tpu.concatenate %519, %522 in 1 : vector<8x46xf32>, vector<8x46xf32> -> vector<8x92xf32>
    %527 = tpu.concatenate %522, %520 in 1 : vector<8x46xf32>, vector<8x46xf32> -> vector<8x92xf32>
    %528 = tpu.concatenate %520, %523 in 1 : vector<8x46xf32>, vector<8x46xf32> -> vector<8x92xf32>
    %c0_22 = arith.constant 0 : index
    %529 = memref.load %arg3[%c0_22] : memref<480xf32, #tpu.memory_space<smem>>
    %530 = vector.broadcast %529 : f32 to vector<8x92xf32>
    %531 = arith.mulf %459, %530 : vector<8x92xf32>
    %c1_23 = arith.constant 1 : index
    %532 = memref.load %arg3[%c1_23] : memref<480xf32, #tpu.memory_space<smem>>
    %533 = vector.broadcast %532 : f32 to vector<8x92xf32>
    %534 = arith.mulf %460, %533 : vector<8x92xf32>
    %535 = arith.addf %531, %534 : vector<8x92xf32>
    %c2_24 = arith.constant 2 : index
    %536 = memref.load %arg3[%c2_24] : memref<480xf32, #tpu.memory_space<smem>>
    %537 = vector.broadcast %536 : f32 to vector<8x92xf32>
    %538 = arith.mulf %461, %537 : vector<8x92xf32>
    %539 = arith.addf %535, %538 : vector<8x92xf32>
    %c3_25 = arith.constant 3 : index
    %540 = memref.load %arg3[%c3_25] : memref<480xf32, #tpu.memory_space<smem>>
    %541 = vector.broadcast %540 : f32 to vector<8x92xf32>
    %542 = arith.mulf %462, %541 : vector<8x92xf32>
    %543 = arith.addf %539, %542 : vector<8x92xf32>
    %c4_26 = arith.constant 4 : index
    %544 = memref.load %arg3[%c4_26] : memref<480xf32, #tpu.memory_space<smem>>
    %545 = vector.broadcast %544 : f32 to vector<8x92xf32>
    %546 = arith.mulf %463, %545 : vector<8x92xf32>
    %547 = arith.addf %543, %546 : vector<8x92xf32>
    %c5_27 = arith.constant 5 : index
    %548 = memref.load %arg3[%c5_27] : memref<480xf32, #tpu.memory_space<smem>>
    %549 = vector.broadcast %548 : f32 to vector<8x92xf32>
    %550 = arith.mulf %472, %549 : vector<8x92xf32>
    %551 = arith.addf %547, %550 : vector<8x92xf32>
    %c6_28 = arith.constant 6 : index
    %552 = memref.load %arg3[%c6_28] : memref<480xf32, #tpu.memory_space<smem>>
    %553 = vector.broadcast %552 : f32 to vector<8x92xf32>
    %554 = arith.mulf %473, %553 : vector<8x92xf32>
    %555 = arith.addf %551, %554 : vector<8x92xf32>
    %c7_29 = arith.constant 7 : index
    %556 = memref.load %arg3[%c7_29] : memref<480xf32, #tpu.memory_space<smem>>
    %557 = vector.broadcast %556 : f32 to vector<8x92xf32>
    %558 = arith.mulf %474, %557 : vector<8x92xf32>
    %559 = arith.addf %555, %558 : vector<8x92xf32>
    %c8_30 = arith.constant 8 : index
    %560 = memref.load %arg3[%c8_30] : memref<480xf32, #tpu.memory_space<smem>>
    %561 = vector.broadcast %560 : f32 to vector<8x92xf32>
    %562 = arith.mulf %475, %561 : vector<8x92xf32>
    %563 = arith.addf %559, %562 : vector<8x92xf32>
    %c9_31 = arith.constant 9 : index
    %564 = memref.load %arg3[%c9_31] : memref<480xf32, #tpu.memory_space<smem>>
    %565 = vector.broadcast %564 : f32 to vector<8x92xf32>
    %566 = arith.mulf %476, %565 : vector<8x92xf32>
    %567 = arith.addf %563, %566 : vector<8x92xf32>
    %c10_32 = arith.constant 10 : index
    %568 = memref.load %arg3[%c10_32] : memref<480xf32, #tpu.memory_space<smem>>
    %569 = vector.broadcast %568 : f32 to vector<8x92xf32>
    %570 = arith.mulf %485, %569 : vector<8x92xf32>
    %571 = arith.addf %567, %570 : vector<8x92xf32>
    %c11_33 = arith.constant 11 : index
    %572 = memref.load %arg3[%c11_33] : memref<480xf32, #tpu.memory_space<smem>>
    %573 = vector.broadcast %572 : f32 to vector<8x92xf32>
    %574 = arith.mulf %486, %573 : vector<8x92xf32>
    %575 = arith.addf %571, %574 : vector<8x92xf32>
    %c12_34 = arith.constant 12 : index
    %576 = memref.load %arg3[%c12_34] : memref<480xf32, #tpu.memory_space<smem>>
    %577 = vector.broadcast %576 : f32 to vector<8x92xf32>
    %578 = arith.mulf %487, %577 : vector<8x92xf32>
    %579 = arith.addf %575, %578 : vector<8x92xf32>
    %c13_35 = arith.constant 13 : index
    %580 = memref.load %arg3[%c13_35] : memref<480xf32, #tpu.memory_space<smem>>
    %581 = vector.broadcast %580 : f32 to vector<8x92xf32>
    %582 = arith.mulf %488, %581 : vector<8x92xf32>
    %583 = arith.addf %579, %582 : vector<8x92xf32>
    %c14_36 = arith.constant 14 : index
    %584 = memref.load %arg3[%c14_36] : memref<480xf32, #tpu.memory_space<smem>>
    %585 = vector.broadcast %584 : f32 to vector<8x92xf32>
    %586 = arith.mulf %489, %585 : vector<8x92xf32>
    %587 = arith.addf %583, %586 : vector<8x92xf32>
    %c15_37 = arith.constant 15 : index
    %588 = memref.load %arg3[%c15_37] : memref<480xf32, #tpu.memory_space<smem>>
    %589 = vector.broadcast %588 : f32 to vector<8x92xf32>
    %590 = arith.mulf %498, %589 : vector<8x92xf32>
    %591 = arith.addf %587, %590 : vector<8x92xf32>
    %c16_38 = arith.constant 16 : index
    %592 = memref.load %arg3[%c16_38] : memref<480xf32, #tpu.memory_space<smem>>
    %593 = vector.broadcast %592 : f32 to vector<8x92xf32>
    %594 = arith.mulf %499, %593 : vector<8x92xf32>
    %595 = arith.addf %591, %594 : vector<8x92xf32>
    %c17_39 = arith.constant 17 : index
    %596 = memref.load %arg3[%c17_39] : memref<480xf32, #tpu.memory_space<smem>>
    %597 = vector.broadcast %596 : f32 to vector<8x92xf32>
    %598 = arith.mulf %500, %597 : vector<8x92xf32>
    %599 = arith.addf %595, %598 : vector<8x92xf32>
    %c18_40 = arith.constant 18 : index
    %600 = memref.load %arg3[%c18_40] : memref<480xf32, #tpu.memory_space<smem>>
    %601 = vector.broadcast %600 : f32 to vector<8x92xf32>
    %602 = arith.mulf %501, %601 : vector<8x92xf32>
    %603 = arith.addf %599, %602 : vector<8x92xf32>
    %c19_41 = arith.constant 19 : index
    %604 = memref.load %arg3[%c19_41] : memref<480xf32, #tpu.memory_space<smem>>
    %605 = vector.broadcast %604 : f32 to vector<8x92xf32>
    %606 = arith.mulf %502, %605 : vector<8x92xf32>
    %607 = arith.addf %603, %606 : vector<8x92xf32>
    %c20_42 = arith.constant 20 : index
    %608 = memref.load %arg3[%c20_42] : memref<480xf32, #tpu.memory_space<smem>>
    %609 = vector.broadcast %608 : f32 to vector<8x92xf32>
    %610 = arith.mulf %511, %609 : vector<8x92xf32>
    %611 = arith.addf %607, %610 : vector<8x92xf32>
    %c21_43 = arith.constant 21 : index
    %612 = memref.load %arg3[%c21_43] : memref<480xf32, #tpu.memory_space<smem>>
    %613 = vector.broadcast %612 : f32 to vector<8x92xf32>
    %614 = arith.mulf %512, %613 : vector<8x92xf32>
    %615 = arith.addf %611, %614 : vector<8x92xf32>
    %c22_44 = arith.constant 22 : index
    %616 = memref.load %arg3[%c22_44] : memref<480xf32, #tpu.memory_space<smem>>
    %617 = vector.broadcast %616 : f32 to vector<8x92xf32>
    %618 = arith.mulf %513, %617 : vector<8x92xf32>
    %619 = arith.addf %615, %618 : vector<8x92xf32>
    %c23_45 = arith.constant 23 : index
    %620 = memref.load %arg3[%c23_45] : memref<480xf32, #tpu.memory_space<smem>>
    %621 = vector.broadcast %620 : f32 to vector<8x92xf32>
    %622 = arith.mulf %514, %621 : vector<8x92xf32>
    %623 = arith.addf %619, %622 : vector<8x92xf32>
    %c24_46 = arith.constant 24 : index
    %624 = memref.load %arg3[%c24_46] : memref<480xf32, #tpu.memory_space<smem>>
    %625 = vector.broadcast %624 : f32 to vector<8x92xf32>
    %626 = arith.mulf %515, %625 : vector<8x92xf32>
    %627 = arith.addf %623, %626 : vector<8x92xf32>
    %c25_47 = arith.constant 25 : index
    %628 = memref.load %arg3[%c25_47] : memref<480xf32, #tpu.memory_space<smem>>
    %629 = vector.broadcast %628 : f32 to vector<8x92xf32>
    %630 = arith.mulf %524, %629 : vector<8x92xf32>
    %631 = arith.addf %627, %630 : vector<8x92xf32>
    %c26_48 = arith.constant 26 : index
    %632 = memref.load %arg3[%c26_48] : memref<480xf32, #tpu.memory_space<smem>>
    %633 = vector.broadcast %632 : f32 to vector<8x92xf32>
    %634 = arith.mulf %525, %633 : vector<8x92xf32>
    %635 = arith.addf %631, %634 : vector<8x92xf32>
    %c27_49 = arith.constant 27 : index
    %636 = memref.load %arg3[%c27_49] : memref<480xf32, #tpu.memory_space<smem>>
    %637 = vector.broadcast %636 : f32 to vector<8x92xf32>
    %638 = arith.mulf %526, %637 : vector<8x92xf32>
    %639 = arith.addf %635, %638 : vector<8x92xf32>
    %c28_50 = arith.constant 28 : index
    %640 = memref.load %arg3[%c28_50] : memref<480xf32, #tpu.memory_space<smem>>
    %641 = vector.broadcast %640 : f32 to vector<8x92xf32>
    %642 = arith.mulf %527, %641 : vector<8x92xf32>
    %643 = arith.addf %639, %642 : vector<8x92xf32>
    %c29_51 = arith.constant 29 : index
    %644 = memref.load %arg3[%c29_51] : memref<480xf32, #tpu.memory_space<smem>>
    %645 = vector.broadcast %644 : f32 to vector<8x92xf32>
    %646 = arith.mulf %528, %645 : vector<8x92xf32>
    %647 = arith.addf %643, %646 : vector<8x92xf32>
    %648 = vector.extract_strided_slice %647 {offsets = [0, 0], sizes = [8, 46], strides = [1, 1]} : vector<8x92xf32> to vector<8x46xf32>
    %649 = vector.extract_strided_slice %647 {offsets = [0, 46], sizes = [8, 46], strides = [1, 1]} : vector<8x92xf32> to vector<8x46xf32>
    %650 = arith.maximumf %648, %649 : vector<8x46xf32>
    %c0_52 = arith.constant 0 : index
    %651 = memref.load %arg4[%c0_52] : memref<16xf32, #tpu.memory_space<smem>>
    %652 = vector.broadcast %651 : f32 to vector<8x46xf32>
    %653 = arith.addf %650, %652 : vector<8x46xf32>
    %cst_53 = arith.constant 0.000000e+00 : f32
    %654 = vector.broadcast %cst_53 : f32 to vector<8x46xf32>
    %655 = arith.maximumf %653, %654 : vector<8x46xf32>
    %c0_54 = arith.constant 0 : index
    %c0_55 = arith.constant 0 : index
    %c0_56 = arith.constant 0 : index
    %656 = vector.load %arg6[%c0_54, %c0_55, %c0_56] : memref<16x46x128xf32, #tpu.memory_space<vmem>>, vector<1x46x128xf32>
    %657 = vector.shape_cast %656 : vector<1x46x128xf32> to vector<46x128xf32>
    %cst_57 = arith.constant dense<0.000000e+00> : vector<8x128xf32>
    %658 = tpu.matmul %655, %657, %cst_57 {dimension_numbers = #tpu.dot_dimension_numbers<[1], [0], [0], [1], [0, 0, 1, 1], [], []>} : vector<8x46xf32>, vector<46x128xf32>, vector<8x128xf32> -> vector<8x128xf32>
    %c30 = arith.constant 30 : index
    %659 = memref.load %arg3[%c30] : memref<480xf32, #tpu.memory_space<smem>>
    %660 = vector.broadcast %659 : f32 to vector<8x92xf32>
    %661 = arith.mulf %459, %660 : vector<8x92xf32>
    %c31 = arith.constant 31 : index
    %662 = memref.load %arg3[%c31] : memref<480xf32, #tpu.memory_space<smem>>
    %663 = vector.broadcast %662 : f32 to vector<8x92xf32>
    %664 = arith.mulf %460, %663 : vector<8x92xf32>
    %665 = arith.addf %661, %664 : vector<8x92xf32>
    %c32 = arith.constant 32 : index
    %666 = memref.load %arg3[%c32] : memref<480xf32, #tpu.memory_space<smem>>
    %667 = vector.broadcast %666 : f32 to vector<8x92xf32>
    %668 = arith.mulf %461, %667 : vector<8x92xf32>
    %669 = arith.addf %665, %668 : vector<8x92xf32>
    %c33 = arith.constant 33 : index
    %670 = memref.load %arg3[%c33] : memref<480xf32, #tpu.memory_space<smem>>
    %671 = vector.broadcast %670 : f32 to vector<8x92xf32>
    %672 = arith.mulf %462, %671 : vector<8x92xf32>
    %673 = arith.addf %669, %672 : vector<8x92xf32>
    %c34 = arith.constant 34 : index
    %674 = memref.load %arg3[%c34] : memref<480xf32, #tpu.memory_space<smem>>
    %675 = vector.broadcast %674 : f32 to vector<8x92xf32>
    %676 = arith.mulf %463, %675 : vector<8x92xf32>
    %677 = arith.addf %673, %676 : vector<8x92xf32>
    %c35 = arith.constant 35 : index
    %678 = memref.load %arg3[%c35] : memref<480xf32, #tpu.memory_space<smem>>
    %679 = vector.broadcast %678 : f32 to vector<8x92xf32>
    %680 = arith.mulf %472, %679 : vector<8x92xf32>
    %681 = arith.addf %677, %680 : vector<8x92xf32>
    %c36 = arith.constant 36 : index
    %682 = memref.load %arg3[%c36] : memref<480xf32, #tpu.memory_space<smem>>
    %683 = vector.broadcast %682 : f32 to vector<8x92xf32>
    %684 = arith.mulf %473, %683 : vector<8x92xf32>
    %685 = arith.addf %681, %684 : vector<8x92xf32>
    %c37 = arith.constant 37 : index
    %686 = memref.load %arg3[%c37] : memref<480xf32, #tpu.memory_space<smem>>
    %687 = vector.broadcast %686 : f32 to vector<8x92xf32>
    %688 = arith.mulf %474, %687 : vector<8x92xf32>
    %689 = arith.addf %685, %688 : vector<8x92xf32>
    %c38 = arith.constant 38 : index
    %690 = memref.load %arg3[%c38] : memref<480xf32, #tpu.memory_space<smem>>
    %691 = vector.broadcast %690 : f32 to vector<8x92xf32>
    %692 = arith.mulf %475, %691 : vector<8x92xf32>
    %693 = arith.addf %689, %692 : vector<8x92xf32>
    %c39 = arith.constant 39 : index
    %694 = memref.load %arg3[%c39] : memref<480xf32, #tpu.memory_space<smem>>
    %695 = vector.broadcast %694 : f32 to vector<8x92xf32>
    %696 = arith.mulf %476, %695 : vector<8x92xf32>
    %697 = arith.addf %693, %696 : vector<8x92xf32>
    %c40 = arith.constant 40 : index
    %698 = memref.load %arg3[%c40] : memref<480xf32, #tpu.memory_space<smem>>
    %699 = vector.broadcast %698 : f32 to vector<8x92xf32>
    %700 = arith.mulf %485, %699 : vector<8x92xf32>
    %701 = arith.addf %697, %700 : vector<8x92xf32>
    %c41 = arith.constant 41 : index
    %702 = memref.load %arg3[%c41] : memref<480xf32, #tpu.memory_space<smem>>
    %703 = vector.broadcast %702 : f32 to vector<8x92xf32>
    %704 = arith.mulf %486, %703 : vector<8x92xf32>
    %705 = arith.addf %701, %704 : vector<8x92xf32>
    %c42 = arith.constant 42 : index
    %706 = memref.load %arg3[%c42] : memref<480xf32, #tpu.memory_space<smem>>
    %707 = vector.broadcast %706 : f32 to vector<8x92xf32>
    %708 = arith.mulf %487, %707 : vector<8x92xf32>
    %709 = arith.addf %705, %708 : vector<8x92xf32>
    %c43 = arith.constant 43 : index
    %710 = memref.load %arg3[%c43] : memref<480xf32, #tpu.memory_space<smem>>
    %711 = vector.broadcast %710 : f32 to vector<8x92xf32>
    %712 = arith.mulf %488, %711 : vector<8x92xf32>
    %713 = arith.addf %709, %712 : vector<8x92xf32>
    %c44 = arith.constant 44 : index
    %714 = memref.load %arg3[%c44] : memref<480xf32, #tpu.memory_space<smem>>
    %715 = vector.broadcast %714 : f32 to vector<8x92xf32>
    %716 = arith.mulf %489, %715 : vector<8x92xf32>
    %717 = arith.addf %713, %716 : vector<8x92xf32>
    %c45 = arith.constant 45 : index
    %718 = memref.load %arg3[%c45] : memref<480xf32, #tpu.memory_space<smem>>
    %719 = vector.broadcast %718 : f32 to vector<8x92xf32>
    %720 = arith.mulf %498, %719 : vector<8x92xf32>
    %721 = arith.addf %717, %720 : vector<8x92xf32>
    %c46 = arith.constant 46 : index
    %722 = memref.load %arg3[%c46] : memref<480xf32, #tpu.memory_space<smem>>
    %723 = vector.broadcast %722 : f32 to vector<8x92xf32>
    %724 = arith.mulf %499, %723 : vector<8x92xf32>
    %725 = arith.addf %721, %724 : vector<8x92xf32>
    %c47 = arith.constant 47 : index
    %726 = memref.load %arg3[%c47] : memref<480xf32, #tpu.memory_space<smem>>
    %727 = vector.broadcast %726 : f32 to vector<8x92xf32>
    %728 = arith.mulf %500, %727 : vector<8x92xf32>
    %729 = arith.addf %725, %728 : vector<8x92xf32>
    %c48 = arith.constant 48 : index
    %730 = memref.load %arg3[%c48] : memref<480xf32, #tpu.memory_space<smem>>
    %731 = vector.broadcast %730 : f32 to vector<8x92xf32>
    %732 = arith.mulf %501, %731 : vector<8x92xf32>
    %733 = arith.addf %729, %732 : vector<8x92xf32>
    %c49 = arith.constant 49 : index
    %734 = memref.load %arg3[%c49] : memref<480xf32, #tpu.memory_space<smem>>
    %735 = vector.broadcast %734 : f32 to vector<8x92xf32>
    %736 = arith.mulf %502, %735 : vector<8x92xf32>
    %737 = arith.addf %733, %736 : vector<8x92xf32>
    %c50 = arith.constant 50 : index
    %738 = memref.load %arg3[%c50] : memref<480xf32, #tpu.memory_space<smem>>
    %739 = vector.broadcast %738 : f32 to vector<8x92xf32>
    %740 = arith.mulf %511, %739 : vector<8x92xf32>
    %741 = arith.addf %737, %740 : vector<8x92xf32>
    %c51 = arith.constant 51 : index
    %742 = memref.load %arg3[%c51] : memref<480xf32, #tpu.memory_space<smem>>
    %743 = vector.broadcast %742 : f32 to vector<8x92xf32>
    %744 = arith.mulf %512, %743 : vector<8x92xf32>
    %745 = arith.addf %741, %744 : vector<8x92xf32>
    %c52 = arith.constant 52 : index
    %746 = memref.load %arg3[%c52] : memref<480xf32, #tpu.memory_space<smem>>
    %747 = vector.broadcast %746 : f32 to vector<8x92xf32>
    %748 = arith.mulf %513, %747 : vector<8x92xf32>
    %749 = arith.addf %745, %748 : vector<8x92xf32>
    %c53 = arith.constant 53 : index
    %750 = memref.load %arg3[%c53] : memref<480xf32, #tpu.memory_space<smem>>
    %751 = vector.broadcast %750 : f32 to vector<8x92xf32>
    %752 = arith.mulf %514, %751 : vector<8x92xf32>
    %753 = arith.addf %749, %752 : vector<8x92xf32>
    %c54 = arith.constant 54 : index
    %754 = memref.load %arg3[%c54] : memref<480xf32, #tpu.memory_space<smem>>
    %755 = vector.broadcast %754 : f32 to vector<8x92xf32>
    %756 = arith.mulf %515, %755 : vector<8x92xf32>
    %757 = arith.addf %753, %756 : vector<8x92xf32>
    %c55 = arith.constant 55 : index
    %758 = memref.load %arg3[%c55] : memref<480xf32, #tpu.memory_space<smem>>
    %759 = vector.broadcast %758 : f32 to vector<8x92xf32>
    %760 = arith.mulf %524, %759 : vector<8x92xf32>
    %761 = arith.addf %757, %760 : vector<8x92xf32>
    %c56 = arith.constant 56 : index
    %762 = memref.load %arg3[%c56] : memref<480xf32, #tpu.memory_space<smem>>
    %763 = vector.broadcast %762 : f32 to vector<8x92xf32>
    %764 = arith.mulf %525, %763 : vector<8x92xf32>
    %765 = arith.addf %761, %764 : vector<8x92xf32>
    %c57 = arith.constant 57 : index
    %766 = memref.load %arg3[%c57] : memref<480xf32, #tpu.memory_space<smem>>
    %767 = vector.broadcast %766 : f32 to vector<8x92xf32>
    %768 = arith.mulf %526, %767 : vector<8x92xf32>
    %769 = arith.addf %765, %768 : vector<8x92xf32>
    %c58 = arith.constant 58 : index
    %770 = memref.load %arg3[%c58] : memref<480xf32, #tpu.memory_space<smem>>
    %771 = vector.broadcast %770 : f32 to vector<8x92xf32>
    %772 = arith.mulf %527, %771 : vector<8x92xf32>
    %773 = arith.addf %769, %772 : vector<8x92xf32>
    %c59 = arith.constant 59 : index
    %774 = memref.load %arg3[%c59] : memref<480xf32, #tpu.memory_space<smem>>
    %775 = vector.broadcast %774 : f32 to vector<8x92xf32>
    %776 = arith.mulf %528, %775 : vector<8x92xf32>
    %777 = arith.addf %773, %776 : vector<8x92xf32>
    %778 = vector.extract_strided_slice %777 {offsets = [0, 0], sizes = [8, 46], strides = [1, 1]} : vector<8x92xf32> to vector<8x46xf32>
    %779 = vector.extract_strided_slice %777 {offsets = [0, 46], sizes = [8, 46], strides = [1, 1]} : vector<8x92xf32> to vector<8x46xf32>
    %780 = arith.maximumf %778, %779 : vector<8x46xf32>
    %c1_58 = arith.constant 1 : index
    %781 = memref.load %arg4[%c1_58] : memref<16xf32, #tpu.memory_space<smem>>
    %782 = vector.broadcast %781 : f32 to vector<8x46xf32>
    %783 = arith.addf %780, %782 : vector<8x46xf32>
    %cst_59 = arith.constant 0.000000e+00 : f32
    %784 = vector.broadcast %cst_59 : f32 to vector<8x46xf32>
    %785 = arith.maximumf %783, %784 : vector<8x46xf32>
    %c1_60 = arith.constant 1 : index
    %c0_61 = arith.constant 0 : index
    %c0_62 = arith.constant 0 : index
    %786 = vector.load %arg6[%c1_60, %c0_61, %c0_62] : memref<16x46x128xf32, #tpu.memory_space<vmem>>, vector<1x46x128xf32>
    %787 = vector.shape_cast %786 : vector<1x46x128xf32> to vector<46x128xf32>
    %cst_63 = arith.constant dense<0.000000e+00> : vector<8x128xf32>
    %788 = tpu.matmul %785, %787, %cst_63 {dimension_numbers = #tpu.dot_dimension_numbers<[1], [0], [0], [1], [0, 0, 1, 1], [], []>} : vector<8x46xf32>, vector<46x128xf32>, vector<8x128xf32> -> vector<8x128xf32>
    %c60 = arith.constant 60 : index
    %789 = memref.load %arg3[%c60] : memref<480xf32, #tpu.memory_space<smem>>
    %790 = vector.broadcast %789 : f32 to vector<8x92xf32>
    %791 = arith.mulf %459, %790 : vector<8x92xf32>
    %c61 = arith.constant 61 : index
    %792 = memref.load %arg3[%c61] : memref<480xf32, #tpu.memory_space<smem>>
    %793 = vector.broadcast %792 : f32 to vector<8x92xf32>
    %794 = arith.mulf %460, %793 : vector<8x92xf32>
    %795 = arith.addf %791, %794 : vector<8x92xf32>
    %c62 = arith.constant 62 : index
    %796 = memref.load %arg3[%c62] : memref<480xf32, #tpu.memory_space<smem>>
    %797 = vector.broadcast %796 : f32 to vector<8x92xf32>
    %798 = arith.mulf %461, %797 : vector<8x92xf32>
    %799 = arith.addf %795, %798 : vector<8x92xf32>
    %c63 = arith.constant 63 : index
    %800 = memref.load %arg3[%c63] : memref<480xf32, #tpu.memory_space<smem>>
    %801 = vector.broadcast %800 : f32 to vector<8x92xf32>
    %802 = arith.mulf %462, %801 : vector<8x92xf32>
    %803 = arith.addf %799, %802 : vector<8x92xf32>
    %c64 = arith.constant 64 : index
    %804 = memref.load %arg3[%c64] : memref<480xf32, #tpu.memory_space<smem>>
    %805 = vector.broadcast %804 : f32 to vector<8x92xf32>
    %806 = arith.mulf %463, %805 : vector<8x92xf32>
    %807 = arith.addf %803, %806 : vector<8x92xf32>
    %c65 = arith.constant 65 : index
    %808 = memref.load %arg3[%c65] : memref<480xf32, #tpu.memory_space<smem>>
    %809 = vector.broadcast %808 : f32 to vector<8x92xf32>
    %810 = arith.mulf %472, %809 : vector<8x92xf32>
    %811 = arith.addf %807, %810 : vector<8x92xf32>
    %c66 = arith.constant 66 : index
    %812 = memref.load %arg3[%c66] : memref<480xf32, #tpu.memory_space<smem>>
    %813 = vector.broadcast %812 : f32 to vector<8x92xf32>
    %814 = arith.mulf %473, %813 : vector<8x92xf32>
    %815 = arith.addf %811, %814 : vector<8x92xf32>
    %c67 = arith.constant 67 : index
    %816 = memref.load %arg3[%c67] : memref<480xf32, #tpu.memory_space<smem>>
    %817 = vector.broadcast %816 : f32 to vector<8x92xf32>
    %818 = arith.mulf %474, %817 : vector<8x92xf32>
    %819 = arith.addf %815, %818 : vector<8x92xf32>
    %c68 = arith.constant 68 : index
    %820 = memref.load %arg3[%c68] : memref<480xf32, #tpu.memory_space<smem>>
    %821 = vector.broadcast %820 : f32 to vector<8x92xf32>
    %822 = arith.mulf %475, %821 : vector<8x92xf32>
    %823 = arith.addf %819, %822 : vector<8x92xf32>
    %c69 = arith.constant 69 : index
    %824 = memref.load %arg3[%c69] : memref<480xf32, #tpu.memory_space<smem>>
    %825 = vector.broadcast %824 : f32 to vector<8x92xf32>
    %826 = arith.mulf %476, %825 : vector<8x92xf32>
    %827 = arith.addf %823, %826 : vector<8x92xf32>
    %c70 = arith.constant 70 : index
    %828 = memref.load %arg3[%c70] : memref<480xf32, #tpu.memory_space<smem>>
    %829 = vector.broadcast %828 : f32 to vector<8x92xf32>
    %830 = arith.mulf %485, %829 : vector<8x92xf32>
    %831 = arith.addf %827, %830 : vector<8x92xf32>
    %c71 = arith.constant 71 : index
    %832 = memref.load %arg3[%c71] : memref<480xf32, #tpu.memory_space<smem>>
    %833 = vector.broadcast %832 : f32 to vector<8x92xf32>
    %834 = arith.mulf %486, %833 : vector<8x92xf32>
    %835 = arith.addf %831, %834 : vector<8x92xf32>
    %c72 = arith.constant 72 : index
    %836 = memref.load %arg3[%c72] : memref<480xf32, #tpu.memory_space<smem>>
    %837 = vector.broadcast %836 : f32 to vector<8x92xf32>
    %838 = arith.mulf %487, %837 : vector<8x92xf32>
    %839 = arith.addf %835, %838 : vector<8x92xf32>
    %c73 = arith.constant 73 : index
    %840 = memref.load %arg3[%c73] : memref<480xf32, #tpu.memory_space<smem>>
    %841 = vector.broadcast %840 : f32 to vector<8x92xf32>
    %842 = arith.mulf %488, %841 : vector<8x92xf32>
    %843 = arith.addf %839, %842 : vector<8x92xf32>
    %c74 = arith.constant 74 : index
    %844 = memref.load %arg3[%c74] : memref<480xf32, #tpu.memory_space<smem>>
    %845 = vector.broadcast %844 : f32 to vector<8x92xf32>
    %846 = arith.mulf %489, %845 : vector<8x92xf32>
    %847 = arith.addf %843, %846 : vector<8x92xf32>
    %c75 = arith.constant 75 : index
    %848 = memref.load %arg3[%c75] : memref<480xf32, #tpu.memory_space<smem>>
    %849 = vector.broadcast %848 : f32 to vector<8x92xf32>
    %850 = arith.mulf %498, %849 : vector<8x92xf32>
    %851 = arith.addf %847, %850 : vector<8x92xf32>
    %c76 = arith.constant 76 : index
    %852 = memref.load %arg3[%c76] : memref<480xf32, #tpu.memory_space<smem>>
    %853 = vector.broadcast %852 : f32 to vector<8x92xf32>
    %854 = arith.mulf %499, %853 : vector<8x92xf32>
    %855 = arith.addf %851, %854 : vector<8x92xf32>
    %c77 = arith.constant 77 : index
    %856 = memref.load %arg3[%c77] : memref<480xf32, #tpu.memory_space<smem>>
    %857 = vector.broadcast %856 : f32 to vector<8x92xf32>
    %858 = arith.mulf %500, %857 : vector<8x92xf32>
    %859 = arith.addf %855, %858 : vector<8x92xf32>
    %c78 = arith.constant 78 : index
    %860 = memref.load %arg3[%c78] : memref<480xf32, #tpu.memory_space<smem>>
    %861 = vector.broadcast %860 : f32 to vector<8x92xf32>
    %862 = arith.mulf %501, %861 : vector<8x92xf32>
    %863 = arith.addf %859, %862 : vector<8x92xf32>
    %c79 = arith.constant 79 : index
    %864 = memref.load %arg3[%c79] : memref<480xf32, #tpu.memory_space<smem>>
    %865 = vector.broadcast %864 : f32 to vector<8x92xf32>
    %866 = arith.mulf %502, %865 : vector<8x92xf32>
    %867 = arith.addf %863, %866 : vector<8x92xf32>
    %c80 = arith.constant 80 : index
    %868 = memref.load %arg3[%c80] : memref<480xf32, #tpu.memory_space<smem>>
    %869 = vector.broadcast %868 : f32 to vector<8x92xf32>
    %870 = arith.mulf %511, %869 : vector<8x92xf32>
    %871 = arith.addf %867, %870 : vector<8x92xf32>
    %c81 = arith.constant 81 : index
    %872 = memref.load %arg3[%c81] : memref<480xf32, #tpu.memory_space<smem>>
    %873 = vector.broadcast %872 : f32 to vector<8x92xf32>
    %874 = arith.mulf %512, %873 : vector<8x92xf32>
    %875 = arith.addf %871, %874 : vector<8x92xf32>
    %c82 = arith.constant 82 : index
    %876 = memref.load %arg3[%c82] : memref<480xf32, #tpu.memory_space<smem>>
    %877 = vector.broadcast %876 : f32 to vector<8x92xf32>
    %878 = arith.mulf %513, %877 : vector<8x92xf32>
    %879 = arith.addf %875, %878 : vector<8x92xf32>
    %c83 = arith.constant 83 : index
    %880 = memref.load %arg3[%c83] : memref<480xf32, #tpu.memory_space<smem>>
    %881 = vector.broadcast %880 : f32 to vector<8x92xf32>
    %882 = arith.mulf %514, %881 : vector<8x92xf32>
    %883 = arith.addf %879, %882 : vector<8x92xf32>
    %c84 = arith.constant 84 : index
    %884 = memref.load %arg3[%c84] : memref<480xf32, #tpu.memory_space<smem>>
    %885 = vector.broadcast %884 : f32 to vector<8x92xf32>
    %886 = arith.mulf %515, %885 : vector<8x92xf32>
    %887 = arith.addf %883, %886 : vector<8x92xf32>
    %c85 = arith.constant 85 : index
    %888 = memref.load %arg3[%c85] : memref<480xf32, #tpu.memory_space<smem>>
    %889 = vector.broadcast %888 : f32 to vector<8x92xf32>
    %890 = arith.mulf %524, %889 : vector<8x92xf32>
    %891 = arith.addf %887, %890 : vector<8x92xf32>
    %c86 = arith.constant 86 : index
    %892 = memref.load %arg3[%c86] : memref<480xf32, #tpu.memory_space<smem>>
    %893 = vector.broadcast %892 : f32 to vector<8x92xf32>
    %894 = arith.mulf %525, %893 : vector<8x92xf32>
    %895 = arith.addf %891, %894 : vector<8x92xf32>
    %c87 = arith.constant 87 : index
    %896 = memref.load %arg3[%c87] : memref<480xf32, #tpu.memory_space<smem>>
    %897 = vector.broadcast %896 : f32 to vector<8x92xf32>
    %898 = arith.mulf %526, %897 : vector<8x92xf32>
    %899 = arith.addf %895, %898 : vector<8x92xf32>
    %c88 = arith.constant 88 : index
    %900 = memref.load %arg3[%c88] : memref<480xf32, #tpu.memory_space<smem>>
    %901 = vector.broadcast %900 : f32 to vector<8x92xf32>
    %902 = arith.mulf %527, %901 : vector<8x92xf32>
    %903 = arith.addf %899, %902 : vector<8x92xf32>
    %c89 = arith.constant 89 : index
    %904 = memref.load %arg3[%c89] : memref<480xf32, #tpu.memory_space<smem>>
    %905 = vector.broadcast %904 : f32 to vector<8x92xf32>
    %906 = arith.mulf %528, %905 : vector<8x92xf32>
    %907 = arith.addf %903, %906 : vector<8x92xf32>
    %908 = vector.extract_strided_slice %907 {offsets = [0, 0], sizes = [8, 46], strides = [1, 1]} : vector<8x92xf32> to vector<8x46xf32>
    %909 = vector.extract_strided_slice %907 {offsets = [0, 46], sizes = [8, 46], strides = [1, 1]} : vector<8x92xf32> to vector<8x46xf32>
    %910 = arith.maximumf %908, %909 : vector<8x46xf32>
    %c2_64 = arith.constant 2 : index
    %911 = memref.load %arg4[%c2_64] : memref<16xf32, #tpu.memory_space<smem>>
    %912 = vector.broadcast %911 : f32 to vector<8x46xf32>
    %913 = arith.addf %910, %912 : vector<8x46xf32>
    %cst_65 = arith.constant 0.000000e+00 : f32
    %914 = vector.broadcast %cst_65 : f32 to vector<8x46xf32>
    %915 = arith.maximumf %913, %914 : vector<8x46xf32>
    %c2_66 = arith.constant 2 : index
    %c0_67 = arith.constant 0 : index
    %c0_68 = arith.constant 0 : index
    %916 = vector.load %arg6[%c2_66, %c0_67, %c0_68] : memref<16x46x128xf32, #tpu.memory_space<vmem>>, vector<1x46x128xf32>
    %917 = vector.shape_cast %916 : vector<1x46x128xf32> to vector<46x128xf32>
    %cst_69 = arith.constant dense<0.000000e+00> : vector<8x128xf32>
    %918 = tpu.matmul %915, %917, %cst_69 {dimension_numbers = #tpu.dot_dimension_numbers<[1], [0], [0], [1], [0, 0, 1, 1], [], []>} : vector<8x46xf32>, vector<46x128xf32>, vector<8x128xf32> -> vector<8x128xf32>
    %c90 = arith.constant 90 : index
    %919 = memref.load %arg3[%c90] : memref<480xf32, #tpu.memory_space<smem>>
    %920 = vector.broadcast %919 : f32 to vector<8x92xf32>
    %921 = arith.mulf %459, %920 : vector<8x92xf32>
    %c91 = arith.constant 91 : index
    %922 = memref.load %arg3[%c91] : memref<480xf32, #tpu.memory_space<smem>>
    %923 = vector.broadcast %922 : f32 to vector<8x92xf32>
    %924 = arith.mulf %460, %923 : vector<8x92xf32>
    %925 = arith.addf %921, %924 : vector<8x92xf32>
    %c92 = arith.constant 92 : index
    %926 = memref.load %arg3[%c92] : memref<480xf32, #tpu.memory_space<smem>>
    %927 = vector.broadcast %926 : f32 to vector<8x92xf32>
    %928 = arith.mulf %461, %927 : vector<8x92xf32>
    %929 = arith.addf %925, %928 : vector<8x92xf32>
    %c93 = arith.constant 93 : index
    %930 = memref.load %arg3[%c93] : memref<480xf32, #tpu.memory_space<smem>>
    %931 = vector.broadcast %930 : f32 to vector<8x92xf32>
    %932 = arith.mulf %462, %931 : vector<8x92xf32>
    %933 = arith.addf %929, %932 : vector<8x92xf32>
    %c94 = arith.constant 94 : index
    %934 = memref.load %arg3[%c94] : memref<480xf32, #tpu.memory_space<smem>>
    %935 = vector.broadcast %934 : f32 to vector<8x92xf32>
    %936 = arith.mulf %463, %935 : vector<8x92xf32>
    %937 = arith.addf %933, %936 : vector<8x92xf32>
    %c95 = arith.constant 95 : index
    %938 = memref.load %arg3[%c95] : memref<480xf32, #tpu.memory_space<smem>>
    %939 = vector.broadcast %938 : f32 to vector<8x92xf32>
    %940 = arith.mulf %472, %939 : vector<8x92xf32>
    %941 = arith.addf %937, %940 : vector<8x92xf32>
    %c96 = arith.constant 96 : index
    %942 = memref.load %arg3[%c96] : memref<480xf32, #tpu.memory_space<smem>>
    %943 = vector.broadcast %942 : f32 to vector<8x92xf32>
    %944 = arith.mulf %473, %943 : vector<8x92xf32>
    %945 = arith.addf %941, %944 : vector<8x92xf32>
    %c97 = arith.constant 97 : index
    %946 = memref.load %arg3[%c97] : memref<480xf32, #tpu.memory_space<smem>>
    %947 = vector.broadcast %946 : f32 to vector<8x92xf32>
    %948 = arith.mulf %474, %947 : vector<8x92xf32>
    %949 = arith.addf %945, %948 : vector<8x92xf32>
    %c98 = arith.constant 98 : index
    %950 = memref.load %arg3[%c98] : memref<480xf32, #tpu.memory_space<smem>>
    %951 = vector.broadcast %950 : f32 to vector<8x92xf32>
    %952 = arith.mulf %475, %951 : vector<8x92xf32>
    %953 = arith.addf %949, %952 : vector<8x92xf32>
    %c99 = arith.constant 99 : index
    %954 = memref.load %arg3[%c99] : memref<480xf32, #tpu.memory_space<smem>>
    %955 = vector.broadcast %954 : f32 to vector<8x92xf32>
    %956 = arith.mulf %476, %955 : vector<8x92xf32>
    %957 = arith.addf %953, %956 : vector<8x92xf32>
    %c100 = arith.constant 100 : index
    %958 = memref.load %arg3[%c100] : memref<480xf32, #tpu.memory_space<smem>>
    %959 = vector.broadcast %958 : f32 to vector<8x92xf32>
    %960 = arith.mulf %485, %959 : vector<8x92xf32>
    %961 = arith.addf %957, %960 : vector<8x92xf32>
    %c101 = arith.constant 101 : index
    %962 = memref.load %arg3[%c101] : memref<480xf32, #tpu.memory_space<smem>>
    %963 = vector.broadcast %962 : f32 to vector<8x92xf32>
    %964 = arith.mulf %486, %963 : vector<8x92xf32>
    %965 = arith.addf %961, %964 : vector<8x92xf32>
    %c102 = arith.constant 102 : index
    %966 = memref.load %arg3[%c102] : memref<480xf32, #tpu.memory_space<smem>>
    %967 = vector.broadcast %966 : f32 to vector<8x92xf32>
    %968 = arith.mulf %487, %967 : vector<8x92xf32>
    %969 = arith.addf %965, %968 : vector<8x92xf32>
    %c103 = arith.constant 103 : index
    %970 = memref.load %arg3[%c103] : memref<480xf32, #tpu.memory_space<smem>>
    %971 = vector.broadcast %970 : f32 to vector<8x92xf32>
    %972 = arith.mulf %488, %971 : vector<8x92xf32>
    %973 = arith.addf %969, %972 : vector<8x92xf32>
    %c104 = arith.constant 104 : index
    %974 = memref.load %arg3[%c104] : memref<480xf32, #tpu.memory_space<smem>>
    %975 = vector.broadcast %974 : f32 to vector<8x92xf32>
    %976 = arith.mulf %489, %975 : vector<8x92xf32>
    %977 = arith.addf %973, %976 : vector<8x92xf32>
    %c105 = arith.constant 105 : index
    %978 = memref.load %arg3[%c105] : memref<480xf32, #tpu.memory_space<smem>>
    %979 = vector.broadcast %978 : f32 to vector<8x92xf32>
    %980 = arith.mulf %498, %979 : vector<8x92xf32>
    %981 = arith.addf %977, %980 : vector<8x92xf32>
    %c106 = arith.constant 106 : index
    %982 = memref.load %arg3[%c106] : memref<480xf32, #tpu.memory_space<smem>>
    %983 = vector.broadcast %982 : f32 to vector<8x92xf32>
    %984 = arith.mulf %499, %983 : vector<8x92xf32>
    %985 = arith.addf %981, %984 : vector<8x92xf32>
    %c107 = arith.constant 107 : index
    %986 = memref.load %arg3[%c107] : memref<480xf32, #tpu.memory_space<smem>>
    %987 = vector.broadcast %986 : f32 to vector<8x92xf32>
    %988 = arith.mulf %500, %987 : vector<8x92xf32>
    %989 = arith.addf %985, %988 : vector<8x92xf32>
    %c108 = arith.constant 108 : index
    %990 = memref.load %arg3[%c108] : memref<480xf32, #tpu.memory_space<smem>>
    %991 = vector.broadcast %990 : f32 to vector<8x92xf32>
    %992 = arith.mulf %501, %991 : vector<8x92xf32>
    %993 = arith.addf %989, %992 : vector<8x92xf32>
    %c109 = arith.constant 109 : index
    %994 = memref.load %arg3[%c109] : memref<480xf32, #tpu.memory_space<smem>>
    %995 = vector.broadcast %994 : f32 to vector<8x92xf32>
    %996 = arith.mulf %502, %995 : vector<8x92xf32>
    %997 = arith.addf %993, %996 : vector<8x92xf32>
    %c110 = arith.constant 110 : index
    %998 = memref.load %arg3[%c110] : memref<480xf32, #tpu.memory_space<smem>>
    %999 = vector.broadcast %998 : f32 to vector<8x92xf32>
    %1000 = arith.mulf %511, %999 : vector<8x92xf32>
    %1001 = arith.addf %997, %1000 : vector<8x92xf32>
    %c111 = arith.constant 111 : index
    %1002 = memref.load %arg3[%c111] : memref<480xf32, #tpu.memory_space<smem>>
    %1003 = vector.broadcast %1002 : f32 to vector<8x92xf32>
    %1004 = arith.mulf %512, %1003 : vector<8x92xf32>
    %1005 = arith.addf %1001, %1004 : vector<8x92xf32>
    %c112 = arith.constant 112 : index
    %1006 = memref.load %arg3[%c112] : memref<480xf32, #tpu.memory_space<smem>>
    %1007 = vector.broadcast %1006 : f32 to vector<8x92xf32>
    %1008 = arith.mulf %513, %1007 : vector<8x92xf32>
    %1009 = arith.addf %1005, %1008 : vector<8x92xf32>
    %c113 = arith.constant 113 : index
    %1010 = memref.load %arg3[%c113] : memref<480xf32, #tpu.memory_space<smem>>
    %1011 = vector.broadcast %1010 : f32 to vector<8x92xf32>
    %1012 = arith.mulf %514, %1011 : vector<8x92xf32>
    %1013 = arith.addf %1009, %1012 : vector<8x92xf32>
    %c114 = arith.constant 114 : index
    %1014 = memref.load %arg3[%c114] : memref<480xf32, #tpu.memory_space<smem>>
    %1015 = vector.broadcast %1014 : f32 to vector<8x92xf32>
    %1016 = arith.mulf %515, %1015 : vector<8x92xf32>
    %1017 = arith.addf %1013, %1016 : vector<8x92xf32>
    %c115 = arith.constant 115 : index
    %1018 = memref.load %arg3[%c115] : memref<480xf32, #tpu.memory_space<smem>>
    %1019 = vector.broadcast %1018 : f32 to vector<8x92xf32>
    %1020 = arith.mulf %524, %1019 : vector<8x92xf32>
    %1021 = arith.addf %1017, %1020 : vector<8x92xf32>
    %c116 = arith.constant 116 : index
    %1022 = memref.load %arg3[%c116] : memref<480xf32, #tpu.memory_space<smem>>
    %1023 = vector.broadcast %1022 : f32 to vector<8x92xf32>
    %1024 = arith.mulf %525, %1023 : vector<8x92xf32>
    %1025 = arith.addf %1021, %1024 : vector<8x92xf32>
    %c117 = arith.constant 117 : index
    %1026 = memref.load %arg3[%c117] : memref<480xf32, #tpu.memory_space<smem>>
    %1027 = vector.broadcast %1026 : f32 to vector<8x92xf32>
    %1028 = arith.mulf %526, %1027 : vector<8x92xf32>
    %1029 = arith.addf %1025, %1028 : vector<8x92xf32>
    %c118 = arith.constant 118 : index
    %1030 = memref.load %arg3[%c118] : memref<480xf32, #tpu.memory_space<smem>>
    %1031 = vector.broadcast %1030 : f32 to vector<8x92xf32>
    %1032 = arith.mulf %527, %1031 : vector<8x92xf32>
    %1033 = arith.addf %1029, %1032 : vector<8x92xf32>
    %c119 = arith.constant 119 : index
    %1034 = memref.load %arg3[%c119] : memref<480xf32, #tpu.memory_space<smem>>
    %1035 = vector.broadcast %1034 : f32 to vector<8x92xf32>
    %1036 = arith.mulf %528, %1035 : vector<8x92xf32>
    %1037 = arith.addf %1033, %1036 : vector<8x92xf32>
    %1038 = vector.extract_strided_slice %1037 {offsets = [0, 0], sizes = [8, 46], strides = [1, 1]} : vector<8x92xf32> to vector<8x46xf32>
    %1039 = vector.extract_strided_slice %1037 {offsets = [0, 46], sizes = [8, 46], strides = [1, 1]} : vector<8x92xf32> to vector<8x46xf32>
    %1040 = arith.maximumf %1038, %1039 : vector<8x46xf32>
    %c3_70 = arith.constant 3 : index
    %1041 = memref.load %arg4[%c3_70] : memref<16xf32, #tpu.memory_space<smem>>
    %1042 = vector.broadcast %1041 : f32 to vector<8x46xf32>
    %1043 = arith.addf %1040, %1042 : vector<8x46xf32>
    %cst_71 = arith.constant 0.000000e+00 : f32
    %1044 = vector.broadcast %cst_71 : f32 to vector<8x46xf32>
    %1045 = arith.maximumf %1043, %1044 : vector<8x46xf32>
    %c3_72 = arith.constant 3 : index
    %c0_73 = arith.constant 0 : index
    %c0_74 = arith.constant 0 : index
    %1046 = vector.load %arg6[%c3_72, %c0_73, %c0_74] : memref<16x46x128xf32, #tpu.memory_space<vmem>>, vector<1x46x128xf32>
    %1047 = vector.shape_cast %1046 : vector<1x46x128xf32> to vector<46x128xf32>
    %cst_75 = arith.constant dense<0.000000e+00> : vector<8x128xf32>
    %1048 = tpu.matmul %1045, %1047, %cst_75 {dimension_numbers = #tpu.dot_dimension_numbers<[1], [0], [0], [1], [0, 0, 1, 1], [], []>} : vector<8x46xf32>, vector<46x128xf32>, vector<8x128xf32> -> vector<8x128xf32>
    %c120 = arith.constant 120 : index
    %1049 = memref.load %arg3[%c120] : memref<480xf32, #tpu.memory_space<smem>>
    %1050 = vector.broadcast %1049 : f32 to vector<8x92xf32>
    %1051 = arith.mulf %459, %1050 : vector<8x92xf32>
    %c121 = arith.constant 121 : index
    %1052 = memref.load %arg3[%c121] : memref<480xf32, #tpu.memory_space<smem>>
    %1053 = vector.broadcast %1052 : f32 to vector<8x92xf32>
    %1054 = arith.mulf %460, %1053 : vector<8x92xf32>
    %1055 = arith.addf %1051, %1054 : vector<8x92xf32>
    %c122 = arith.constant 122 : index
    %1056 = memref.load %arg3[%c122] : memref<480xf32, #tpu.memory_space<smem>>
    %1057 = vector.broadcast %1056 : f32 to vector<8x92xf32>
    %1058 = arith.mulf %461, %1057 : vector<8x92xf32>
    %1059 = arith.addf %1055, %1058 : vector<8x92xf32>
    %c123 = arith.constant 123 : index
    %1060 = memref.load %arg3[%c123] : memref<480xf32, #tpu.memory_space<smem>>
    %1061 = vector.broadcast %1060 : f32 to vector<8x92xf32>
    %1062 = arith.mulf %462, %1061 : vector<8x92xf32>
    %1063 = arith.addf %1059, %1062 : vector<8x92xf32>
    %c124 = arith.constant 124 : index
    %1064 = memref.load %arg3[%c124] : memref<480xf32, #tpu.memory_space<smem>>
    %1065 = vector.broadcast %1064 : f32 to vector<8x92xf32>
    %1066 = arith.mulf %463, %1065 : vector<8x92xf32>
    %1067 = arith.addf %1063, %1066 : vector<8x92xf32>
    %c125 = arith.constant 125 : index
    %1068 = memref.load %arg3[%c125] : memref<480xf32, #tpu.memory_space<smem>>
    %1069 = vector.broadcast %1068 : f32 to vector<8x92xf32>
    %1070 = arith.mulf %472, %1069 : vector<8x92xf32>
    %1071 = arith.addf %1067, %1070 : vector<8x92xf32>
    %c126 = arith.constant 126 : index
    %1072 = memref.load %arg3[%c126] : memref<480xf32, #tpu.memory_space<smem>>
    %1073 = vector.broadcast %1072 : f32 to vector<8x92xf32>
    %1074 = arith.mulf %473, %1073 : vector<8x92xf32>
    %1075 = arith.addf %1071, %1074 : vector<8x92xf32>
    %c127 = arith.constant 127 : index
    %1076 = memref.load %arg3[%c127] : memref<480xf32, #tpu.memory_space<smem>>
    %1077 = vector.broadcast %1076 : f32 to vector<8x92xf32>
    %1078 = arith.mulf %474, %1077 : vector<8x92xf32>
    %1079 = arith.addf %1075, %1078 : vector<8x92xf32>
    %c128 = arith.constant 128 : index
    %1080 = memref.load %arg3[%c128] : memref<480xf32, #tpu.memory_space<smem>>
    %1081 = vector.broadcast %1080 : f32 to vector<8x92xf32>
    %1082 = arith.mulf %475, %1081 : vector<8x92xf32>
    %1083 = arith.addf %1079, %1082 : vector<8x92xf32>
    %c129 = arith.constant 129 : index
    %1084 = memref.load %arg3[%c129] : memref<480xf32, #tpu.memory_space<smem>>
    %1085 = vector.broadcast %1084 : f32 to vector<8x92xf32>
    %1086 = arith.mulf %476, %1085 : vector<8x92xf32>
    %1087 = arith.addf %1083, %1086 : vector<8x92xf32>
    %c130 = arith.constant 130 : index
    %1088 = memref.load %arg3[%c130] : memref<480xf32, #tpu.memory_space<smem>>
    %1089 = vector.broadcast %1088 : f32 to vector<8x92xf32>
    %1090 = arith.mulf %485, %1089 : vector<8x92xf32>
    %1091 = arith.addf %1087, %1090 : vector<8x92xf32>
    %c131 = arith.constant 131 : index
    %1092 = memref.load %arg3[%c131] : memref<480xf32, #tpu.memory_space<smem>>
    %1093 = vector.broadcast %1092 : f32 to vector<8x92xf32>
    %1094 = arith.mulf %486, %1093 : vector<8x92xf32>
    %1095 = arith.addf %1091, %1094 : vector<8x92xf32>
    %c132 = arith.constant 132 : index
    %1096 = memref.load %arg3[%c132] : memref<480xf32, #tpu.memory_space<smem>>
    %1097 = vector.broadcast %1096 : f32 to vector<8x92xf32>
    %1098 = arith.mulf %487, %1097 : vector<8x92xf32>
    %1099 = arith.addf %1095, %1098 : vector<8x92xf32>
    %c133 = arith.constant 133 : index
    %1100 = memref.load %arg3[%c133] : memref<480xf32, #tpu.memory_space<smem>>
    %1101 = vector.broadcast %1100 : f32 to vector<8x92xf32>
    %1102 = arith.mulf %488, %1101 : vector<8x92xf32>
    %1103 = arith.addf %1099, %1102 : vector<8x92xf32>
    %c134 = arith.constant 134 : index
    %1104 = memref.load %arg3[%c134] : memref<480xf32, #tpu.memory_space<smem>>
    %1105 = vector.broadcast %1104 : f32 to vector<8x92xf32>
    %1106 = arith.mulf %489, %1105 : vector<8x92xf32>
    %1107 = arith.addf %1103, %1106 : vector<8x92xf32>
    %c135 = arith.constant 135 : index
    %1108 = memref.load %arg3[%c135] : memref<480xf32, #tpu.memory_space<smem>>
    %1109 = vector.broadcast %1108 : f32 to vector<8x92xf32>
    %1110 = arith.mulf %498, %1109 : vector<8x92xf32>
    %1111 = arith.addf %1107, %1110 : vector<8x92xf32>
    %c136 = arith.constant 136 : index
    %1112 = memref.load %arg3[%c136] : memref<480xf32, #tpu.memory_space<smem>>
    %1113 = vector.broadcast %1112 : f32 to vector<8x92xf32>
    %1114 = arith.mulf %499, %1113 : vector<8x92xf32>
    %1115 = arith.addf %1111, %1114 : vector<8x92xf32>
    %c137 = arith.constant 137 : index
    %1116 = memref.load %arg3[%c137] : memref<480xf32, #tpu.memory_space<smem>>
    %1117 = vector.broadcast %1116 : f32 to vector<8x92xf32>
    %1118 = arith.mulf %500, %1117 : vector<8x92xf32>
    %1119 = arith.addf %1115, %1118 : vector<8x92xf32>
    %c138 = arith.constant 138 : index
    %1120 = memref.load %arg3[%c138] : memref<480xf32, #tpu.memory_space<smem>>
    %1121 = vector.broadcast %1120 : f32 to vector<8x92xf32>
    %1122 = arith.mulf %501, %1121 : vector<8x92xf32>
    %1123 = arith.addf %1119, %1122 : vector<8x92xf32>
    %c139 = arith.constant 139 : index
    %1124 = memref.load %arg3[%c139] : memref<480xf32, #tpu.memory_space<smem>>
    %1125 = vector.broadcast %1124 : f32 to vector<8x92xf32>
    %1126 = arith.mulf %502, %1125 : vector<8x92xf32>
    %1127 = arith.addf %1123, %1126 : vector<8x92xf32>
    %c140 = arith.constant 140 : index
    %1128 = memref.load %arg3[%c140] : memref<480xf32, #tpu.memory_space<smem>>
    %1129 = vector.broadcast %1128 : f32 to vector<8x92xf32>
    %1130 = arith.mulf %511, %1129 : vector<8x92xf32>
    %1131 = arith.addf %1127, %1130 : vector<8x92xf32>
    %c141 = arith.constant 141 : index
    %1132 = memref.load %arg3[%c141] : memref<480xf32, #tpu.memory_space<smem>>
    %1133 = vector.broadcast %1132 : f32 to vector<8x92xf32>
    %1134 = arith.mulf %512, %1133 : vector<8x92xf32>
    %1135 = arith.addf %1131, %1134 : vector<8x92xf32>
    %c142 = arith.constant 142 : index
    %1136 = memref.load %arg3[%c142] : memref<480xf32, #tpu.memory_space<smem>>
    %1137 = vector.broadcast %1136 : f32 to vector<8x92xf32>
    %1138 = arith.mulf %513, %1137 : vector<8x92xf32>
    %1139 = arith.addf %1135, %1138 : vector<8x92xf32>
    %c143 = arith.constant 143 : index
    %1140 = memref.load %arg3[%c143] : memref<480xf32, #tpu.memory_space<smem>>
    %1141 = vector.broadcast %1140 : f32 to vector<8x92xf32>
    %1142 = arith.mulf %514, %1141 : vector<8x92xf32>
    %1143 = arith.addf %1139, %1142 : vector<8x92xf32>
    %c144 = arith.constant 144 : index
    %1144 = memref.load %arg3[%c144] : memref<480xf32, #tpu.memory_space<smem>>
    %1145 = vector.broadcast %1144 : f32 to vector<8x92xf32>
    %1146 = arith.mulf %515, %1145 : vector<8x92xf32>
    %1147 = arith.addf %1143, %1146 : vector<8x92xf32>
    %c145 = arith.constant 145 : index
    %1148 = memref.load %arg3[%c145] : memref<480xf32, #tpu.memory_space<smem>>
    %1149 = vector.broadcast %1148 : f32 to vector<8x92xf32>
    %1150 = arith.mulf %524, %1149 : vector<8x92xf32>
    %1151 = arith.addf %1147, %1150 : vector<8x92xf32>
    %c146 = arith.constant 146 : index
    %1152 = memref.load %arg3[%c146] : memref<480xf32, #tpu.memory_space<smem>>
    %1153 = vector.broadcast %1152 : f32 to vector<8x92xf32>
    %1154 = arith.mulf %525, %1153 : vector<8x92xf32>
    %1155 = arith.addf %1151, %1154 : vector<8x92xf32>
    %c147 = arith.constant 147 : index
    %1156 = memref.load %arg3[%c147] : memref<480xf32, #tpu.memory_space<smem>>
    %1157 = vector.broadcast %1156 : f32 to vector<8x92xf32>
    %1158 = arith.mulf %526, %1157 : vector<8x92xf32>
    %1159 = arith.addf %1155, %1158 : vector<8x92xf32>
    %c148 = arith.constant 148 : index
    %1160 = memref.load %arg3[%c148] : memref<480xf32, #tpu.memory_space<smem>>
    %1161 = vector.broadcast %1160 : f32 to vector<8x92xf32>
    %1162 = arith.mulf %527, %1161 : vector<8x92xf32>
    %1163 = arith.addf %1159, %1162 : vector<8x92xf32>
    %c149 = arith.constant 149 : index
    %1164 = memref.load %arg3[%c149] : memref<480xf32, #tpu.memory_space<smem>>
    %1165 = vector.broadcast %1164 : f32 to vector<8x92xf32>
    %1166 = arith.mulf %528, %1165 : vector<8x92xf32>
    %1167 = arith.addf %1163, %1166 : vector<8x92xf32>
    %1168 = vector.extract_strided_slice %1167 {offsets = [0, 0], sizes = [8, 46], strides = [1, 1]} : vector<8x92xf32> to vector<8x46xf32>
    %1169 = vector.extract_strided_slice %1167 {offsets = [0, 46], sizes = [8, 46], strides = [1, 1]} : vector<8x92xf32> to vector<8x46xf32>
    %1170 = arith.maximumf %1168, %1169 : vector<8x46xf32>
    %c4_76 = arith.constant 4 : index
    %1171 = memref.load %arg4[%c4_76] : memref<16xf32, #tpu.memory_space<smem>>
    %1172 = vector.broadcast %1171 : f32 to vector<8x46xf32>
    %1173 = arith.addf %1170, %1172 : vector<8x46xf32>
    %cst_77 = arith.constant 0.000000e+00 : f32
    %1174 = vector.broadcast %cst_77 : f32 to vector<8x46xf32>
    %1175 = arith.maximumf %1173, %1174 : vector<8x46xf32>
    %c4_78 = arith.constant 4 : index
    %c0_79 = arith.constant 0 : index
    %c0_80 = arith.constant 0 : index
    %1176 = vector.load %arg6[%c4_78, %c0_79, %c0_80] : memref<16x46x128xf32, #tpu.memory_space<vmem>>, vector<1x46x128xf32>
    %1177 = vector.shape_cast %1176 : vector<1x46x128xf32> to vector<46x128xf32>
    %cst_81 = arith.constant dense<0.000000e+00> : vector<8x128xf32>
    %1178 = tpu.matmul %1175, %1177, %cst_81 {dimension_numbers = #tpu.dot_dimension_numbers<[1], [0], [0], [1], [0, 0, 1, 1], [], []>} : vector<8x46xf32>, vector<46x128xf32>, vector<8x128xf32> -> vector<8x128xf32>
    %c150 = arith.constant 150 : index
    %1179 = memref.load %arg3[%c150] : memref<480xf32, #tpu.memory_space<smem>>
    %1180 = vector.broadcast %1179 : f32 to vector<8x92xf32>
    %1181 = arith.mulf %459, %1180 : vector<8x92xf32>
    %c151 = arith.constant 151 : index
    %1182 = memref.load %arg3[%c151] : memref<480xf32, #tpu.memory_space<smem>>
    %1183 = vector.broadcast %1182 : f32 to vector<8x92xf32>
    %1184 = arith.mulf %460, %1183 : vector<8x92xf32>
    %1185 = arith.addf %1181, %1184 : vector<8x92xf32>
    %c152 = arith.constant 152 : index
    %1186 = memref.load %arg3[%c152] : memref<480xf32, #tpu.memory_space<smem>>
    %1187 = vector.broadcast %1186 : f32 to vector<8x92xf32>
    %1188 = arith.mulf %461, %1187 : vector<8x92xf32>
    %1189 = arith.addf %1185, %1188 : vector<8x92xf32>
    %c153 = arith.constant 153 : index
    %1190 = memref.load %arg3[%c153] : memref<480xf32, #tpu.memory_space<smem>>
    %1191 = vector.broadcast %1190 : f32 to vector<8x92xf32>
    %1192 = arith.mulf %462, %1191 : vector<8x92xf32>
    %1193 = arith.addf %1189, %1192 : vector<8x92xf32>
    %c154 = arith.constant 154 : index
    %1194 = memref.load %arg3[%c154] : memref<480xf32, #tpu.memory_space<smem>>
    %1195 = vector.broadcast %1194 : f32 to vector<8x92xf32>
    %1196 = arith.mulf %463, %1195 : vector<8x92xf32>
    %1197 = arith.addf %1193, %1196 : vector<8x92xf32>
    %c155 = arith.constant 155 : index
    %1198 = memref.load %arg3[%c155] : memref<480xf32, #tpu.memory_space<smem>>
    %1199 = vector.broadcast %1198 : f32 to vector<8x92xf32>
    %1200 = arith.mulf %472, %1199 : vector<8x92xf32>
    %1201 = arith.addf %1197, %1200 : vector<8x92xf32>
    %c156 = arith.constant 156 : index
    %1202 = memref.load %arg3[%c156] : memref<480xf32, #tpu.memory_space<smem>>
    %1203 = vector.broadcast %1202 : f32 to vector<8x92xf32>
    %1204 = arith.mulf %473, %1203 : vector<8x92xf32>
    %1205 = arith.addf %1201, %1204 : vector<8x92xf32>
    %c157 = arith.constant 157 : index
    %1206 = memref.load %arg3[%c157] : memref<480xf32, #tpu.memory_space<smem>>
    %1207 = vector.broadcast %1206 : f32 to vector<8x92xf32>
    %1208 = arith.mulf %474, %1207 : vector<8x92xf32>
    %1209 = arith.addf %1205, %1208 : vector<8x92xf32>
    %c158 = arith.constant 158 : index
    %1210 = memref.load %arg3[%c158] : memref<480xf32, #tpu.memory_space<smem>>
    %1211 = vector.broadcast %1210 : f32 to vector<8x92xf32>
    %1212 = arith.mulf %475, %1211 : vector<8x92xf32>
    %1213 = arith.addf %1209, %1212 : vector<8x92xf32>
    %c159 = arith.constant 159 : index
    %1214 = memref.load %arg3[%c159] : memref<480xf32, #tpu.memory_space<smem>>
    %1215 = vector.broadcast %1214 : f32 to vector<8x92xf32>
    %1216 = arith.mulf %476, %1215 : vector<8x92xf32>
    %1217 = arith.addf %1213, %1216 : vector<8x92xf32>
    %c160 = arith.constant 160 : index
    %1218 = memref.load %arg3[%c160] : memref<480xf32, #tpu.memory_space<smem>>
    %1219 = vector.broadcast %1218 : f32 to vector<8x92xf32>
    %1220 = arith.mulf %485, %1219 : vector<8x92xf32>
    %1221 = arith.addf %1217, %1220 : vector<8x92xf32>
    %c161 = arith.constant 161 : index
    %1222 = memref.load %arg3[%c161] : memref<480xf32, #tpu.memory_space<smem>>
    %1223 = vector.broadcast %1222 : f32 to vector<8x92xf32>
    %1224 = arith.mulf %486, %1223 : vector<8x92xf32>
    %1225 = arith.addf %1221, %1224 : vector<8x92xf32>
    %c162 = arith.constant 162 : index
    %1226 = memref.load %arg3[%c162] : memref<480xf32, #tpu.memory_space<smem>>
    %1227 = vector.broadcast %1226 : f32 to vector<8x92xf32>
    %1228 = arith.mulf %487, %1227 : vector<8x92xf32>
    %1229 = arith.addf %1225, %1228 : vector<8x92xf32>
    %c163 = arith.constant 163 : index
    %1230 = memref.load %arg3[%c163] : memref<480xf32, #tpu.memory_space<smem>>
    %1231 = vector.broadcast %1230 : f32 to vector<8x92xf32>
    %1232 = arith.mulf %488, %1231 : vector<8x92xf32>
    %1233 = arith.addf %1229, %1232 : vector<8x92xf32>
    %c164 = arith.constant 164 : index
    %1234 = memref.load %arg3[%c164] : memref<480xf32, #tpu.memory_space<smem>>
    %1235 = vector.broadcast %1234 : f32 to vector<8x92xf32>
    %1236 = arith.mulf %489, %1235 : vector<8x92xf32>
    %1237 = arith.addf %1233, %1236 : vector<8x92xf32>
    %c165 = arith.constant 165 : index
    %1238 = memref.load %arg3[%c165] : memref<480xf32, #tpu.memory_space<smem>>
    %1239 = vector.broadcast %1238 : f32 to vector<8x92xf32>
    %1240 = arith.mulf %498, %1239 : vector<8x92xf32>
    %1241 = arith.addf %1237, %1240 : vector<8x92xf32>
    %c166 = arith.constant 166 : index
    %1242 = memref.load %arg3[%c166] : memref<480xf32, #tpu.memory_space<smem>>
    %1243 = vector.broadcast %1242 : f32 to vector<8x92xf32>
    %1244 = arith.mulf %499, %1243 : vector<8x92xf32>
    %1245 = arith.addf %1241, %1244 : vector<8x92xf32>
    %c167 = arith.constant 167 : index
    %1246 = memref.load %arg3[%c167] : memref<480xf32, #tpu.memory_space<smem>>
    %1247 = vector.broadcast %1246 : f32 to vector<8x92xf32>
    %1248 = arith.mulf %500, %1247 : vector<8x92xf32>
    %1249 = arith.addf %1245, %1248 : vector<8x92xf32>
    %c168 = arith.constant 168 : index
    %1250 = memref.load %arg3[%c168] : memref<480xf32, #tpu.memory_space<smem>>
    %1251 = vector.broadcast %1250 : f32 to vector<8x92xf32>
    %1252 = arith.mulf %501, %1251 : vector<8x92xf32>
    %1253 = arith.addf %1249, %1252 : vector<8x92xf32>
    %c169 = arith.constant 169 : index
    %1254 = memref.load %arg3[%c169] : memref<480xf32, #tpu.memory_space<smem>>
    %1255 = vector.broadcast %1254 : f32 to vector<8x92xf32>
    %1256 = arith.mulf %502, %1255 : vector<8x92xf32>
    %1257 = arith.addf %1253, %1256 : vector<8x92xf32>
    %c170 = arith.constant 170 : index
    %1258 = memref.load %arg3[%c170] : memref<480xf32, #tpu.memory_space<smem>>
    %1259 = vector.broadcast %1258 : f32 to vector<8x92xf32>
    %1260 = arith.mulf %511, %1259 : vector<8x92xf32>
    %1261 = arith.addf %1257, %1260 : vector<8x92xf32>
    %c171 = arith.constant 171 : index
    %1262 = memref.load %arg3[%c171] : memref<480xf32, #tpu.memory_space<smem>>
    %1263 = vector.broadcast %1262 : f32 to vector<8x92xf32>
    %1264 = arith.mulf %512, %1263 : vector<8x92xf32>
    %1265 = arith.addf %1261, %1264 : vector<8x92xf32>
    %c172 = arith.constant 172 : index
    %1266 = memref.load %arg3[%c172] : memref<480xf32, #tpu.memory_space<smem>>
    %1267 = vector.broadcast %1266 : f32 to vector<8x92xf32>
    %1268 = arith.mulf %513, %1267 : vector<8x92xf32>
    %1269 = arith.addf %1265, %1268 : vector<8x92xf32>
    %c173 = arith.constant 173 : index
    %1270 = memref.load %arg3[%c173] : memref<480xf32, #tpu.memory_space<smem>>
    %1271 = vector.broadcast %1270 : f32 to vector<8x92xf32>
    %1272 = arith.mulf %514, %1271 : vector<8x92xf32>
    %1273 = arith.addf %1269, %1272 : vector<8x92xf32>
    %c174 = arith.constant 174 : index
    %1274 = memref.load %arg3[%c174] : memref<480xf32, #tpu.memory_space<smem>>
    %1275 = vector.broadcast %1274 : f32 to vector<8x92xf32>
    %1276 = arith.mulf %515, %1275 : vector<8x92xf32>
    %1277 = arith.addf %1273, %1276 : vector<8x92xf32>
    %c175 = arith.constant 175 : index
    %1278 = memref.load %arg3[%c175] : memref<480xf32, #tpu.memory_space<smem>>
    %1279 = vector.broadcast %1278 : f32 to vector<8x92xf32>
    %1280 = arith.mulf %524, %1279 : vector<8x92xf32>
    %1281 = arith.addf %1277, %1280 : vector<8x92xf32>
    %c176 = arith.constant 176 : index
    %1282 = memref.load %arg3[%c176] : memref<480xf32, #tpu.memory_space<smem>>
    %1283 = vector.broadcast %1282 : f32 to vector<8x92xf32>
    %1284 = arith.mulf %525, %1283 : vector<8x92xf32>
    %1285 = arith.addf %1281, %1284 : vector<8x92xf32>
    %c177 = arith.constant 177 : index
    %1286 = memref.load %arg3[%c177] : memref<480xf32, #tpu.memory_space<smem>>
    %1287 = vector.broadcast %1286 : f32 to vector<8x92xf32>
    %1288 = arith.mulf %526, %1287 : vector<8x92xf32>
    %1289 = arith.addf %1285, %1288 : vector<8x92xf32>
    %c178 = arith.constant 178 : index
    %1290 = memref.load %arg3[%c178] : memref<480xf32, #tpu.memory_space<smem>>
    %1291 = vector.broadcast %1290 : f32 to vector<8x92xf32>
    %1292 = arith.mulf %527, %1291 : vector<8x92xf32>
    %1293 = arith.addf %1289, %1292 : vector<8x92xf32>
    %c179 = arith.constant 179 : index
    %1294 = memref.load %arg3[%c179] : memref<480xf32, #tpu.memory_space<smem>>
    %1295 = vector.broadcast %1294 : f32 to vector<8x92xf32>
    %1296 = arith.mulf %528, %1295 : vector<8x92xf32>
    %1297 = arith.addf %1293, %1296 : vector<8x92xf32>
    %1298 = vector.extract_strided_slice %1297 {offsets = [0, 0], sizes = [8, 46], strides = [1, 1]} : vector<8x92xf32> to vector<8x46xf32>
    %1299 = vector.extract_strided_slice %1297 {offsets = [0, 46], sizes = [8, 46], strides = [1, 1]} : vector<8x92xf32> to vector<8x46xf32>
    %1300 = arith.maximumf %1298, %1299 : vector<8x46xf32>
    %c5_82 = arith.constant 5 : index
    %1301 = memref.load %arg4[%c5_82] : memref<16xf32, #tpu.memory_space<smem>>
    %1302 = vector.broadcast %1301 : f32 to vector<8x46xf32>
    %1303 = arith.addf %1300, %1302 : vector<8x46xf32>
    %cst_83 = arith.constant 0.000000e+00 : f32
    %1304 = vector.broadcast %cst_83 : f32 to vector<8x46xf32>
    %1305 = arith.maximumf %1303, %1304 : vector<8x46xf32>
    %c5_84 = arith.constant 5 : index
    %c0_85 = arith.constant 0 : index
    %c0_86 = arith.constant 0 : index
    %1306 = vector.load %arg6[%c5_84, %c0_85, %c0_86] : memref<16x46x128xf32, #tpu.memory_space<vmem>>, vector<1x46x128xf32>
    %1307 = vector.shape_cast %1306 : vector<1x46x128xf32> to vector<46x128xf32>
    %cst_87 = arith.constant dense<0.000000e+00> : vector<8x128xf32>
    %1308 = tpu.matmul %1305, %1307, %cst_87 {dimension_numbers = #tpu.dot_dimension_numbers<[1], [0], [0], [1], [0, 0, 1, 1], [], []>} : vector<8x46xf32>, vector<46x128xf32>, vector<8x128xf32> -> vector<8x128xf32>
    %c180 = arith.constant 180 : index
    %1309 = memref.load %arg3[%c180] : memref<480xf32, #tpu.memory_space<smem>>
    %1310 = vector.broadcast %1309 : f32 to vector<8x92xf32>
    %1311 = arith.mulf %459, %1310 : vector<8x92xf32>
    %c181 = arith.constant 181 : index
    %1312 = memref.load %arg3[%c181] : memref<480xf32, #tpu.memory_space<smem>>
    %1313 = vector.broadcast %1312 : f32 to vector<8x92xf32>
    %1314 = arith.mulf %460, %1313 : vector<8x92xf32>
    %1315 = arith.addf %1311, %1314 : vector<8x92xf32>
    %c182 = arith.constant 182 : index
    %1316 = memref.load %arg3[%c182] : memref<480xf32, #tpu.memory_space<smem>>
    %1317 = vector.broadcast %1316 : f32 to vector<8x92xf32>
    %1318 = arith.mulf %461, %1317 : vector<8x92xf32>
    %1319 = arith.addf %1315, %1318 : vector<8x92xf32>
    %c183 = arith.constant 183 : index
    %1320 = memref.load %arg3[%c183] : memref<480xf32, #tpu.memory_space<smem>>
    %1321 = vector.broadcast %1320 : f32 to vector<8x92xf32>
    %1322 = arith.mulf %462, %1321 : vector<8x92xf32>
    %1323 = arith.addf %1319, %1322 : vector<8x92xf32>
    %c184 = arith.constant 184 : index
    %1324 = memref.load %arg3[%c184] : memref<480xf32, #tpu.memory_space<smem>>
    %1325 = vector.broadcast %1324 : f32 to vector<8x92xf32>
    %1326 = arith.mulf %463, %1325 : vector<8x92xf32>
    %1327 = arith.addf %1323, %1326 : vector<8x92xf32>
    %c185 = arith.constant 185 : index
    %1328 = memref.load %arg3[%c185] : memref<480xf32, #tpu.memory_space<smem>>
    %1329 = vector.broadcast %1328 : f32 to vector<8x92xf32>
    %1330 = arith.mulf %472, %1329 : vector<8x92xf32>
    %1331 = arith.addf %1327, %1330 : vector<8x92xf32>
    %c186 = arith.constant 186 : index
    %1332 = memref.load %arg3[%c186] : memref<480xf32, #tpu.memory_space<smem>>
    %1333 = vector.broadcast %1332 : f32 to vector<8x92xf32>
    %1334 = arith.mulf %473, %1333 : vector<8x92xf32>
    %1335 = arith.addf %1331, %1334 : vector<8x92xf32>
    %c187 = arith.constant 187 : index
    %1336 = memref.load %arg3[%c187] : memref<480xf32, #tpu.memory_space<smem>>
    %1337 = vector.broadcast %1336 : f32 to vector<8x92xf32>
    %1338 = arith.mulf %474, %1337 : vector<8x92xf32>
    %1339 = arith.addf %1335, %1338 : vector<8x92xf32>
    %c188 = arith.constant 188 : index
    %1340 = memref.load %arg3[%c188] : memref<480xf32, #tpu.memory_space<smem>>
    %1341 = vector.broadcast %1340 : f32 to vector<8x92xf32>
    %1342 = arith.mulf %475, %1341 : vector<8x92xf32>
    %1343 = arith.addf %1339, %1342 : vector<8x92xf32>
    %c189 = arith.constant 189 : index
    %1344 = memref.load %arg3[%c189] : memref<480xf32, #tpu.memory_space<smem>>
    %1345 = vector.broadcast %1344 : f32 to vector<8x92xf32>
    %1346 = arith.mulf %476, %1345 : vector<8x92xf32>
    %1347 = arith.addf %1343, %1346 : vector<8x92xf32>
    %c190 = arith.constant 190 : index
    %1348 = memref.load %arg3[%c190] : memref<480xf32, #tpu.memory_space<smem>>
    %1349 = vector.broadcast %1348 : f32 to vector<8x92xf32>
    %1350 = arith.mulf %485, %1349 : vector<8x92xf32>
    %1351 = arith.addf %1347, %1350 : vector<8x92xf32>
    %c191 = arith.constant 191 : index
    %1352 = memref.load %arg3[%c191] : memref<480xf32, #tpu.memory_space<smem>>
    %1353 = vector.broadcast %1352 : f32 to vector<8x92xf32>
    %1354 = arith.mulf %486, %1353 : vector<8x92xf32>
    %1355 = arith.addf %1351, %1354 : vector<8x92xf32>
    %c192 = arith.constant 192 : index
    %1356 = memref.load %arg3[%c192] : memref<480xf32, #tpu.memory_space<smem>>
    %1357 = vector.broadcast %1356 : f32 to vector<8x92xf32>
    %1358 = arith.mulf %487, %1357 : vector<8x92xf32>
    %1359 = arith.addf %1355, %1358 : vector<8x92xf32>
    %c193 = arith.constant 193 : index
    %1360 = memref.load %arg3[%c193] : memref<480xf32, #tpu.memory_space<smem>>
    %1361 = vector.broadcast %1360 : f32 to vector<8x92xf32>
    %1362 = arith.mulf %488, %1361 : vector<8x92xf32>
    %1363 = arith.addf %1359, %1362 : vector<8x92xf32>
    %c194 = arith.constant 194 : index
    %1364 = memref.load %arg3[%c194] : memref<480xf32, #tpu.memory_space<smem>>
    %1365 = vector.broadcast %1364 : f32 to vector<8x92xf32>
    %1366 = arith.mulf %489, %1365 : vector<8x92xf32>
    %1367 = arith.addf %1363, %1366 : vector<8x92xf32>
    %c195 = arith.constant 195 : index
    %1368 = memref.load %arg3[%c195] : memref<480xf32, #tpu.memory_space<smem>>
    %1369 = vector.broadcast %1368 : f32 to vector<8x92xf32>
    %1370 = arith.mulf %498, %1369 : vector<8x92xf32>
    %1371 = arith.addf %1367, %1370 : vector<8x92xf32>
    %c196 = arith.constant 196 : index
    %1372 = memref.load %arg3[%c196] : memref<480xf32, #tpu.memory_space<smem>>
    %1373 = vector.broadcast %1372 : f32 to vector<8x92xf32>
    %1374 = arith.mulf %499, %1373 : vector<8x92xf32>
    %1375 = arith.addf %1371, %1374 : vector<8x92xf32>
    %c197 = arith.constant 197 : index
    %1376 = memref.load %arg3[%c197] : memref<480xf32, #tpu.memory_space<smem>>
    %1377 = vector.broadcast %1376 : f32 to vector<8x92xf32>
    %1378 = arith.mulf %500, %1377 : vector<8x92xf32>
    %1379 = arith.addf %1375, %1378 : vector<8x92xf32>
    %c198 = arith.constant 198 : index
    %1380 = memref.load %arg3[%c198] : memref<480xf32, #tpu.memory_space<smem>>
    %1381 = vector.broadcast %1380 : f32 to vector<8x92xf32>
    %1382 = arith.mulf %501, %1381 : vector<8x92xf32>
    %1383 = arith.addf %1379, %1382 : vector<8x92xf32>
    %c199 = arith.constant 199 : index
    %1384 = memref.load %arg3[%c199] : memref<480xf32, #tpu.memory_space<smem>>
    %1385 = vector.broadcast %1384 : f32 to vector<8x92xf32>
    %1386 = arith.mulf %502, %1385 : vector<8x92xf32>
    %1387 = arith.addf %1383, %1386 : vector<8x92xf32>
    %c200 = arith.constant 200 : index
    %1388 = memref.load %arg3[%c200] : memref<480xf32, #tpu.memory_space<smem>>
    %1389 = vector.broadcast %1388 : f32 to vector<8x92xf32>
    %1390 = arith.mulf %511, %1389 : vector<8x92xf32>
    %1391 = arith.addf %1387, %1390 : vector<8x92xf32>
    %c201 = arith.constant 201 : index
    %1392 = memref.load %arg3[%c201] : memref<480xf32, #tpu.memory_space<smem>>
    %1393 = vector.broadcast %1392 : f32 to vector<8x92xf32>
    %1394 = arith.mulf %512, %1393 : vector<8x92xf32>
    %1395 = arith.addf %1391, %1394 : vector<8x92xf32>
    %c202 = arith.constant 202 : index
    %1396 = memref.load %arg3[%c202] : memref<480xf32, #tpu.memory_space<smem>>
    %1397 = vector.broadcast %1396 : f32 to vector<8x92xf32>
    %1398 = arith.mulf %513, %1397 : vector<8x92xf32>
    %1399 = arith.addf %1395, %1398 : vector<8x92xf32>
    %c203 = arith.constant 203 : index
    %1400 = memref.load %arg3[%c203] : memref<480xf32, #tpu.memory_space<smem>>
    %1401 = vector.broadcast %1400 : f32 to vector<8x92xf32>
    %1402 = arith.mulf %514, %1401 : vector<8x92xf32>
    %1403 = arith.addf %1399, %1402 : vector<8x92xf32>
    %c204 = arith.constant 204 : index
    %1404 = memref.load %arg3[%c204] : memref<480xf32, #tpu.memory_space<smem>>
    %1405 = vector.broadcast %1404 : f32 to vector<8x92xf32>
    %1406 = arith.mulf %515, %1405 : vector<8x92xf32>
    %1407 = arith.addf %1403, %1406 : vector<8x92xf32>
    %c205 = arith.constant 205 : index
    %1408 = memref.load %arg3[%c205] : memref<480xf32, #tpu.memory_space<smem>>
    %1409 = vector.broadcast %1408 : f32 to vector<8x92xf32>
    %1410 = arith.mulf %524, %1409 : vector<8x92xf32>
    %1411 = arith.addf %1407, %1410 : vector<8x92xf32>
    %c206 = arith.constant 206 : index
    %1412 = memref.load %arg3[%c206] : memref<480xf32, #tpu.memory_space<smem>>
    %1413 = vector.broadcast %1412 : f32 to vector<8x92xf32>
    %1414 = arith.mulf %525, %1413 : vector<8x92xf32>
    %1415 = arith.addf %1411, %1414 : vector<8x92xf32>
    %c207 = arith.constant 207 : index
    %1416 = memref.load %arg3[%c207] : memref<480xf32, #tpu.memory_space<smem>>
    %1417 = vector.broadcast %1416 : f32 to vector<8x92xf32>
    %1418 = arith.mulf %526, %1417 : vector<8x92xf32>
    %1419 = arith.addf %1415, %1418 : vector<8x92xf32>
    %c208 = arith.constant 208 : index
    %1420 = memref.load %arg3[%c208] : memref<480xf32, #tpu.memory_space<smem>>
    %1421 = vector.broadcast %1420 : f32 to vector<8x92xf32>
    %1422 = arith.mulf %527, %1421 : vector<8x92xf32>
    %1423 = arith.addf %1419, %1422 : vector<8x92xf32>
    %c209 = arith.constant 209 : index
    %1424 = memref.load %arg3[%c209] : memref<480xf32, #tpu.memory_space<smem>>
    %1425 = vector.broadcast %1424 : f32 to vector<8x92xf32>
    %1426 = arith.mulf %528, %1425 : vector<8x92xf32>
    %1427 = arith.addf %1423, %1426 : vector<8x92xf32>
    %1428 = vector.extract_strided_slice %1427 {offsets = [0, 0], sizes = [8, 46], strides = [1, 1]} : vector<8x92xf32> to vector<8x46xf32>
    %1429 = vector.extract_strided_slice %1427 {offsets = [0, 46], sizes = [8, 46], strides = [1, 1]} : vector<8x92xf32> to vector<8x46xf32>
    %1430 = arith.maximumf %1428, %1429 : vector<8x46xf32>
    %c6_88 = arith.constant 6 : index
    %1431 = memref.load %arg4[%c6_88] : memref<16xf32, #tpu.memory_space<smem>>
    %1432 = vector.broadcast %1431 : f32 to vector<8x46xf32>
    %1433 = arith.addf %1430, %1432 : vector<8x46xf32>
    %cst_89 = arith.constant 0.000000e+00 : f32
    %1434 = vector.broadcast %cst_89 : f32 to vector<8x46xf32>
    %1435 = arith.maximumf %1433, %1434 : vector<8x46xf32>
    %c6_90 = arith.constant 6 : index
    %c0_91 = arith.constant 0 : index
    %c0_92 = arith.constant 0 : index
    %1436 = vector.load %arg6[%c6_90, %c0_91, %c0_92] : memref<16x46x128xf32, #tpu.memory_space<vmem>>, vector<1x46x128xf32>
    %1437 = vector.shape_cast %1436 : vector<1x46x128xf32> to vector<46x128xf32>
    %cst_93 = arith.constant dense<0.000000e+00> : vector<8x128xf32>
    %1438 = tpu.matmul %1435, %1437, %cst_93 {dimension_numbers = #tpu.dot_dimension_numbers<[1], [0], [0], [1], [0, 0, 1, 1], [], []>} : vector<8x46xf32>, vector<46x128xf32>, vector<8x128xf32> -> vector<8x128xf32>
    %c210 = arith.constant 210 : index
    %1439 = memref.load %arg3[%c210] : memref<480xf32, #tpu.memory_space<smem>>
    %1440 = vector.broadcast %1439 : f32 to vector<8x92xf32>
    %1441 = arith.mulf %459, %1440 : vector<8x92xf32>
    %c211 = arith.constant 211 : index
    %1442 = memref.load %arg3[%c211] : memref<480xf32, #tpu.memory_space<smem>>
    %1443 = vector.broadcast %1442 : f32 to vector<8x92xf32>
    %1444 = arith.mulf %460, %1443 : vector<8x92xf32>
    %1445 = arith.addf %1441, %1444 : vector<8x92xf32>
    %c212 = arith.constant 212 : index
    %1446 = memref.load %arg3[%c212] : memref<480xf32, #tpu.memory_space<smem>>
    %1447 = vector.broadcast %1446 : f32 to vector<8x92xf32>
    %1448 = arith.mulf %461, %1447 : vector<8x92xf32>
    %1449 = arith.addf %1445, %1448 : vector<8x92xf32>
    %c213 = arith.constant 213 : index
    %1450 = memref.load %arg3[%c213] : memref<480xf32, #tpu.memory_space<smem>>
    %1451 = vector.broadcast %1450 : f32 to vector<8x92xf32>
    %1452 = arith.mulf %462, %1451 : vector<8x92xf32>
    %1453 = arith.addf %1449, %1452 : vector<8x92xf32>
    %c214 = arith.constant 214 : index
    %1454 = memref.load %arg3[%c214] : memref<480xf32, #tpu.memory_space<smem>>
    %1455 = vector.broadcast %1454 : f32 to vector<8x92xf32>
    %1456 = arith.mulf %463, %1455 : vector<8x92xf32>
    %1457 = arith.addf %1453, %1456 : vector<8x92xf32>
    %c215 = arith.constant 215 : index
    %1458 = memref.load %arg3[%c215] : memref<480xf32, #tpu.memory_space<smem>>
    %1459 = vector.broadcast %1458 : f32 to vector<8x92xf32>
    %1460 = arith.mulf %472, %1459 : vector<8x92xf32>
    %1461 = arith.addf %1457, %1460 : vector<8x92xf32>
    %c216 = arith.constant 216 : index
    %1462 = memref.load %arg3[%c216] : memref<480xf32, #tpu.memory_space<smem>>
    %1463 = vector.broadcast %1462 : f32 to vector<8x92xf32>
    %1464 = arith.mulf %473, %1463 : vector<8x92xf32>
    %1465 = arith.addf %1461, %1464 : vector<8x92xf32>
    %c217 = arith.constant 217 : index
    %1466 = memref.load %arg3[%c217] : memref<480xf32, #tpu.memory_space<smem>>
    %1467 = vector.broadcast %1466 : f32 to vector<8x92xf32>
    %1468 = arith.mulf %474, %1467 : vector<8x92xf32>
    %1469 = arith.addf %1465, %1468 : vector<8x92xf32>
    %c218 = arith.constant 218 : index
    %1470 = memref.load %arg3[%c218] : memref<480xf32, #tpu.memory_space<smem>>
    %1471 = vector.broadcast %1470 : f32 to vector<8x92xf32>
    %1472 = arith.mulf %475, %1471 : vector<8x92xf32>
    %1473 = arith.addf %1469, %1472 : vector<8x92xf32>
    %c219 = arith.constant 219 : index
    %1474 = memref.load %arg3[%c219] : memref<480xf32, #tpu.memory_space<smem>>
    %1475 = vector.broadcast %1474 : f32 to vector<8x92xf32>
    %1476 = arith.mulf %476, %1475 : vector<8x92xf32>
    %1477 = arith.addf %1473, %1476 : vector<8x92xf32>
    %c220 = arith.constant 220 : index
    %1478 = memref.load %arg3[%c220] : memref<480xf32, #tpu.memory_space<smem>>
    %1479 = vector.broadcast %1478 : f32 to vector<8x92xf32>
    %1480 = arith.mulf %485, %1479 : vector<8x92xf32>
    %1481 = arith.addf %1477, %1480 : vector<8x92xf32>
    %c221 = arith.constant 221 : index
    %1482 = memref.load %arg3[%c221] : memref<480xf32, #tpu.memory_space<smem>>
    %1483 = vector.broadcast %1482 : f32 to vector<8x92xf32>
    %1484 = arith.mulf %486, %1483 : vector<8x92xf32>
    %1485 = arith.addf %1481, %1484 : vector<8x92xf32>
    %c222 = arith.constant 222 : index
    %1486 = memref.load %arg3[%c222] : memref<480xf32, #tpu.memory_space<smem>>
    %1487 = vector.broadcast %1486 : f32 to vector<8x92xf32>
    %1488 = arith.mulf %487, %1487 : vector<8x92xf32>
    %1489 = arith.addf %1485, %1488 : vector<8x92xf32>
    %c223 = arith.constant 223 : index
    %1490 = memref.load %arg3[%c223] : memref<480xf32, #tpu.memory_space<smem>>
    %1491 = vector.broadcast %1490 : f32 to vector<8x92xf32>
    %1492 = arith.mulf %488, %1491 : vector<8x92xf32>
    %1493 = arith.addf %1489, %1492 : vector<8x92xf32>
    %c224 = arith.constant 224 : index
    %1494 = memref.load %arg3[%c224] : memref<480xf32, #tpu.memory_space<smem>>
    %1495 = vector.broadcast %1494 : f32 to vector<8x92xf32>
    %1496 = arith.mulf %489, %1495 : vector<8x92xf32>
    %1497 = arith.addf %1493, %1496 : vector<8x92xf32>
    %c225 = arith.constant 225 : index
    %1498 = memref.load %arg3[%c225] : memref<480xf32, #tpu.memory_space<smem>>
    %1499 = vector.broadcast %1498 : f32 to vector<8x92xf32>
    %1500 = arith.mulf %498, %1499 : vector<8x92xf32>
    %1501 = arith.addf %1497, %1500 : vector<8x92xf32>
    %c226 = arith.constant 226 : index
    %1502 = memref.load %arg3[%c226] : memref<480xf32, #tpu.memory_space<smem>>
    %1503 = vector.broadcast %1502 : f32 to vector<8x92xf32>
    %1504 = arith.mulf %499, %1503 : vector<8x92xf32>
    %1505 = arith.addf %1501, %1504 : vector<8x92xf32>
    %c227 = arith.constant 227 : index
    %1506 = memref.load %arg3[%c227] : memref<480xf32, #tpu.memory_space<smem>>
    %1507 = vector.broadcast %1506 : f32 to vector<8x92xf32>
    %1508 = arith.mulf %500, %1507 : vector<8x92xf32>
    %1509 = arith.addf %1505, %1508 : vector<8x92xf32>
    %c228 = arith.constant 228 : index
    %1510 = memref.load %arg3[%c228] : memref<480xf32, #tpu.memory_space<smem>>
    %1511 = vector.broadcast %1510 : f32 to vector<8x92xf32>
    %1512 = arith.mulf %501, %1511 : vector<8x92xf32>
    %1513 = arith.addf %1509, %1512 : vector<8x92xf32>
    %c229 = arith.constant 229 : index
    %1514 = memref.load %arg3[%c229] : memref<480xf32, #tpu.memory_space<smem>>
    %1515 = vector.broadcast %1514 : f32 to vector<8x92xf32>
    %1516 = arith.mulf %502, %1515 : vector<8x92xf32>
    %1517 = arith.addf %1513, %1516 : vector<8x92xf32>
    %c230 = arith.constant 230 : index
    %1518 = memref.load %arg3[%c230] : memref<480xf32, #tpu.memory_space<smem>>
    %1519 = vector.broadcast %1518 : f32 to vector<8x92xf32>
    %1520 = arith.mulf %511, %1519 : vector<8x92xf32>
    %1521 = arith.addf %1517, %1520 : vector<8x92xf32>
    %c231 = arith.constant 231 : index
    %1522 = memref.load %arg3[%c231] : memref<480xf32, #tpu.memory_space<smem>>
    %1523 = vector.broadcast %1522 : f32 to vector<8x92xf32>
    %1524 = arith.mulf %512, %1523 : vector<8x92xf32>
    %1525 = arith.addf %1521, %1524 : vector<8x92xf32>
    %c232 = arith.constant 232 : index
    %1526 = memref.load %arg3[%c232] : memref<480xf32, #tpu.memory_space<smem>>
    %1527 = vector.broadcast %1526 : f32 to vector<8x92xf32>
    %1528 = arith.mulf %513, %1527 : vector<8x92xf32>
    %1529 = arith.addf %1525, %1528 : vector<8x92xf32>
    %c233 = arith.constant 233 : index
    %1530 = memref.load %arg3[%c233] : memref<480xf32, #tpu.memory_space<smem>>
    %1531 = vector.broadcast %1530 : f32 to vector<8x92xf32>
    %1532 = arith.mulf %514, %1531 : vector<8x92xf32>
    %1533 = arith.addf %1529, %1532 : vector<8x92xf32>
    %c234 = arith.constant 234 : index
    %1534 = memref.load %arg3[%c234] : memref<480xf32, #tpu.memory_space<smem>>
    %1535 = vector.broadcast %1534 : f32 to vector<8x92xf32>
    %1536 = arith.mulf %515, %1535 : vector<8x92xf32>
    %1537 = arith.addf %1533, %1536 : vector<8x92xf32>
    %c235 = arith.constant 235 : index
    %1538 = memref.load %arg3[%c235] : memref<480xf32, #tpu.memory_space<smem>>
    %1539 = vector.broadcast %1538 : f32 to vector<8x92xf32>
    %1540 = arith.mulf %524, %1539 : vector<8x92xf32>
    %1541 = arith.addf %1537, %1540 : vector<8x92xf32>
    %c236 = arith.constant 236 : index
    %1542 = memref.load %arg3[%c236] : memref<480xf32, #tpu.memory_space<smem>>
    %1543 = vector.broadcast %1542 : f32 to vector<8x92xf32>
    %1544 = arith.mulf %525, %1543 : vector<8x92xf32>
    %1545 = arith.addf %1541, %1544 : vector<8x92xf32>
    %c237 = arith.constant 237 : index
    %1546 = memref.load %arg3[%c237] : memref<480xf32, #tpu.memory_space<smem>>
    %1547 = vector.broadcast %1546 : f32 to vector<8x92xf32>
    %1548 = arith.mulf %526, %1547 : vector<8x92xf32>
    %1549 = arith.addf %1545, %1548 : vector<8x92xf32>
    %c238 = arith.constant 238 : index
    %1550 = memref.load %arg3[%c238] : memref<480xf32, #tpu.memory_space<smem>>
    %1551 = vector.broadcast %1550 : f32 to vector<8x92xf32>
    %1552 = arith.mulf %527, %1551 : vector<8x92xf32>
    %1553 = arith.addf %1549, %1552 : vector<8x92xf32>
    %c239 = arith.constant 239 : index
    %1554 = memref.load %arg3[%c239] : memref<480xf32, #tpu.memory_space<smem>>
    %1555 = vector.broadcast %1554 : f32 to vector<8x92xf32>
    %1556 = arith.mulf %528, %1555 : vector<8x92xf32>
    %1557 = arith.addf %1553, %1556 : vector<8x92xf32>
    %1558 = vector.extract_strided_slice %1557 {offsets = [0, 0], sizes = [8, 46], strides = [1, 1]} : vector<8x92xf32> to vector<8x46xf32>
    %1559 = vector.extract_strided_slice %1557 {offsets = [0, 46], sizes = [8, 46], strides = [1, 1]} : vector<8x92xf32> to vector<8x46xf32>
    %1560 = arith.maximumf %1558, %1559 : vector<8x46xf32>
    %c7_94 = arith.constant 7 : index
    %1561 = memref.load %arg4[%c7_94] : memref<16xf32, #tpu.memory_space<smem>>
    %1562 = vector.broadcast %1561 : f32 to vector<8x46xf32>
    %1563 = arith.addf %1560, %1562 : vector<8x46xf32>
    %cst_95 = arith.constant 0.000000e+00 : f32
    %1564 = vector.broadcast %cst_95 : f32 to vector<8x46xf32>
    %1565 = arith.maximumf %1563, %1564 : vector<8x46xf32>
    %c7_96 = arith.constant 7 : index
    %c0_97 = arith.constant 0 : index
    %c0_98 = arith.constant 0 : index
    %1566 = vector.load %arg6[%c7_96, %c0_97, %c0_98] : memref<16x46x128xf32, #tpu.memory_space<vmem>>, vector<1x46x128xf32>
    %1567 = vector.shape_cast %1566 : vector<1x46x128xf32> to vector<46x128xf32>
    %cst_99 = arith.constant dense<0.000000e+00> : vector<8x128xf32>
    %1568 = tpu.matmul %1565, %1567, %cst_99 {dimension_numbers = #tpu.dot_dimension_numbers<[1], [0], [0], [1], [0, 0, 1, 1], [], []>} : vector<8x46xf32>, vector<46x128xf32>, vector<8x128xf32> -> vector<8x128xf32>
    %c240 = arith.constant 240 : index
    %1569 = memref.load %arg3[%c240] : memref<480xf32, #tpu.memory_space<smem>>
    %1570 = vector.broadcast %1569 : f32 to vector<8x92xf32>
    %1571 = arith.mulf %459, %1570 : vector<8x92xf32>
    %c241 = arith.constant 241 : index
    %1572 = memref.load %arg3[%c241] : memref<480xf32, #tpu.memory_space<smem>>
    %1573 = vector.broadcast %1572 : f32 to vector<8x92xf32>
    %1574 = arith.mulf %460, %1573 : vector<8x92xf32>
    %1575 = arith.addf %1571, %1574 : vector<8x92xf32>
    %c242 = arith.constant 242 : index
    %1576 = memref.load %arg3[%c242] : memref<480xf32, #tpu.memory_space<smem>>
    %1577 = vector.broadcast %1576 : f32 to vector<8x92xf32>
    %1578 = arith.mulf %461, %1577 : vector<8x92xf32>
    %1579 = arith.addf %1575, %1578 : vector<8x92xf32>
    %c243 = arith.constant 243 : index
    %1580 = memref.load %arg3[%c243] : memref<480xf32, #tpu.memory_space<smem>>
    %1581 = vector.broadcast %1580 : f32 to vector<8x92xf32>
    %1582 = arith.mulf %462, %1581 : vector<8x92xf32>
    %1583 = arith.addf %1579, %1582 : vector<8x92xf32>
    %c244 = arith.constant 244 : index
    %1584 = memref.load %arg3[%c244] : memref<480xf32, #tpu.memory_space<smem>>
    %1585 = vector.broadcast %1584 : f32 to vector<8x92xf32>
    %1586 = arith.mulf %463, %1585 : vector<8x92xf32>
    %1587 = arith.addf %1583, %1586 : vector<8x92xf32>
    %c245 = arith.constant 245 : index
    %1588 = memref.load %arg3[%c245] : memref<480xf32, #tpu.memory_space<smem>>
    %1589 = vector.broadcast %1588 : f32 to vector<8x92xf32>
    %1590 = arith.mulf %472, %1589 : vector<8x92xf32>
    %1591 = arith.addf %1587, %1590 : vector<8x92xf32>
    %c246 = arith.constant 246 : index
    %1592 = memref.load %arg3[%c246] : memref<480xf32, #tpu.memory_space<smem>>
    %1593 = vector.broadcast %1592 : f32 to vector<8x92xf32>
    %1594 = arith.mulf %473, %1593 : vector<8x92xf32>
    %1595 = arith.addf %1591, %1594 : vector<8x92xf32>
    %c247 = arith.constant 247 : index
    %1596 = memref.load %arg3[%c247] : memref<480xf32, #tpu.memory_space<smem>>
    %1597 = vector.broadcast %1596 : f32 to vector<8x92xf32>
    %1598 = arith.mulf %474, %1597 : vector<8x92xf32>
    %1599 = arith.addf %1595, %1598 : vector<8x92xf32>
    %c248 = arith.constant 248 : index
    %1600 = memref.load %arg3[%c248] : memref<480xf32, #tpu.memory_space<smem>>
    %1601 = vector.broadcast %1600 : f32 to vector<8x92xf32>
    %1602 = arith.mulf %475, %1601 : vector<8x92xf32>
    %1603 = arith.addf %1599, %1602 : vector<8x92xf32>
    %c249 = arith.constant 249 : index
    %1604 = memref.load %arg3[%c249] : memref<480xf32, #tpu.memory_space<smem>>
    %1605 = vector.broadcast %1604 : f32 to vector<8x92xf32>
    %1606 = arith.mulf %476, %1605 : vector<8x92xf32>
    %1607 = arith.addf %1603, %1606 : vector<8x92xf32>
    %c250 = arith.constant 250 : index
    %1608 = memref.load %arg3[%c250] : memref<480xf32, #tpu.memory_space<smem>>
    %1609 = vector.broadcast %1608 : f32 to vector<8x92xf32>
    %1610 = arith.mulf %485, %1609 : vector<8x92xf32>
    %1611 = arith.addf %1607, %1610 : vector<8x92xf32>
    %c251 = arith.constant 251 : index
    %1612 = memref.load %arg3[%c251] : memref<480xf32, #tpu.memory_space<smem>>
    %1613 = vector.broadcast %1612 : f32 to vector<8x92xf32>
    %1614 = arith.mulf %486, %1613 : vector<8x92xf32>
    %1615 = arith.addf %1611, %1614 : vector<8x92xf32>
    %c252 = arith.constant 252 : index
    %1616 = memref.load %arg3[%c252] : memref<480xf32, #tpu.memory_space<smem>>
    %1617 = vector.broadcast %1616 : f32 to vector<8x92xf32>
    %1618 = arith.mulf %487, %1617 : vector<8x92xf32>
    %1619 = arith.addf %1615, %1618 : vector<8x92xf32>
    %c253 = arith.constant 253 : index
    %1620 = memref.load %arg3[%c253] : memref<480xf32, #tpu.memory_space<smem>>
    %1621 = vector.broadcast %1620 : f32 to vector<8x92xf32>
    %1622 = arith.mulf %488, %1621 : vector<8x92xf32>
    %1623 = arith.addf %1619, %1622 : vector<8x92xf32>
    %c254 = arith.constant 254 : index
    %1624 = memref.load %arg3[%c254] : memref<480xf32, #tpu.memory_space<smem>>
    %1625 = vector.broadcast %1624 : f32 to vector<8x92xf32>
    %1626 = arith.mulf %489, %1625 : vector<8x92xf32>
    %1627 = arith.addf %1623, %1626 : vector<8x92xf32>
    %c255 = arith.constant 255 : index
    %1628 = memref.load %arg3[%c255] : memref<480xf32, #tpu.memory_space<smem>>
    %1629 = vector.broadcast %1628 : f32 to vector<8x92xf32>
    %1630 = arith.mulf %498, %1629 : vector<8x92xf32>
    %1631 = arith.addf %1627, %1630 : vector<8x92xf32>
    %c256 = arith.constant 256 : index
    %1632 = memref.load %arg3[%c256] : memref<480xf32, #tpu.memory_space<smem>>
    %1633 = vector.broadcast %1632 : f32 to vector<8x92xf32>
    %1634 = arith.mulf %499, %1633 : vector<8x92xf32>
    %1635 = arith.addf %1631, %1634 : vector<8x92xf32>
    %c257 = arith.constant 257 : index
    %1636 = memref.load %arg3[%c257] : memref<480xf32, #tpu.memory_space<smem>>
    %1637 = vector.broadcast %1636 : f32 to vector<8x92xf32>
    %1638 = arith.mulf %500, %1637 : vector<8x92xf32>
    %1639 = arith.addf %1635, %1638 : vector<8x92xf32>
    %c258 = arith.constant 258 : index
    %1640 = memref.load %arg3[%c258] : memref<480xf32, #tpu.memory_space<smem>>
    %1641 = vector.broadcast %1640 : f32 to vector<8x92xf32>
    %1642 = arith.mulf %501, %1641 : vector<8x92xf32>
    %1643 = arith.addf %1639, %1642 : vector<8x92xf32>
    %c259 = arith.constant 259 : index
    %1644 = memref.load %arg3[%c259] : memref<480xf32, #tpu.memory_space<smem>>
    %1645 = vector.broadcast %1644 : f32 to vector<8x92xf32>
    %1646 = arith.mulf %502, %1645 : vector<8x92xf32>
    %1647 = arith.addf %1643, %1646 : vector<8x92xf32>
    %c260 = arith.constant 260 : index
    %1648 = memref.load %arg3[%c260] : memref<480xf32, #tpu.memory_space<smem>>
    %1649 = vector.broadcast %1648 : f32 to vector<8x92xf32>
    %1650 = arith.mulf %511, %1649 : vector<8x92xf32>
    %1651 = arith.addf %1647, %1650 : vector<8x92xf32>
    %c261 = arith.constant 261 : index
    %1652 = memref.load %arg3[%c261] : memref<480xf32, #tpu.memory_space<smem>>
    %1653 = vector.broadcast %1652 : f32 to vector<8x92xf32>
    %1654 = arith.mulf %512, %1653 : vector<8x92xf32>
    %1655 = arith.addf %1651, %1654 : vector<8x92xf32>
    %c262 = arith.constant 262 : index
    %1656 = memref.load %arg3[%c262] : memref<480xf32, #tpu.memory_space<smem>>
    %1657 = vector.broadcast %1656 : f32 to vector<8x92xf32>
    %1658 = arith.mulf %513, %1657 : vector<8x92xf32>
    %1659 = arith.addf %1655, %1658 : vector<8x92xf32>
    %c263 = arith.constant 263 : index
    %1660 = memref.load %arg3[%c263] : memref<480xf32, #tpu.memory_space<smem>>
    %1661 = vector.broadcast %1660 : f32 to vector<8x92xf32>
    %1662 = arith.mulf %514, %1661 : vector<8x92xf32>
    %1663 = arith.addf %1659, %1662 : vector<8x92xf32>
    %c264 = arith.constant 264 : index
    %1664 = memref.load %arg3[%c264] : memref<480xf32, #tpu.memory_space<smem>>
    %1665 = vector.broadcast %1664 : f32 to vector<8x92xf32>
    %1666 = arith.mulf %515, %1665 : vector<8x92xf32>
    %1667 = arith.addf %1663, %1666 : vector<8x92xf32>
    %c265 = arith.constant 265 : index
    %1668 = memref.load %arg3[%c265] : memref<480xf32, #tpu.memory_space<smem>>
    %1669 = vector.broadcast %1668 : f32 to vector<8x92xf32>
    %1670 = arith.mulf %524, %1669 : vector<8x92xf32>
    %1671 = arith.addf %1667, %1670 : vector<8x92xf32>
    %c266 = arith.constant 266 : index
    %1672 = memref.load %arg3[%c266] : memref<480xf32, #tpu.memory_space<smem>>
    %1673 = vector.broadcast %1672 : f32 to vector<8x92xf32>
    %1674 = arith.mulf %525, %1673 : vector<8x92xf32>
    %1675 = arith.addf %1671, %1674 : vector<8x92xf32>
    %c267 = arith.constant 267 : index
    %1676 = memref.load %arg3[%c267] : memref<480xf32, #tpu.memory_space<smem>>
    %1677 = vector.broadcast %1676 : f32 to vector<8x92xf32>
    %1678 = arith.mulf %526, %1677 : vector<8x92xf32>
    %1679 = arith.addf %1675, %1678 : vector<8x92xf32>
    %c268 = arith.constant 268 : index
    %1680 = memref.load %arg3[%c268] : memref<480xf32, #tpu.memory_space<smem>>
    %1681 = vector.broadcast %1680 : f32 to vector<8x92xf32>
    %1682 = arith.mulf %527, %1681 : vector<8x92xf32>
    %1683 = arith.addf %1679, %1682 : vector<8x92xf32>
    %c269 = arith.constant 269 : index
    %1684 = memref.load %arg3[%c269] : memref<480xf32, #tpu.memory_space<smem>>
    %1685 = vector.broadcast %1684 : f32 to vector<8x92xf32>
    %1686 = arith.mulf %528, %1685 : vector<8x92xf32>
    %1687 = arith.addf %1683, %1686 : vector<8x92xf32>
    %1688 = vector.extract_strided_slice %1687 {offsets = [0, 0], sizes = [8, 46], strides = [1, 1]} : vector<8x92xf32> to vector<8x46xf32>
    %1689 = vector.extract_strided_slice %1687 {offsets = [0, 46], sizes = [8, 46], strides = [1, 1]} : vector<8x92xf32> to vector<8x46xf32>
    %1690 = arith.maximumf %1688, %1689 : vector<8x46xf32>
    %c8_100 = arith.constant 8 : index
    %1691 = memref.load %arg4[%c8_100] : memref<16xf32, #tpu.memory_space<smem>>
    %1692 = vector.broadcast %1691 : f32 to vector<8x46xf32>
    %1693 = arith.addf %1690, %1692 : vector<8x46xf32>
    %cst_101 = arith.constant 0.000000e+00 : f32
    %1694 = vector.broadcast %cst_101 : f32 to vector<8x46xf32>
    %1695 = arith.maximumf %1693, %1694 : vector<8x46xf32>
    %c8_102 = arith.constant 8 : index
    %c0_103 = arith.constant 0 : index
    %c0_104 = arith.constant 0 : index
    %1696 = vector.load %arg6[%c8_102, %c0_103, %c0_104] : memref<16x46x128xf32, #tpu.memory_space<vmem>>, vector<1x46x128xf32>
    %1697 = vector.shape_cast %1696 : vector<1x46x128xf32> to vector<46x128xf32>
    %cst_105 = arith.constant dense<0.000000e+00> : vector<8x128xf32>
    %1698 = tpu.matmul %1695, %1697, %cst_105 {dimension_numbers = #tpu.dot_dimension_numbers<[1], [0], [0], [1], [0, 0, 1, 1], [], []>} : vector<8x46xf32>, vector<46x128xf32>, vector<8x128xf32> -> vector<8x128xf32>
    %c270 = arith.constant 270 : index
    %1699 = memref.load %arg3[%c270] : memref<480xf32, #tpu.memory_space<smem>>
    %1700 = vector.broadcast %1699 : f32 to vector<8x92xf32>
    %1701 = arith.mulf %459, %1700 : vector<8x92xf32>
    %c271 = arith.constant 271 : index
    %1702 = memref.load %arg3[%c271] : memref<480xf32, #tpu.memory_space<smem>>
    %1703 = vector.broadcast %1702 : f32 to vector<8x92xf32>
    %1704 = arith.mulf %460, %1703 : vector<8x92xf32>
    %1705 = arith.addf %1701, %1704 : vector<8x92xf32>
    %c272 = arith.constant 272 : index
    %1706 = memref.load %arg3[%c272] : memref<480xf32, #tpu.memory_space<smem>>
    %1707 = vector.broadcast %1706 : f32 to vector<8x92xf32>
    %1708 = arith.mulf %461, %1707 : vector<8x92xf32>
    %1709 = arith.addf %1705, %1708 : vector<8x92xf32>
    %c273 = arith.constant 273 : index
    %1710 = memref.load %arg3[%c273] : memref<480xf32, #tpu.memory_space<smem>>
    %1711 = vector.broadcast %1710 : f32 to vector<8x92xf32>
    %1712 = arith.mulf %462, %1711 : vector<8x92xf32>
    %1713 = arith.addf %1709, %1712 : vector<8x92xf32>
    %c274 = arith.constant 274 : index
    %1714 = memref.load %arg3[%c274] : memref<480xf32, #tpu.memory_space<smem>>
    %1715 = vector.broadcast %1714 : f32 to vector<8x92xf32>
    %1716 = arith.mulf %463, %1715 : vector<8x92xf32>
    %1717 = arith.addf %1713, %1716 : vector<8x92xf32>
    %c275 = arith.constant 275 : index
    %1718 = memref.load %arg3[%c275] : memref<480xf32, #tpu.memory_space<smem>>
    %1719 = vector.broadcast %1718 : f32 to vector<8x92xf32>
    %1720 = arith.mulf %472, %1719 : vector<8x92xf32>
    %1721 = arith.addf %1717, %1720 : vector<8x92xf32>
    %c276 = arith.constant 276 : index
    %1722 = memref.load %arg3[%c276] : memref<480xf32, #tpu.memory_space<smem>>
    %1723 = vector.broadcast %1722 : f32 to vector<8x92xf32>
    %1724 = arith.mulf %473, %1723 : vector<8x92xf32>
    %1725 = arith.addf %1721, %1724 : vector<8x92xf32>
    %c277 = arith.constant 277 : index
    %1726 = memref.load %arg3[%c277] : memref<480xf32, #tpu.memory_space<smem>>
    %1727 = vector.broadcast %1726 : f32 to vector<8x92xf32>
    %1728 = arith.mulf %474, %1727 : vector<8x92xf32>
    %1729 = arith.addf %1725, %1728 : vector<8x92xf32>
    %c278 = arith.constant 278 : index
    %1730 = memref.load %arg3[%c278] : memref<480xf32, #tpu.memory_space<smem>>
    %1731 = vector.broadcast %1730 : f32 to vector<8x92xf32>
    %1732 = arith.mulf %475, %1731 : vector<8x92xf32>
    %1733 = arith.addf %1729, %1732 : vector<8x92xf32>
    %c279 = arith.constant 279 : index
    %1734 = memref.load %arg3[%c279] : memref<480xf32, #tpu.memory_space<smem>>
    %1735 = vector.broadcast %1734 : f32 to vector<8x92xf32>
    %1736 = arith.mulf %476, %1735 : vector<8x92xf32>
    %1737 = arith.addf %1733, %1736 : vector<8x92xf32>
    %c280 = arith.constant 280 : index
    %1738 = memref.load %arg3[%c280] : memref<480xf32, #tpu.memory_space<smem>>
    %1739 = vector.broadcast %1738 : f32 to vector<8x92xf32>
    %1740 = arith.mulf %485, %1739 : vector<8x92xf32>
    %1741 = arith.addf %1737, %1740 : vector<8x92xf32>
    %c281 = arith.constant 281 : index
    %1742 = memref.load %arg3[%c281] : memref<480xf32, #tpu.memory_space<smem>>
    %1743 = vector.broadcast %1742 : f32 to vector<8x92xf32>
    %1744 = arith.mulf %486, %1743 : vector<8x92xf32>
    %1745 = arith.addf %1741, %1744 : vector<8x92xf32>
    %c282 = arith.constant 282 : index
    %1746 = memref.load %arg3[%c282] : memref<480xf32, #tpu.memory_space<smem>>
    %1747 = vector.broadcast %1746 : f32 to vector<8x92xf32>
    %1748 = arith.mulf %487, %1747 : vector<8x92xf32>
    %1749 = arith.addf %1745, %1748 : vector<8x92xf32>
    %c283 = arith.constant 283 : index
    %1750 = memref.load %arg3[%c283] : memref<480xf32, #tpu.memory_space<smem>>
    %1751 = vector.broadcast %1750 : f32 to vector<8x92xf32>
    %1752 = arith.mulf %488, %1751 : vector<8x92xf32>
    %1753 = arith.addf %1749, %1752 : vector<8x92xf32>
    %c284 = arith.constant 284 : index
    %1754 = memref.load %arg3[%c284] : memref<480xf32, #tpu.memory_space<smem>>
    %1755 = vector.broadcast %1754 : f32 to vector<8x92xf32>
    %1756 = arith.mulf %489, %1755 : vector<8x92xf32>
    %1757 = arith.addf %1753, %1756 : vector<8x92xf32>
    %c285 = arith.constant 285 : index
    %1758 = memref.load %arg3[%c285] : memref<480xf32, #tpu.memory_space<smem>>
    %1759 = vector.broadcast %1758 : f32 to vector<8x92xf32>
    %1760 = arith.mulf %498, %1759 : vector<8x92xf32>
    %1761 = arith.addf %1757, %1760 : vector<8x92xf32>
    %c286 = arith.constant 286 : index
    %1762 = memref.load %arg3[%c286] : memref<480xf32, #tpu.memory_space<smem>>
    %1763 = vector.broadcast %1762 : f32 to vector<8x92xf32>
    %1764 = arith.mulf %499, %1763 : vector<8x92xf32>
    %1765 = arith.addf %1761, %1764 : vector<8x92xf32>
    %c287 = arith.constant 287 : index
    %1766 = memref.load %arg3[%c287] : memref<480xf32, #tpu.memory_space<smem>>
    %1767 = vector.broadcast %1766 : f32 to vector<8x92xf32>
    %1768 = arith.mulf %500, %1767 : vector<8x92xf32>
    %1769 = arith.addf %1765, %1768 : vector<8x92xf32>
    %c288 = arith.constant 288 : index
    %1770 = memref.load %arg3[%c288] : memref<480xf32, #tpu.memory_space<smem>>
    %1771 = vector.broadcast %1770 : f32 to vector<8x92xf32>
    %1772 = arith.mulf %501, %1771 : vector<8x92xf32>
    %1773 = arith.addf %1769, %1772 : vector<8x92xf32>
    %c289 = arith.constant 289 : index
    %1774 = memref.load %arg3[%c289] : memref<480xf32, #tpu.memory_space<smem>>
    %1775 = vector.broadcast %1774 : f32 to vector<8x92xf32>
    %1776 = arith.mulf %502, %1775 : vector<8x92xf32>
    %1777 = arith.addf %1773, %1776 : vector<8x92xf32>
    %c290 = arith.constant 290 : index
    %1778 = memref.load %arg3[%c290] : memref<480xf32, #tpu.memory_space<smem>>
    %1779 = vector.broadcast %1778 : f32 to vector<8x92xf32>
    %1780 = arith.mulf %511, %1779 : vector<8x92xf32>
    %1781 = arith.addf %1777, %1780 : vector<8x92xf32>
    %c291 = arith.constant 291 : index
    %1782 = memref.load %arg3[%c291] : memref<480xf32, #tpu.memory_space<smem>>
    %1783 = vector.broadcast %1782 : f32 to vector<8x92xf32>
    %1784 = arith.mulf %512, %1783 : vector<8x92xf32>
    %1785 = arith.addf %1781, %1784 : vector<8x92xf32>
    %c292 = arith.constant 292 : index
    %1786 = memref.load %arg3[%c292] : memref<480xf32, #tpu.memory_space<smem>>
    %1787 = vector.broadcast %1786 : f32 to vector<8x92xf32>
    %1788 = arith.mulf %513, %1787 : vector<8x92xf32>
    %1789 = arith.addf %1785, %1788 : vector<8x92xf32>
    %c293 = arith.constant 293 : index
    %1790 = memref.load %arg3[%c293] : memref<480xf32, #tpu.memory_space<smem>>
    %1791 = vector.broadcast %1790 : f32 to vector<8x92xf32>
    %1792 = arith.mulf %514, %1791 : vector<8x92xf32>
    %1793 = arith.addf %1789, %1792 : vector<8x92xf32>
    %c294 = arith.constant 294 : index
    %1794 = memref.load %arg3[%c294] : memref<480xf32, #tpu.memory_space<smem>>
    %1795 = vector.broadcast %1794 : f32 to vector<8x92xf32>
    %1796 = arith.mulf %515, %1795 : vector<8x92xf32>
    %1797 = arith.addf %1793, %1796 : vector<8x92xf32>
    %c295 = arith.constant 295 : index
    %1798 = memref.load %arg3[%c295] : memref<480xf32, #tpu.memory_space<smem>>
    %1799 = vector.broadcast %1798 : f32 to vector<8x92xf32>
    %1800 = arith.mulf %524, %1799 : vector<8x92xf32>
    %1801 = arith.addf %1797, %1800 : vector<8x92xf32>
    %c296 = arith.constant 296 : index
    %1802 = memref.load %arg3[%c296] : memref<480xf32, #tpu.memory_space<smem>>
    %1803 = vector.broadcast %1802 : f32 to vector<8x92xf32>
    %1804 = arith.mulf %525, %1803 : vector<8x92xf32>
    %1805 = arith.addf %1801, %1804 : vector<8x92xf32>
    %c297 = arith.constant 297 : index
    %1806 = memref.load %arg3[%c297] : memref<480xf32, #tpu.memory_space<smem>>
    %1807 = vector.broadcast %1806 : f32 to vector<8x92xf32>
    %1808 = arith.mulf %526, %1807 : vector<8x92xf32>
    %1809 = arith.addf %1805, %1808 : vector<8x92xf32>
    %c298 = arith.constant 298 : index
    %1810 = memref.load %arg3[%c298] : memref<480xf32, #tpu.memory_space<smem>>
    %1811 = vector.broadcast %1810 : f32 to vector<8x92xf32>
    %1812 = arith.mulf %527, %1811 : vector<8x92xf32>
    %1813 = arith.addf %1809, %1812 : vector<8x92xf32>
    %c299 = arith.constant 299 : index
    %1814 = memref.load %arg3[%c299] : memref<480xf32, #tpu.memory_space<smem>>
    %1815 = vector.broadcast %1814 : f32 to vector<8x92xf32>
    %1816 = arith.mulf %528, %1815 : vector<8x92xf32>
    %1817 = arith.addf %1813, %1816 : vector<8x92xf32>
    %1818 = vector.extract_strided_slice %1817 {offsets = [0, 0], sizes = [8, 46], strides = [1, 1]} : vector<8x92xf32> to vector<8x46xf32>
    %1819 = vector.extract_strided_slice %1817 {offsets = [0, 46], sizes = [8, 46], strides = [1, 1]} : vector<8x92xf32> to vector<8x46xf32>
    %1820 = arith.maximumf %1818, %1819 : vector<8x46xf32>
    %c9_106 = arith.constant 9 : index
    %1821 = memref.load %arg4[%c9_106] : memref<16xf32, #tpu.memory_space<smem>>
    %1822 = vector.broadcast %1821 : f32 to vector<8x46xf32>
    %1823 = arith.addf %1820, %1822 : vector<8x46xf32>
    %cst_107 = arith.constant 0.000000e+00 : f32
    %1824 = vector.broadcast %cst_107 : f32 to vector<8x46xf32>
    %1825 = arith.maximumf %1823, %1824 : vector<8x46xf32>
    %c9_108 = arith.constant 9 : index
    %c0_109 = arith.constant 0 : index
    %c0_110 = arith.constant 0 : index
    %1826 = vector.load %arg6[%c9_108, %c0_109, %c0_110] : memref<16x46x128xf32, #tpu.memory_space<vmem>>, vector<1x46x128xf32>
    %1827 = vector.shape_cast %1826 : vector<1x46x128xf32> to vector<46x128xf32>
    %cst_111 = arith.constant dense<0.000000e+00> : vector<8x128xf32>
    %1828 = tpu.matmul %1825, %1827, %cst_111 {dimension_numbers = #tpu.dot_dimension_numbers<[1], [0], [0], [1], [0, 0, 1, 1], [], []>} : vector<8x46xf32>, vector<46x128xf32>, vector<8x128xf32> -> vector<8x128xf32>
    %c300 = arith.constant 300 : index
    %1829 = memref.load %arg3[%c300] : memref<480xf32, #tpu.memory_space<smem>>
    %1830 = vector.broadcast %1829 : f32 to vector<8x92xf32>
    %1831 = arith.mulf %459, %1830 : vector<8x92xf32>
    %c301 = arith.constant 301 : index
    %1832 = memref.load %arg3[%c301] : memref<480xf32, #tpu.memory_space<smem>>
    %1833 = vector.broadcast %1832 : f32 to vector<8x92xf32>
    %1834 = arith.mulf %460, %1833 : vector<8x92xf32>
    %1835 = arith.addf %1831, %1834 : vector<8x92xf32>
    %c302 = arith.constant 302 : index
    %1836 = memref.load %arg3[%c302] : memref<480xf32, #tpu.memory_space<smem>>
    %1837 = vector.broadcast %1836 : f32 to vector<8x92xf32>
    %1838 = arith.mulf %461, %1837 : vector<8x92xf32>
    %1839 = arith.addf %1835, %1838 : vector<8x92xf32>
    %c303 = arith.constant 303 : index
    %1840 = memref.load %arg3[%c303] : memref<480xf32, #tpu.memory_space<smem>>
    %1841 = vector.broadcast %1840 : f32 to vector<8x92xf32>
    %1842 = arith.mulf %462, %1841 : vector<8x92xf32>
    %1843 = arith.addf %1839, %1842 : vector<8x92xf32>
    %c304 = arith.constant 304 : index
    %1844 = memref.load %arg3[%c304] : memref<480xf32, #tpu.memory_space<smem>>
    %1845 = vector.broadcast %1844 : f32 to vector<8x92xf32>
    %1846 = arith.mulf %463, %1845 : vector<8x92xf32>
    %1847 = arith.addf %1843, %1846 : vector<8x92xf32>
    %c305 = arith.constant 305 : index
    %1848 = memref.load %arg3[%c305] : memref<480xf32, #tpu.memory_space<smem>>
    %1849 = vector.broadcast %1848 : f32 to vector<8x92xf32>
    %1850 = arith.mulf %472, %1849 : vector<8x92xf32>
    %1851 = arith.addf %1847, %1850 : vector<8x92xf32>
    %c306 = arith.constant 306 : index
    %1852 = memref.load %arg3[%c306] : memref<480xf32, #tpu.memory_space<smem>>
    %1853 = vector.broadcast %1852 : f32 to vector<8x92xf32>
    %1854 = arith.mulf %473, %1853 : vector<8x92xf32>
    %1855 = arith.addf %1851, %1854 : vector<8x92xf32>
    %c307 = arith.constant 307 : index
    %1856 = memref.load %arg3[%c307] : memref<480xf32, #tpu.memory_space<smem>>
    %1857 = vector.broadcast %1856 : f32 to vector<8x92xf32>
    %1858 = arith.mulf %474, %1857 : vector<8x92xf32>
    %1859 = arith.addf %1855, %1858 : vector<8x92xf32>
    %c308 = arith.constant 308 : index
    %1860 = memref.load %arg3[%c308] : memref<480xf32, #tpu.memory_space<smem>>
    %1861 = vector.broadcast %1860 : f32 to vector<8x92xf32>
    %1862 = arith.mulf %475, %1861 : vector<8x92xf32>
    %1863 = arith.addf %1859, %1862 : vector<8x92xf32>
    %c309 = arith.constant 309 : index
    %1864 = memref.load %arg3[%c309] : memref<480xf32, #tpu.memory_space<smem>>
    %1865 = vector.broadcast %1864 : f32 to vector<8x92xf32>
    %1866 = arith.mulf %476, %1865 : vector<8x92xf32>
    %1867 = arith.addf %1863, %1866 : vector<8x92xf32>
    %c310 = arith.constant 310 : index
    %1868 = memref.load %arg3[%c310] : memref<480xf32, #tpu.memory_space<smem>>
    %1869 = vector.broadcast %1868 : f32 to vector<8x92xf32>
    %1870 = arith.mulf %485, %1869 : vector<8x92xf32>
    %1871 = arith.addf %1867, %1870 : vector<8x92xf32>
    %c311 = arith.constant 311 : index
    %1872 = memref.load %arg3[%c311] : memref<480xf32, #tpu.memory_space<smem>>
    %1873 = vector.broadcast %1872 : f32 to vector<8x92xf32>
    %1874 = arith.mulf %486, %1873 : vector<8x92xf32>
    %1875 = arith.addf %1871, %1874 : vector<8x92xf32>
    %c312 = arith.constant 312 : index
    %1876 = memref.load %arg3[%c312] : memref<480xf32, #tpu.memory_space<smem>>
    %1877 = vector.broadcast %1876 : f32 to vector<8x92xf32>
    %1878 = arith.mulf %487, %1877 : vector<8x92xf32>
    %1879 = arith.addf %1875, %1878 : vector<8x92xf32>
    %c313 = arith.constant 313 : index
    %1880 = memref.load %arg3[%c313] : memref<480xf32, #tpu.memory_space<smem>>
    %1881 = vector.broadcast %1880 : f32 to vector<8x92xf32>
    %1882 = arith.mulf %488, %1881 : vector<8x92xf32>
    %1883 = arith.addf %1879, %1882 : vector<8x92xf32>
    %c314 = arith.constant 314 : index
    %1884 = memref.load %arg3[%c314] : memref<480xf32, #tpu.memory_space<smem>>
    %1885 = vector.broadcast %1884 : f32 to vector<8x92xf32>
    %1886 = arith.mulf %489, %1885 : vector<8x92xf32>
    %1887 = arith.addf %1883, %1886 : vector<8x92xf32>
    %c315 = arith.constant 315 : index
    %1888 = memref.load %arg3[%c315] : memref<480xf32, #tpu.memory_space<smem>>
    %1889 = vector.broadcast %1888 : f32 to vector<8x92xf32>
    %1890 = arith.mulf %498, %1889 : vector<8x92xf32>
    %1891 = arith.addf %1887, %1890 : vector<8x92xf32>
    %c316 = arith.constant 316 : index
    %1892 = memref.load %arg3[%c316] : memref<480xf32, #tpu.memory_space<smem>>
    %1893 = vector.broadcast %1892 : f32 to vector<8x92xf32>
    %1894 = arith.mulf %499, %1893 : vector<8x92xf32>
    %1895 = arith.addf %1891, %1894 : vector<8x92xf32>
    %c317 = arith.constant 317 : index
    %1896 = memref.load %arg3[%c317] : memref<480xf32, #tpu.memory_space<smem>>
    %1897 = vector.broadcast %1896 : f32 to vector<8x92xf32>
    %1898 = arith.mulf %500, %1897 : vector<8x92xf32>
    %1899 = arith.addf %1895, %1898 : vector<8x92xf32>
    %c318 = arith.constant 318 : index
    %1900 = memref.load %arg3[%c318] : memref<480xf32, #tpu.memory_space<smem>>
    %1901 = vector.broadcast %1900 : f32 to vector<8x92xf32>
    %1902 = arith.mulf %501, %1901 : vector<8x92xf32>
    %1903 = arith.addf %1899, %1902 : vector<8x92xf32>
    %c319 = arith.constant 319 : index
    %1904 = memref.load %arg3[%c319] : memref<480xf32, #tpu.memory_space<smem>>
    %1905 = vector.broadcast %1904 : f32 to vector<8x92xf32>
    %1906 = arith.mulf %502, %1905 : vector<8x92xf32>
    %1907 = arith.addf %1903, %1906 : vector<8x92xf32>
    %c320 = arith.constant 320 : index
    %1908 = memref.load %arg3[%c320] : memref<480xf32, #tpu.memory_space<smem>>
    %1909 = vector.broadcast %1908 : f32 to vector<8x92xf32>
    %1910 = arith.mulf %511, %1909 : vector<8x92xf32>
    %1911 = arith.addf %1907, %1910 : vector<8x92xf32>
    %c321 = arith.constant 321 : index
    %1912 = memref.load %arg3[%c321] : memref<480xf32, #tpu.memory_space<smem>>
    %1913 = vector.broadcast %1912 : f32 to vector<8x92xf32>
    %1914 = arith.mulf %512, %1913 : vector<8x92xf32>
    %1915 = arith.addf %1911, %1914 : vector<8x92xf32>
    %c322 = arith.constant 322 : index
    %1916 = memref.load %arg3[%c322] : memref<480xf32, #tpu.memory_space<smem>>
    %1917 = vector.broadcast %1916 : f32 to vector<8x92xf32>
    %1918 = arith.mulf %513, %1917 : vector<8x92xf32>
    %1919 = arith.addf %1915, %1918 : vector<8x92xf32>
    %c323 = arith.constant 323 : index
    %1920 = memref.load %arg3[%c323] : memref<480xf32, #tpu.memory_space<smem>>
    %1921 = vector.broadcast %1920 : f32 to vector<8x92xf32>
    %1922 = arith.mulf %514, %1921 : vector<8x92xf32>
    %1923 = arith.addf %1919, %1922 : vector<8x92xf32>
    %c324 = arith.constant 324 : index
    %1924 = memref.load %arg3[%c324] : memref<480xf32, #tpu.memory_space<smem>>
    %1925 = vector.broadcast %1924 : f32 to vector<8x92xf32>
    %1926 = arith.mulf %515, %1925 : vector<8x92xf32>
    %1927 = arith.addf %1923, %1926 : vector<8x92xf32>
    %c325 = arith.constant 325 : index
    %1928 = memref.load %arg3[%c325] : memref<480xf32, #tpu.memory_space<smem>>
    %1929 = vector.broadcast %1928 : f32 to vector<8x92xf32>
    %1930 = arith.mulf %524, %1929 : vector<8x92xf32>
    %1931 = arith.addf %1927, %1930 : vector<8x92xf32>
    %c326 = arith.constant 326 : index
    %1932 = memref.load %arg3[%c326] : memref<480xf32, #tpu.memory_space<smem>>
    %1933 = vector.broadcast %1932 : f32 to vector<8x92xf32>
    %1934 = arith.mulf %525, %1933 : vector<8x92xf32>
    %1935 = arith.addf %1931, %1934 : vector<8x92xf32>
    %c327 = arith.constant 327 : index
    %1936 = memref.load %arg3[%c327] : memref<480xf32, #tpu.memory_space<smem>>
    %1937 = vector.broadcast %1936 : f32 to vector<8x92xf32>
    %1938 = arith.mulf %526, %1937 : vector<8x92xf32>
    %1939 = arith.addf %1935, %1938 : vector<8x92xf32>
    %c328 = arith.constant 328 : index
    %1940 = memref.load %arg3[%c328] : memref<480xf32, #tpu.memory_space<smem>>
    %1941 = vector.broadcast %1940 : f32 to vector<8x92xf32>
    %1942 = arith.mulf %527, %1941 : vector<8x92xf32>
    %1943 = arith.addf %1939, %1942 : vector<8x92xf32>
    %c329 = arith.constant 329 : index
    %1944 = memref.load %arg3[%c329] : memref<480xf32, #tpu.memory_space<smem>>
    %1945 = vector.broadcast %1944 : f32 to vector<8x92xf32>
    %1946 = arith.mulf %528, %1945 : vector<8x92xf32>
    %1947 = arith.addf %1943, %1946 : vector<8x92xf32>
    %1948 = vector.extract_strided_slice %1947 {offsets = [0, 0], sizes = [8, 46], strides = [1, 1]} : vector<8x92xf32> to vector<8x46xf32>
    %1949 = vector.extract_strided_slice %1947 {offsets = [0, 46], sizes = [8, 46], strides = [1, 1]} : vector<8x92xf32> to vector<8x46xf32>
    %1950 = arith.maximumf %1948, %1949 : vector<8x46xf32>
    %c10_112 = arith.constant 10 : index
    %1951 = memref.load %arg4[%c10_112] : memref<16xf32, #tpu.memory_space<smem>>
    %1952 = vector.broadcast %1951 : f32 to vector<8x46xf32>
    %1953 = arith.addf %1950, %1952 : vector<8x46xf32>
    %cst_113 = arith.constant 0.000000e+00 : f32
    %1954 = vector.broadcast %cst_113 : f32 to vector<8x46xf32>
    %1955 = arith.maximumf %1953, %1954 : vector<8x46xf32>
    %c10_114 = arith.constant 10 : index
    %c0_115 = arith.constant 0 : index
    %c0_116 = arith.constant 0 : index
    %1956 = vector.load %arg6[%c10_114, %c0_115, %c0_116] : memref<16x46x128xf32, #tpu.memory_space<vmem>>, vector<1x46x128xf32>
    %1957 = vector.shape_cast %1956 : vector<1x46x128xf32> to vector<46x128xf32>
    %cst_117 = arith.constant dense<0.000000e+00> : vector<8x128xf32>
    %1958 = tpu.matmul %1955, %1957, %cst_117 {dimension_numbers = #tpu.dot_dimension_numbers<[1], [0], [0], [1], [0, 0, 1, 1], [], []>} : vector<8x46xf32>, vector<46x128xf32>, vector<8x128xf32> -> vector<8x128xf32>
    %c330 = arith.constant 330 : index
    %1959 = memref.load %arg3[%c330] : memref<480xf32, #tpu.memory_space<smem>>
    %1960 = vector.broadcast %1959 : f32 to vector<8x92xf32>
    %1961 = arith.mulf %459, %1960 : vector<8x92xf32>
    %c331 = arith.constant 331 : index
    %1962 = memref.load %arg3[%c331] : memref<480xf32, #tpu.memory_space<smem>>
    %1963 = vector.broadcast %1962 : f32 to vector<8x92xf32>
    %1964 = arith.mulf %460, %1963 : vector<8x92xf32>
    %1965 = arith.addf %1961, %1964 : vector<8x92xf32>
    %c332 = arith.constant 332 : index
    %1966 = memref.load %arg3[%c332] : memref<480xf32, #tpu.memory_space<smem>>
    %1967 = vector.broadcast %1966 : f32 to vector<8x92xf32>
    %1968 = arith.mulf %461, %1967 : vector<8x92xf32>
    %1969 = arith.addf %1965, %1968 : vector<8x92xf32>
    %c333 = arith.constant 333 : index
    %1970 = memref.load %arg3[%c333] : memref<480xf32, #tpu.memory_space<smem>>
    %1971 = vector.broadcast %1970 : f32 to vector<8x92xf32>
    %1972 = arith.mulf %462, %1971 : vector<8x92xf32>
    %1973 = arith.addf %1969, %1972 : vector<8x92xf32>
    %c334 = arith.constant 334 : index
    %1974 = memref.load %arg3[%c334] : memref<480xf32, #tpu.memory_space<smem>>
    %1975 = vector.broadcast %1974 : f32 to vector<8x92xf32>
    %1976 = arith.mulf %463, %1975 : vector<8x92xf32>
    %1977 = arith.addf %1973, %1976 : vector<8x92xf32>
    %c335 = arith.constant 335 : index
    %1978 = memref.load %arg3[%c335] : memref<480xf32, #tpu.memory_space<smem>>
    %1979 = vector.broadcast %1978 : f32 to vector<8x92xf32>
    %1980 = arith.mulf %472, %1979 : vector<8x92xf32>
    %1981 = arith.addf %1977, %1980 : vector<8x92xf32>
    %c336 = arith.constant 336 : index
    %1982 = memref.load %arg3[%c336] : memref<480xf32, #tpu.memory_space<smem>>
    %1983 = vector.broadcast %1982 : f32 to vector<8x92xf32>
    %1984 = arith.mulf %473, %1983 : vector<8x92xf32>
    %1985 = arith.addf %1981, %1984 : vector<8x92xf32>
    %c337 = arith.constant 337 : index
    %1986 = memref.load %arg3[%c337] : memref<480xf32, #tpu.memory_space<smem>>
    %1987 = vector.broadcast %1986 : f32 to vector<8x92xf32>
    %1988 = arith.mulf %474, %1987 : vector<8x92xf32>
    %1989 = arith.addf %1985, %1988 : vector<8x92xf32>
    %c338 = arith.constant 338 : index
    %1990 = memref.load %arg3[%c338] : memref<480xf32, #tpu.memory_space<smem>>
    %1991 = vector.broadcast %1990 : f32 to vector<8x92xf32>
    %1992 = arith.mulf %475, %1991 : vector<8x92xf32>
    %1993 = arith.addf %1989, %1992 : vector<8x92xf32>
    %c339 = arith.constant 339 : index
    %1994 = memref.load %arg3[%c339] : memref<480xf32, #tpu.memory_space<smem>>
    %1995 = vector.broadcast %1994 : f32 to vector<8x92xf32>
    %1996 = arith.mulf %476, %1995 : vector<8x92xf32>
    %1997 = arith.addf %1993, %1996 : vector<8x92xf32>
    %c340 = arith.constant 340 : index
    %1998 = memref.load %arg3[%c340] : memref<480xf32, #tpu.memory_space<smem>>
    %1999 = vector.broadcast %1998 : f32 to vector<8x92xf32>
    %2000 = arith.mulf %485, %1999 : vector<8x92xf32>
    %2001 = arith.addf %1997, %2000 : vector<8x92xf32>
    %c341 = arith.constant 341 : index
    %2002 = memref.load %arg3[%c341] : memref<480xf32, #tpu.memory_space<smem>>
    %2003 = vector.broadcast %2002 : f32 to vector<8x92xf32>
    %2004 = arith.mulf %486, %2003 : vector<8x92xf32>
    %2005 = arith.addf %2001, %2004 : vector<8x92xf32>
    %c342 = arith.constant 342 : index
    %2006 = memref.load %arg3[%c342] : memref<480xf32, #tpu.memory_space<smem>>
    %2007 = vector.broadcast %2006 : f32 to vector<8x92xf32>
    %2008 = arith.mulf %487, %2007 : vector<8x92xf32>
    %2009 = arith.addf %2005, %2008 : vector<8x92xf32>
    %c343 = arith.constant 343 : index
    %2010 = memref.load %arg3[%c343] : memref<480xf32, #tpu.memory_space<smem>>
    %2011 = vector.broadcast %2010 : f32 to vector<8x92xf32>
    %2012 = arith.mulf %488, %2011 : vector<8x92xf32>
    %2013 = arith.addf %2009, %2012 : vector<8x92xf32>
    %c344 = arith.constant 344 : index
    %2014 = memref.load %arg3[%c344] : memref<480xf32, #tpu.memory_space<smem>>
    %2015 = vector.broadcast %2014 : f32 to vector<8x92xf32>
    %2016 = arith.mulf %489, %2015 : vector<8x92xf32>
    %2017 = arith.addf %2013, %2016 : vector<8x92xf32>
    %c345 = arith.constant 345 : index
    %2018 = memref.load %arg3[%c345] : memref<480xf32, #tpu.memory_space<smem>>
    %2019 = vector.broadcast %2018 : f32 to vector<8x92xf32>
    %2020 = arith.mulf %498, %2019 : vector<8x92xf32>
    %2021 = arith.addf %2017, %2020 : vector<8x92xf32>
    %c346 = arith.constant 346 : index
    %2022 = memref.load %arg3[%c346] : memref<480xf32, #tpu.memory_space<smem>>
    %2023 = vector.broadcast %2022 : f32 to vector<8x92xf32>
    %2024 = arith.mulf %499, %2023 : vector<8x92xf32>
    %2025 = arith.addf %2021, %2024 : vector<8x92xf32>
    %c347 = arith.constant 347 : index
    %2026 = memref.load %arg3[%c347] : memref<480xf32, #tpu.memory_space<smem>>
    %2027 = vector.broadcast %2026 : f32 to vector<8x92xf32>
    %2028 = arith.mulf %500, %2027 : vector<8x92xf32>
    %2029 = arith.addf %2025, %2028 : vector<8x92xf32>
    %c348 = arith.constant 348 : index
    %2030 = memref.load %arg3[%c348] : memref<480xf32, #tpu.memory_space<smem>>
    %2031 = vector.broadcast %2030 : f32 to vector<8x92xf32>
    %2032 = arith.mulf %501, %2031 : vector<8x92xf32>
    %2033 = arith.addf %2029, %2032 : vector<8x92xf32>
    %c349 = arith.constant 349 : index
    %2034 = memref.load %arg3[%c349] : memref<480xf32, #tpu.memory_space<smem>>
    %2035 = vector.broadcast %2034 : f32 to vector<8x92xf32>
    %2036 = arith.mulf %502, %2035 : vector<8x92xf32>
    %2037 = arith.addf %2033, %2036 : vector<8x92xf32>
    %c350 = arith.constant 350 : index
    %2038 = memref.load %arg3[%c350] : memref<480xf32, #tpu.memory_space<smem>>
    %2039 = vector.broadcast %2038 : f32 to vector<8x92xf32>
    %2040 = arith.mulf %511, %2039 : vector<8x92xf32>
    %2041 = arith.addf %2037, %2040 : vector<8x92xf32>
    %c351 = arith.constant 351 : index
    %2042 = memref.load %arg3[%c351] : memref<480xf32, #tpu.memory_space<smem>>
    %2043 = vector.broadcast %2042 : f32 to vector<8x92xf32>
    %2044 = arith.mulf %512, %2043 : vector<8x92xf32>
    %2045 = arith.addf %2041, %2044 : vector<8x92xf32>
    %c352 = arith.constant 352 : index
    %2046 = memref.load %arg3[%c352] : memref<480xf32, #tpu.memory_space<smem>>
    %2047 = vector.broadcast %2046 : f32 to vector<8x92xf32>
    %2048 = arith.mulf %513, %2047 : vector<8x92xf32>
    %2049 = arith.addf %2045, %2048 : vector<8x92xf32>
    %c353 = arith.constant 353 : index
    %2050 = memref.load %arg3[%c353] : memref<480xf32, #tpu.memory_space<smem>>
    %2051 = vector.broadcast %2050 : f32 to vector<8x92xf32>
    %2052 = arith.mulf %514, %2051 : vector<8x92xf32>
    %2053 = arith.addf %2049, %2052 : vector<8x92xf32>
    %c354 = arith.constant 354 : index
    %2054 = memref.load %arg3[%c354] : memref<480xf32, #tpu.memory_space<smem>>
    %2055 = vector.broadcast %2054 : f32 to vector<8x92xf32>
    %2056 = arith.mulf %515, %2055 : vector<8x92xf32>
    %2057 = arith.addf %2053, %2056 : vector<8x92xf32>
    %c355 = arith.constant 355 : index
    %2058 = memref.load %arg3[%c355] : memref<480xf32, #tpu.memory_space<smem>>
    %2059 = vector.broadcast %2058 : f32 to vector<8x92xf32>
    %2060 = arith.mulf %524, %2059 : vector<8x92xf32>
    %2061 = arith.addf %2057, %2060 : vector<8x92xf32>
    %c356 = arith.constant 356 : index
    %2062 = memref.load %arg3[%c356] : memref<480xf32, #tpu.memory_space<smem>>
    %2063 = vector.broadcast %2062 : f32 to vector<8x92xf32>
    %2064 = arith.mulf %525, %2063 : vector<8x92xf32>
    %2065 = arith.addf %2061, %2064 : vector<8x92xf32>
    %c357 = arith.constant 357 : index
    %2066 = memref.load %arg3[%c357] : memref<480xf32, #tpu.memory_space<smem>>
    %2067 = vector.broadcast %2066 : f32 to vector<8x92xf32>
    %2068 = arith.mulf %526, %2067 : vector<8x92xf32>
    %2069 = arith.addf %2065, %2068 : vector<8x92xf32>
    %c358 = arith.constant 358 : index
    %2070 = memref.load %arg3[%c358] : memref<480xf32, #tpu.memory_space<smem>>
    %2071 = vector.broadcast %2070 : f32 to vector<8x92xf32>
    %2072 = arith.mulf %527, %2071 : vector<8x92xf32>
    %2073 = arith.addf %2069, %2072 : vector<8x92xf32>
    %c359 = arith.constant 359 : index
    %2074 = memref.load %arg3[%c359] : memref<480xf32, #tpu.memory_space<smem>>
    %2075 = vector.broadcast %2074 : f32 to vector<8x92xf32>
    %2076 = arith.mulf %528, %2075 : vector<8x92xf32>
    %2077 = arith.addf %2073, %2076 : vector<8x92xf32>
    %2078 = vector.extract_strided_slice %2077 {offsets = [0, 0], sizes = [8, 46], strides = [1, 1]} : vector<8x92xf32> to vector<8x46xf32>
    %2079 = vector.extract_strided_slice %2077 {offsets = [0, 46], sizes = [8, 46], strides = [1, 1]} : vector<8x92xf32> to vector<8x46xf32>
    %2080 = arith.maximumf %2078, %2079 : vector<8x46xf32>
    %c11_118 = arith.constant 11 : index
    %2081 = memref.load %arg4[%c11_118] : memref<16xf32, #tpu.memory_space<smem>>
    %2082 = vector.broadcast %2081 : f32 to vector<8x46xf32>
    %2083 = arith.addf %2080, %2082 : vector<8x46xf32>
    %cst_119 = arith.constant 0.000000e+00 : f32
    %2084 = vector.broadcast %cst_119 : f32 to vector<8x46xf32>
    %2085 = arith.maximumf %2083, %2084 : vector<8x46xf32>
    %c11_120 = arith.constant 11 : index
    %c0_121 = arith.constant 0 : index
    %c0_122 = arith.constant 0 : index
    %2086 = vector.load %arg6[%c11_120, %c0_121, %c0_122] : memref<16x46x128xf32, #tpu.memory_space<vmem>>, vector<1x46x128xf32>
    %2087 = vector.shape_cast %2086 : vector<1x46x128xf32> to vector<46x128xf32>
    %cst_123 = arith.constant dense<0.000000e+00> : vector<8x128xf32>
    %2088 = tpu.matmul %2085, %2087, %cst_123 {dimension_numbers = #tpu.dot_dimension_numbers<[1], [0], [0], [1], [0, 0, 1, 1], [], []>} : vector<8x46xf32>, vector<46x128xf32>, vector<8x128xf32> -> vector<8x128xf32>
    %c360 = arith.constant 360 : index
    %2089 = memref.load %arg3[%c360] : memref<480xf32, #tpu.memory_space<smem>>
    %2090 = vector.broadcast %2089 : f32 to vector<8x92xf32>
    %2091 = arith.mulf %459, %2090 : vector<8x92xf32>
    %c361 = arith.constant 361 : index
    %2092 = memref.load %arg3[%c361] : memref<480xf32, #tpu.memory_space<smem>>
    %2093 = vector.broadcast %2092 : f32 to vector<8x92xf32>
    %2094 = arith.mulf %460, %2093 : vector<8x92xf32>
    %2095 = arith.addf %2091, %2094 : vector<8x92xf32>
    %c362 = arith.constant 362 : index
    %2096 = memref.load %arg3[%c362] : memref<480xf32, #tpu.memory_space<smem>>
    %2097 = vector.broadcast %2096 : f32 to vector<8x92xf32>
    %2098 = arith.mulf %461, %2097 : vector<8x92xf32>
    %2099 = arith.addf %2095, %2098 : vector<8x92xf32>
    %c363 = arith.constant 363 : index
    %2100 = memref.load %arg3[%c363] : memref<480xf32, #tpu.memory_space<smem>>
    %2101 = vector.broadcast %2100 : f32 to vector<8x92xf32>
    %2102 = arith.mulf %462, %2101 : vector<8x92xf32>
    %2103 = arith.addf %2099, %2102 : vector<8x92xf32>
    %c364 = arith.constant 364 : index
    %2104 = memref.load %arg3[%c364] : memref<480xf32, #tpu.memory_space<smem>>
    %2105 = vector.broadcast %2104 : f32 to vector<8x92xf32>
    %2106 = arith.mulf %463, %2105 : vector<8x92xf32>
    %2107 = arith.addf %2103, %2106 : vector<8x92xf32>
    %c365 = arith.constant 365 : index
    %2108 = memref.load %arg3[%c365] : memref<480xf32, #tpu.memory_space<smem>>
    %2109 = vector.broadcast %2108 : f32 to vector<8x92xf32>
    %2110 = arith.mulf %472, %2109 : vector<8x92xf32>
    %2111 = arith.addf %2107, %2110 : vector<8x92xf32>
    %c366 = arith.constant 366 : index
    %2112 = memref.load %arg3[%c366] : memref<480xf32, #tpu.memory_space<smem>>
    %2113 = vector.broadcast %2112 : f32 to vector<8x92xf32>
    %2114 = arith.mulf %473, %2113 : vector<8x92xf32>
    %2115 = arith.addf %2111, %2114 : vector<8x92xf32>
    %c367 = arith.constant 367 : index
    %2116 = memref.load %arg3[%c367] : memref<480xf32, #tpu.memory_space<smem>>
    %2117 = vector.broadcast %2116 : f32 to vector<8x92xf32>
    %2118 = arith.mulf %474, %2117 : vector<8x92xf32>
    %2119 = arith.addf %2115, %2118 : vector<8x92xf32>
    %c368 = arith.constant 368 : index
    %2120 = memref.load %arg3[%c368] : memref<480xf32, #tpu.memory_space<smem>>
    %2121 = vector.broadcast %2120 : f32 to vector<8x92xf32>
    %2122 = arith.mulf %475, %2121 : vector<8x92xf32>
    %2123 = arith.addf %2119, %2122 : vector<8x92xf32>
    %c369 = arith.constant 369 : index
    %2124 = memref.load %arg3[%c369] : memref<480xf32, #tpu.memory_space<smem>>
    %2125 = vector.broadcast %2124 : f32 to vector<8x92xf32>
    %2126 = arith.mulf %476, %2125 : vector<8x92xf32>
    %2127 = arith.addf %2123, %2126 : vector<8x92xf32>
    %c370 = arith.constant 370 : index
    %2128 = memref.load %arg3[%c370] : memref<480xf32, #tpu.memory_space<smem>>
    %2129 = vector.broadcast %2128 : f32 to vector<8x92xf32>
    %2130 = arith.mulf %485, %2129 : vector<8x92xf32>
    %2131 = arith.addf %2127, %2130 : vector<8x92xf32>
    %c371 = arith.constant 371 : index
    %2132 = memref.load %arg3[%c371] : memref<480xf32, #tpu.memory_space<smem>>
    %2133 = vector.broadcast %2132 : f32 to vector<8x92xf32>
    %2134 = arith.mulf %486, %2133 : vector<8x92xf32>
    %2135 = arith.addf %2131, %2134 : vector<8x92xf32>
    %c372 = arith.constant 372 : index
    %2136 = memref.load %arg3[%c372] : memref<480xf32, #tpu.memory_space<smem>>
    %2137 = vector.broadcast %2136 : f32 to vector<8x92xf32>
    %2138 = arith.mulf %487, %2137 : vector<8x92xf32>
    %2139 = arith.addf %2135, %2138 : vector<8x92xf32>
    %c373 = arith.constant 373 : index
    %2140 = memref.load %arg3[%c373] : memref<480xf32, #tpu.memory_space<smem>>
    %2141 = vector.broadcast %2140 : f32 to vector<8x92xf32>
    %2142 = arith.mulf %488, %2141 : vector<8x92xf32>
    %2143 = arith.addf %2139, %2142 : vector<8x92xf32>
    %c374 = arith.constant 374 : index
    %2144 = memref.load %arg3[%c374] : memref<480xf32, #tpu.memory_space<smem>>
    %2145 = vector.broadcast %2144 : f32 to vector<8x92xf32>
    %2146 = arith.mulf %489, %2145 : vector<8x92xf32>
    %2147 = arith.addf %2143, %2146 : vector<8x92xf32>
    %c375 = arith.constant 375 : index
    %2148 = memref.load %arg3[%c375] : memref<480xf32, #tpu.memory_space<smem>>
    %2149 = vector.broadcast %2148 : f32 to vector<8x92xf32>
    %2150 = arith.mulf %498, %2149 : vector<8x92xf32>
    %2151 = arith.addf %2147, %2150 : vector<8x92xf32>
    %c376 = arith.constant 376 : index
    %2152 = memref.load %arg3[%c376] : memref<480xf32, #tpu.memory_space<smem>>
    %2153 = vector.broadcast %2152 : f32 to vector<8x92xf32>
    %2154 = arith.mulf %499, %2153 : vector<8x92xf32>
    %2155 = arith.addf %2151, %2154 : vector<8x92xf32>
    %c377 = arith.constant 377 : index
    %2156 = memref.load %arg3[%c377] : memref<480xf32, #tpu.memory_space<smem>>
    %2157 = vector.broadcast %2156 : f32 to vector<8x92xf32>
    %2158 = arith.mulf %500, %2157 : vector<8x92xf32>
    %2159 = arith.addf %2155, %2158 : vector<8x92xf32>
    %c378 = arith.constant 378 : index
    %2160 = memref.load %arg3[%c378] : memref<480xf32, #tpu.memory_space<smem>>
    %2161 = vector.broadcast %2160 : f32 to vector<8x92xf32>
    %2162 = arith.mulf %501, %2161 : vector<8x92xf32>
    %2163 = arith.addf %2159, %2162 : vector<8x92xf32>
    %c379 = arith.constant 379 : index
    %2164 = memref.load %arg3[%c379] : memref<480xf32, #tpu.memory_space<smem>>
    %2165 = vector.broadcast %2164 : f32 to vector<8x92xf32>
    %2166 = arith.mulf %502, %2165 : vector<8x92xf32>
    %2167 = arith.addf %2163, %2166 : vector<8x92xf32>
    %c380 = arith.constant 380 : index
    %2168 = memref.load %arg3[%c380] : memref<480xf32, #tpu.memory_space<smem>>
    %2169 = vector.broadcast %2168 : f32 to vector<8x92xf32>
    %2170 = arith.mulf %511, %2169 : vector<8x92xf32>
    %2171 = arith.addf %2167, %2170 : vector<8x92xf32>
    %c381 = arith.constant 381 : index
    %2172 = memref.load %arg3[%c381] : memref<480xf32, #tpu.memory_space<smem>>
    %2173 = vector.broadcast %2172 : f32 to vector<8x92xf32>
    %2174 = arith.mulf %512, %2173 : vector<8x92xf32>
    %2175 = arith.addf %2171, %2174 : vector<8x92xf32>
    %c382 = arith.constant 382 : index
    %2176 = memref.load %arg3[%c382] : memref<480xf32, #tpu.memory_space<smem>>
    %2177 = vector.broadcast %2176 : f32 to vector<8x92xf32>
    %2178 = arith.mulf %513, %2177 : vector<8x92xf32>
    %2179 = arith.addf %2175, %2178 : vector<8x92xf32>
    %c383 = arith.constant 383 : index
    %2180 = memref.load %arg3[%c383] : memref<480xf32, #tpu.memory_space<smem>>
    %2181 = vector.broadcast %2180 : f32 to vector<8x92xf32>
    %2182 = arith.mulf %514, %2181 : vector<8x92xf32>
    %2183 = arith.addf %2179, %2182 : vector<8x92xf32>
    %c384 = arith.constant 384 : index
    %2184 = memref.load %arg3[%c384] : memref<480xf32, #tpu.memory_space<smem>>
    %2185 = vector.broadcast %2184 : f32 to vector<8x92xf32>
    %2186 = arith.mulf %515, %2185 : vector<8x92xf32>
    %2187 = arith.addf %2183, %2186 : vector<8x92xf32>
    %c385 = arith.constant 385 : index
    %2188 = memref.load %arg3[%c385] : memref<480xf32, #tpu.memory_space<smem>>
    %2189 = vector.broadcast %2188 : f32 to vector<8x92xf32>
    %2190 = arith.mulf %524, %2189 : vector<8x92xf32>
    %2191 = arith.addf %2187, %2190 : vector<8x92xf32>
    %c386 = arith.constant 386 : index
    %2192 = memref.load %arg3[%c386] : memref<480xf32, #tpu.memory_space<smem>>
    %2193 = vector.broadcast %2192 : f32 to vector<8x92xf32>
    %2194 = arith.mulf %525, %2193 : vector<8x92xf32>
    %2195 = arith.addf %2191, %2194 : vector<8x92xf32>
    %c387 = arith.constant 387 : index
    %2196 = memref.load %arg3[%c387] : memref<480xf32, #tpu.memory_space<smem>>
    %2197 = vector.broadcast %2196 : f32 to vector<8x92xf32>
    %2198 = arith.mulf %526, %2197 : vector<8x92xf32>
    %2199 = arith.addf %2195, %2198 : vector<8x92xf32>
    %c388 = arith.constant 388 : index
    %2200 = memref.load %arg3[%c388] : memref<480xf32, #tpu.memory_space<smem>>
    %2201 = vector.broadcast %2200 : f32 to vector<8x92xf32>
    %2202 = arith.mulf %527, %2201 : vector<8x92xf32>
    %2203 = arith.addf %2199, %2202 : vector<8x92xf32>
    %c389 = arith.constant 389 : index
    %2204 = memref.load %arg3[%c389] : memref<480xf32, #tpu.memory_space<smem>>
    %2205 = vector.broadcast %2204 : f32 to vector<8x92xf32>
    %2206 = arith.mulf %528, %2205 : vector<8x92xf32>
    %2207 = arith.addf %2203, %2206 : vector<8x92xf32>
    %2208 = vector.extract_strided_slice %2207 {offsets = [0, 0], sizes = [8, 46], strides = [1, 1]} : vector<8x92xf32> to vector<8x46xf32>
    %2209 = vector.extract_strided_slice %2207 {offsets = [0, 46], sizes = [8, 46], strides = [1, 1]} : vector<8x92xf32> to vector<8x46xf32>
    %2210 = arith.maximumf %2208, %2209 : vector<8x46xf32>
    %c12_124 = arith.constant 12 : index
    %2211 = memref.load %arg4[%c12_124] : memref<16xf32, #tpu.memory_space<smem>>
    %2212 = vector.broadcast %2211 : f32 to vector<8x46xf32>
    %2213 = arith.addf %2210, %2212 : vector<8x46xf32>
    %cst_125 = arith.constant 0.000000e+00 : f32
    %2214 = vector.broadcast %cst_125 : f32 to vector<8x46xf32>
    %2215 = arith.maximumf %2213, %2214 : vector<8x46xf32>
    %c12_126 = arith.constant 12 : index
    %c0_127 = arith.constant 0 : index
    %c0_128 = arith.constant 0 : index
    %2216 = vector.load %arg6[%c12_126, %c0_127, %c0_128] : memref<16x46x128xf32, #tpu.memory_space<vmem>>, vector<1x46x128xf32>
    %2217 = vector.shape_cast %2216 : vector<1x46x128xf32> to vector<46x128xf32>
    %cst_129 = arith.constant dense<0.000000e+00> : vector<8x128xf32>
    %2218 = tpu.matmul %2215, %2217, %cst_129 {dimension_numbers = #tpu.dot_dimension_numbers<[1], [0], [0], [1], [0, 0, 1, 1], [], []>} : vector<8x46xf32>, vector<46x128xf32>, vector<8x128xf32> -> vector<8x128xf32>
    %c390 = arith.constant 390 : index
    %2219 = memref.load %arg3[%c390] : memref<480xf32, #tpu.memory_space<smem>>
    %2220 = vector.broadcast %2219 : f32 to vector<8x92xf32>
    %2221 = arith.mulf %459, %2220 : vector<8x92xf32>
    %c391 = arith.constant 391 : index
    %2222 = memref.load %arg3[%c391] : memref<480xf32, #tpu.memory_space<smem>>
    %2223 = vector.broadcast %2222 : f32 to vector<8x92xf32>
    %2224 = arith.mulf %460, %2223 : vector<8x92xf32>
    %2225 = arith.addf %2221, %2224 : vector<8x92xf32>
    %c392 = arith.constant 392 : index
    %2226 = memref.load %arg3[%c392] : memref<480xf32, #tpu.memory_space<smem>>
    %2227 = vector.broadcast %2226 : f32 to vector<8x92xf32>
    %2228 = arith.mulf %461, %2227 : vector<8x92xf32>
    %2229 = arith.addf %2225, %2228 : vector<8x92xf32>
    %c393 = arith.constant 393 : index
    %2230 = memref.load %arg3[%c393] : memref<480xf32, #tpu.memory_space<smem>>
    %2231 = vector.broadcast %2230 : f32 to vector<8x92xf32>
    %2232 = arith.mulf %462, %2231 : vector<8x92xf32>
    %2233 = arith.addf %2229, %2232 : vector<8x92xf32>
    %c394 = arith.constant 394 : index
    %2234 = memref.load %arg3[%c394] : memref<480xf32, #tpu.memory_space<smem>>
    %2235 = vector.broadcast %2234 : f32 to vector<8x92xf32>
    %2236 = arith.mulf %463, %2235 : vector<8x92xf32>
    %2237 = arith.addf %2233, %2236 : vector<8x92xf32>
    %c395 = arith.constant 395 : index
    %2238 = memref.load %arg3[%c395] : memref<480xf32, #tpu.memory_space<smem>>
    %2239 = vector.broadcast %2238 : f32 to vector<8x92xf32>
    %2240 = arith.mulf %472, %2239 : vector<8x92xf32>
    %2241 = arith.addf %2237, %2240 : vector<8x92xf32>
    %c396 = arith.constant 396 : index
    %2242 = memref.load %arg3[%c396] : memref<480xf32, #tpu.memory_space<smem>>
    %2243 = vector.broadcast %2242 : f32 to vector<8x92xf32>
    %2244 = arith.mulf %473, %2243 : vector<8x92xf32>
    %2245 = arith.addf %2241, %2244 : vector<8x92xf32>
    %c397 = arith.constant 397 : index
    %2246 = memref.load %arg3[%c397] : memref<480xf32, #tpu.memory_space<smem>>
    %2247 = vector.broadcast %2246 : f32 to vector<8x92xf32>
    %2248 = arith.mulf %474, %2247 : vector<8x92xf32>
    %2249 = arith.addf %2245, %2248 : vector<8x92xf32>
    %c398 = arith.constant 398 : index
    %2250 = memref.load %arg3[%c398] : memref<480xf32, #tpu.memory_space<smem>>
    %2251 = vector.broadcast %2250 : f32 to vector<8x92xf32>
    %2252 = arith.mulf %475, %2251 : vector<8x92xf32>
    %2253 = arith.addf %2249, %2252 : vector<8x92xf32>
    %c399 = arith.constant 399 : index
    %2254 = memref.load %arg3[%c399] : memref<480xf32, #tpu.memory_space<smem>>
    %2255 = vector.broadcast %2254 : f32 to vector<8x92xf32>
    %2256 = arith.mulf %476, %2255 : vector<8x92xf32>
    %2257 = arith.addf %2253, %2256 : vector<8x92xf32>
    %c400 = arith.constant 400 : index
    %2258 = memref.load %arg3[%c400] : memref<480xf32, #tpu.memory_space<smem>>
    %2259 = vector.broadcast %2258 : f32 to vector<8x92xf32>
    %2260 = arith.mulf %485, %2259 : vector<8x92xf32>
    %2261 = arith.addf %2257, %2260 : vector<8x92xf32>
    %c401 = arith.constant 401 : index
    %2262 = memref.load %arg3[%c401] : memref<480xf32, #tpu.memory_space<smem>>
    %2263 = vector.broadcast %2262 : f32 to vector<8x92xf32>
    %2264 = arith.mulf %486, %2263 : vector<8x92xf32>
    %2265 = arith.addf %2261, %2264 : vector<8x92xf32>
    %c402 = arith.constant 402 : index
    %2266 = memref.load %arg3[%c402] : memref<480xf32, #tpu.memory_space<smem>>
    %2267 = vector.broadcast %2266 : f32 to vector<8x92xf32>
    %2268 = arith.mulf %487, %2267 : vector<8x92xf32>
    %2269 = arith.addf %2265, %2268 : vector<8x92xf32>
    %c403 = arith.constant 403 : index
    %2270 = memref.load %arg3[%c403] : memref<480xf32, #tpu.memory_space<smem>>
    %2271 = vector.broadcast %2270 : f32 to vector<8x92xf32>
    %2272 = arith.mulf %488, %2271 : vector<8x92xf32>
    %2273 = arith.addf %2269, %2272 : vector<8x92xf32>
    %c404 = arith.constant 404 : index
    %2274 = memref.load %arg3[%c404] : memref<480xf32, #tpu.memory_space<smem>>
    %2275 = vector.broadcast %2274 : f32 to vector<8x92xf32>
    %2276 = arith.mulf %489, %2275 : vector<8x92xf32>
    %2277 = arith.addf %2273, %2276 : vector<8x92xf32>
    %c405 = arith.constant 405 : index
    %2278 = memref.load %arg3[%c405] : memref<480xf32, #tpu.memory_space<smem>>
    %2279 = vector.broadcast %2278 : f32 to vector<8x92xf32>
    %2280 = arith.mulf %498, %2279 : vector<8x92xf32>
    %2281 = arith.addf %2277, %2280 : vector<8x92xf32>
    %c406 = arith.constant 406 : index
    %2282 = memref.load %arg3[%c406] : memref<480xf32, #tpu.memory_space<smem>>
    %2283 = vector.broadcast %2282 : f32 to vector<8x92xf32>
    %2284 = arith.mulf %499, %2283 : vector<8x92xf32>
    %2285 = arith.addf %2281, %2284 : vector<8x92xf32>
    %c407 = arith.constant 407 : index
    %2286 = memref.load %arg3[%c407] : memref<480xf32, #tpu.memory_space<smem>>
    %2287 = vector.broadcast %2286 : f32 to vector<8x92xf32>
    %2288 = arith.mulf %500, %2287 : vector<8x92xf32>
    %2289 = arith.addf %2285, %2288 : vector<8x92xf32>
    %c408 = arith.constant 408 : index
    %2290 = memref.load %arg3[%c408] : memref<480xf32, #tpu.memory_space<smem>>
    %2291 = vector.broadcast %2290 : f32 to vector<8x92xf32>
    %2292 = arith.mulf %501, %2291 : vector<8x92xf32>
    %2293 = arith.addf %2289, %2292 : vector<8x92xf32>
    %c409 = arith.constant 409 : index
    %2294 = memref.load %arg3[%c409] : memref<480xf32, #tpu.memory_space<smem>>
    %2295 = vector.broadcast %2294 : f32 to vector<8x92xf32>
    %2296 = arith.mulf %502, %2295 : vector<8x92xf32>
    %2297 = arith.addf %2293, %2296 : vector<8x92xf32>
    %c410 = arith.constant 410 : index
    %2298 = memref.load %arg3[%c410] : memref<480xf32, #tpu.memory_space<smem>>
    %2299 = vector.broadcast %2298 : f32 to vector<8x92xf32>
    %2300 = arith.mulf %511, %2299 : vector<8x92xf32>
    %2301 = arith.addf %2297, %2300 : vector<8x92xf32>
    %c411 = arith.constant 411 : index
    %2302 = memref.load %arg3[%c411] : memref<480xf32, #tpu.memory_space<smem>>
    %2303 = vector.broadcast %2302 : f32 to vector<8x92xf32>
    %2304 = arith.mulf %512, %2303 : vector<8x92xf32>
    %2305 = arith.addf %2301, %2304 : vector<8x92xf32>
    %c412 = arith.constant 412 : index
    %2306 = memref.load %arg3[%c412] : memref<480xf32, #tpu.memory_space<smem>>
    %2307 = vector.broadcast %2306 : f32 to vector<8x92xf32>
    %2308 = arith.mulf %513, %2307 : vector<8x92xf32>
    %2309 = arith.addf %2305, %2308 : vector<8x92xf32>
    %c413 = arith.constant 413 : index
    %2310 = memref.load %arg3[%c413] : memref<480xf32, #tpu.memory_space<smem>>
    %2311 = vector.broadcast %2310 : f32 to vector<8x92xf32>
    %2312 = arith.mulf %514, %2311 : vector<8x92xf32>
    %2313 = arith.addf %2309, %2312 : vector<8x92xf32>
    %c414 = arith.constant 414 : index
    %2314 = memref.load %arg3[%c414] : memref<480xf32, #tpu.memory_space<smem>>
    %2315 = vector.broadcast %2314 : f32 to vector<8x92xf32>
    %2316 = arith.mulf %515, %2315 : vector<8x92xf32>
    %2317 = arith.addf %2313, %2316 : vector<8x92xf32>
    %c415 = arith.constant 415 : index
    %2318 = memref.load %arg3[%c415] : memref<480xf32, #tpu.memory_space<smem>>
    %2319 = vector.broadcast %2318 : f32 to vector<8x92xf32>
    %2320 = arith.mulf %524, %2319 : vector<8x92xf32>
    %2321 = arith.addf %2317, %2320 : vector<8x92xf32>
    %c416 = arith.constant 416 : index
    %2322 = memref.load %arg3[%c416] : memref<480xf32, #tpu.memory_space<smem>>
    %2323 = vector.broadcast %2322 : f32 to vector<8x92xf32>
    %2324 = arith.mulf %525, %2323 : vector<8x92xf32>
    %2325 = arith.addf %2321, %2324 : vector<8x92xf32>
    %c417 = arith.constant 417 : index
    %2326 = memref.load %arg3[%c417] : memref<480xf32, #tpu.memory_space<smem>>
    %2327 = vector.broadcast %2326 : f32 to vector<8x92xf32>
    %2328 = arith.mulf %526, %2327 : vector<8x92xf32>
    %2329 = arith.addf %2325, %2328 : vector<8x92xf32>
    %c418 = arith.constant 418 : index
    %2330 = memref.load %arg3[%c418] : memref<480xf32, #tpu.memory_space<smem>>
    %2331 = vector.broadcast %2330 : f32 to vector<8x92xf32>
    %2332 = arith.mulf %527, %2331 : vector<8x92xf32>
    %2333 = arith.addf %2329, %2332 : vector<8x92xf32>
    %c419 = arith.constant 419 : index
    %2334 = memref.load %arg3[%c419] : memref<480xf32, #tpu.memory_space<smem>>
    %2335 = vector.broadcast %2334 : f32 to vector<8x92xf32>
    %2336 = arith.mulf %528, %2335 : vector<8x92xf32>
    %2337 = arith.addf %2333, %2336 : vector<8x92xf32>
    %2338 = vector.extract_strided_slice %2337 {offsets = [0, 0], sizes = [8, 46], strides = [1, 1]} : vector<8x92xf32> to vector<8x46xf32>
    %2339 = vector.extract_strided_slice %2337 {offsets = [0, 46], sizes = [8, 46], strides = [1, 1]} : vector<8x92xf32> to vector<8x46xf32>
    %2340 = arith.maximumf %2338, %2339 : vector<8x46xf32>
    %c13_130 = arith.constant 13 : index
    %2341 = memref.load %arg4[%c13_130] : memref<16xf32, #tpu.memory_space<smem>>
    %2342 = vector.broadcast %2341 : f32 to vector<8x46xf32>
    %2343 = arith.addf %2340, %2342 : vector<8x46xf32>
    %cst_131 = arith.constant 0.000000e+00 : f32
    %2344 = vector.broadcast %cst_131 : f32 to vector<8x46xf32>
    %2345 = arith.maximumf %2343, %2344 : vector<8x46xf32>
    %c13_132 = arith.constant 13 : index
    %c0_133 = arith.constant 0 : index
    %c0_134 = arith.constant 0 : index
    %2346 = vector.load %arg6[%c13_132, %c0_133, %c0_134] : memref<16x46x128xf32, #tpu.memory_space<vmem>>, vector<1x46x128xf32>
    %2347 = vector.shape_cast %2346 : vector<1x46x128xf32> to vector<46x128xf32>
    %cst_135 = arith.constant dense<0.000000e+00> : vector<8x128xf32>
    %2348 = tpu.matmul %2345, %2347, %cst_135 {dimension_numbers = #tpu.dot_dimension_numbers<[1], [0], [0], [1], [0, 0, 1, 1], [], []>} : vector<8x46xf32>, vector<46x128xf32>, vector<8x128xf32> -> vector<8x128xf32>
    %c420 = arith.constant 420 : index
    %2349 = memref.load %arg3[%c420] : memref<480xf32, #tpu.memory_space<smem>>
    %2350 = vector.broadcast %2349 : f32 to vector<8x92xf32>
    %2351 = arith.mulf %459, %2350 : vector<8x92xf32>
    %c421 = arith.constant 421 : index
    %2352 = memref.load %arg3[%c421] : memref<480xf32, #tpu.memory_space<smem>>
    %2353 = vector.broadcast %2352 : f32 to vector<8x92xf32>
    %2354 = arith.mulf %460, %2353 : vector<8x92xf32>
    %2355 = arith.addf %2351, %2354 : vector<8x92xf32>
    %c422 = arith.constant 422 : index
    %2356 = memref.load %arg3[%c422] : memref<480xf32, #tpu.memory_space<smem>>
    %2357 = vector.broadcast %2356 : f32 to vector<8x92xf32>
    %2358 = arith.mulf %461, %2357 : vector<8x92xf32>
    %2359 = arith.addf %2355, %2358 : vector<8x92xf32>
    %c423 = arith.constant 423 : index
    %2360 = memref.load %arg3[%c423] : memref<480xf32, #tpu.memory_space<smem>>
    %2361 = vector.broadcast %2360 : f32 to vector<8x92xf32>
    %2362 = arith.mulf %462, %2361 : vector<8x92xf32>
    %2363 = arith.addf %2359, %2362 : vector<8x92xf32>
    %c424 = arith.constant 424 : index
    %2364 = memref.load %arg3[%c424] : memref<480xf32, #tpu.memory_space<smem>>
    %2365 = vector.broadcast %2364 : f32 to vector<8x92xf32>
    %2366 = arith.mulf %463, %2365 : vector<8x92xf32>
    %2367 = arith.addf %2363, %2366 : vector<8x92xf32>
    %c425 = arith.constant 425 : index
    %2368 = memref.load %arg3[%c425] : memref<480xf32, #tpu.memory_space<smem>>
    %2369 = vector.broadcast %2368 : f32 to vector<8x92xf32>
    %2370 = arith.mulf %472, %2369 : vector<8x92xf32>
    %2371 = arith.addf %2367, %2370 : vector<8x92xf32>
    %c426 = arith.constant 426 : index
    %2372 = memref.load %arg3[%c426] : memref<480xf32, #tpu.memory_space<smem>>
    %2373 = vector.broadcast %2372 : f32 to vector<8x92xf32>
    %2374 = arith.mulf %473, %2373 : vector<8x92xf32>
    %2375 = arith.addf %2371, %2374 : vector<8x92xf32>
    %c427 = arith.constant 427 : index
    %2376 = memref.load %arg3[%c427] : memref<480xf32, #tpu.memory_space<smem>>
    %2377 = vector.broadcast %2376 : f32 to vector<8x92xf32>
    %2378 = arith.mulf %474, %2377 : vector<8x92xf32>
    %2379 = arith.addf %2375, %2378 : vector<8x92xf32>
    %c428 = arith.constant 428 : index
    %2380 = memref.load %arg3[%c428] : memref<480xf32, #tpu.memory_space<smem>>
    %2381 = vector.broadcast %2380 : f32 to vector<8x92xf32>
    %2382 = arith.mulf %475, %2381 : vector<8x92xf32>
    %2383 = arith.addf %2379, %2382 : vector<8x92xf32>
    %c429 = arith.constant 429 : index
    %2384 = memref.load %arg3[%c429] : memref<480xf32, #tpu.memory_space<smem>>
    %2385 = vector.broadcast %2384 : f32 to vector<8x92xf32>
    %2386 = arith.mulf %476, %2385 : vector<8x92xf32>
    %2387 = arith.addf %2383, %2386 : vector<8x92xf32>
    %c430 = arith.constant 430 : index
    %2388 = memref.load %arg3[%c430] : memref<480xf32, #tpu.memory_space<smem>>
    %2389 = vector.broadcast %2388 : f32 to vector<8x92xf32>
    %2390 = arith.mulf %485, %2389 : vector<8x92xf32>
    %2391 = arith.addf %2387, %2390 : vector<8x92xf32>
    %c431 = arith.constant 431 : index
    %2392 = memref.load %arg3[%c431] : memref<480xf32, #tpu.memory_space<smem>>
    %2393 = vector.broadcast %2392 : f32 to vector<8x92xf32>
    %2394 = arith.mulf %486, %2393 : vector<8x92xf32>
    %2395 = arith.addf %2391, %2394 : vector<8x92xf32>
    %c432 = arith.constant 432 : index
    %2396 = memref.load %arg3[%c432] : memref<480xf32, #tpu.memory_space<smem>>
    %2397 = vector.broadcast %2396 : f32 to vector<8x92xf32>
    %2398 = arith.mulf %487, %2397 : vector<8x92xf32>
    %2399 = arith.addf %2395, %2398 : vector<8x92xf32>
    %c433 = arith.constant 433 : index
    %2400 = memref.load %arg3[%c433] : memref<480xf32, #tpu.memory_space<smem>>
    %2401 = vector.broadcast %2400 : f32 to vector<8x92xf32>
    %2402 = arith.mulf %488, %2401 : vector<8x92xf32>
    %2403 = arith.addf %2399, %2402 : vector<8x92xf32>
    %c434 = arith.constant 434 : index
    %2404 = memref.load %arg3[%c434] : memref<480xf32, #tpu.memory_space<smem>>
    %2405 = vector.broadcast %2404 : f32 to vector<8x92xf32>
    %2406 = arith.mulf %489, %2405 : vector<8x92xf32>
    %2407 = arith.addf %2403, %2406 : vector<8x92xf32>
    %c435 = arith.constant 435 : index
    %2408 = memref.load %arg3[%c435] : memref<480xf32, #tpu.memory_space<smem>>
    %2409 = vector.broadcast %2408 : f32 to vector<8x92xf32>
    %2410 = arith.mulf %498, %2409 : vector<8x92xf32>
    %2411 = arith.addf %2407, %2410 : vector<8x92xf32>
    %c436 = arith.constant 436 : index
    %2412 = memref.load %arg3[%c436] : memref<480xf32, #tpu.memory_space<smem>>
    %2413 = vector.broadcast %2412 : f32 to vector<8x92xf32>
    %2414 = arith.mulf %499, %2413 : vector<8x92xf32>
    %2415 = arith.addf %2411, %2414 : vector<8x92xf32>
    %c437 = arith.constant 437 : index
    %2416 = memref.load %arg3[%c437] : memref<480xf32, #tpu.memory_space<smem>>
    %2417 = vector.broadcast %2416 : f32 to vector<8x92xf32>
    %2418 = arith.mulf %500, %2417 : vector<8x92xf32>
    %2419 = arith.addf %2415, %2418 : vector<8x92xf32>
    %c438 = arith.constant 438 : index
    %2420 = memref.load %arg3[%c438] : memref<480xf32, #tpu.memory_space<smem>>
    %2421 = vector.broadcast %2420 : f32 to vector<8x92xf32>
    %2422 = arith.mulf %501, %2421 : vector<8x92xf32>
    %2423 = arith.addf %2419, %2422 : vector<8x92xf32>
    %c439 = arith.constant 439 : index
    %2424 = memref.load %arg3[%c439] : memref<480xf32, #tpu.memory_space<smem>>
    %2425 = vector.broadcast %2424 : f32 to vector<8x92xf32>
    %2426 = arith.mulf %502, %2425 : vector<8x92xf32>
    %2427 = arith.addf %2423, %2426 : vector<8x92xf32>
    %c440 = arith.constant 440 : index
    %2428 = memref.load %arg3[%c440] : memref<480xf32, #tpu.memory_space<smem>>
    %2429 = vector.broadcast %2428 : f32 to vector<8x92xf32>
    %2430 = arith.mulf %511, %2429 : vector<8x92xf32>
    %2431 = arith.addf %2427, %2430 : vector<8x92xf32>
    %c441 = arith.constant 441 : index
    %2432 = memref.load %arg3[%c441] : memref<480xf32, #tpu.memory_space<smem>>
    %2433 = vector.broadcast %2432 : f32 to vector<8x92xf32>
    %2434 = arith.mulf %512, %2433 : vector<8x92xf32>
    %2435 = arith.addf %2431, %2434 : vector<8x92xf32>
    %c442 = arith.constant 442 : index
    %2436 = memref.load %arg3[%c442] : memref<480xf32, #tpu.memory_space<smem>>
    %2437 = vector.broadcast %2436 : f32 to vector<8x92xf32>
    %2438 = arith.mulf %513, %2437 : vector<8x92xf32>
    %2439 = arith.addf %2435, %2438 : vector<8x92xf32>
    %c443 = arith.constant 443 : index
    %2440 = memref.load %arg3[%c443] : memref<480xf32, #tpu.memory_space<smem>>
    %2441 = vector.broadcast %2440 : f32 to vector<8x92xf32>
    %2442 = arith.mulf %514, %2441 : vector<8x92xf32>
    %2443 = arith.addf %2439, %2442 : vector<8x92xf32>
    %c444 = arith.constant 444 : index
    %2444 = memref.load %arg3[%c444] : memref<480xf32, #tpu.memory_space<smem>>
    %2445 = vector.broadcast %2444 : f32 to vector<8x92xf32>
    %2446 = arith.mulf %515, %2445 : vector<8x92xf32>
    %2447 = arith.addf %2443, %2446 : vector<8x92xf32>
    %c445 = arith.constant 445 : index
    %2448 = memref.load %arg3[%c445] : memref<480xf32, #tpu.memory_space<smem>>
    %2449 = vector.broadcast %2448 : f32 to vector<8x92xf32>
    %2450 = arith.mulf %524, %2449 : vector<8x92xf32>
    %2451 = arith.addf %2447, %2450 : vector<8x92xf32>
    %c446 = arith.constant 446 : index
    %2452 = memref.load %arg3[%c446] : memref<480xf32, #tpu.memory_space<smem>>
    %2453 = vector.broadcast %2452 : f32 to vector<8x92xf32>
    %2454 = arith.mulf %525, %2453 : vector<8x92xf32>
    %2455 = arith.addf %2451, %2454 : vector<8x92xf32>
    %c447 = arith.constant 447 : index
    %2456 = memref.load %arg3[%c447] : memref<480xf32, #tpu.memory_space<smem>>
    %2457 = vector.broadcast %2456 : f32 to vector<8x92xf32>
    %2458 = arith.mulf %526, %2457 : vector<8x92xf32>
    %2459 = arith.addf %2455, %2458 : vector<8x92xf32>
    %c448 = arith.constant 448 : index
    %2460 = memref.load %arg3[%c448] : memref<480xf32, #tpu.memory_space<smem>>
    %2461 = vector.broadcast %2460 : f32 to vector<8x92xf32>
    %2462 = arith.mulf %527, %2461 : vector<8x92xf32>
    %2463 = arith.addf %2459, %2462 : vector<8x92xf32>
    %c449 = arith.constant 449 : index
    %2464 = memref.load %arg3[%c449] : memref<480xf32, #tpu.memory_space<smem>>
    %2465 = vector.broadcast %2464 : f32 to vector<8x92xf32>
    %2466 = arith.mulf %528, %2465 : vector<8x92xf32>
    %2467 = arith.addf %2463, %2466 : vector<8x92xf32>
    %2468 = vector.extract_strided_slice %2467 {offsets = [0, 0], sizes = [8, 46], strides = [1, 1]} : vector<8x92xf32> to vector<8x46xf32>
    %2469 = vector.extract_strided_slice %2467 {offsets = [0, 46], sizes = [8, 46], strides = [1, 1]} : vector<8x92xf32> to vector<8x46xf32>
    %2470 = arith.maximumf %2468, %2469 : vector<8x46xf32>
    %c14_136 = arith.constant 14 : index
    %2471 = memref.load %arg4[%c14_136] : memref<16xf32, #tpu.memory_space<smem>>
    %2472 = vector.broadcast %2471 : f32 to vector<8x46xf32>
    %2473 = arith.addf %2470, %2472 : vector<8x46xf32>
    %cst_137 = arith.constant 0.000000e+00 : f32
    %2474 = vector.broadcast %cst_137 : f32 to vector<8x46xf32>
    %2475 = arith.maximumf %2473, %2474 : vector<8x46xf32>
    %c14_138 = arith.constant 14 : index
    %c0_139 = arith.constant 0 : index
    %c0_140 = arith.constant 0 : index
    %2476 = vector.load %arg6[%c14_138, %c0_139, %c0_140] : memref<16x46x128xf32, #tpu.memory_space<vmem>>, vector<1x46x128xf32>
    %2477 = vector.shape_cast %2476 : vector<1x46x128xf32> to vector<46x128xf32>
    %cst_141 = arith.constant dense<0.000000e+00> : vector<8x128xf32>
    %2478 = tpu.matmul %2475, %2477, %cst_141 {dimension_numbers = #tpu.dot_dimension_numbers<[1], [0], [0], [1], [0, 0, 1, 1], [], []>} : vector<8x46xf32>, vector<46x128xf32>, vector<8x128xf32> -> vector<8x128xf32>
    %c450 = arith.constant 450 : index
    %2479 = memref.load %arg3[%c450] : memref<480xf32, #tpu.memory_space<smem>>
    %2480 = vector.broadcast %2479 : f32 to vector<8x92xf32>
    %2481 = arith.mulf %459, %2480 : vector<8x92xf32>
    %c451 = arith.constant 451 : index
    %2482 = memref.load %arg3[%c451] : memref<480xf32, #tpu.memory_space<smem>>
    %2483 = vector.broadcast %2482 : f32 to vector<8x92xf32>
    %2484 = arith.mulf %460, %2483 : vector<8x92xf32>
    %2485 = arith.addf %2481, %2484 : vector<8x92xf32>
    %c452 = arith.constant 452 : index
    %2486 = memref.load %arg3[%c452] : memref<480xf32, #tpu.memory_space<smem>>
    %2487 = vector.broadcast %2486 : f32 to vector<8x92xf32>
    %2488 = arith.mulf %461, %2487 : vector<8x92xf32>
    %2489 = arith.addf %2485, %2488 : vector<8x92xf32>
    %c453 = arith.constant 453 : index
    %2490 = memref.load %arg3[%c453] : memref<480xf32, #tpu.memory_space<smem>>
    %2491 = vector.broadcast %2490 : f32 to vector<8x92xf32>
    %2492 = arith.mulf %462, %2491 : vector<8x92xf32>
    %2493 = arith.addf %2489, %2492 : vector<8x92xf32>
    %c454 = arith.constant 454 : index
    %2494 = memref.load %arg3[%c454] : memref<480xf32, #tpu.memory_space<smem>>
    %2495 = vector.broadcast %2494 : f32 to vector<8x92xf32>
    %2496 = arith.mulf %463, %2495 : vector<8x92xf32>
    %2497 = arith.addf %2493, %2496 : vector<8x92xf32>
    %c455 = arith.constant 455 : index
    %2498 = memref.load %arg3[%c455] : memref<480xf32, #tpu.memory_space<smem>>
    %2499 = vector.broadcast %2498 : f32 to vector<8x92xf32>
    %2500 = arith.mulf %472, %2499 : vector<8x92xf32>
    %2501 = arith.addf %2497, %2500 : vector<8x92xf32>
    %c456 = arith.constant 456 : index
    %2502 = memref.load %arg3[%c456] : memref<480xf32, #tpu.memory_space<smem>>
    %2503 = vector.broadcast %2502 : f32 to vector<8x92xf32>
    %2504 = arith.mulf %473, %2503 : vector<8x92xf32>
    %2505 = arith.addf %2501, %2504 : vector<8x92xf32>
    %c457 = arith.constant 457 : index
    %2506 = memref.load %arg3[%c457] : memref<480xf32, #tpu.memory_space<smem>>
    %2507 = vector.broadcast %2506 : f32 to vector<8x92xf32>
    %2508 = arith.mulf %474, %2507 : vector<8x92xf32>
    %2509 = arith.addf %2505, %2508 : vector<8x92xf32>
    %c458 = arith.constant 458 : index
    %2510 = memref.load %arg3[%c458] : memref<480xf32, #tpu.memory_space<smem>>
    %2511 = vector.broadcast %2510 : f32 to vector<8x92xf32>
    %2512 = arith.mulf %475, %2511 : vector<8x92xf32>
    %2513 = arith.addf %2509, %2512 : vector<8x92xf32>
    %c459 = arith.constant 459 : index
    %2514 = memref.load %arg3[%c459] : memref<480xf32, #tpu.memory_space<smem>>
    %2515 = vector.broadcast %2514 : f32 to vector<8x92xf32>
    %2516 = arith.mulf %476, %2515 : vector<8x92xf32>
    %2517 = arith.addf %2513, %2516 : vector<8x92xf32>
    %c460 = arith.constant 460 : index
    %2518 = memref.load %arg3[%c460] : memref<480xf32, #tpu.memory_space<smem>>
    %2519 = vector.broadcast %2518 : f32 to vector<8x92xf32>
    %2520 = arith.mulf %485, %2519 : vector<8x92xf32>
    %2521 = arith.addf %2517, %2520 : vector<8x92xf32>
    %c461 = arith.constant 461 : index
    %2522 = memref.load %arg3[%c461] : memref<480xf32, #tpu.memory_space<smem>>
    %2523 = vector.broadcast %2522 : f32 to vector<8x92xf32>
    %2524 = arith.mulf %486, %2523 : vector<8x92xf32>
    %2525 = arith.addf %2521, %2524 : vector<8x92xf32>
    %c462 = arith.constant 462 : index
    %2526 = memref.load %arg3[%c462] : memref<480xf32, #tpu.memory_space<smem>>
    %2527 = vector.broadcast %2526 : f32 to vector<8x92xf32>
    %2528 = arith.mulf %487, %2527 : vector<8x92xf32>
    %2529 = arith.addf %2525, %2528 : vector<8x92xf32>
    %c463 = arith.constant 463 : index
    %2530 = memref.load %arg3[%c463] : memref<480xf32, #tpu.memory_space<smem>>
    %2531 = vector.broadcast %2530 : f32 to vector<8x92xf32>
    %2532 = arith.mulf %488, %2531 : vector<8x92xf32>
    %2533 = arith.addf %2529, %2532 : vector<8x92xf32>
    %c464 = arith.constant 464 : index
    %2534 = memref.load %arg3[%c464] : memref<480xf32, #tpu.memory_space<smem>>
    %2535 = vector.broadcast %2534 : f32 to vector<8x92xf32>
    %2536 = arith.mulf %489, %2535 : vector<8x92xf32>
    %2537 = arith.addf %2533, %2536 : vector<8x92xf32>
    %c465 = arith.constant 465 : index
    %2538 = memref.load %arg3[%c465] : memref<480xf32, #tpu.memory_space<smem>>
    %2539 = vector.broadcast %2538 : f32 to vector<8x92xf32>
    %2540 = arith.mulf %498, %2539 : vector<8x92xf32>
    %2541 = arith.addf %2537, %2540 : vector<8x92xf32>
    %c466 = arith.constant 466 : index
    %2542 = memref.load %arg3[%c466] : memref<480xf32, #tpu.memory_space<smem>>
    %2543 = vector.broadcast %2542 : f32 to vector<8x92xf32>
    %2544 = arith.mulf %499, %2543 : vector<8x92xf32>
    %2545 = arith.addf %2541, %2544 : vector<8x92xf32>
    %c467 = arith.constant 467 : index
    %2546 = memref.load %arg3[%c467] : memref<480xf32, #tpu.memory_space<smem>>
    %2547 = vector.broadcast %2546 : f32 to vector<8x92xf32>
    %2548 = arith.mulf %500, %2547 : vector<8x92xf32>
    %2549 = arith.addf %2545, %2548 : vector<8x92xf32>
    %c468 = arith.constant 468 : index
    %2550 = memref.load %arg3[%c468] : memref<480xf32, #tpu.memory_space<smem>>
    %2551 = vector.broadcast %2550 : f32 to vector<8x92xf32>
    %2552 = arith.mulf %501, %2551 : vector<8x92xf32>
    %2553 = arith.addf %2549, %2552 : vector<8x92xf32>
    %c469 = arith.constant 469 : index
    %2554 = memref.load %arg3[%c469] : memref<480xf32, #tpu.memory_space<smem>>
    %2555 = vector.broadcast %2554 : f32 to vector<8x92xf32>
    %2556 = arith.mulf %502, %2555 : vector<8x92xf32>
    %2557 = arith.addf %2553, %2556 : vector<8x92xf32>
    %c470 = arith.constant 470 : index
    %2558 = memref.load %arg3[%c470] : memref<480xf32, #tpu.memory_space<smem>>
    %2559 = vector.broadcast %2558 : f32 to vector<8x92xf32>
    %2560 = arith.mulf %511, %2559 : vector<8x92xf32>
    %2561 = arith.addf %2557, %2560 : vector<8x92xf32>
    %c471 = arith.constant 471 : index
    %2562 = memref.load %arg3[%c471] : memref<480xf32, #tpu.memory_space<smem>>
    %2563 = vector.broadcast %2562 : f32 to vector<8x92xf32>
    %2564 = arith.mulf %512, %2563 : vector<8x92xf32>
    %2565 = arith.addf %2561, %2564 : vector<8x92xf32>
    %c472 = arith.constant 472 : index
    %2566 = memref.load %arg3[%c472] : memref<480xf32, #tpu.memory_space<smem>>
    %2567 = vector.broadcast %2566 : f32 to vector<8x92xf32>
    %2568 = arith.mulf %513, %2567 : vector<8x92xf32>
    %2569 = arith.addf %2565, %2568 : vector<8x92xf32>
    %c473 = arith.constant 473 : index
    %2570 = memref.load %arg3[%c473] : memref<480xf32, #tpu.memory_space<smem>>
    %2571 = vector.broadcast %2570 : f32 to vector<8x92xf32>
    %2572 = arith.mulf %514, %2571 : vector<8x92xf32>
    %2573 = arith.addf %2569, %2572 : vector<8x92xf32>
    %c474 = arith.constant 474 : index
    %2574 = memref.load %arg3[%c474] : memref<480xf32, #tpu.memory_space<smem>>
    %2575 = vector.broadcast %2574 : f32 to vector<8x92xf32>
    %2576 = arith.mulf %515, %2575 : vector<8x92xf32>
    %2577 = arith.addf %2573, %2576 : vector<8x92xf32>
    %c475 = arith.constant 475 : index
    %2578 = memref.load %arg3[%c475] : memref<480xf32, #tpu.memory_space<smem>>
    %2579 = vector.broadcast %2578 : f32 to vector<8x92xf32>
    %2580 = arith.mulf %524, %2579 : vector<8x92xf32>
    %2581 = arith.addf %2577, %2580 : vector<8x92xf32>
    %c476 = arith.constant 476 : index
    %2582 = memref.load %arg3[%c476] : memref<480xf32, #tpu.memory_space<smem>>
    %2583 = vector.broadcast %2582 : f32 to vector<8x92xf32>
    %2584 = arith.mulf %525, %2583 : vector<8x92xf32>
    %2585 = arith.addf %2581, %2584 : vector<8x92xf32>
    %c477 = arith.constant 477 : index
    %2586 = memref.load %arg3[%c477] : memref<480xf32, #tpu.memory_space<smem>>
    %2587 = vector.broadcast %2586 : f32 to vector<8x92xf32>
    %2588 = arith.mulf %526, %2587 : vector<8x92xf32>
    %2589 = arith.addf %2585, %2588 : vector<8x92xf32>
    %c478 = arith.constant 478 : index
    %2590 = memref.load %arg3[%c478] : memref<480xf32, #tpu.memory_space<smem>>
    %2591 = vector.broadcast %2590 : f32 to vector<8x92xf32>
    %2592 = arith.mulf %527, %2591 : vector<8x92xf32>
    %2593 = arith.addf %2589, %2592 : vector<8x92xf32>
    %c479 = arith.constant 479 : index
    %2594 = memref.load %arg3[%c479] : memref<480xf32, #tpu.memory_space<smem>>
    %2595 = vector.broadcast %2594 : f32 to vector<8x92xf32>
    %2596 = arith.mulf %528, %2595 : vector<8x92xf32>
    %2597 = arith.addf %2593, %2596 : vector<8x92xf32>
    %2598 = vector.extract_strided_slice %2597 {offsets = [0, 0], sizes = [8, 46], strides = [1, 1]} : vector<8x92xf32> to vector<8x46xf32>
    %2599 = vector.extract_strided_slice %2597 {offsets = [0, 46], sizes = [8, 46], strides = [1, 1]} : vector<8x92xf32> to vector<8x46xf32>
    %2600 = arith.maximumf %2598, %2599 : vector<8x46xf32>
    %c15_142 = arith.constant 15 : index
    %2601 = memref.load %arg4[%c15_142] : memref<16xf32, #tpu.memory_space<smem>>
    %2602 = vector.broadcast %2601 : f32 to vector<8x46xf32>
    %2603 = arith.addf %2600, %2602 : vector<8x46xf32>
    %cst_143 = arith.constant 0.000000e+00 : f32
    %2604 = vector.broadcast %cst_143 : f32 to vector<8x46xf32>
    %2605 = arith.maximumf %2603, %2604 : vector<8x46xf32>
    %c15_144 = arith.constant 15 : index
    %c0_145 = arith.constant 0 : index
    %c0_146 = arith.constant 0 : index
    %2606 = vector.load %arg6[%c15_144, %c0_145, %c0_146] : memref<16x46x128xf32, #tpu.memory_space<vmem>>, vector<1x46x128xf32>
    %2607 = vector.shape_cast %2606 : vector<1x46x128xf32> to vector<46x128xf32>
    %cst_147 = arith.constant dense<0.000000e+00> : vector<8x128xf32>
    %2608 = tpu.matmul %2605, %2607, %cst_147 {dimension_numbers = #tpu.dot_dimension_numbers<[1], [0], [0], [1], [0, 0, 1, 1], [], []>} : vector<8x46xf32>, vector<46x128xf32>, vector<8x128xf32> -> vector<8x128xf32>
    %2609 = arith.addf %658, %788 : vector<8x128xf32>
    %2610 = arith.addf %918, %1048 : vector<8x128xf32>
    %2611 = arith.addf %1178, %1308 : vector<8x128xf32>
    %2612 = arith.addf %1438, %1568 : vector<8x128xf32>
    %2613 = arith.addf %1698, %1828 : vector<8x128xf32>
    %2614 = arith.addf %1958, %2088 : vector<8x128xf32>
    %2615 = arith.addf %2218, %2348 : vector<8x128xf32>
    %2616 = arith.addf %2478, %2608 : vector<8x128xf32>
    %2617 = arith.addf %2609, %2610 : vector<8x128xf32>
    %2618 = arith.addf %2611, %2612 : vector<8x128xf32>
    %2619 = arith.addf %2613, %2614 : vector<8x128xf32>
    %2620 = arith.addf %2615, %2616 : vector<8x128xf32>
    %2621 = arith.addf %2617, %2618 : vector<8x128xf32>
    %2622 = arith.addf %2619, %2620 : vector<8x128xf32>
    %2623 = arith.addf %2621, %2622 : vector<8x128xf32>
    %c0_148 = arith.constant 0 : index
    %c0_149 = arith.constant 0 : index
    %2624 = vector.load %arg7[%c0_148, %c0_149] : memref<1x128xf32, #tpu.memory_space<vmem>>, vector<1x128xf32>
    %2625 = vector.broadcast %2624 : vector<1x128xf32> to vector<8x128xf32>
    %2626 = arith.addf %2623, %2625 : vector<8x128xf32>
    %cst_150 = arith.constant 0.000000e+00 : f32
    %2627 = vector.broadcast %cst_150 : f32 to vector<8x128xf32>
    %2628 = arith.maximumf %2626, %2627 : vector<8x128xf32>
    %c0_151 = arith.constant 0 : index
    %c0_152 = arith.constant 0 : index
    %2629 = vector.load %arg8[%c0_151, %c0_152] : memref<128x128xf32, #tpu.memory_space<vmem>>, vector<128x128xf32>
    %cst_153 = arith.constant dense<0.000000e+00> : vector<8x128xf32>
    %2630 = tpu.matmul %2628, %2629, %cst_153 {dimension_numbers = #tpu.dot_dimension_numbers<[1], [0], [0], [1], [0, 0, 1, 1], [], []>} : vector<8x128xf32>, vector<128x128xf32>, vector<8x128xf32> -> vector<8x128xf32>
    %c0_154 = arith.constant 0 : index
    %c0_155 = arith.constant 0 : index
    %2631 = vector.load %arg9[%c0_154, %c0_155] : memref<1x128xf32, #tpu.memory_space<vmem>>, vector<1x128xf32>
    %2632 = vector.broadcast %2631 : vector<1x128xf32> to vector<8x128xf32>
    %2633 = arith.addf %2630, %2632 : vector<8x128xf32>
    %c0_156 = arith.constant 0 : index
    %c0_157 = arith.constant 0 : index
    %2634 = vector.load %arg10[%c0_156, %c0_157] : memref<8x128xf32, #tpu.memory_space<vmem>>, vector<8x128xf32>
    tpu.vector_store %arg10[%c0_156, %c0_157], %2633 {strides = array<i32>} : memref<8x128xf32, #tpu.memory_space<vmem>>, vector<8x128xf32>,
    return
  }
  func.func @transform_0(%arg0: i32) -> i32 {
    %c0_i32 = arith.constant 0 : i32
    %c0_i32_0 = arith.constant 0 : i32
    return %c0_i32 : i32
  }
  func.func @transform_1(%arg0: i32) -> i32 {
    %c0_i32 = arith.constant 0 : i32
    %c0_i32_0 = arith.constant 0 : i32
    return %c0_i32 : i32
  }
  func.func @transform_2(%arg0: i32) -> i32 {
    %c0_i32 = arith.constant 0 : i32
    %c0_i32_0 = arith.constant 0 : i32
    return %c0_i32 : i32
  }
  func.func @transform_3(%arg0: i32) -> i32 {
    %c0_i32 = arith.constant 0 : i32
    %c0_i32_0 = arith.constant 0 : i32
    return %c0_i32 : i32
  }
  func.func @transform_4(%arg0: i32) -> (i32, i32, i32) {
    %c0_i32 = arith.constant 0 : i32
    %c0_i32_0 = arith.constant 0 : i32
    %c0_i32_1 = arith.constant 0 : i32
    return %c0_i32, %arg0, %c0_i32_0 : i32, i32, i32
  }
  func.func @transform_5(%arg0: i32) -> (i32, i32, i32) {
    %c0_i32 = arith.constant 0 : i32
    %c0_i32_0 = arith.constant 0 : i32
    %c0_i32_1 = arith.constant 0 : i32
    %c0_i32_2 = arith.constant 0 : i32
    return %c0_i32, %c0_i32_0, %c0_i32_1 : i32, i32, i32
  }
  func.func @transform_6(%arg0: i32) -> (i32, i32) {
    %c0_i32 = arith.constant 0 : i32
    %c0_i32_0 = arith.constant 0 : i32
    %c0_i32_1 = arith.constant 0 : i32
    return %c0_i32, %c0_i32_0 : i32, i32
  }
  func.func @transform_7(%arg0: i32) -> (i32, i32) {
    %c0_i32 = arith.constant 0 : i32
    %c0_i32_0 = arith.constant 0 : i32
    %c0_i32_1 = arith.constant 0 : i32
    return %c0_i32, %c0_i32_0 : i32, i32
  }
  func.func @transform_8(%arg0: i32) -> (i32, i32) {
    %c0_i32 = arith.constant 0 : i32
    %c0_i32_0 = arith.constant 0 : i32
    %c0_i32_1 = arith.constant 0 : i32
    return %c0_i32, %c0_i32_0 : i32, i32
  }
  func.func @transform_9(%arg0: i32) -> (i32, i32) {
    %c0_i32 = arith.constant 0 : i32
    %c0_i32_0 = arith.constant 0 : i32
    return %arg0, %c0_i32 : i32, i32
  }
}

</mosaic_0001>

<bundles_post_ra>
// kernel: my_cnn_forward.1
= control target key start
LH: loop header
LB: loop body
LE: loop exit
PB: predicated region body
PF: predicated region fallthrough
CT: control target
= control target key end

     0   :  { %s9193_s0 = inlined_call_operand.vmem [shape: f32[30], index: 0, kind: input, shape index: {}]   ;;  %s9194_s1 = inlined_call_operand.vmem [shape: f32[6], index: 1, kind: input, shape index: {}]   ;;  %s9195_s2 = inlined_call_operand.vmem [shape: f32[480], index: 2, kind: input, shape index: {}]   ;;  %s9196_s3 = inlined_call_operand.vmem [shape: f32[16], index: 3, kind: input, shape index: {}]   ;;  %s9197_s4 = inlined_call_operand.vmem [shape: f32[4,8,46], index: 4, kind: input, shape index: {}]   ;;  %s9198_s5 = inlined_call_operand.vmem [shape: f32[16,46,128], index: 5, kind: input, shape index: {}]   ;;  %s9199_s6 = inlined_call_operand.vmem [shape: f32[1,128], index: 6, kind: input, shape index: {}]   ;;  %s9200_s7 = inlined_call_operand.vmem [shape: f32[128,128], index: 7, kind: input, shape index: {}]   ;;  %s9201_s8 = inlined_call_operand.vmem [shape: f32[1,128], index: 8, kind: input, shape index: {}]   ;;  %s9202_s9 = inlined_call_operand.vmem [shape: f32[8,128], index: 9, kind: output, shape index: {}]  }
   0x1   :  { %9348 = sst [smem:[#allocation132_spill]] %s9198_s5 }
   0x2   :  { %9349 = sst [smem:[#allocation133_spill]] %s9199_s6 }
   0x3   :  { %9350 = sst [smem:[#allocation134_spill]] %s9200_s7 }
   0x4   :  { %9351 = sst [smem:[#allocation135_spill]] %s9201_s8 }
   0x5   :  { %9352 = sst [smem:[#allocation136_spill]] %s9202_s9 }
   0x6   :  { %14 = vsyncpa [#allocation3], 0 }
   0x7   :  { %15 = vsyncpa [#allocation5], 0  ;;  %s33_s11 = sshll.u32 %s9194_s1, 4  ;;  %s34_s11 = int_to_ptr.vmem [resolvable:$true] %s33_s11 }
   0x8   :  { %16 = vsyncpa [#allocation8], 0  ;;  %s23_s14 = sshll.u32 %s9193_s0, 4  ;;  %s5473_s15 = scalar_lea.vmem %s34_s11, 16  ;;  %s24_s14 = int_to_ptr.vmem [resolvable:$true] %s23_s14 }
   0x9   :  { %p5474_p0 = scmp.ne.s32.totalorder %s34_s11, %s5473_s15  ;;  %p5478_p1 = scmp.lt.s32.totalorder %s34_s11, %s34_s11 }
   0xa   :  { %p5479_p2 = scmp.lt.s32.totalorder %s5473_s15, %s5473_s15 }
   0xc   :  { %p5480_p3 = por %p5479_p2, %p5478_p1 }
   0xe   :  { %p5481_p4 = pnand %p5480_p3, %p5474_p0 }
  0x10   :  { %5484 = shalt.err (!%p5481_p4)
}
  0x11   :  { %s5527_s16 = smov [#allocation4]   ;;  %s5485_s17 = scalar_lea.vmem %s24_s14, 16 }
  0x12   :  { %36 = dma.vmem_to_smem %s34_s11, 16, %s5527_s16, [#allocation5]  }
  0x13   :  { %p5486_p5 = scmp.ne.s32.totalorder %s24_s14, %s5485_s17  ;;  %p5490_p6 = scmp.lt.s32.totalorder %s24_s14, %s24_s14 }
  0x14   :  { %p5491_p7 = scmp.lt.s32.totalorder %s5485_s17, %s5485_s17 }
  0x16   :  { %p5492_p8 = por %p5491_p7, %p5490_p6 }
  0x18   :  { %p5493_p9 = pnand %p5492_p8, %p5486_p5 }
  0x1a   :  { %5496 = shalt.err (!%p5493_p9)
}
  0x1b   :  { %s5528_s1 = smov [#allocation2]   ;;  %s43_s19 = sshll.u32 %s9195_s2, 4  ;;  %s44_s19 = int_to_ptr.vmem [resolvable:$true] %s43_s19 }
  0x1c   :  { %26 = dma.vmem_to_smem %s24_s14, 16, %s5528_s1, [#allocation3]  }
  0x1d   :  { %s53_s22 = sshll.u32 %s9196_s3, 4  ;;  %s5497_s23 = scalar_lea.vmem %s44_s19, 64  ;;  %s54_s22 = int_to_ptr.vmem [resolvable:$true] %s53_s22 }
  0x1e   :  { %p5498_p10 = scmp.ne.s32.totalorder %s44_s19, %s5497_s23  ;;  %p5502_p11 = scmp.lt.s32.totalorder %s44_s19, %s44_s19 }
  0x1f   :  { %p5503_p12 = scmp.lt.s32.totalorder %s5497_s23, %s5497_s23 }
  0x21   :  { %p5504_p13 = por %p5503_p12, %p5502_p11 }
  0x23   :  { %p5505_p0 = pnand %p5504_p13, %p5498_p10 }
  0x25   :  { %5508 = shalt.err (!%p5505_p0)
}
  0x26   :  { %s5529_s24 = smov [#allocation6]   ;;  %s5509_s25 = scalar_lea.vmem %s54_s22, 16 }
  0x27   :  { %46 = dma.vmem_to_smem %s44_s19, 64, %s5529_s24, [#allocation5]  }
  0x28   :  { %p5510_p1 = scmp.ne.s32.totalorder %s54_s22, %s5509_s25  ;;  %p5514_p2 = scmp.lt.s32.totalorder %s54_s22, %s54_s22 }
  0x29   :  { %p5515_p3 = scmp.lt.s32.totalorder %s5509_s25, %s5509_s25 }
  0x2b   :  { %p5516_p4 = por %p5515_p3, %p5514_p2 }
  0x2d   :  { %p5517_p5 = pnand %p5516_p4, %p5510_p1 }
  0x2f   :  { %5520 = shalt.err (!%p5517_p5)
}
  0x30   :  { %s5530_s2 = smov [#allocation7]  }
  0x31   :  { %56 = dma.vmem_to_smem %s54_s22, 16, %s5530_s2, [#allocation8]  }
  0x32   :  { %5521 = dma.done.wait [#allocation3], 16  }
  0x33   :  { %5522 = vsyncadd [#allocation3], 4294967280 }
  0x34   :  { %5523 = dma.done.wait [#allocation5], 80  }
  0x35   :  { %5524 = vsyncadd [#allocation5], 4294967216 }
  0x36   :  { %5525 = dma.done.wait [#allocation8], 16  }
  0x37   :  { %5526 = vsyncadd [#allocation8], 4294967280 }
  0x38   :  { %79 = sfence }
  0x39   :  { %s4404_s3 = sld [smem:[#allocation2 + $0x2]]  ;;  %v5606_v0 = vld [vmem:[%s9197_s4 + $0x8] sm:$0xff]  ;;  %v5611_v1 = vld [vmem:[%s9197_s4] sm:$0xff]  ;;  %s9205_s12 = smov 127   ;;  %v5625_v9 = vld [vmem:[%s9197_s4 + $0x10] sm:$0xff]  ;;  %vm660_vm0 = vcmask 7168  }
  0x3a   :  { %s4403_s26 = sld [smem:[#allocation2 + $0x1]]  ;;  %v5638_v15 = vld [vmem:[%s9197_s4 + $0x18] sm:$0xff]  ;;  %s5532_s1 = smov 1   ;;  %vm662_vm1 = vcmask 375808   ;;  %vm652_vm2 = vcmask 15360   ;;  %vm654_vm3 = vcmask 384000  }
  0x3b   :  { %s4405_s27 = sld [smem:[#allocation2 + $0x3]]  ;;  %s9371_s8 = smov 45   ;;  %vm1182_vm4 = vcmask 1045504   ;;  %vm5540_vm5 = vmmov 0  }
  0x3c   :  { %s4406_s11 = sld [smem:[#allocation2 + $0x4]]  ;;  %s9372_s6 = smov 46  }
  0x3d   :  { %s4409_s15 = sld [smem:[#allocation2 + $0x7]] }
  0x3e   :  { %s4408_s16 = sld [smem:[#allocation2 + $0x6]] }
  0x3f   :  { %v105_v2 = vstv %s4404_s3  ;;  %s4410_s0 = sld [smem:[#allocation2 + $0x8]] }
  0x40   :  { %v116_v3 = vmul.f32 %v105_v2, %v5606_v0  ;;  %v5614_v4 = vstv %s4403_s26  ;;  %v110_v8 = vmul.f32 %v105_v2, %v5611_v1  ;;  %s4411_s18 = sld [smem:[#allocation2 + $0x9]]  ;;  %v108_v28 = vmul.f32 %v105_v2, %v5638_v15 }
  0x41   :  { %v98_v5 = vmul.f32 %v5614_v4, %v5611_v1  ;;  %v123_v6 = vstv %s4405_s27  ;;  %s84_s19 = sld [smem:[#allocation2]]  ;;  %v94_v24 = vmul.f32 %v5614_v4, %v5625_v9  ;;  %v92_v25 = vmul.f32 %v5614_v4, %v5606_v0 }
  0x42   :  { %118 = vrot.lane.b32.xlu1 %v116_v3, %s9205_s12  ;;  %v126_v7 = vmul.f32 %v123_v6, %v5611_v1  ;;  %v138_v10 = vmul.f32 %v123_v6, %v5625_v9  ;;  %v132_v11 = vmul.f32 %v123_v6, %v5606_v0  ;;  %v145_v12 = vstv %s4406_s11  ;;  %s4407_s4 = sld [smem:[#allocation2 + $0x5]] }
  0x43   :  { %100 = vrot.lane.b32.xlu0 %v98_v5, %s9205_s12  ;;  %v152_v13 = vmul.f32 %v145_v12, %v5606_v0  ;;  %v146_v14 = vmul.f32 %v145_v12, %v5611_v1  ;;  %v164_v16 = vmul.f32 %v145_v12, %v5638_v15  ;;  %v158_v17 = vmul.f32 %v145_v12, %v5625_v9  ;;  %s4414_s20 = sld [smem:[#allocation2 + $0xb]] }
  0x44   :  { %v199_v18 = vstv %s4409_s15  ;;  %v5644_v19 = vstv %s4408_s16  ;;  %s5651_s21 = sld [smem:[#allocation2 + $0xa]]  ;;  %v106_v32 = vmul.f32 %v105_v2, %v5625_v9  ;;  %v124_v38 = vmul.f32 %v123_v6, %v5638_v15 }
  0x45   :  { %v204_v20 = vmul.f32 %v199_v18, %v5611_v1  ;;  %v192_v21 = vmul.f32 %v5644_v19, %v5611_v1  ;;  %v217_v22 = vstv %s4410_s0  ;;  %s5655_s22 = sld [smem:[#allocation2 + $0xc]]  ;;  %v210_v26 = vmul.f32 %v199_v18, %v5606_v0  ;;  %s5533_s0 = smov 2  }
  0x46   :  { %128 = vrot.lane.b32.xlu1 %v126_v7, %s9205_s12  ;;  %v220_v23 = vmul.f32 %v217_v22, %v5611_v1  ;;  %v232_v29 = vmul.f32 %v217_v22, %v5625_v9  ;;  %v226_v30 = vmul.f32 %v217_v22, %v5606_v0  ;;  %v239_v33 = vstv %s4411_s18  ;;  %s4416_s23 = sld [smem:[#allocation2 + $0xd]] }
  0x47   :  { %112 = vrot.lane.b32.xlu0 %v110_v8, %s9205_s12  ;;  %v5663_v27 = vstv %s84_s19  ;;  %v188_v35 = vmul.f32 %v5644_v19, %v5625_v9  ;;  %v186_v36 = vmul.f32 %v5644_v19, %v5606_v0  ;;  %v202_v40 = vmul.f32 %v199_v18, %v5638_v15  ;;  %s4417_s24 = sld [smem:[#allocation2 + $0xe]] }
  0x48   :  { %v87_v31 = vmul.f32 %v5663_v27, %v5606_v0  ;;  %v86_v34 = vmul.f32 %v5663_v27, %v5611_v1  ;;  %v5679_v39 = vstv %s4407_s4  ;;  %v200_v44 = vmul.f32 %v199_v18, %v5625_v9  ;;  %s4420_s25 = sld [smem:[#allocation2 + $0x10]] }
  0x49   :  { %v181_v42 = vmul.f32 %v5679_v39, %v5606_v0  ;;  %v180_v43 = vmul.f32 %v5679_v39, %v5611_v1  ;;  %v246_v45 = vmul.f32 %v239_v33, %v5606_v0  ;;  %v5689_v46 = vstv %s4414_s20  ;;  %s4419_s2 = sld [smem:[#allocation2 + $0xf]] }
  0x4a   :  { %140 = vrot.lane.b32.xlu1 %v138_v10, %s9205_s12  ;;  %v95_v37 = vadd.f32 %v94_v24, %v87_v31  ;;  %v93_v41 = vadd.f32 %v92_v25, %v86_v34  ;;  %v218_v48 = vmul.f32 %v217_v22, %v5638_v15  ;;  %v5695_v52 = vstv %s5651_s21  ;;  %s4421_s3 = sld [smem:[#allocation2 + $0x11]] }
  0x4b   :  { %134 = vrot.lane.b32.xlu0 %v132_v11, %s9205_s12  ;;  %v189_v50 = vadd.f32 %v188_v35, %v181_v42  ;;  %v187_v51 = vadd.f32 %v186_v36, %v180_v43  ;;  %v240_v53 = vmul.f32 %v239_v33, %v5611_v1  ;;  %v293_v54 = vstv %s5655_s22  ;;  %s4422_s26 = sld [smem:[#allocation2 + $0x12]] }
  0x4c   :  { %v5691_v47 = vadd.f32 %v108_v28, %v95_v37  ;;  %v107_v49 = vadd.f32 %v106_v32, %v93_v41  ;;  %v275_v55 = vmul.f32 %v5695_v52, %v5606_v0  ;;  %v282_v56 = vmul.f32 %v5689_v46, %v5625_v9  ;;  %s4423_s27 = sld [smem:[#allocation2 + $0x13]] }
  0x4d   :  { %v5707_v58 = vadd.f32 %v202_v40, %v189_v50  ;;  %v201_v59 = vadd.f32 %v200_v44, %v187_v51  ;;  %v296_v60 = vmul.f32 %v293_v54, %v5638_v15  ;;  %v258_v63 = vmul.f32 %v239_v33, %v5638_v15  ;;  %s4426_s28 = sld [smem:[#allocation2 + $0x15]] }
  0x4e   :  { %154 = vrot.lane.b32.xlu1 %v152_v13, %s9205_s12  ;;  %v5705_v57 = vadd.f32 %v124_v38, %v107_v49  ;;  %v283_v61 = vadd.f32 %v282_v56, %v275_v55  ;;  %v274_v3 = vmul.f32 %v5695_v52, %v5611_v1  ;;  %v280_v5 = vmul.f32 %v5689_v46, %v5606_v0  ;;  %s4425_s29 = sld [smem:[#allocation2 + $0x14]] }
  0x4f   :  { %148 = vrot.lane.b32.xlu0 %v146_v14, %s9205_s12  ;;  %v5710_v62 = vadd.f32 %v218_v48, %v201_v59  ;;  %v252_v6 = vmul.f32 %v239_v33, %v5625_v9  ;;  %v294_v8 = vmul.f32 %v293_v54, %v5625_v9  ;;  %v311_v10 = vstv %s4416_s23  ;;  %s4427_s30 = sld [smem:[#allocation2 + $0x16]]  ;;  %s9209_s23 = smov 45  }
  0x50   :  { %v5714_v2 = vadd.f32 %v296_v60, %v283_v61  ;;  %v281_v7 = vadd.f32 %v280_v5, %v274_v3  ;;  %v298_v11 = vmul.f32 %v293_v54, %v5611_v1  ;;  %v312_v13 = vmul.f32 %v311_v10, %v5638_v15  ;;  %s4428_s10 = sld [smem:[#allocation2 + $0x17]] }
  0x51   :  { %v286_v14 = vmul.f32 %v5689_v46, %v5611_v1  ;;  %v304_v18 = vmul.f32 %v293_v54, %v5606_v0  ;;  %v333_v22 = vstv %s4417_s24  ;;  %v5741_v24 = vstv %s4419_s2  ;;  %s4429_s11 = sld [smem:[#allocation2 + $0x18]]  ;;  %s9207_s24 = smov 46  }
  0x52   :  { %166 = vrot.lane.b32.xlu1 %v164_v16, %s9205_s12  ;;  %v295_v12 = vadd.f32 %v294_v8, %v281_v7  ;;  %v369_v25 = vmul.f32 %v5741_v24, %v5606_v0  ;;  %v387_v28 = vstv %s4421_s3  ;;  %v334_v32 = vmul.f32 %v333_v22, %v5611_v1  ;;  %s4433_s13 = sld [smem:[#allocation2 + $0x1b]] }
  0x53   :  { %160 = vrot.lane.b32.xlu0 %v158_v17, %s9205_s12  ;;  %v314_v17 = vmul.f32 %v311_v10, %v5611_v1  ;;  %v390_v31 = vmul.f32 %v387_v28, %v5638_v15  ;;  %v352_v34 = vmul.f32 %v333_v22, %v5638_v15  ;;  %v368_v35 = vmul.f32 %v5741_v24, %v5611_v1  ;;  %s4432_s14 = sld [smem:[#allocation2 + $0x1a]] }
  0x54   :  { %v5729_v16 = vadd.f32 %v312_v13, %v295_v12  ;;  %v346_v37 = vmul.f32 %v333_v22, %v5625_v9  ;;  %v388_v40 = vmul.f32 %v387_v28, %v5625_v9  ;;  %v405_v41 = vstv %s4422_s26  ;;  %s4434_s15 = sld [smem:[#allocation2 + $0x1c]] }
  0x55   :  { %v392_v42 = vmul.f32 %v387_v28, %v5611_v1  ;;  %v406_v44 = vmul.f32 %v405_v41, %v5638_v15  ;;  %v408_v49 = vmul.f32 %v405_v41, %v5611_v1  ;;  %v398_v50 = vmul.f32 %v387_v28, %v5606_v0  ;;  %s4435_s16 = sld [smem:[#allocation2 + $0x1d]] }
  0x56   :  { %206 = vrot.lane.b32.xlu1 %v204_v20, %s9205_s12  ;;  %v326_v20 = vmul.f32 %v311_v10, %v5625_v9  ;;  %v420_v51 = vmul.f32 %v405_v41, %v5625_v9  ;;  %v427_v54 = vstv %s4423_s27  ;;  %v5779_v55 = vstv %s4426_s28  ;;  %s170_s17 = sld [smem:[#allocation4]] }
  0x57   :  { %194 = vrot.lane.b32.xlu0 %v192_v21, %s9205_s12  ;;  %v320_v21 = vmul.f32 %v311_v10, %v5606_v0  ;;  %v5781_v56 = vstv %s4425_s29  ;;  %v470_v60 = vmul.f32 %v5779_v55, %v5625_v9  ;;  %v481_v61 = vstv %s4427_s30  ;;  %s4412_s18 = sld [smem:[#allocation4 + $0x1]] }
  0x58   :  { %v463_v59 = vmul.f32 %v5781_v56, %v5606_v0  ;;  %v484_v5 = vmul.f32 %v481_v61, %v5638_v15  ;;  %v446_v8 = vmul.f32 %v427_v54, %v5638_v15  ;;  %v462_v10 = vmul.f32 %v5781_v56, %v5611_v1  ;;  %s4418_s19 = sld [smem:[#allocation4 + $0x2]] }
  0x59   :  { %v440_v12 = vmul.f32 %v427_v54, %v5625_v9  ;;  %v492_v28 = vmul.f32 %v481_v61, %v5606_v0  ;;  %s4424_s4 = sld [smem:[#allocation4 + $0x3]] }
  0x5a   :  { %222 = vrot.lane.b32.xlu1 %v220_v23, %s9205_s12  ;;  %v5739_v23 = vstv %s4420_s25  ;;  %v471_v3 = vadd.f32 %v470_v60, %v463_v59  ;;  %s5907_s20 = sld [smem:[#allocation4 + $0x4]]  ;;  %s9203_s25 = smov 44  }
  0x5b   :  { %212 = vrot.lane.b32.xlu0 %v210_v26, %s9205_s12  ;;  %v376_v26 = vmul.f32 %v5739_v23, %v5625_v9  ;;  %v374_v36 = vmul.f32 %v5739_v23, %v5606_v0  ;;  %s4431_s21 = sld [smem:[#allocation2 + $0x19]] }
  0x5c   :  { %v5792_v7 = vadd.f32 %v484_v5, %v471_v3  ;;  %v89_v3 = vmul.f32 %v5663_v27, %v5638_v15  ;;  %s4436_s22 = sld [smem:[#allocation4 + $0x5]] }
  0x5d   :  { %v375_v38 = vadd.f32 %v374_v36, %v368_v35  ;;  %s5968_s2 = sld [smem:[#allocation6 + $0x5a]] }
  0x5e   :  { %234 = vrot.lane.b32.xlu1 %v232_v29, %s9205_s12  ;;  %v340_v29 = vmul.f32 %v333_v22, %v5606_v0  ;;  %v474_v22 = vmul.f32 %v5779_v55, %v5611_v1  ;;  %s5970_s3 = sld [smem:[#allocation6 + $0x1e]] }
  0x5f   :  { %228 = vrot.lane.b32.xlu0 %v226_v30, %s9205_s12  ;;  %v377_v30 = vadd.f32 %v376_v26, %v369_v25  ;;  %v389_v43 = vadd.f32 %v388_v40, %v375_v38  ;;  %v5829_v38 = vstv %s4432_s14  ;;  %s5972_s26 = sld [smem:[#allocation6 + $0xd2]] }
  0x60   :  { %s5974_s27 = sld [smem:[#allocation6 + $0x96]] }
  0x61   :  { %v5752_v33 = vadd.f32 %v390_v31, %v377_v30  ;;  %v5769_v48 = vadd.f32 %v406_v44, %v389_v43  ;;  %v521_v31 = vstv %s4429_s11  ;;  %s5976_s28 = sld [smem:[#allocation6 + $0x5f]] }
  0x62   :  { %248 = vrot.lane.b32.xlu1 %v246_v45, %s9205_s12  ;;  %v380_v45 = vmul.f32 %v5739_v23, %v5611_v1  ;;  %v540_v35 = vmul.f32 %v521_v31, %v5638_v15  ;;  %v534_v36 = vmul.f32 %v521_v31, %v5625_v9  ;;  %s5979_s29 = sld [smem:[#allocation6 + $0x23]] }
  0x63   :  { %242 = vrot.lane.b32.xlu0 %v240_v53, %s9205_s12  ;;  %v414_v53 = vmul.f32 %v405_v41, %v5606_v0  ;;  %v568_v41 = vmul.f32 %v5829_v38, %v5611_v1  ;;  %s5984_s30 = sld [smem:[#allocation6 + $0xd7]] }
  0x64   :  { %s5992_s11 = sld [smem:[#allocation6 + $0x14a]] }
  0x65   :  { %s5996_s14 = sld [smem:[#allocation6 + $0x28]] }
  0x66   :  { %260 = vrot.lane.b32.xlu1 %v258_v63, %s9205_s12  ;;  %v434_v63 = vmul.f32 %v427_v54, %v5606_v0  ;;  %s6036_s9 = sld [smem:[#allocation6 + $0x5e]] }
  0x67   :  { %254 = vrot.lane.b32.xlu0 %v252_v6, %s9205_s12  ;;  %v428_v6 = vmul.f32 %v427_v54, %v5611_v1  ;;  %s6043_s7 = sld [smem:[#allocation6 + $0x21]] }
  0x68   :  { %s6045_s5 = sld [smem:[#allocation6 + $0x22]] }
  0x6a   :  { %300 = vrot.lane.b32.xlu1 %v298_v11, %s9205_s12  ;;  %v468_v11 = vmul.f32 %v5779_v55, %v5606_v0 }
  0x6b   :  { %288 = vrot.lane.b32.xlu0 %v286_v14, %s9205_s12  ;;  %v482_v14 = vmul.f32 %v481_v61, %v5625_v9  ;;  %9355 = sst [smem:[#allocation14_spill]] %s5996_s14 }
  0x6c   :  { %v469_v13 = vadd.f32 %v468_v11, %v462_v10  ;;  %9370 = sst [smem:[#allocation29_spill]] %s6036_s9  ;;  %s9377_s9 = smov 127  }
  0x6d   :  { %9373 = sst [smem:[#allocation30_spill]] %s6043_s7 }
  0x6e   :  { %316 = vrot.lane.b32.xlu1 %v314_v17, %s9205_s12  ;;  %v499_v17 = vstv %s4428_s10  ;;  %s5990_s10 = sld [smem:[#allocation6 + $0x9b]] }
  0x6f   :  { %306 = vrot.lane.b32.xlu0 %v304_v18, %s9205_s12  ;;  %v486_v18 = vmul.f32 %v481_v61, %v5611_v1  ;;  %v502_v26 = vmul.f32 %v499_v17, %v5611_v1  ;;  %v508_v30 = vmul.f32 %v499_v17, %v5606_v0  ;;  %9374 = sst [smem:[#allocation31_spill]] %s6045_s5 }
  0x70   :  { %s6062_s7 = sld [smem:[#allocation6 + $0x61]] }
  0x71   :  { %s6064_s5 = sld [smem:[#allocation6 + $0x62]] }
  0x72   :  { %328 = vrot.lane.b32.xlu1 %v326_v20, %s9205_s12  ;;  %v483_v20 = vadd.f32 %v482_v14, %v469_v13 }
  0x73   :  { %322 = vrot.lane.b32.xlu0 %v320_v21, %s9205_s12  ;;  %v500_v21 = vmul.f32 %v499_v17, %v5638_v15 }
  0x74   :  { %9353 = sst [smem:[#allocation12_spill]] %s5990_s10 }
  0x75   :  { %v5809_v25 = vadd.f32 %v500_v21, %v483_v20 }
  0x76   :  { %342 = vrot.lane.b32.xlu1 %v340_v29, %s9205_s12  ;;  %v514_v29 = vmul.f32 %v499_v17, %v5625_v9  ;;  %9380 = sst [smem:[#allocation36_spill]] %s6062_s7 }
  0x77   :  { %336 = vrot.lane.b32.xlu0 %v334_v32, %s9205_s12  ;;  %v528_v32 = vmul.f32 %v521_v31, %v5606_v0  ;;  %9381 = sst [smem:[#allocation37_spill]] %s6064_s5 }
  0x78   :  { %s6080_s7 = sld [smem:[#allocation6 + $0x27]] }
  0x79   :  { %s6086_s5 = sld [smem:[#allocation6 + $0xd5]] }
  0x7a   :  { %354 = vrot.lane.b32.xlu1 %v352_v34, %s9205_s12  ;;  %v522_v34 = vmul.f32 %v521_v31, %v5611_v1 }
  0x7b   :  { %348 = vrot.lane.b32.xlu0 %v346_v37, %s9205_s12  ;;  %v5827_v37 = vstv %s4433_s13  ;;  %s5994_s13 = sld [smem:[#allocation6 + $0x64]] }
  0x7c   :  { %v580_v40 = vmul.f32 %v5827_v37, %v5611_v1  ;;  %v586_v44 = vmul.f32 %v5827_v37, %v5606_v0 }
  0x7e   :  { %394 = vrot.lane.b32.xlu1 %v392_v42, %s9205_s12  ;;  %v5837_v42 = vstv %s4434_s15  ;;  %s6002_s15 = sld [smem:[#allocation6 + $0xdc]] }
  0x7f   :  { %382 = vrot.lane.b32.xlu0 %v380_v45, %s9205_s12  ;;  %v596_v43 = vmul.f32 %v5837_v42, %v5611_v1  ;;  %v608_v45 = vmul.f32 %v5837_v42, %v5625_v9  ;;  %9386 = sst [smem:[#allocation41_spill]] %s6080_s7 }
  0x80   :  { %9387 = sst [smem:[#allocation42_spill]] %s6086_s5 }
  0x81   :  { %9354 = sst [smem:[#allocation13_spill]] %s5994_s13 }
  0x82   :  { %410 = vrot.lane.b32.xlu1 %v408_v49, %s9205_s12  ;;  %v602_v49 = vmul.f32 %v5837_v42, %v5606_v0  ;;  %s6098_s7 = sld [smem:[#allocation6 + $0x29]] }
  0x83   :  { %400 = vrot.lane.b32.xlu0 %v398_v50, %s9205_s12  ;;  %v615_v50 = vstv %s4435_s16  ;;  %s6004_s16 = sld [smem:[#allocation6 + $0x10e]] }
  0x84   :  { %v634_v54 = vmul.f32 %v615_v50, %v5638_v15  ;;  %v628_v59 = vmul.f32 %v615_v50, %v5625_v9  ;;  %9356 = sst [smem:[#allocation15_spill]] %s6002_s15 }
  0x85   :  { %s6104_s5 = sld [smem:[#allocation6 + $0x68]] }
  0x86   :  { %422 = vrot.lane.b32.xlu1 %v420_v51, %s9205_s12  ;;  %v622_v51 = vmul.f32 %v615_v50, %v5606_v0 }
  0x87   :  { %416 = vrot.lane.b32.xlu0 %v414_v53, %s9205_s12  ;;  %v616_v53 = vmul.f32 %v615_v50, %v5611_v1  ;;  %v190_v50 = vmul.f32 %v5644_v19, %v5638_v15 }
  0x88   :  { %9391 = sst [smem:[#allocation46_spill]] %s6098_s7 }
  0x89   :  { %s6115_s7 = sld [smem:[#allocation6 + $0x6a]] }
  0x8a   :  { %436 = vrot.lane.b32.xlu1 %v434_v63, %s9205_s12 }
  0x8b   :  { %430 = vrot.lane.b32.xlu0 %v428_v6, %s9205_s12  ;;  %v88_v6 = vmul.f32 %v5663_v27, %v5625_v9  ;;  %9394 = sst [smem:[#allocation49_spill]] %s6104_s5 }
  0x8c   :  { %s6126_s5 = sld [smem:[#allocation6 + $0x2e]] }
  0x8e   :  { %448 = vrot.lane.b32.xlu1 %v446_v8, %s9205_s12  ;;  %v96_v8 = vmul.f32 %v5614_v4, %v5638_v15 }
  0x8f   :  { %442 = vrot.lane.b32.xlu0 %v440_v12, %s9205_s12  ;;  %9398 = sst [smem:[#allocation52_spill]] %s6115_s7 }
  0x90   :  { %v97_v13 = vadd.f32 %v96_v8, %v88_v6  ;;  %s6132_s7 = sld [smem:[#allocation6 + $0x6c]] }
  0x92   :  { %488 = vrot.lane.b32.xlu1 %v486_v18, %s9205_s12  ;;  %9400 = sst [smem:[#allocation54_spill]] %s6126_s5 }
  0x93   :  { %476 = vrot.lane.b32.xlu0 %v474_v22, %s9205_s12  ;;  %s6142_s5 = sld [smem:[#allocation6 + $0x30]] }
  0x96   :  { %504 = vrot.lane.b32.xlu1 %v502_v26, %s9205_s12  ;;  %9403 = sst [smem:[#allocation57_spill]] %s6132_s7 }
  0x97   :  { %494 = vrot.lane.b32.xlu0 %v492_v28, %s9205_s12  ;;  %s6152_s7 = sld [smem:[#allocation6 + $0x31]] }
  0x99   :  { %9405 = sst [smem:[#allocation59_spill]] %s6142_s5 }
  0x9a   :  { %516 = vrot.lane.b32.xlu1 %v514_v29, %s9205_s12  ;;  %v172_v29 = vstv %s170_s17  ;;  %s6006_s17 = sld [smem:[#allocation6 + $0xa0]] }
  0x9b   :  { %510 = vrot.lane.b32.xlu0 %v508_v30, %s9205_s12  ;;  %s6162_s5 = sld [smem:[#allocation6 + $0x6f]] }
  0x9d   :  { %9407 = sst [smem:[#allocation61_spill]] %s6152_s7 }
  0x9e   :  { %530 = vrot.lane.b32.xlu1 %v528_v32, %s9205_s12  ;;  %s6170_s7 = sld [smem:[#allocation6 + $0x33]] }
  0x9f   :  { %524 = vrot.lane.b32.xlu0 %v522_v34, %s9205_s12 }
  0xa0   :  { %9357 = sst [smem:[#allocation16_spill]] %s6006_s17 }
  0xa1   :  { %9410 = sst [smem:[#allocation64_spill]] %s6162_s5 }
  0xa2   :  { %542 = vrot.lane.b32.xlu1 %v540_v35, %s9205_s12  ;;  %s6242_s5 = sld [smem:[#allocation6 + $0xe4]] }
  0xa3   :  { %536 = vrot.lane.b32.xlu0 %v534_v36, %s9205_s12 }
  0xa4   :  { %9412 = sst [smem:[#allocation66_spill]] %s6170_s7 }
  0xa5   :  { %s6187_s7 = sld [smem:[#allocation6 + $0x74]] }
  0xa6   :  { %582 = vrot.lane.b32.xlu1 %v580_v40, %s9205_s12 }
  0xa7   :  { %570 = vrot.lane.b32.xlu0 %v568_v41, %s9205_s12 }
  0xa8   :  { %9434 = sst [smem:[#allocation88_spill]] %s6242_s5 }
  0xa9   :  { %s6262_s5 = sld [smem:[#allocation6 + $0xed]] }
  0xaa   :  { %598 = vrot.lane.b32.xlu1 %v596_v43, %s9205_s12 }
  0xab   :  { %588 = vrot.lane.b32.xlu0 %v586_v44, %s9205_s12  ;;  %9418 = sst [smem:[#allocation72_spill]] %s6187_s7 }
  0xac   :  { %s6213_s7 = sld [smem:[#allocation6 + $0x3a]] }
  0xae   :  { %610 = vrot.lane.b32.xlu1 %v608_v45, %s9205_s12 }
  0xaf   :  { %604 = vrot.lane.b32.xlu0 %v602_v49, %s9205_s12  ;;  %v182_v49 = vmul.f32 %v5679_v39, %v5625_v9  ;;  %9442 = sst [smem:[#allocation96_spill]] %s6262_s5 }
  0xb2   :  { %624 = vrot.lane.b32.xlu1 %v622_v51, %s9205_s12  ;;  %v183_v51 = vmul.f32 %v5679_v39, %v5638_v15  ;;  %9425 = sst [smem:[#allocation79_spill]] %s6213_s7 }
  0xb3   :  { %618 = vrot.lane.b32.xlu0 %v616_v53, %s9205_s12  ;;  %s6232_s7 = sld [smem:[#allocation6 + $0xe0]] }
  0xb4   :  { %v119_v60 = vpop.permute.xlu1 %118 }
  0xb5   :  { %v101_v61 = vpop.permute.xlu0 %100 }
  0xb6   :  { %636 = vrot.lane.b32.xlu1 %v634_v54, %s9205_s12  ;;  %v103_v11 = vadd.f32 %v101_v61, %v89_v3 }
  0xb7   :  { %630 = vrot.lane.b32.xlu0 %v628_v59, %s9205_s12  ;;  %v191_v59 = vadd.f32 %v190_v50, %v182_v49  ;;  %v360_v49 = vstv %s4418_s19  ;;  %s6014_s19 = sld [smem:[#allocation6 + $0x14f]] }
  0xb8   :  { %v129_v63 = vpop.permute.xlu1 %128  ;;  %v121_v18 = vadd.f32 %v119_v60, %v103_v11  ;;  %v266_v11 = vstv %s4412_s18  ;;  %s6012_s18 = sld [smem:[#allocation6 + $0xe1]] }
  0xb9   :  { %v113_v5 = vpop.permute.xlu0 %112  ;;  %v131_v14 = vadd.f32 %v129_v63, %v5691_v47  ;;  %9431 = sst [smem:[#allocation85_spill]] %s6232_s7 }
  0xba   :  { %v115_v22 = vadd.f32 %v113_v5, %v97_v13  ;;  %s6250_s7 = sld [smem:[#allocation6 + $0xe7]] }
  0xbc   :  { %v141_v10 = vpop.permute.xlu1 %140 }
  0xbd   :  { %v135_v12 = vpop.permute.xlu0 %134  ;;  %v143_v28 = vadd.f32 %v141_v10, %v121_v18  ;;  %9361 = sst [smem:[#allocation20_spill]] %s6014_s19 }
  0xbe   :  { %v137_v27 = vadd.f32 %v135_v12, %v115_v22  ;;  %9360 = sst [smem:[#allocation19_spill]] %s6012_s18 }
  0xbf   :  { %s6073_s19 = sld [smem:[#allocation6 + $0x26]] }
  0xc0   :  { %v155_v17 = vpop.permute.xlu1 %154  ;;  %9436 = sst [smem:[#allocation90_spill]] %s6250_s7 }
  0xc1   :  { %v157_v20 = vadd.f32 %v155_v17, %v131_v14  ;;  %v149_v21 = vpop.permute.xlu0 %148 }
  0xc2   :  { %v151_v26 = vadd.f32 %v149_v21, %v5705_v57 }
  0xc4   :  { %v171_v30 = vmax.f32 %v151_v26, %v157_v20  ;;  %v167_v31 = vpop.permute.xlu1 %166 }
  0xc5   :  { %v169_v4 = vadd.f32 %v167_v31, %v143_v28  ;;  %v161_v32 = vpop.permute.xlu0 %160  ;;  %v284_v31 = vmul.f32 %v5689_v46, %v5638_v15  ;;  %9384 = sst [smem:[#allocation39_spill]] %s6073_s19 }
  0xc6   :  { %v163_v34 = vadd.f32 %v161_v32, %v137_v27  ;;  %v173_v35 = vadd.f32 %v172_v29, %v171_v30  ;;  %s6092_s19 = sld [smem:[#allocation6 + $0x66]] }
  0xc8   :  { %v175_v36 = vmax.f32 %v163_v34, %v169_v4  ;;  %v207_v40 = vpop.permute.xlu1 %206  ;;  %v174_v41 = vmax.f32 %v173_v35, 0.0  ;;  %v277_v4 = vmul.f32 %v5695_v52, %v5638_v15 }
  0xc9   :  { %v195_v47 = vpop.permute.xlu0 %194  ;;  %v209_v8 = vadd.f32 %v207_v40, %v191_v59 }
  0xca   :  { %657 = vrot.lane.b32.xlu1 %v174_v41, %s5532_s1  ;;  %v176_v43 = vadd.f32 %v175_v36, %v172_v29  ;;  %v197_v60 = vadd.f32 %v195_v47, %v183_v51 }
  0xcc   :  { %v223_v44 = vpop.permute.xlu1 %222  ;;  %v177_v45 = vmax.f32 %v176_v43, 0.0  ;;  %9390 = sst [smem:[#allocation45_spill]] %s6092_s19 }
  0xcd   :  { %v213_v57 = vpop.permute.xlu0 %212  ;;  %v225_v61 = vadd.f32 %v223_v44, %v5707_v58  ;;  %s6111_s19 = sld [smem:[#allocation6 + $0x2b]] }
  0xce   :  { %649 = vrot.lane.b32.xlu0 %v177_v45, %s5533_s0  ;;  %v215_v3 = vadd.f32 %v213_v57, %v197_v60 }
  0xd0   :  { %v235_v53 = vpop.permute.xlu1 %234 }
  0xd1   :  { %v229_v54 = vpop.permute.xlu0 %228  ;;  %v237_v10 = vadd.f32 %v235_v53, %v215_v3 }
  0xd2   :  { %v231_v12 = vadd.f32 %v229_v54, %v209_v8 }
  0xd3   :  { %9396 = sst [smem:[#allocation50_spill]] %s6111_s19 }
  0xd4   :  { %v249_v63 = vpop.permute.xlu1 %248  ;;  %s6128_s19 = sld [smem:[#allocation6 + $0x37]] }
  0xd5   :  { %v251_v5 = vadd.f32 %v249_v63, %v225_v61  ;;  %v243_v6 = vpop.permute.xlu0 %242 }
  0xd6   :  { %v245_v19 = vadd.f32 %v243_v6, %v5710_v62  ;;  %v276_v62 = vmul.f32 %v5695_v52, %v5625_v9 }
  0xd8   :  { %v265_v13 = vmax.f32 %v245_v19, %v251_v5  ;;  %v261_v14 = vpop.permute.xlu1 %260  ;;  %v285_v35 = vadd.f32 %v284_v31, %v276_v62 }
  0xd9   :  { %v263_v39 = vadd.f32 %v261_v14, %v237_v10  ;;  %v255_v17 = vpop.permute.xlu0 %254  ;;  %v378_v10 = vmul.f32 %v5739_v23, %v5638_v15 }
  0xda   :  { %v257_v18 = vadd.f32 %v255_v17, %v231_v12  ;;  %v267_v20 = vadd.f32 %v266_v11, %v265_v13  ;;  %9401 = sst [smem:[#allocation55_spill]] %s6128_s19 }
  0xdb   :  { %s6174_s19 = sld [smem:[#allocation6 + $0x71]] }
  0xdc   :  { %v269_v21 = vmax.f32 %v257_v18, %v263_v39  ;;  %v301_v22 = vpop.permute.xlu1 %300  ;;  %v268_v26 = vmax.f32 %v267_v20, 0.0 }
  0xdd   :  { %v289_v58 = vpop.permute.xlu0 %288  ;;  %v303_v45 = vadd.f32 %v301_v22, %v285_v35 }
  0xde   :  { %702 = vrot.lane.b32.xlu0 %v268_v26, %s5532_s1  ;;  %v270_v28 = vadd.f32 %v269_v21, %v266_v11  ;;  %v291_v36 = vadd.f32 %v289_v58, %v277_v4  ;;  %v371_v11 = vmul.f32 %v5741_v24, %v5638_v15 }
  0xe0   :  { %v317_v29 = vpop.permute.xlu1 %316  ;;  %v271_v27 = vmax.f32 %v270_v28, 0.0  ;;  %v454_v28 = vstv %s4424_s4  ;;  %s6016_s4 = sld [smem:[#allocation6 + $0x6e]] }
  0xe1   :  { %v307_v30 = vpop.permute.xlu0 %306  ;;  %v319_v40 = vadd.f32 %v317_v29, %v5714_v2  ;;  %9414 = sst [smem:[#allocation68_spill]] %s6174_s19 }
  0xe2   :  { %696 = vrot.lane.b32.xlu1 %v271_v27, %s5533_s0  ;;  %v309_v47 = vadd.f32 %v307_v30, %v291_v36  ;;  %s6200_s19 = sld [smem:[#allocation6 + $0xdb]] }
  0xe4   :  { %v329_v32 = vpop.permute.xlu1 %328 }
  0xe5   :  { %v323_v34 = vpop.permute.xlu0 %322  ;;  %v331_v46 = vadd.f32 %v329_v32, %v309_v47 }
  0xe6   :  { %v325_v50 = vadd.f32 %v323_v34, %v303_v45  ;;  %9362 = sst [smem:[#allocation21_spill]] %s6016_s4 }
  0xe7   :  { %s6585_s4 = sld [smem:[#allocation6 + $0x15d]] }
  0xe8   :  { %v343_v41 = vpop.permute.xlu1 %342  ;;  %9421 = sst [smem:[#allocation75_spill]] %s6200_s19 }
  0xe9   :  { %v345_v43 = vadd.f32 %v343_v41, %v319_v40  ;;  %v337_v44 = vpop.permute.xlu0 %336  ;;  %s6220_s19 = sld [smem:[#allocation6 + $0x3b]] }
  0xea   :  { %v339_v57 = vadd.f32 %v337_v44, %v5729_v16  ;;  %v370_v16 = vmul.f32 %v5741_v24, %v5625_v9  ;;  %v465_v44 = vmul.f32 %v5781_v56, %v5638_v15 }
  0xec   :  { %v359_v51 = vmax.f32 %v339_v57, %v345_v43  ;;  %v355_v53 = vpop.permute.xlu1 %354  ;;  %v379_v14 = vadd.f32 %v378_v10, %v370_v16  ;;  %v472_v43 = vmul.f32 %v5779_v55, %v5638_v15 }
  0xed   :  { %v357_v52 = vadd.f32 %v355_v53, %v331_v46  ;;  %v349_v54 = vpop.permute.xlu0 %348 }
  0xee   :  { %v351_v59 = vadd.f32 %v349_v54, %v325_v50  ;;  %v361_v60 = vadd.f32 %v360_v49, %v359_v51 }
  0xef   :  { %9427 = sst [smem:[#allocation81_spill]] %s6220_s19 }
  0xf0   :  { %v363_v61 = vmax.f32 %v351_v59, %v357_v52  ;;  %v395_v63 = vpop.permute.xlu1 %394  ;;  %v362_v3 = vmax.f32 %v361_v60, 0.0  ;;  %s6238_s19 = sld [smem:[#allocation6 + $0xe2]] }
  0xf1   :  { %v383_v2 = vpop.permute.xlu0 %382  ;;  %v397_v26 = vadd.f32 %v395_v63, %v379_v14  ;;  %v566_v14 = vmul.f32 %v5829_v38, %v5638_v15 }
  0xf2   :  { %745 = vrot.lane.b32.xlu0 %v362_v3, %s5532_s1  ;;  %v364_v5 = vadd.f32 %v363_v61, %v360_v49  ;;  %v385_v39 = vadd.f32 %v383_v2, %v371_v11  ;;  %v548_v61 = vstv %s5907_s20  ;;  %v555_v2 = vstv %s4431_s21  ;;  %s6018_s20 = sld [smem:[#allocation6 + $0x32]] }
  0xf3   :  { %v556_v10 = vmul.f32 %v555_v2, %v5611_v1  ;;  %s6020_s21 = sld [smem:[#allocation6 + $0xe6]] }
  0xf4   :  { %v411_v6 = vpop.permute.xlu1 %410  ;;  %v365_v8 = vmax.f32 %v364_v5, 0.0 }
  0xf5   :  { %v401_v19 = vpop.permute.xlu0 %400  ;;  %v413_v17 = vadd.f32 %v411_v6, %v5752_v33 }
  0xf6   :  { %739 = vrot.lane.b32.xlu1 %v365_v8, %s5533_s0  ;;  %v403_v20 = vadd.f32 %v401_v19, %v385_v39  ;;  %v557_v8 = vmul.f32 %v555_v2, %v5606_v0  ;;  %v559_v39 = vmul.f32 %v555_v2, %v5638_v15  ;;  %9432 = sst [smem:[#allocation86_spill]] %s6238_s19 }
  0xf7   :  { %s6258_s19 = sld [smem:[#allocation6 + $0xeb]] }
  0xf8   :  { %v423_v12 = vpop.permute.xlu1 %422  ;;  %9363 = sst [smem:[#allocation22_spill]] %s6018_s20 }
  0xf9   :  { %v417_v13 = vpop.permute.xlu0 %416  ;;  %v425_v23 = vadd.f32 %v423_v12, %v403_v20  ;;  %v578_v20 = vmul.f32 %v5827_v37, %v5638_v15  ;;  %9364 = sst [smem:[#allocation23_spill]] %s6020_s21 }
  0xfa   :  { %v419_v29 = vadd.f32 %v417_v13, %v397_v26  ;;  %s6531_s20 = sld [smem:[#allocation6 + $0x158]] }
  0xfc   :  { %v437_v18 = vpop.permute.xlu1 %436 }
  0xfd   :  { %v439_v21 = vadd.f32 %v437_v18, %v413_v17  ;;  %v431_v22 = vpop.permute.xlu0 %430  ;;  %9440 = sst [smem:[#allocation94_spill]] %s6258_s19 }
  0xfe   :  { %v433_v58 = vadd.f32 %v431_v22, %v5769_v48  ;;  %v464_v48 = vmul.f32 %v5781_v56, %v5625_v9  ;;  %s6623_s19 = sld [smem:[#allocation6 + $0x162]] }
 0x100   :  { %v453_v27 = vmax.f32 %v433_v58, %v439_v21  ;;  %v449_v30 = vpop.permute.xlu1 %448  ;;  %v473_v46 = vadd.f32 %v472_v43, %v464_v48  ;;  %v558_v21 = vmul.f32 %v555_v2, %v5625_v9 }
 0x101   :  { %v451_v24 = vadd.f32 %v449_v30, %v425_v23  ;;  %v443_v62 = vpop.permute.xlu0 %442  ;;  %v594_v30 = vmul.f32 %v5837_v42, %v5638_v15 }
 0x102   :  { %v445_v31 = vadd.f32 %v443_v62, %v419_v29  ;;  %v455_v4 = vadd.f32 %v454_v28, %v453_v27  ;;  %v567_v29 = vadd.f32 %v566_v14, %v558_v21 }
 0x104   :  { %v457_v32 = vmax.f32 %v445_v31, %v451_v24  ;;  %v489_v34 = vpop.permute.xlu1 %488  ;;  %v456_v35 = vmax.f32 %v455_v4, 0.0 }
 0x105   :  { %v477_v33 = vpop.permute.xlu0 %476  ;;  %v491_v55 = vadd.f32 %v489_v34, %v473_v46 }
 0x106   :  { %788 = vrot.lane.b32.xlu0 %v456_v35, %s5532_s1  ;;  %v458_v36 = vadd.f32 %v457_v32, %v454_v28  ;;  %v479_v49 = vadd.f32 %v477_v33, %v465_v44  ;;  %v642_v44 = vstv %s4436_s22  ;;  %s6022_s22 = sld [smem:[#allocation6 + $0x5b]] }
 0x108   :  { %v505_v40 = vpop.permute.xlu1 %504  ;;  %v459_v41 = vmax.f32 %v458_v36, 0.0 }
 0x109   :  { %v495_v47 = vpop.permute.xlu0 %494  ;;  %v507_v50 = vadd.f32 %v505_v40, %v5792_v7  ;;  %v564_v7 = vmul.f32 %v5829_v38, %v5625_v9 }
 0x10a   :  { %782 = vrot.lane.b32.xlu1 %v459_v41, %s5533_s0  ;;  %v497_v53 = vadd.f32 %v495_v47, %v479_v49 }
 0x10b   :  { %v565_v18 = vadd.f32 %v564_v7, %v557_v8 }
 0x10c   :  { %v517_v45 = vpop.permute.xlu1 %516  ;;  %9365 = sst [smem:[#allocation24_spill]] %s6022_s22 }
 0x10d   :  { %v511_v57 = vpop.permute.xlu0 %510  ;;  %v519_v60 = vadd.f32 %v517_v45, %v497_v53  ;;  %s6071_s22 = sld [smem:[#allocation6 + $0x25]] }
 0x10e   :  { %v513_v56 = vadd.f32 %v511_v57, %v491_v55 }
 0x110   :  { %v531_v51 = vpop.permute.xlu1 %530 }
 0x111   :  { %v533_v52 = vadd.f32 %v531_v51, %v507_v50  ;;  %v525_v54 = vpop.permute.xlu0 %524 }
 0x112   :  { %v527_v59 = vadd.f32 %v525_v54, %v5809_v25  ;;  %v562_v25 = vmul.f32 %v5829_v38, %v5606_v0  ;;  %v576_v0 = vmul.f32 %v5827_v37, %v5625_v9  ;;  %v579_v38 = vadd.f32 %v578_v20, %v565_v18 }
 0x113   :  { %9383 = sst [smem:[#allocation38_spill]] %s6071_s22 }
 0x114   :  { %v547_v63 = vmax.f32 %v527_v59, %v533_v52  ;;  %v543_v3 = vpop.permute.xlu1 %542  ;;  %v563_v22 = vadd.f32 %v562_v25, %v556_v10  ;;  %s6090_s22 = sld [smem:[#allocation6 + $0x65]] }
 0x115   :  { %v545_v5 = vadd.f32 %v543_v3, %v519_v60  ;;  %v537_v6 = vpop.permute.xlu0 %536 }
 0x116   :  { %v539_v19 = vadd.f32 %v537_v6, %v513_v56  ;;  %v549_v16 = vadd.f32 %v548_v61, %v547_v63  ;;  %v577_v27 = vadd.f32 %v576_v0, %v563_v22 }
 0x118   :  { %v551_v11 = vmax.f32 %v539_v19, %v545_v5  ;;  %v583_v12 = vpop.permute.xlu1 %582  ;;  %v550_v13 = vmax.f32 %v549_v16, 0.0  ;;  %v595_v34 = vadd.f32 %v594_v30, %v577_v27  ;;  %v1392_v30 = vstv %s5968_s2  ;;  %s6487_s2 = sld [smem:[#allocation6 + $0x154]] }
 0x119   :  { %v571_v17 = vpop.permute.xlu0 %570  ;;  %v585_v32 = vadd.f32 %v583_v12, %v567_v29 }
 0x11a   :  { %831 = vrot.lane.b32.xlu0 %v550_v13, %s5532_s1  ;;  %v552_v1 = vadd.f32 %v551_v11, %v548_v61  ;;  %v573_v23 = vadd.f32 %v571_v17, %v559_v39  ;;  %9389 = sst [smem:[#allocation44_spill]] %s6090_s22  ;;  %s9395_s22 = smov 126  }
 0x11c   :  { %v599_v26 = vpop.permute.xlu1 %598  ;;  %v553_v58 = vmax.f32 %v552_v1, 0.0 }
 0x11d   :  { %v589_v28 = vpop.permute.xlu0 %588  ;;  %v601_v62 = vadd.f32 %v599_v26, %v579_v38 }
 0x11e   :  { %825 = vrot.lane.b32.xlu1 %v553_v58, %s5533_s0  ;;  %v591_v31 = vadd.f32 %v589_v28, %v573_v23  ;;  %9544 = sst [smem:[#allocation12_spill]] %s6487_s2 }
 0x11f   :  { %s6617_s2 = sld [smem:[#allocation6 + $0x161]] }
 0x120   :  { %v611_v24 = vpop.permute.xlu1 %610 }
 0x121   :  { %v605_v4 = vpop.permute.xlu0 %604  ;;  %v613_v37 = vadd.f32 %v611_v24, %v591_v31  ;;  %v1411_v24 = vstv %s5976_s28  ;;  %v2084_v31 = vstv %s5972_s26  ;;  %s6595_s26 = sld [smem:[#allocation6 + $0x15e]] }
 0x122   :  { %v607_v36 = vadd.f32 %v605_v4, %v585_v32  ;;  %v1738_v4 = vstv %s5974_s27  ;;  %s6679_s27 = sld [smem:[#allocation6 + $0x166]] }
 0x124   :  { %v625_v9 = vpop.permute.xlu1 %624 }
 0x125   :  { %v627_v35 = vadd.f32 %v625_v9, %v601_v62  ;;  %v619_v33 = vpop.permute.xlu0 %618  ;;  %v1045_v62 = vstv %s5970_s3  ;;  %v1064_v9 = vstv %s5979_s29  ;;  %9597 = sst [smem:[#allocation16_spill]] %s6617_s2 }
 0x126   :  { %v621_v40 = vadd.f32 %v619_v33, %v595_v34  ;;  %v2776_v33 = vstv %s5992_s11  ;;  %s6467_s11 = sld [smem:[#allocation6 + $0x152]] }
 0x127   :  { %9590 = sst [smem:[#allocation14_spill]] %s6595_s26 }
 0x128   :  { %v641_v41 = vmax.f32 %v621_v40, %v627_v35  ;;  %v637_v47 = vpop.permute.xlu1 %636  ;;  %v1757_v35 = vstv %s5990_s10  ;;  %v1084_v40 = vstv %s5996_s14  ;;  %s6409_s14 = sld [smem:[#allocation6 + $0x14c]] }
 0x129   :  { %v639_v48 = vadd.f32 %v637_v47, %v613_v37  ;;  %v631_v43 = vpop.permute.xlu0 %630  ;;  %v2103_v37 = vstv %s5984_s30  ;;  %v2430_v47 = vstv %s6004_s16  ;;  %s6477_s16 = sld [smem:[#allocation6 + $0x153]] }
 0x12a   :  { %v633_v45 = vadd.f32 %v631_v43, %v607_v36  ;;  %v643_v15 = vadd.f32 %v642_v44, %v641_v41  ;;  %v1431_v36 = vstv %s5994_s13  ;;  %v2123_v41 = vstv %s6002_s15  ;;  %s6336_s15 = sld [smem:[#allocation6 + $0xab]] }
 0x12b   :  { %s6403_s13 = sld [smem:[#allocation6 + $0x14b]] }
 0x12c   :  { %v645_v42 = vmax.f32 %v633_v45, %v639_v48  ;;  %v644_v57 = vmax.f32 %v643_v15, 0.0  ;;  %v1777_v45 = vstv %s6006_s17  ;;  %s6343_s17 = sld [smem:[#allocation6 + $0xac]] }
 0x12d   :  { %9536 = sst [smem:[#allocation126_spill]] %s6467_s11 }
 0x12e   :  { %v646_v46 = vadd.f32 %v645_v42, %v642_v44  ;;  %874 = vrot.lane.b32.xlu0 %v644_v57, %s5532_s1  ;;  %s6008_s1 = sld [smem:[#allocation6 + $0x69]]  ;;  %v2143_v44 = vstv %s6012_s18 }
 0x12f   :  { %s6377_s18 = sld [smem:[#allocation6 + $0xb1]] }
 0x130   :  { %v647_v49 = vmax.f32 %v646_v46, 0.0  ;;  %9474 = sst [smem:[#allocation117_spill]] %s6336_s15 }
 0x131   :  { %s6349_s15 = sld [smem:[#allocation6 + $0xad]] }
 0x132   :  { %868 = vrot.lane.b32.xlu1 %v647_v49, %s5533_s0  ;;  %s6010_s0 = sld [smem:[#allocation6 + $0x2d]] }
 0x133   :  { %9480 = sst [smem:[#allocation118_spill]] %s6343_s17 }
 0x134   :  { %9358 = sst [smem:[#allocation17_spill]] %s6008_s1  ;;  %v1451_v48 = vstv %s6008_s1 }
 0x135   :  { %9504 = sst [smem:[#allocation123_spill]] %s6377_s18 }
 0x136   :  { %9538 = sst [smem:[#allocation127_spill]] %s6477_s16 }
 0x137   :  { %9485 = sst [smem:[#allocation119_spill]] %s6349_s15 }
 0x138   :  { %9359 = sst [smem:[#allocation18_spill]] %s6010_s0  ;;  %v1104_v43 = vstv %s6010_s0 }
 0x139   :  { %s6365_s15 = sld [smem:[#allocation6 + $0xaf]] }
 0x13a   :  { %s6493_s11 = sld [smem:[#allocation6 + $0x155]] }
 0x13b   :  { %s6511_s0 = sld [smem:[#allocation6 + $0x156]] }
 0x13c   :  { %v658_v50 = vpop.permute.xlu1 %657  ;;  %s6525_s10 = sld [smem:[#allocation6 + $0x157]] }
 0x13d   :  { %v661_v51 = vsel %vm660_vm0, 0.0, %v658_v50  ;;  %s6541_s17 = sld [smem:[#allocation6 + $0x159]] }
 0x13e   :  { %v5934_v53 = vsel %vm662_vm1, %v661_v51, 0.0  ;;  %s6611_s26 = sld [smem:[#allocation6 + $0x160]] }
 0x13f   :  { %677 = vrot.lane.b32.xlu1 %v5934_v53, %s9209_s23  ;;  %665 = vrot.lane.b32.xlu0 %v5934_v53, %s9207_s24  ;;  %9495 = sst [smem:[#allocation121_spill]] %s6365_s15 }
 0x140   :  { %v650_v52 = vpop.permute.xlu0 %649  ;;  %s6699_s16 = sld [smem:[#allocation6 + $0x10f]] }
 0x141   :  { %v653_v7 = vsel %vm652_vm2, 0.0, %v650_v52  ;;  %9553 = sst [smem:[#allocation128_spill]] %s6511_s0 }
 0x142   :  { %v6050_v19 = vsel %vm654_vm3, %v653_v7, 0.0  ;;  %s6778_s2 = sld [smem:[#allocation6 + $0x118]] }
 0x143   :  { %691 = vrot.lane.b32.xlu1 %v5934_v53, %s9203_s25  ;;  %681 = vrot.lane.b32.xlu0 %v5934_v53, %s9205_s12 }
 0x150   :  { %v703_v54 = vpop.permute.xlu0 %702 }
 0x151   :  { %v705_v55 = vsel %vm660_vm0, 0.0, %v703_v54 }
 0x152   :  { %v5946_v59 = vsel %vm662_vm1, %v705_v55, 0.0 }
 0x153   :  { %720 = vrot.lane.b32.xlu1 %v5946_v59, %s9209_s23  ;;  %708 = vrot.lane.b32.xlu0 %v5946_v59, %s9207_s24 }
 0x154   :  { %v697_v16 = vpop.permute.xlu1 %696 }
 0x155   :  { %v699_v10 = vsel %vm652_vm2, 0.0, %v697_v16 }
 0x156   :  { %v6078_v25 = vsel %vm654_vm3, %v699_v10, 0.0 }
 0x157   :  { %734 = vrot.lane.b32.xlu1 %v5946_v59, %s9203_s25  ;;  %724 = vrot.lane.b32.xlu0 %v5946_v59, %s9205_s12 }
 0x164   :  { %v746_v60 = vpop.permute.xlu0 %745 }
 0x165   :  { %v748_v61 = vsel %vm660_vm0, 0.0, %v746_v60 }
 0x166   :  { %v5958_v56 = vsel %vm662_vm1, %v748_v61, 0.0 }
 0x167   :  { %763 = vrot.lane.b32.xlu1 %v5958_v56, %s9209_s23  ;;  %751 = vrot.lane.b32.xlu0 %v5958_v56, %s9207_s24 }
 0x168   :  { %v740_v11 = vpop.permute.xlu1 %739 }
 0x169   :  { %v742_v12 = vsel %vm652_vm2, 0.0, %v740_v11 }
 0x16a   :  { %v6118_v13 = vsel %vm654_vm3, %v742_v12, 0.0 }
 0x16b   :  { %777 = vrot.lane.b32.xlu1 %v5958_v56, %s9203_s25  ;;  %767 = vrot.lane.b32.xlu0 %v5958_v56, %s9205_s12 }
 0x178   :  { %v789_v63 = vpop.permute.xlu0 %788 }
 0x179   :  { %v791_v3 = vsel %vm660_vm0, 0.0, %v789_v63 }
 0x17a   :  { %v5982_v2 = vsel %vm662_vm1, %v791_v3, 0.0 }
 0x17b   :  { %806 = vrot.lane.b32.xlu1 %v5982_v2, %s9209_s23  ;;  %794 = vrot.lane.b32.xlu0 %v5982_v2, %s9207_s24  ;;  %s6028_s24 = sld [smem:[#allocation6 + $0x20]] }
 0x17c   :  { %s6031_s23 = sld [smem:[#allocation6 + $0x5d]]  ;;  %v783_v14 = vpop.permute.xlu1 %782 }
 0x17d   :  { %v785_v17 = vsel %vm652_vm2, 0.0, %v783_v14 }
 0x17e   :  { %v6147_v20 = vsel %vm654_vm3, %v785_v17, 0.0 }
 0x17f   :  { %820 = vrot.lane.b32.xlu1 %v5982_v2, %s9203_s25  ;;  %810 = vrot.lane.b32.xlu0 %v5982_v2, %s9205_s12  ;;  %s6024_s25 = sld [smem:[#allocation6 + $0x5c]] }
 0x180   :  { %s6026_s12 = sld [smem:[#allocation6 + $0x1f]] }
 0x181   :  { %9368 = sst [smem:[#allocation27_spill]] %s6028_s24 }
 0x182   :  { %9369 = sst [smem:[#allocation28_spill]] %s6031_s23 }
 0x183   :  { %s6047_s24 = sld [smem:[#allocation6 + $0x60]] }
 0x184   :  { %s6052_s23 = sld [smem:[#allocation6 + $0x24]] }
 0x185   :  { %9366 = sst [smem:[#allocation25_spill]] %s6024_s25 }
 0x186   :  { %9367 = sst [smem:[#allocation26_spill]] %s6026_s12 }
 0x187   :  { %s6058_s12 = sld [smem:[#allocation6 + $0xd3]] }
 0x188   :  { %s6060_s25 = sld [smem:[#allocation6 + $0xd4]] }
 0x189   :  { %9375 = sst [smem:[#allocation32_spill]] %s6047_s24  ;;  %s9382_s24 = smov 44  }
 0x18a   :  { %9376 = sst [smem:[#allocation33_spill]] %s6052_s23  ;;  %s9227_s23 = smov 126  }
 0x18b   :  { %s9467_s5 = sld [smem:[#allocation28_spill]] }
 0x18c   :  { %v832_v5 = vpop.permute.xlu0 %831 }
 0x18d   :  { %v834_v6 = vsel %vm660_vm0, 0.0, %v832_v5  ;;  %9378 = sst [smem:[#allocation34_spill]] %s6058_s12 }
 0x18e   :  { %v6034_v8 = vsel %vm662_vm1, %v834_v6, 0.0  ;;  %9379 = sst [smem:[#allocation35_spill]] %s6060_s25 }
 0x18f   :  { %849 = vrot.lane.b32.xlu1 %v6034_v8, %s9371_s8  ;;  %837 = vrot.lane.b32.xlu0 %v6034_v8, %s9372_s6  ;;  %s6075_s12 = sld [smem:[#allocation6 + $0x63]] }
 0x190   :  { %s6102_s25 = sld [smem:[#allocation6 + $0x67]]  ;;  %v826_v1 = vpop.permute.xlu1 %825 }
 0x191   :  { %v828_v22 = vsel %vm652_vm2, 0.0, %v826_v1  ;;  %s9475_s7 = sld [smem:[#allocation34_spill]]  ;;  %v1403_v54 = vstv %s9467_s5 }
 0x192   :  { %v6190_v0 = vsel %vm654_vm3, %v828_v22, 0.0  ;;  %s6669_s5 = sld [smem:[#allocation6 + $0x165]] }
 0x193   :  { %670 = vrot.lane.b32.xlu1 %v6050_v19, %s9371_s8  ;;  %674 = vrot.lane.b32.xlu0 %v6050_v19, %s9377_s9  ;;  %9648 = sst [smem:[#allocation34_spill]] %s6778_s2 }
 0x194   :  { %s6831_s2 = sld [smem:[#allocation6 + $0x11e]] }
 0x195   :  { %9385 = sst [smem:[#allocation40_spill]] %s6075_s12 }
 0x196   :  { %s6100_s12 = sld [smem:[#allocation6 + $0x2a]] }
 0x197   :  { %684 = vrot.lane.b32.xlu1 %v6050_v19, %s9382_s24  ;;  %688 = vrot.lane.b32.xlu0 %v6050_v19, %s9227_s23  ;;  %s6088_s23 = sld [smem:[#allocation6 + $0xd6]]  ;;  %v2087_v7 = vstv %s9475_s7 }
 0x198   :  { %9393 = sst [smem:[#allocation48_spill]] %s6102_s25 }
 0x199   :  { %s6120_s25 = sld [smem:[#allocation6 + $0x73]] }
 0x19b   :  { %853 = vrot.lane.b32.xlu0 %v6034_v8, %s9377_s9  ;;  %713 = vrot.lane.b32.xlu1 %v6078_v25, %s9371_s8 }
 0x19c   :  { %9392 = sst [smem:[#allocation47_spill]] %s6100_s12 }
 0x19d   :  { %9388 = sst [smem:[#allocation43_spill]] %s6088_s23 }
 0x19e   :  { %s6113_s23 = sld [smem:[#allocation6 + $0x2c]] }
 0x19f   :  { %717 = vrot.lane.b32.xlu0 %v6078_v25, %s9377_s9  ;;  %727 = vrot.lane.b32.xlu1 %v6078_v25, %s9382_s24  ;;  %9399 = sst [smem:[#allocation53_spill]] %s6120_s25 }
 0x1a0   :  { %v875_v39 = vpop.permute.xlu0 %874  ;;  %s6140_s25 = sld [smem:[#allocation6 + $0x2f]] }
 0x1a1   :  { %v877_v18 = vsel %vm660_vm0, 0.0, %v875_v39  ;;  %s6144_s12 = sld [smem:[#allocation6 + $0x6d]] }
 0x1a2   :  { %v6150_v21 = vsel %vm662_vm1, %v877_v18, 0.0 }
 0x1a3   :  { %731 = vrot.lane.b32.xlu0 %v6078_v25, %s9395_s22  ;;  %863 = vrot.lane.b32.xlu1 %v6034_v8, %s9382_s24 }
 0x1a4   :  { %9397 = sst [smem:[#allocation51_spill]] %s6113_s23  ;;  %v869_v26 = vpop.permute.xlu1 %868 }
 0x1a5   :  { %s6130_s23 = sld [smem:[#allocation6 + $0x6b]]  ;;  %v871_v58 = vsel %vm652_vm2, 0.0, %v869_v26 }
 0x1a6   :  { %9404 = sst [smem:[#allocation58_spill]] %s6140_s25  ;;  %v6218_v23 = vsel %vm654_vm3, %v871_v58, 0.0 }
 0x1a7   :  { %760 = vrot.lane.b32.xlu0 %v6118_v13, %s9377_s9  ;;  %756 = vrot.lane.b32.xlu1 %v6118_v13, %s9371_s8  ;;  %9406 = sst [smem:[#allocation60_spill]] %s6144_s12 }
 0x1a8   :  { %s6160_s25 = sld [smem:[#allocation6 + $0xd9]] }
 0x1a9   :  { %s6164_s12 = sld [smem:[#allocation6 + $0x70]] }
 0x1ab   :  { %9402 = sst [smem:[#allocation56_spill]] %s6130_s23  ;;  %774 = vrot.lane.b32.xlu0 %v6118_v13, %s9395_s22  ;;  %770 = vrot.lane.b32.xlu1 %v6118_v13, %s9382_s24 }
 0x1ac   :  { %s6158_s23 = sld [smem:[#allocation6 + $0xd8]] }
 0x1ae   :  { %9409 = sst [smem:[#allocation63_spill]] %s6160_s25 }
 0x1af   :  { %880 = vrot.lane.b32.xlu0 %v6150_v21, %s9372_s6  ;;  %799 = vrot.lane.b32.xlu1 %v6147_v20, %s9371_s8  ;;  %9411 = sst [smem:[#allocation65_spill]] %s6164_s12 }
 0x1b0   :  { %s6172_s6 = sld [smem:[#allocation6 + $0x34]] }
 0x1b1   :  { %s6183_s25 = sld [smem:[#allocation6 + $0x35]]  ;;  %v6278_v38 = vpop.permute.xlu0 %665  ;;  %v6280_v28 = vpop.permute.xlu1 %677 }
 0x1b2   :  { %9408 = sst [smem:[#allocation62_spill]] %s6158_s23  ;;  %v6398_v39 = vsel %vm662_vm1, %v6050_v19, %v6278_v38 }
 0x1b3   :  { %803 = vrot.lane.b32.xlu0 %v6147_v20, %s9377_s9  ;;  %813 = vrot.lane.b32.xlu1 %v6147_v20, %s9382_s24  ;;  %s6176_s23 = sld [smem:[#allocation6 + $0x72]]  ;;  %v6420_v26 = vmul.f32 %v1392_v30, %v6398_v39  ;;  %v6434_v19 = vmul.f32 %v1045_v62, %v6398_v39  ;;  %v6440_v58 = vmul.f32 %v2084_v31, %v6398_v39 }
 0x1b4   :  { %s6185_s12 = sld [smem:[#allocation6 + $0x36]]  ;;  %v6445_v11 = vmul.f32 %v1738_v4, %v6398_v39  ;;  %v6454_v62 = vmul.f32 %v2776_v33, %v6398_v39  ;;  %v6461_v31 = vmul.f32 %v2430_v47, %v6398_v39 }
 0x1b5   :  { %v6294_v29 = vpop.permute.xlu0 %681  ;;  %v6296_v27 = vpop.permute.xlu1 %691  ;;  %s9625_s15 = sld [smem:[#allocation62_spill]] }
 0x1b6   :  { %9413 = sst [smem:[#allocation67_spill]] %s6172_s6 }
 0x1b7   :  { %817 = vrot.lane.b32.xlu0 %v6147_v20, %s9395_s22  ;;  %892 = vrot.lane.b32.xlu1 %v6150_v21, %s9371_s8  ;;  %9416 = sst [smem:[#allocation70_spill]] %s6183_s25 }
 0x1b8   :  { %s6192_s6 = sld [smem:[#allocation6 + $0x38]] }
 0x1b9   :  { %9415 = sst [smem:[#allocation69_spill]] %s6176_s23 }
 0x1ba   :  { %9417 = sst [smem:[#allocation71_spill]] %s6185_s12 }
 0x1bb   :  { %846 = vrot.lane.b32.xlu0 %v6190_v0, %s9377_s9  ;;  %842 = vrot.lane.b32.xlu1 %v6190_v0, %s9371_s8  ;;  %s6198_s23 = sld [smem:[#allocation6 + $0xda]] }
 0x1bc   :  { %s6202_s25 = sld [smem:[#allocation6 + $0x75]] }
 0x1bd   :  { %s6204_s12 = sld [smem:[#allocation6 + $0x76]] }
 0x1be   :  { %9419 = sst [smem:[#allocation73_spill]] %s6192_s6 }
 0x1bf   :  { %860 = vrot.lane.b32.xlu0 %v6190_v0, %s9395_s22  ;;  %856 = vrot.lane.b32.xlu1 %v6190_v0, %s9382_s24  ;;  %s6211_s6 = sld [smem:[#allocation6 + $0x39]] }
 0x1c1   :  { %9420 = sst [smem:[#allocation74_spill]] %s6198_s23 }
 0x1c2   :  { %9422 = sst [smem:[#allocation76_spill]] %s6202_s25 }
 0x1c3   :  { %9423 = sst [smem:[#allocation77_spill]] %s6204_s12  ;;  %896 = vrot.lane.b32.xlu0 %v6150_v21, %s9377_s9  ;;  %885 = vrot.lane.b32.xlu1 %v6218_v23, %s9371_s8 }
 0x1c4   :  { %s6215_s23 = sld [smem:[#allocation6 + $0x77]] }
 0x1c5   :  { %9424 = sst [smem:[#allocation78_spill]] %s6211_s6  ;;  %v6311_v32 = vpop.permute.xlu0 %708  ;;  %v6313_v34 = vpop.permute.xlu1 %720 }
 0x1c6   :  { %s6226_s12 = sld [smem:[#allocation6 + $0xdd]]  ;;  %v6472_v33 = vsel %vm662_vm1, %v6078_v25, %v6311_v32 }
 0x1c7   :  { %s6228_s25 = sld [smem:[#allocation6 + $0xde]]  ;;  %889 = vrot.lane.b32.xlu0 %v6218_v23, %s9377_s9  ;;  %899 = vrot.lane.b32.xlu1 %v6218_v23, %s9382_s24  ;;  %v6498_v57 = vmul.f32 %v1411_v24, %v6472_v33  ;;  %v6503_v12 = vmul.f32 %v1064_v9, %v6472_v33  ;;  %v6508_v10 = vmul.f32 %v2103_v37, %v6472_v33 }
 0x1c8   :  { %s6230_s6 = sld [smem:[#allocation6 + $0xdf]]  ;;  %v6518_v24 = vmul.f32 %v1757_v35, %v6472_v33 }
 0x1c9   :  { %s6244_s8 = sld [smem:[#allocation6 + $0xe5]]  ;;  %v6351_v63 = vpop.permute.xlu0 %724  ;;  %v6353_v3 = vpop.permute.xlu1 %734 }
 0x1ca   :  { %9426 = sst [smem:[#allocation80_spill]] %s6215_s23 }
 0x1cb   :  { %s6240_s23 = sld [smem:[#allocation6 + $0xe3]]  ;;  %903 = vrot.lane.b32.xlu0 %v6218_v23, %s9395_s22  ;;  %906 = vrot.lane.b32.xlu1 %v6150_v21, %s9382_s24 }
 0x1cc   :  { %9428 = sst [smem:[#allocation82_spill]] %s6226_s12 }
 0x1cd   :  { %9429 = sst [smem:[#allocation83_spill]] %s6228_s25 }
 0x1ce   :  { %9430 = sst [smem:[#allocation84_spill]] %s6230_s6 }
 0x1cf   :  { %9435 = sst [smem:[#allocation89_spill]] %s6244_s8 }
 0x1d0   :  { %s6252_s9 = sld [smem:[#allocation6 + $0xe8]] }
 0x1d1   :  { %9433 = sst [smem:[#allocation87_spill]] %s6240_s23 }
 0x1d2   :  { %s6254_s6 = sld [smem:[#allocation6 + $0xe9]] }
 0x1d3   :  { %s6256_s25 = sld [smem:[#allocation6 + $0xea]] }
 0x1d4   :  { %s6260_s23 = sld [smem:[#allocation6 + $0xec]] }
 0x1d5   :  { %s6264_s8 = sld [smem:[#allocation6 + $0xee]] }
 0x1d6   :  { %9437 = sst [smem:[#allocation91_spill]] %s6252_s9 }
 0x1d7   :  { %s6266_s22 = sld [smem:[#allocation6 + $0xef]] }
 0x1d8   :  { %9438 = sst [smem:[#allocation92_spill]] %s6254_s6 }
 0x1d9   :  { %9439 = sst [smem:[#allocation93_spill]] %s6256_s25  ;;  %v6379_v42 = vpop.permute.xlu0 %751  ;;  %v6381_v15 = vpop.permute.xlu1 %763 }
 0x1da   :  { %9441 = sst [smem:[#allocation95_spill]] %s6260_s23  ;;  %v6536_v35 = vsel %vm662_vm1, %v6118_v13, %v6379_v42 }
 0x1db   :  { %9443 = sst [smem:[#allocation97_spill]] %s6264_s8  ;;  %v6562_v47 = vmul.f32 %v1431_v36, %v6536_v35  ;;  %v6572_v6 = vmul.f32 %v1084_v40, %v6536_v35  ;;  %v6582_v36 = vmul.f32 %v1777_v45, %v6536_v35 }
 0x1dc   :  { %s6268_s12 = sld [smem:[#allocation6 + $0x97]] }
 0x1dd   :  { %9444 = sst [smem:[#allocation98_spill]] %s6266_s22  ;;  %v6427_v38 = vpop.permute.xlu0 %767  ;;  %v6429_v22 = vpop.permute.xlu1 %777 }
 0x1de   :  { %s6270_s24 = sld [smem:[#allocation6 + $0x98]] }
 0x1df   :  { %s6272_s9 = sld [smem:[#allocation6 + $0x99]] }
 0x1e0   :  { %s6274_s6 = sld [smem:[#allocation6 + $0x9a]] }
 0x1e1   :  { %s6276_s25 = sld [smem:[#allocation6 + $0x9c]] }
 0x1e2   :  { %9445 = sst [smem:[#allocation99_spill]] %s6268_s12 }
 0x1e3   :  { %s6282_s22 = sld [smem:[#allocation6 + $0x9d]] }
 0x1e4   :  { %9446 = sst [smem:[#allocation100_spill]] %s6270_s24 }
 0x1e5   :  { %9447 = sst [smem:[#allocation101_spill]] %s6272_s9 }
 0x1e6   :  { %9448 = sst [smem:[#allocation102_spill]] %s6274_s6 }
 0x1e7   :  { %9449 = sst [smem:[#allocation103_spill]] %s6276_s25 }
 0x1e8   :  { %s6284_s12 = sld [smem:[#allocation6 + $0x9e]] }
 0x1e9   :  { %9450 = sst [smem:[#allocation104_spill]] %s6282_s22 }
 0x1ea   :  { %s6286_s24 = sld [smem:[#allocation6 + $0x9f]] }
 0x1eb   :  { %s6288_s8 = sld [smem:[#allocation6 + $0xa1]] }
 0x1ec   :  { %s6290_s6 = sld [smem:[#allocation6 + $0xa2]] }
 0x1ed   :  { %s6292_s25 = sld [smem:[#allocation6 + $0xa3]]  ;;  %v6479_v4 = vpop.permute.xlu0 %794  ;;  %v6481_v30 = vpop.permute.xlu1 %806 }
 0x1ee   :  { %9451 = sst [smem:[#allocation105_spill]] %s6284_s12  ;;  %v6606_v40 = vsel %vm662_vm1, %v6147_v20, %v6479_v4  ;;  %v2779_v4 = vstv %s6403_s13 }
 0x1ef   :  { %s6298_s9 = sld [smem:[#allocation6 + $0xa4]]  ;;  %v6636_v18 = vmul.f32 %v1451_v48, %v6606_v40  ;;  %v6641_v20 = vmul.f32 %v1104_v43, %v6606_v40 }
 0x1f0   :  { %9452 = sst [smem:[#allocation106_spill]] %s6286_s24 }
 0x1f1   :  { %9453 = sst [smem:[#allocation107_spill]] %s6288_s8  ;;  %v6543_v32 = vpop.permute.xlu0 %810  ;;  %v6545_v14 = vpop.permute.xlu1 %820 }
 0x1f2   :  { %9454 = sst [smem:[#allocation108_spill]] %s6290_s6 }
 0x1f3   :  { %9455 = sst [smem:[#allocation109_spill]] %s6292_s25 }
 0x1f4   :  { %s6300_s12 = sld [smem:[#allocation6 + $0xa5]] }
 0x1f5   :  { %9456 = sst [smem:[#allocation110_spill]] %s6298_s9 }
 0x1f6   :  { %s6303_s8 = sld [smem:[#allocation6 + $0xa6]] }
 0x1f7   :  { %s6309_s25 = sld [smem:[#allocation6 + $0xa7]] }
 0x1f8   :  { %s9462_s9 = sld [smem:[#allocation24_spill]] }
 0x1f9   :  { %s9463_s6 = sld [smem:[#allocation25_spill]] }
 0x1fa   :  { %9457 = sst [smem:[#allocation111_spill]] %s6300_s12 }
 0x1fb   :  { %s9461_s12 = sld [smem:[#allocation20_spill]] }
 0x1fc   :  { %9458 = sst [smem:[#allocation112_spill]] %s6303_s8 }
 0x1fd   :  { %9459 = sst [smem:[#allocation113_spill]] %s6309_s25 }
 0x1fe   :  { %s6318_s8 = sld [smem:[#allocation6 + $0xa8]]  ;;  %v1395_v49 = vstv %s9462_s9 }
 0x1ff   :  { %s9464_s25 = sld [smem:[#allocation26_spill]]  ;;  %v1399_v50 = vstv %s9463_s6 }
 0x200   :  { %s9465_s24 = sld [smem:[#allocation27_spill]] }
 0x201   :  { %s6324_s22 = sld [smem:[#allocation6 + $0xa9]]  ;;  %v2795_v46 = vstv %s9461_s12  ;;  %v6587_v42 = vpop.permute.xlu0 %837  ;;  %v6589_v5 = vpop.permute.xlu1 %849 }
 0x202   :  { %s6359_s23 = sld [smem:[#allocation6 + $0xae]]  ;;  %v6523_v9 = vmul.f32 %v2795_v46, %v6472_v33  ;;  %v6577_v46 = vmul.f32 %v2123_v41, %v6536_v35 }
 0x203   :  { %s6447_s9 = sld [smem:[#allocation6 + $0x150]] }
 0x204   :  { %9460 = sst [smem:[#allocation114_spill]] %s6318_s8 }
 0x205   :  { %s6331_s8 = sld [smem:[#allocation6 + $0xaa]]  ;;  %v1048_v51 = vstv %s9464_s25  ;;  %v675_v55 = vpop.permute.xlu0 %674  ;;  %v671_v13 = vpop.permute.xlu1 %670 }
 0x206   :  { %v1052_v52 = vstv %s9465_s24  ;;  %s6387_s24 = sld [smem:[#allocation6 + $0xb2]]  ;;  %v6627_v61 = vsel %vm662_vm1, %v675_v55, %v6280_v28  ;;  %v6631_v45 = vsel %vm662_vm1, %v5934_v53, %v671_v13  ;;  %v6654_v53 = vmul.f32 %v2143_v44, %v6606_v40 }
 0x207   :  { %9466 = sst [smem:[#allocation115_spill]] %s6324_s22  ;;  %v1396_v28 = vmul.f32 %v1395_v49, %v6631_v45  ;;  %v1049_v55 = vmul.f32 %v1048_v51, %v6631_v45  ;;  %v1400_v43 = vmul.f32 %v1399_v50, %v6627_v61  ;;  %v2088_v13 = vmul.f32 %v2087_v7, %v6631_v45 }
 0x208   :  { %s9476_s22 = sld [smem:[#allocation35_spill]]  ;;  %v1053_v50 = vmul.f32 %v1052_v52, %v6627_v61 }
 0x209   :  { %9491 = sst [smem:[#allocation120_spill]] %s6359_s23  ;;  %v689_v44 = vpop.permute.xlu0 %688  ;;  %v685_v51 = vpop.permute.xlu1 %684  ;;  %v1050_v41 = vadd.f32 %v1049_v55, %v6434_v19 }
 0x20a   :  { %s6425_s25 = sld [smem:[#allocation6 + $0x14e]]  ;;  %v6687_v1 = vsel %vm662_vm1, %v6294_v29, %v685_v51 }
 0x20b   :  { %9471 = sst [smem:[#allocation116_spill]] %s6331_s8 }
 0x20c   :  { %9510 = sst [smem:[#allocation124_spill]] %s6387_s24 }
 0x20d   :  { %s6415_s8 = sld [smem:[#allocation6 + $0x14d]] }
 0x20e   :  { %v2091_v16 = vstv %s9476_s22  ;;  %s6371_s22 = sld [smem:[#allocation6 + $0xb0]] }
 0x20f   :  { %s6456_s6 = sld [smem:[#allocation6 + $0x151]]  ;;  %v2092_v7 = vmul.f32 %v2091_v16, %v6627_v61  ;;  %v1404_v16 = vmul.f32 %v1403_v54, %v6687_v1  ;;  %v6712_v54 = vpop.permute.xlu0 %853 }
 0x210   :  { %9549 = sst [smem:[#allocation20_spill]] %s6493_s11 }
 0x211   :  { %s9555_s29 = sld [smem:[#allocation99_spill]] }
 0x212   :  { %s9556_s30 = sld [smem:[#allocation100_spill]] }
 0x213   :  { %9557 = sst [smem:[#allocation99_spill]] %s6525_s10 }
 0x214   :  { %9500 = sst [smem:[#allocation122_spill]] %s6371_s22 }
 0x215   :  { %s6393_s22 = sld [smem:[#allocation6 + $0xb3]] }
 0x216   :  { %s9558_s1 = sld [smem:[#allocation101_spill]] }
 0x217   :  { %s9560_s21 = sld [smem:[#allocation103_spill]]  ;;  %v1741_v37 = vstv %s9555_s29 }
 0x218   :  { %9562 = sst [smem:[#allocation100_spill]] %s6531_s20  ;;  %v1742_v49 = vmul.f32 %v1741_v37, %v6631_v45  ;;  %v6683_v37 = vsel %vm662_vm1, %v689_v44, %v6296_v27  ;;  %v9613_v27 = vstv %s9556_s30 }
 0x219   :  { %s9563_s18 = sld [smem:[#allocation105_spill]]  ;;  %v1746_v55 = vmul.f32 %v9613_v27, %v6627_v61 }
 0x21a   :  { %s9565_s10 = sld [smem:[#allocation106_spill]]  ;;  %v1743_v19 = vadd.f32 %v1742_v49, %v6445_v11 }
 0x21b   :  { %9515 = sst [smem:[#allocation125_spill]] %s6393_s22 }
 0x21c   :  { %9567 = sst [smem:[#allocation101_spill]] %s6541_s17  ;;  %v1747_v27 = vadd.f32 %v1746_v55, %v1743_v19  ;;  %v2803_v55 = vstv %s6456_s6 }
 0x21d   :  { %s9572_s0 = sld [smem:[#allocation109_spill]] }
 0x21e   :  { %s6551_s23 = sld [smem:[#allocation6 + $0x15a]] }
 0x21f   :  { %s9574_s7 = sld [smem:[#allocation110_spill]] }
 0x220   :  { %s9575_s3 = sld [smem:[#allocation111_spill]] }
 0x221   :  { %s9576_s17 = sld [smem:[#allocation112_spill]] }
 0x222   :  { %s6557_s11 = sld [smem:[#allocation6 + $0x15b]] }
 0x223   :  { %s9578_s28 = sld [smem:[#allocation113_spill]] }
 0x224   :  { %9573 = sst [smem:[#allocation103_spill]] %s6551_s23 }
 0x225   :  { %s6567_s12 = sld [smem:[#allocation6 + $0x15c]] }
 0x226   :  { %9586 = sst [smem:[#allocation106_spill]] %s6585_s4  ;;  %v1797_v25 = vstv %s9575_s3 }
 0x227   :  { %s6601_s4 = sld [smem:[#allocation6 + $0x15f]]  ;;  %v6657_v48 = vmul.f32 %v1797_v25, %v6606_v40  ;;  %v1397_v25 = vadd.f32 %v1396_v28, %v6420_v26  ;;  %v2089_v26 = vadd.f32 %v2088_v13, %v6440_v58  ;;  %v1054_v28 = vadd.f32 %v1053_v50, %v1050_v41  ;;  %v714_v41 = vpop.permute.xlu1 %713 }
 0x228   :  { %9577 = sst [smem:[#allocation105_spill]] %s6557_s11 }
 0x229   :  { %9600 = sst [smem:[#allocation109_spill]] %s6623_s19  ;;  %v1401_v52 = vadd.f32 %v1400_v43, %v1397_v25  ;;  %v2093_v49 = vadd.f32 %v2092_v7, %v2089_v26  ;;  %v6724_v26 = vsel %vm662_vm1, %v5946_v59, %v714_v41 }
 0x22a   :  { %s6643_s24 = sld [smem:[#allocation6 + $0x163]] }
 0x22b   :  { %9582 = sst [smem:[#allocation13_spill]] %s6567_s12  ;;  %v1405_v51 = vadd.f32 %v1404_v16, %v1401_v52  ;;  %v2799_v16 = vstv %s6447_s9 }
 0x22c   :  { %s6659_s12 = sld [smem:[#allocation6 + $0x164]] }
 0x22d   :  { %9591 = sst [smem:[#allocation15_spill]] %s6601_s4 }
 0x22e   :  { %9606 = sst [smem:[#allocation112_spill]] %s6669_s5 }
 0x22f   :  { %s9607_s4 = sld [smem:[#allocation29_spill]] }
 0x230   :  { %9602 = sst [smem:[#allocation110_spill]] %s6643_s24 }
 0x231   :  { %s9608_s3 = sld [smem:[#allocation30_spill]] }
 0x232   :  { %9604 = sst [smem:[#allocation111_spill]] %s6659_s12 }
 0x233   :  { %s9609_s29 = sld [smem:[#allocation42_spill]] }
 0x234   :  { %9610 = sst [smem:[#allocation113_spill]] %s6679_s27 }
 0x235   :  { %s9611_s20 = sld [smem:[#allocation31_spill]]  ;;  %v9614_v29 = vstv %s9607_s4 }
 0x236   :  { %s6691_s22 = sld [smem:[#allocation6 + $0x167]]  ;;  %v1408_v58 = vmul.f32 %v9614_v29, %v6683_v37  ;;  %v9621_v29 = vstv %s9558_s1 }
 0x237   :  { %s9615_s27 = sld [smem:[#allocation43_spill]]  ;;  %v9616_v13 = vstv %s9608_s3  ;;  %v1750_v7 = vmul.f32 %v9621_v29, %v6687_v1 }
 0x238   :  { %v1057_v11 = vmul.f32 %v9616_v13, %v6687_v1  ;;  %s6710_s23 = sld [smem:[#allocation6 + $0x110]]  ;;  %v1409_v19 = vadd.f32 %v1408_v58, %v1405_v51  ;;  %v9634_v51 = vstv %s9625_s15 }
 0x239   :  { %v9617_v44 = vstv %s9609_s29  ;;  %s9619_s30 = sld [smem:[#allocation32_spill]] }
 0x23a   :  { %v2096_v43 = vmul.f32 %v9617_v44, %v6687_v1  ;;  %s9622_s4 = sld [smem:[#allocation127_spill]]  ;;  %v1058_v13 = vadd.f32 %v1057_v11, %v1054_v28  ;;  %v728_v11 = vpop.permute.xlu1 %727  ;;  %v1413_v58 = vadd.f32 %v6498_v57, %v1409_v19 }
 0x23b   :  { %v9620_v25 = vstv %s9611_s20  ;;  %s6720_s3 = sld [smem:[#allocation6 + $0x111]] }
 0x23c   :  { %9612 = sst [smem:[#allocation17_spill]] %s6691_s22  ;;  %v1061_v50 = vmul.f32 %v9620_v25, %v6683_v37  ;;  %v2097_v44 = vadd.f32 %v2096_v43, %v2093_v49  ;;  %v2108_v25 = vmul.f32 %v9634_v51, %v6724_v26 }
 0x23d   :  { %s9618_s22 = sld [smem:[#allocation126_spill]]  ;;  %v9623_v60 = vstv %s9615_s27 }
 0x23e   :  { %s9624_s29 = sld [smem:[#allocation33_spill]]  ;;  %v2100_v52 = vmul.f32 %v9623_v60, %v6683_v37  ;;  %v1062_v59 = vadd.f32 %v1061_v50, %v1058_v13  ;;  %v718_v60 = vpop.permute.xlu0 %717  ;;  %v1751_v50 = vadd.f32 %v1750_v7, %v1747_v27 }
 0x23f   :  { %s6729_s20 = sld [smem:[#allocation6 + $0x112]]  ;;  %v9628_v29 = vstv %s9619_s30  ;;  %v6753_v13 = vsel %vm662_vm1, %v718_v60, %v6313_v34 }
 0x240   :  { %s6734_s1 = sld [smem:[#allocation6 + $0x113]]  ;;  %v1416_v17 = vmul.f32 %v9628_v29, %v6724_v26  ;;  %v2101_v41 = vadd.f32 %v2100_v52, %v2097_v44  ;;  %v6757_v44 = vsel %vm662_vm1, %v6351_v63, %v728_v11  ;;  %v1066_v57 = vadd.f32 %v6503_v12, %v1062_v59  ;;  %v6780_v11 = vpop.permute.xlu1 %863 }
 0x241   :  { %s9629_s5 = sld [smem:[#allocation36_spill]] }
 0x242   :  { %s9630_s12 = sld [smem:[#allocation38_spill]]  ;;  %v2105_v52 = vadd.f32 %v6508_v10, %v2101_v41  ;;  %v1417_v19 = vadd.f32 %v1416_v17, %v1413_v58  ;;  %v732_v17 = vpop.permute.xlu0 %731 }
 0x243   :  { %s6740_s27 = sld [smem:[#allocation6 + $0x114]] }
 0x244   :  { %s9632_s24 = sld [smem:[#allocation102_spill]]  ;;  %v9633_v49 = vstv %s9624_s29  ;;  %v2109_v12 = vadd.f32 %v2108_v25, %v2105_v52 }
 0x245   :  { %9626 = sst [smem:[#allocation18_spill]] %s6729_s20  ;;  %v1069_v43 = vmul.f32 %v9633_v49, %v6724_v26 }
 0x246   :  { %9627 = sst [smem:[#allocation24_spill]] %s6734_s1 }
 0x247   :  { %s9635_s1 = sld [smem:[#allocation63_spill]]  ;;  %v9641_v27 = vstv %s9629_s5  ;;  %v1070_v63 = vadd.f32 %v1069_v43, %v1066_v57  ;;  %v6792_v57 = vsel %vm662_vm1, %v732_v17, %v6353_v3  ;;  %v761_v17 = vpop.permute.xlu0 %760 }
 0x248   :  { %s9636_s30 = sld [smem:[#allocation12_spill]]  ;;  %v1420_v7 = vmul.f32 %v9641_v27, %v6753_v13  ;;  %v9642_v29 = vstv %s9630_s12 }
 0x249   :  { %9631 = sst [smem:[#allocation26_spill]] %s6740_s27  ;;  %v1073_v34 = vmul.f32 %v9642_v29, %v6753_v13 }
 0x24a   :  { %s6749_s20 = sld [smem:[#allocation6 + $0x115]]  ;;  %v9643_v60 = vstv %s9632_s24  ;;  %v1421_v58 = vadd.f32 %v1420_v7, %v1417_v19 }
 0x24b   :  { %s9638_s29 = sld [smem:[#allocation37_spill]]  ;;  %v1754_v49 = vmul.f32 %v9643_v60, %v6683_v37  ;;  %v1074_v52 = vadd.f32 %v1073_v34, %v1070_v63 }
 0x24c   :  { %s9639_s15 = sld [smem:[#allocation39_spill]] }
 0x24d   :  { %s6761_s27 = sld [smem:[#allocation6 + $0x116]]  ;;  %v9645_v10 = vstv %s9635_s1  ;;  %v1755_v25 = vadd.f32 %v1754_v49, %v1751_v50 }
 0x24e   :  { %s9644_s11 = sld [smem:[#allocation74_spill]]  ;;  %v2112_v59 = vmul.f32 %v9645_v10, %v6753_v13  ;;  %v2815_v41 = vstv %s9636_s30 }
 0x24f   :  { %s9646_s19 = sld [smem:[#allocation40_spill]] }
 0x250   :  { %9637 = sst [smem:[#allocation19_spill]] %s6749_s20  ;;  %v2113_v60 = vadd.f32 %v2112_v59, %v2109_v12  ;;  %v6811_v12 = vmul.f32 %v2815_v41, %v6536_v35  ;;  %v6825_v41 = vsel %vm662_vm1, %v761_v17, %v6381_v15 }
 0x251   :  { %s6772_s20 = sld [smem:[#allocation6 + $0x117]]  ;;  %v9650_v51 = vstv %s9638_s29 }
 0x252   :  { %s9649_s5 = sld [smem:[#allocation75_spill]]  ;;  %v1424_v27 = vmul.f32 %v9650_v51, %v6757_v44  ;;  %v9651_v29 = vstv %s9639_s15 }
 0x253   :  { %9640 = sst [smem:[#allocation25_spill]] %s6761_s27  ;;  %v1077_v43 = vmul.f32 %v9651_v29, %v6757_v44 }
 0x254   :  { %s9647_s27 = sld [smem:[#allocation41_spill]]  ;;  %v9654_v10 = vstv %s9644_s11  ;;  %v1425_v19 = vadd.f32 %v1424_v27, %v1421_v58  ;;  %v757_v58 = vpop.permute.xlu1 %756 }
 0x255   :  { %s9652_s24 = sld [smem:[#allocation20_spill]]  ;;  %v2116_v28 = vmul.f32 %v9654_v10, %v6757_v44  ;;  %v9657_v7 = vstv %s9646_s19  ;;  %v1078_v34 = vadd.f32 %v1077_v43, %v1074_v52  ;;  %v1759_v10 = vadd.f32 %v6518_v24, %v1755_v25 }
 0x256   :  { %s6788_s12 = sld [smem:[#allocation6 + $0x119]]  ;;  %v1428_v51 = vmul.f32 %v9657_v7, %v6792_v57  ;;  %v9666_v7 = vstv %s9560_s21  ;;  %v6829_v43 = vsel %vm662_vm1, %v5958_v56, %v757_v58  ;;  %v775_v58 = vpop.permute.xlu0 %774 }
 0x257   :  { %s6797_s1 = sld [smem:[#allocation6 + $0x11a]]  ;;  %v2117_v63 = vadd.f32 %v2116_v28, %v2113_v60 }
 0x258   :  { %s9656_s30 = sld [smem:[#allocation128_spill]]  ;;  %v9659_v29 = vstv %s9649_s5  ;;  %v1429_v27 = vadd.f32 %v1428_v51, %v1425_v19 }
 0x259   :  { %v2120_v3 = vmul.f32 %v9659_v29, %v6792_v57  ;;  %s6808_s29 = sld [smem:[#allocation6 + $0x11b]] }
 0x25a   :  { %v9658_v50 = vstv %s9647_s27  ;;  %s9661_s11 = sld [smem:[#allocation44_spill]]  ;;  %v1433_v24 = vadd.f32 %v6562_v47, %v1429_v27  ;;  %v771_v27 = vpop.permute.xlu1 %770 }
 0x25b   :  { %v1081_v49 = vmul.f32 %v9658_v50, %v6792_v57  ;;  %v2819_v59 = vstv %s9652_s24  ;;  %s9662_s15 = sld [smem:[#allocation46_spill]]  ;;  %v1762_v50 = vmul.f32 %v9666_v7, %v6724_v26  ;;  %v2121_v60 = vadd.f32 %v2120_v3, %v2117_v63 }
 0x25c   :  { %9653 = sst [smem:[#allocation27_spill]] %s6788_s12 }
 0x25d   :  { %9655 = sst [smem:[#allocation35_spill]] %s6797_s1  ;;  %v1082_v52 = vadd.f32 %v1081_v49, %v1078_v34  ;;  %v2125_v34 = vadd.f32 %v6577_v46, %v2121_v60  ;;  %v6865_v46 = vsel %vm662_vm1, %v775_v58, %v6429_v22  ;;  %v6885_v22 = vsel %vm662_vm1, %v6190_v0, %v6587_v42 }
 0x25e   :  { %s6814_s1 = sld [smem:[#allocation6 + $0x11c]]  ;;  %v2823_v28 = vstv %s9656_s30 }
 0x25f   :  { %9660 = sst [smem:[#allocation28_spill]] %s6808_s29  ;;  %v1086_v3 = vadd.f32 %v6572_v6, %v1082_v52  ;;  %v1763_v6 = vadd.f32 %v1762_v50, %v1759_v10  ;;  %v6869_v52 = vsel %vm662_vm1, %v6427_v38, %v771_v27 }
 0x260   :  { %s9664_s19 = sld [smem:[#allocation104_spill]]  ;;  %v9672_v25 = vstv %s9661_s11 }
 0x261   :  { %s9665_s27 = sld [smem:[#allocation45_spill]]  ;;  %v1436_v19 = vmul.f32 %v9672_v25, %v6829_v43  ;;  %v9673_v51 = vstv %s9662_s15 }
 0x262   :  { %s9667_s5 = sld [smem:[#allocation82_spill]]  ;;  %v1089_v29 = vmul.f32 %v9673_v51, %v6829_v43 }
 0x263   :  { %s6821_s29 = sld [smem:[#allocation6 + $0x11d]]  ;;  %v1437_v7 = vadd.f32 %v1436_v19, %v1433_v24 }
 0x264   :  { %9663 = sst [smem:[#allocation29_spill]] %s6814_s1  ;;  %v1090_v60 = vadd.f32 %v1089_v29, %v1086_v3 }
 0x265   :  { %s9669_s1 = sld [smem:[#allocation47_spill]] }
 0x266   :  { %s9670_s12 = sld [smem:[#allocation83_spill]]  ;;  %v9674_v15 = vstv %s9664_s19 }
 0x267   :  { %9671 = sst [smem:[#allocation42_spill]] %s6831_s2  ;;  %v1766_v17 = vmul.f32 %v9674_v15, %v6753_v13  ;;  %v9676_v56 = vstv %s9665_s27 }
 0x268   :  { %s6843_s21 = sld [smem:[#allocation6 + $0x11f]]  ;;  %v1440_v49 = vmul.f32 %v9676_v56, %v6825_v41  ;;  %v9677_v47 = vstv %s9667_s5 }
 0x269   :  { %9668 = sst [smem:[#allocation30_spill]] %s6821_s29  ;;  %v2128_v63 = vmul.f32 %v9677_v47, %v6829_v43 }
 0x26a   :  { %s9678_s2 = sld [smem:[#allocation48_spill]]  ;;  %v1441_v19 = vadd.f32 %v1440_v49, %v1437_v7 }
 0x26b   :  { %s9679_s11 = sld [smem:[#allocation50_spill]]  ;;  %v9682_v25 = vstv %s9669_s1  ;;  %v2129_v24 = vadd.f32 %v2128_v63, %v2125_v34  ;;  %v6892_v34 = vpop.permute.xlu0 %880  ;;  %v800_v63 = vpop.permute.xlu1 %799 }
 0x26c   :  { %s6853_s29 = sld [smem:[#allocation6 + $0x120]]  ;;  %v1093_v51 = vmul.f32 %v9682_v25, %v6825_v41  ;;  %v9683_v15 = vstv %s9670_s12 }
 0x26d   :  { %s9681_s15 = sld [smem:[#allocation101_spill]]  ;;  %v2132_v56 = vmul.f32 %v9683_v15, %v6825_v41 }
 0x26e   :  { %9675 = sst [smem:[#allocation31_spill]] %s6843_s21  ;;  %v1094_v38 = vadd.f32 %v1093_v51, %v1090_v60  ;;  %v1767_v51 = vadd.f32 %v1766_v17, %v1763_v6 }
 0x26f   :  { %s9684_s19 = sld [smem:[#allocation84_spill]]  ;;  %v2133_v29 = vadd.f32 %v2132_v56, %v2129_v24  ;;  %v6904_v56 = vsel %vm662_vm1, %v5982_v2, %v800_v63  ;;  %v9707_v2 = vstv %s9563_s18 }
 0x270   :  { %s6861_s27 = sld [smem:[#allocation6 + $0x121]]  ;;  %v9689_v47 = vstv %s9678_s2 }
 0x271   :  { %s9686_s5 = sld [smem:[#allocation49_spill]]  ;;  %v1444_v10 = vmul.f32 %v9689_v47, %v6869_v52  ;;  %v9690_v50 = vstv %s9679_s11 }
 0x272   :  { %9680 = sst [smem:[#allocation43_spill]] %s6853_s29  ;;  %v1097_v25 = vmul.f32 %v9690_v50, %v6869_v52 }
 0x273   :  { %s9687_s1 = sld [smem:[#allocation51_spill]]  ;;  %v2835_v15 = vstv %s9681_s15  ;;  %v1445_v58 = vadd.f32 %v1444_v10, %v1441_v19 }
 0x274   :  { %s6871_s29 = sld [smem:[#allocation6 + $0x122]]  ;;  %v1098_v60 = vadd.f32 %v1097_v25, %v1094_v38  ;;  %v1770_v25 = vmul.f32 %v9707_v2, %v6757_v44 }
 0x275   :  { %s6880_s12 = sld [smem:[#allocation6 + $0x123]]  ;;  %v9693_v3 = vstv %s9684_s19 }
 0x276   :  { %9685 = sst [smem:[#allocation126_spill]] %s6861_s27  ;;  %v2136_v49 = vmul.f32 %v9693_v3, %v6869_v52 }
 0x277   :  { %s9692_s27 = sld [smem:[#allocation85_spill]]  ;;  %v9698_v27 = vstv %s9686_s5 }
 0x278   :  { %s9695_s2 = sld [smem:[#allocation22_spill]]  ;;  %v1448_v7 = vmul.f32 %v9698_v27, %v6865_v46  ;;  %v2137_v24 = vadd.f32 %v2136_v49, %v2133_v29 }
 0x279   :  { %s6890_s21 = sld [smem:[#allocation6 + $0x124]]  ;;  %v9699_v0 = vstv %s9687_s1 }
 0x27a   :  { %9688 = sst [smem:[#allocation32_spill]] %s6871_s29  ;;  %v1101_v42 = vmul.f32 %v9699_v0, %v6865_v46  ;;  %v1449_v10 = vadd.f32 %v1448_v7, %v1445_v58  ;;  %v9710_v58 = vstv %s9565_s10  ;;  %v804_v7 = vpop.permute.xlu0 %803  ;;  %v814_v0 = vpop.permute.xlu1 %813 }
 0x27b   :  { %9691 = sst [smem:[#allocation127_spill]] %s6880_s12  ;;  %v1774_v27 = vmul.f32 %v9710_v58, %v6792_v57 }
 0x27c   :  { %s9694_s29 = sld [smem:[#allocation21_spill]]  ;;  %v1102_v49 = vadd.f32 %v1101_v42, %v1098_v60  ;;  %v1771_v60 = vadd.f32 %v1770_v25, %v1767_v51 }
 0x27d   :  { %s9697_s11 = sld [smem:[#allocation52_spill]]  ;;  %v9701_v47 = vstv %s9692_s27 }
 0x27e   :  { %s6900_s19 = sld [smem:[#allocation6 + $0x125]]  ;;  %v2140_v19 = vmul.f32 %v9701_v47, %v6865_v46  ;;  %v9706_v17 = vstv %s9695_s2  ;;  %v1453_v47 = vadd.f32 %v6636_v18, %v1449_v10  ;;  %v1106_v18 = vadd.f32 %v6641_v20, %v1102_v49 }
 0x27f   :  { %9696 = sst [smem:[#allocation33_spill]] %s6890_s21  ;;  %v6919_v6 = vmul.f32 %v9706_v17, %v6885_v22 }
 0x280   :  { %s9702_s21 = sld [smem:[#allocation54_spill]]  ;;  %v2141_v63 = vadd.f32 %v2140_v19, %v2137_v24  ;;  %v6945_v24 = vsel %vm662_vm1, %v804_v7, %v6481_v30  ;;  %v6949_v19 = vsel %vm662_vm1, %v6543_v32, %v814_v0  ;;  %v6974_v0 = vpop.permute.xlu1 %892 }
 0x281   :  { %s9703_s12 = sld [smem:[#allocation86_spill]] }
 0x282   :  { %s6909_s5 = sld [smem:[#allocation6 + $0x126]]  ;;  %v9705_v50 = vstv %s9694_s29  ;;  %v2145_v10 = vadd.f32 %v6654_v53, %v2141_v63  ;;  %v818_v63 = vpop.permute.xlu0 %817 }
 0x283   :  { %v6914_v3 = vmul.f32 %v9705_v50, %v6885_v22  ;;  %s6924_s1 = sld [smem:[#allocation6 + $0x127]]  ;;  %v9709_v38 = vstv %s9697_s11 }
 0x284   :  { %9700 = sst [smem:[#allocation62_spill]] %s6900_s19  ;;  %v1456_v29 = vmul.f32 %v9709_v38, %v6904_v56 }
 0x285   :  { %s9711_s27 = sld [smem:[#allocation56_spill]] }
 0x286   :  { %s9712_s29 = sld [smem:[#allocation58_spill]]  ;;  %v9715_v50 = vstv %s9702_s21  ;;  %v1457_v38 = vadd.f32 %v1456_v29, %v1453_v47  ;;  %v2780_v29 = vmul.f32 %v2779_v4, %v6631_v45  ;;  %v6986_v4 = vsel %vm662_vm1, %v818_v63, %v6545_v14 }
 0x287   :  { %s9714_s2 = sld [smem:[#allocation23_spill]]  ;;  %v1109_v17 = vmul.f32 %v9715_v50, %v6904_v56  ;;  %v9716_v2 = vstv %s9703_s12 }
 0x288   :  { %9704 = sst [smem:[#allocation36_spill]] %s6909_s5  ;;  %v2148_v42 = vmul.f32 %v9716_v2, %v6904_v56 }
 0x289   :  { %9708 = sst [smem:[#allocation38_spill]] %s6924_s1  ;;  %v1110_v32 = vadd.f32 %v1109_v17, %v1106_v18  ;;  %v1775_v18 = vadd.f32 %v1774_v27, %v1771_v60 }
 0x28a   :  { %s6932_s5 = sld [smem:[#allocation6 + $0x128]]  ;;  %v2149_v20 = vadd.f32 %v2148_v42, %v2145_v10 }
 0x28b   :  { %s9717_s18 = sld [smem:[#allocation87_spill]]  ;;  %v9722_v51 = vstv %s9711_s27 }
 0x28c   :  { %s6941_s10 = sld [smem:[#allocation6 + $0x129]]  ;;  %v1460_v25 = vmul.f32 %v9722_v51, %v6945_v24  ;;  %v9723_v58 = vstv %s9712_s29 }
 0x28d   :  { %s9719_s21 = sld [smem:[#allocation57_spill]]  ;;  %v1113_v30 = vmul.f32 %v9723_v58, %v6945_v24  ;;  %v9724_v7 = vstv %s9714_s2 }
 0x28e   :  { %s9720_s12 = sld [smem:[#allocation59_spill]]  ;;  %v2164_v50 = vmul.f32 %v9724_v7, %v6885_v22  ;;  %v1461_v47 = vadd.f32 %v1460_v25, %v1457_v38 }
 0x28f   :  { %s6953_s11 = sld [smem:[#allocation6 + $0x12a]]  ;;  %v1114_v10 = vadd.f32 %v1113_v30, %v1110_v32 }
 0x290   :  { %9713 = sst [smem:[#allocation102_spill]] %s6932_s5 }
 0x291   :  { %s9726_s5 = sld [smem:[#allocation88_spill]]  ;;  %v9727_v53 = vstv %s9717_s18 }
 0x292   :  { %9718 = sst [smem:[#allocation63_spill]] %s6941_s10  ;;  %v2152_v49 = vmul.f32 %v9727_v53, %v6945_v24 }
 0x293   :  { %s6964_s10 = sld [smem:[#allocation6 + $0x12b]]  ;;  %v9731_v2 = vstv %s9719_s21 }
 0x294   :  { %s9729_s27 = sld [smem:[#allocation61_spill]]  ;;  %v1464_v51 = vmul.f32 %v9731_v2, %v6949_v19  ;;  %v9732_v17 = vstv %s9720_s12  ;;  %v2153_v58 = vadd.f32 %v2152_v49, %v2149_v20  ;;  %v2781_v20 = vadd.f32 %v2780_v29, %v6454_v62 }
 0x295   :  { %9721 = sst [smem:[#allocation12_spill]] %s6953_s11  ;;  %v1117_v42 = vmul.f32 %v9732_v17, %v6949_v19  ;;  %v9738_v49 = vstv %s6409_s14 }
 0x296   :  { %s9728_s11 = sld [smem:[#allocation60_spill]]  ;;  %v1465_v38 = vadd.f32 %v1464_v51, %v1461_v47  ;;  %v2784_v63 = vmul.f32 %v9738_v49, %v6627_v61  ;;  %v847_v47 = vpop.permute.xlu0 %846  ;;  %v843_v51 = vpop.permute.xlu1 %842 }
 0x297   :  { %s6972_s1 = sld [smem:[#allocation6 + $0x1c2]]  ;;  %v9733_v7 = vstv %s9726_s5  ;;  %v1118_v30 = vadd.f32 %v1117_v42, %v1114_v10  ;;  %v9745_v10 = vstv %s6415_s8  ;;  %v7023_v29 = vsel %vm662_vm1, %v847_v47, %v6589_v5 }
 0x298   :  { %s9730_s29 = sld [smem:[#allocation89_spill]]  ;;  %v2156_v53 = vmul.f32 %v9733_v7, %v6949_v19  ;;  %v7017_v62 = vmul.f32 %v9745_v10, %v6687_v1 }
 0x299   :  { %9725 = sst [smem:[#allocation37_spill]] %s6964_s10 }
 0x29a   :  { %s6982_s2 = sld [smem:[#allocation6 + $0x1c3]]  ;;  %v9736_v27 = vstv %s9729_s27  ;;  %v2157_v32 = vadd.f32 %v2156_v53, %v2153_v58  ;;  %v7027_v58 = vsel %vm662_vm1, %v6034_v8, %v843_v51  ;;  %v861_v51 = vpop.permute.xlu0 %860 }
 0x29b   :  { %s9734_s13 = sld [smem:[#allocation107_spill]]  ;;  %v1121_v60 = vmul.f32 %v9736_v27, %v6986_v4 }
 0x29c   :  { %s6991_s18 = sld [smem:[#allocation6 + $0x1c4]]  ;;  %v9735_v25 = vstv %s9728_s11 }
 0x29d   :  { %v1468_v2 = vmul.f32 %v9735_v25, %v6986_v4  ;;  %s7002_s21 = sld [smem:[#allocation6 + $0x1c5]]  ;;  %v1779_v25 = vadd.f32 %v6582_v36, %v1775_v18  ;;  %v1122_v53 = vadd.f32 %v1121_v60, %v1118_v30 }
 0x29e   :  { %v9737_v17 = vstv %s9730_s29  ;;  %s9739_s5 = sld [smem:[#allocation64_spill]] }
 0x29f   :  { %v2160_v14 = vmul.f32 %v9737_v17, %v6986_v4  ;;  %s9740_s12 = sld [smem:[#allocation66_spill]]  ;;  %v1469_v7 = vadd.f32 %v1468_v2, %v1465_v38 }
 0x2a0   :  { %s7008_s10 = sld [smem:[#allocation6 + $0x1c6]] }
 0x2a1   :  { %s9742_s11 = sld [smem:[#allocation108_spill]]  ;;  %v9744_v27 = vstv %s9734_s13  ;;  %v2161_v36 = vadd.f32 %v2160_v14, %v2157_v32  ;;  %v1473_v18 = vadd.f32 %v6914_v3, %v1469_v7  ;;  %v1126_v14 = vadd.f32 %v6919_v6, %v1122_v53  ;;  %v857_v7 = vpop.permute.xlu1 %856 }
 0x2a2   :  { %s9743_s27 = sld [smem:[#allocation65_spill]]  ;;  %v1782_v42 = vmul.f32 %v9744_v27, %v6829_v43  ;;  %v7066_v53 = vsel %vm662_vm1, %v6712_v54, %v857_v7 }
 0x2a3   :  { %s9746_s29 = sld [smem:[#allocation90_spill]]  ;;  %v2165_v30 = vadd.f32 %v2164_v50, %v2161_v36  ;;  %v7062_v50 = vsel %vm662_vm1, %v861_v51, %v6780_v11 }
 0x2a4   :  { %s7019_s14 = sld [smem:[#allocation6 + $0x1c7]]  ;;  %v9751_v38 = vstv %s9739_s5  ;;  %v1783_v6 = vadd.f32 %v1782_v42, %v1779_v25  ;;  %v7073_v25 = vsel %vm662_vm1, %v6218_v23, %v6892_v34  ;;  %v897_v34 = vpop.permute.xlu0 %896 }
 0x2a5   :  { %s9748_s19 = sld [smem:[#allocation67_spill]]  ;;  %v1476_v2 = vmul.f32 %v9751_v38, %v7027_v58  ;;  %v9752_v17 = vstv %s9740_s12 }
 0x2a6   :  { %9741 = sst [smem:[#allocation39_spill]] %s7008_s10  ;;  %v1129_v49 = vmul.f32 %v9752_v17, %v7027_v58 }
 0x2a7   :  { %s9749_s13 = sld [smem:[#allocation91_spill]]  ;;  %v9753_v5 = vstv %s9742_s11  ;;  %v1477_v27 = vadd.f32 %v1476_v2, %v1473_v18 }
 0x2a8   :  { %s7029_s10 = sld [smem:[#allocation6 + $0x1c8]]  ;;  %v1786_v47 = vmul.f32 %v9753_v5, %v6825_v41  ;;  %v9755_v8 = vstv %s9743_s27  ;;  %v1130_v36 = vadd.f32 %v1129_v49, %v1126_v14 }
 0x2a9   :  { %s7041_s8 = sld [smem:[#allocation6 + $0x1c9]]  ;;  %v1480_v60 = vmul.f32 %v9755_v8, %v7023_v29  ;;  %v9756_v32 = vstv %s9746_s29 }
 0x2aa   :  { %9747 = sst [smem:[#allocation74_spill]] %s7019_s14  ;;  %v2168_v3 = vmul.f32 %v9756_v32, %v7027_v58 }
 0x2ab   :  { %s7050_s5 = sld [smem:[#allocation6 + $0x1ca]]  ;;  %v9760_v10 = vstv %s9748_s19  ;;  %v1481_v42 = vadd.f32 %v1480_v60, %v1477_v27  ;;  %v886_v60 = vpop.permute.xlu1 %885 }
 0x2ac   :  { %s9759_s14 = sld [smem:[#allocation70_spill]]  ;;  %v1133_v38 = vmul.f32 %v9760_v10, %v7023_v29  ;;  %v2169_v18 = vadd.f32 %v2168_v3, %v2165_v30  ;;  %v9771_v3 = vstv %s9572_s0 }
 0x2ad   :  { %v9761_v17 = vstv %s9749_s13  ;;  %s9762_s12 = sld [smem:[#allocation92_spill]]  ;;  %v1790_v23 = vmul.f32 %v9771_v3, %v6869_v52  ;;  %v2785_v3 = vadd.f32 %v2784_v63, %v2781_v20 }
 0x2ae   :  { %9750 = sst [smem:[#allocation40_spill]] %s7029_s10  ;;  %v2172_v5 = vmul.f32 %v9761_v17, %v7023_v29  ;;  %v1134_v54 = vadd.f32 %v1133_v38, %v1130_v36  ;;  %v1787_v17 = vadd.f32 %v1786_v47, %v1783_v6 }
 0x2af   :  { %9754 = sst [smem:[#allocation41_spill]] %s7041_s8 }
 0x2b0   :  { %s9757_s10 = sld [smem:[#allocation68_spill]]  ;;  %v2173_v49 = vadd.f32 %v2172_v5, %v2169_v18  ;;  %v7101_v5 = vsel %vm662_vm1, %v6150_v21, %v886_v60 }
 0x2b1   :  { %9758 = sst [smem:[#allocation75_spill]] %s7050_s5 }
 0x2b2   :  { %s7058_s11 = sld [smem:[#allocation6 + $0x1cb]]  ;;  %v9768_v8 = vstv %s9759_s14 }
 0x2b3   :  { %s9764_s27 = sld [smem:[#allocation69_spill]]  ;;  %v1137_v32 = vmul.f32 %v9768_v8, %v7066_v53  ;;  %v9770_v14 = vstv %s9762_s12 }
 0x2b4   :  { %s9765_s19 = sld [smem:[#allocation71_spill]]  ;;  %v2176_v30 = vmul.f32 %v9770_v14, %v7066_v53 }
 0x2b5   :  { %s7068_s29 = sld [smem:[#allocation6 + $0x1cc]]  ;;  %v1138_v36 = vadd.f32 %v1137_v32, %v1134_v54 }
 0x2b6   :  { %v9767_v2 = vstv %s9757_s10  ;;  %s7081_s13 = sld [smem:[#allocation6 + $0x1cd]]  ;;  %v2177_v18 = vadd.f32 %v2176_v30, %v2173_v49 }
 0x2b7   :  { %v1484_v11 = vmul.f32 %v9767_v2, %v7066_v53  ;;  %s9773_s5 = sld [smem:[#allocation55_spill]] }
 0x2b8   :  { %9763 = sst [smem:[#allocation20_spill]] %s7058_s11 }
 0x2b9   :  { %s9769_s11 = sld [smem:[#allocation93_spill]]  ;;  %v1485_v51 = vadd.f32 %v1484_v11, %v1481_v42  ;;  %v9776_v7 = vstv %s9764_s27 }
 0x2ba   :  { %s7089_s8 = sld [smem:[#allocation6 + $0x1ce]]  ;;  %v1488_v27 = vmul.f32 %v9776_v7, %v7062_v50  ;;  %v9777_v10 = vstv %s9765_s19  ;;  %v900_v7 = vpop.permute.xlu1 %899 }
 0x2bb   :  { %9766 = sst [smem:[#allocation128_spill]] %s7068_s29  ;;  %v1141_v38 = vmul.f32 %v9777_v10, %v7062_v50 }
 0x2bc   :  { %s9772_s29 = sld [smem:[#allocation53_spill]]  ;;  %v1489_v11 = vadd.f32 %v1488_v27, %v1485_v51  ;;  %v890_v51 = vpop.permute.xlu0 %889 }
 0x2bd   :  { %s9775_s10 = sld [smem:[#allocation72_spill]]  ;;  %v9785_v47 = vstv %s9773_s5  ;;  %v1142_v54 = vadd.f32 %v1141_v38, %v1138_v36  ;;  %v1791_v38 = vadd.f32 %v1790_v23, %v1787_v17  ;;  %v7134_v36 = vsel %vm662_vm1, %v890_v51, %v6974_v0 }
 0x2be   :  { %s9778_s14 = sld [smem:[#allocation94_spill]]  ;;  %v1145_v6 = vmul.f32 %v9785_v47, %v7073_v25  ;;  %v907_v51 = vpop.permute.xlu1 %906 }
 0x2bf   :  { %s7097_s12 = sld [smem:[#allocation6 + $0x1cf]]  ;;  %v9780_v2 = vstv %s9769_s11 }
 0x2c0   :  { %9774 = sst [smem:[#allocation44_spill]] %s7089_s8  ;;  %v2180_v42 = vmul.f32 %v9780_v2, %v7062_v50 }
 0x2c1   :  { %s9781_s0 = sld [smem:[#allocation73_spill]] }
 0x2c2   :  { %s9782_s8 = sld [smem:[#allocation95_spill]]  ;;  %v9784_v8 = vstv %s9772_s29  ;;  %v2181_v49 = vadd.f32 %v2180_v42, %v2177_v18  ;;  %v7137_v18 = vsel %vm662_vm1, %v897_v34, %v900_v7  ;;  %v1146_v42 = vadd.f32 %v1145_v6, %v1142_v54 }
 0x2c3   :  { %s7106_s27 = sld [smem:[#allocation6 + $0x1d0]]  ;;  %v1492_v14 = vmul.f32 %v9784_v8, %v7073_v25  ;;  %v9787_v21 = vstv %s9775_s10 }
 0x2c4   :  { %s7114_s19 = sld [smem:[#allocation6 + $0x1d1]]  ;;  %v1496_v32 = vmul.f32 %v9787_v21, %v7101_v5  ;;  %v9788_v30 = vstv %s9778_s14  ;;  %v9800_v21 = vstv %s9574_s7 }
 0x2c5   :  { %9779 = sst [smem:[#allocation46_spill]] %s7097_s12  ;;  %v2184_v60 = vmul.f32 %v9788_v30, %v7073_v25  ;;  %v1493_v27 = vadd.f32 %v1492_v14, %v1489_v11  ;;  %v1794_v30 = vmul.f32 %v9800_v21, %v6865_v46 }
 0x2c6   :  { %s9789_s11 = sld [smem:[#allocation76_spill]] }
 0x2c7   :  { %s7122_s12 = sld [smem:[#allocation6 + $0x1d2]]  ;;  %v9792_v20 = vstv %s9781_s0  ;;  %v2185_v11 = vadd.f32 %v2184_v60, %v2181_v49  ;;  %v1497_v8 = vadd.f32 %v1496_v32, %v1493_v27  ;;  %v9804_v49 = vstv %s6425_s25  ;;  %v904_v60 = vpop.permute.xlu0 %903 }
 0x2c8   :  { %v1149_v63 = vmul.f32 %v9792_v20, %v7101_v5  ;;  %v9793_v10 = vstv %s9782_s8  ;;  %s9794_s5 = sld [smem:[#allocation96_spill]]  ;;  %v2792_v32 = vmul.f32 %v9804_v49, %v6683_v37 }
 0x2c9   :  { %9783 = sst [smem:[#allocation104_spill]] %s7106_s27  ;;  %v2188_v2 = vmul.f32 %v9793_v10, %v7101_v5  ;;  %v2789_v10 = vadd.f32 %v7017_v62, %v2785_v3 }
 0x2ca   :  { %9786 = sst [smem:[#allocation45_spill]] %s7114_s19  ;;  %v1150_v0 = vadd.f32 %v1149_v63, %v1146_v42  ;;  %v1795_v63 = vadd.f32 %v1794_v30, %v1791_v38 }
 0x2cb   :  { %s9790_s27 = sld [smem:[#allocation78_spill]]  ;;  %v2189_v34 = vadd.f32 %v2188_v2, %v2185_v11  ;;  %v7167_v2 = vsel %vm662_vm1, %v904_v60, %v907_v51 }
 0x2cc   :  { %s7130_s29 = sld [smem:[#allocation6 + $0x1d3]]  ;;  %v9798_v14 = vstv %s9789_s11 }
 0x2cd   :  { %9791 = sst [smem:[#allocation82_spill]] %s7122_s12  ;;  %v1500_v47 = vmul.f32 %v9798_v14, %v7134_v36 }
 0x2ce   :  { %s9796_s10 = sld [smem:[#allocation77_spill]]  ;;  %v9803_v6 = vstv %s9794_s5 }
 0x2cf   :  { %s7139_s14 = sld [smem:[#allocation6 + $0x1d4]]  ;;  %v2192_v54 = vmul.f32 %v9803_v6, %v7134_v36  ;;  %v1501_v7 = vadd.f32 %v1500_v47, %v1497_v8 }
 0x2d0   :  { %s9801_s8 = sld [smem:[#allocation79_spill]] }
 0x2d1   :  { %v9799_v23 = vstv %s9790_s27  ;;  %s7150_s0 = sld [smem:[#allocation6 + $0x1d5]] }
 0x2d2   :  { %9795 = sst [smem:[#allocation47_spill]] %s7130_s29  ;;  %v1153_v17 = vmul.f32 %v9799_v23, %v7134_v36  ;;  %v2193_v23 = vadd.f32 %v2192_v54, %v2189_v34  ;;  %v9820_v34 = vstv %s9576_s17  ;;  %v9821_v54 = vstv %s9578_s28 }
 0x2d3   :  { %s9806_s11 = sld [smem:[#allocation81_spill]]  ;;  %v1802_v6 = vmul.f32 %v9820_v34, %v6904_v56  ;;  %v1806_v49 = vmul.f32 %v9821_v54, %v6945_v24 }
 0x2d4   :  { %s7158_s29 = sld [smem:[#allocation6 + $0x1d6]]  ;;  %v9809_v27 = vstv %s9796_s10  ;;  %v1154_v42 = vadd.f32 %v1153_v17, %v1150_v0  ;;  %v1799_v0 = vadd.f32 %v6657_v48, %v1795_v63 }
 0x2d5   :  { %9797 = sst [smem:[#allocation83_spill]] %s7139_s14  ;;  %v1504_v20 = vmul.f32 %v9809_v27, %v7137_v18 }
 0x2d6   :  { %s9805_s14 = sld [smem:[#allocation80_spill]]  ;;  %v9811_v11 = vstv %s9801_s8  ;;  %v1803_v63 = vadd.f32 %v1802_v6, %v1799_v0 }
 0x2d7   :  { %9802 = sst [smem:[#allocation48_spill]] %s7150_s0  ;;  %v1157_v14 = vmul.f32 %v9811_v11, %v7137_v18  ;;  %v1505_v8 = vadd.f32 %v1504_v20, %v1501_v7  ;;  %v2793_v20 = vadd.f32 %v2792_v32, %v2789_v10  ;;  %v2800_v10 = vmul.f32 %v2799_v16, %v6724_v26 }
 0x2d8   :  { %s9808_s27 = sld [smem:[#allocation97_spill]] }
 0x2d9   :  { %s7164_s7 = sld [smem:[#allocation6 + $0x1d7]]  ;;  %v9815_v21 = vstv %s9806_s11  ;;  %v1158_v17 = vadd.f32 %v1157_v14, %v1154_v42  ;;  %v2797_v32 = vadd.f32 %v6523_v9, %v2793_v20  ;;  %v2804_v14 = vmul.f32 %v2803_v55, %v6753_v13 }
 0x2da   :  { %9807 = sst [smem:[#allocation50_spill]] %s7158_s29  ;;  %v1161_v62 = vmul.f32 %v9815_v21, %v7167_v2 }
 0x2db   :  { %s9812_s25 = sld [smem:[#allocation98_spill]]  ;;  %v2801_v21 = vadd.f32 %v2800_v10, %v2797_v32 }
 0x2dc   :  { %s7172_s5 = sld [smem:[#allocation6 + $0x1d8]]  ;;  %v9814_v47 = vstv %s9805_s14  ;;  %v7201_v48 = vadd.f32 %v1161_v62, %v1158_v17 }
 0x2dd   :  { %v1508_v38 = vmul.f32 %v9814_v47, %v7167_v2  ;;  %s9816_s10 = sld [smem:[#allocation99_spill]] }
 0x2de   :  { %v9817_v3 = vstv %s9808_s27  ;;  %s7183_s29 = sld [smem:[#allocation6 + $0x1d9]] }
 0x2df   :  { %9810 = sst [smem:[#allocation101_spill]] %s7164_s7  ;;  %v2196_v30 = vmul.f32 %v9817_v3, %v7137_v18  ;;  %v7194_v60 = vadd.f32 %v1508_v38, %v1505_v8  ;;  %v1807_v8 = vadd.f32 %v1806_v49, %v1803_v63  ;;  %v2805_v49 = vadd.f32 %v2804_v14, %v2801_v21 }
 0x2e0   :  { %s9818_s7 = sld [smem:[#allocation100_spill]]  ;;  %v2863_v14 = vstv %s6611_s26  ;;  %v2441_v21 = vstv %s6720_s3 }
 0x2e1   :  { %s7192_s14 = sld [smem:[#allocation6 + $0x1da]]  ;;  %v2197_v51 = vadd.f32 %v2196_v30, %v2193_v23  ;;  %v9823_v7 = vstv %s9812_s25  ;;  %v7219_v23 = vmul.f32 %v2835_v15, %v6606_v40 }
 0x2e2   :  { %9813 = sst [smem:[#allocation84_spill]] %s7172_s5  ;;  %v2200_v27 = vmul.f32 %v9823_v7, %v7167_v2 }
 0x2e3   :  { %s9824_s8 = sld [smem:[#allocation114_spill]]  ;;  %v2827_v42 = vstv %s9816_s10 }
 0x2e4   :  { %9819 = sst [smem:[#allocation49_spill]] %s7183_s29  ;;  %s9343_s29 = smov 82   ;;  %v7234_v15 = vadd.f32 %v2200_v27, %v2197_v51  ;;  %v9843_v51 = vstv %s9618_s22  ;;  %v9845_v27 = vstv %s9622_s4 }
 0x2e5   :  { %s7199_s11 = sld [smem:[#allocation6 + $0x1db]]  ;;  %1511 = vrot.lane.b32.xlu1 %v7194_v60, %s9343_s29  ;;  %1164 = vrot.lane.b32.xlu0 %v7201_v48, %s9343_s29  ;;  %v2808_v7 = vmul.f32 %v9843_v51, %v6757_v44  ;;  %v2812_v20 = vmul.f32 %v9845_v27, %v6792_v57 }
 0x2e6   :  { %s9826_s17 = sld [smem:[#allocation115_spill]]  ;;  %v2831_v11 = vstv %s9818_s7 }
 0x2e7   :  { %9822 = sst [smem:[#allocation51_spill]] %s7192_s14 }
 0x2e8   :  { %s9827_s28 = sld [smem:[#allocation103_spill]] }
 0x2e9   :  { %s7205_s27 = sld [smem:[#allocation6 + $0x1dc]]  ;;  %v9835_v9 = vstv %s9824_s8 }
 0x2ea   :  { %s9829_s14 = sld [smem:[#allocation105_spill]]  ;;  %v1810_v16 = vmul.f32 %v9835_v9, %v6949_v19  ;;  %v2437_v9 = vstv %s6710_s23 }
 0x2eb   :  { %9825 = sst [smem:[#allocation85_spill]] %s7199_s11 }
 0x2ec   :  { %s9830_s5 = sld [smem:[#allocation13_spill]]  ;;  %v9837_v47 = vstv %s9826_s17  ;;  %v1811_v30 = vadd.f32 %v1810_v16, %v1807_v8  ;;  %s9841_s17 = smov 82   ;;  %v2433_v8 = vstv %s6699_s16  ;;  %v2809_v16 = vadd.f32 %v2808_v7, %v2805_v49 }
 0x2ed   :  { %s9831_s25 = sld [smem:[#allocation106_spill]]  ;;  %v1814_v38 = vmul.f32 %v9837_v47, %v6986_v4  ;;  %2203 = vrot.lane.b32.xlu1 %v7234_v15, %s9841_s17  ;;  %v2434_v47 = vmul.f32 %v2433_v8, %v6631_v45  ;;  %v2438_v7 = vmul.f32 %v2437_v9, %v6627_v61 }
 0x2ee   :  { %s9832_s11 = sld [smem:[#allocation14_spill]]  ;;  %v2839_v55 = vstv %s9827_s28  ;;  %v2813_v27 = vadd.f32 %v2812_v20, %v2809_v16 }
 0x2ef   :  { %9828 = sst [smem:[#allocation21_spill]] %s7205_s27  ;;  %v1815_v63 = vadd.f32 %v1814_v38, %v1811_v30  ;;  %v2820_v38 = vmul.f32 %v2819_v59, %v6829_v43  ;;  %v2435_v49 = vadd.f32 %v2434_v47, %v6461_v31 }
 0x2f0   :  { %s9833_s27 = sld [smem:[#allocation15_spill]]  ;;  %v2843_v62 = vstv %s9829_s14  ;;  %v2817_v31 = vadd.f32 %v6811_v12, %v2813_v27 }
 0x2f1   :  { %s7221_s0 = sld [smem:[#allocation6 + $0x1dd]] }
 0x2f2   :  { %s9836_s9 = sld [smem:[#allocation116_spill]]  ;;  %v2847_v3 = vstv %s9830_s5  ;;  %v2821_v12 = vadd.f32 %v2820_v38, %v2817_v31 }
 0x2f3   :  { %s7232_s6 = sld [smem:[#allocation6 + $0x1de]]  ;;  %v2851_v17 = vstv %s9831_s25 }
 0x2f4   :  { %s9839_s15 = sld [smem:[#allocation117_spill]]  ;;  %v2855_v0 = vstv %s9832_s11 }
 0x2f5   :  { %s7238_s29 = sld [smem:[#allocation6 + $0x1df]]  ;;  %v7293_v9 = vmul.f32 %v2855_v0, %v6885_v22  ;;  %v2828_v0 = vmul.f32 %v2827_v42, %v6869_v52 }
 0x2f6   :  { %v2859_v34 = vstv %s9833_s27  ;;  %s7243_s8 = sld [smem:[#allocation6 + $0x186]] }
 0x2f7   :  { %9834 = sst [smem:[#allocation22_spill]] %s7221_s0 }
 0x2f8   :  { %v9842_v6 = vstv %s9836_s9  ;;  %s7256_s11 = sld [smem:[#allocation6 + $0x187]] }
 0x2f9   :  { %9838 = sst [smem:[#allocation52_spill]] %s7232_s6  ;;  %v1818_v54 = vmul.f32 %v9842_v6, %v6885_v22 }
 0x2fa   :  { %s9844_s6 = sld [smem:[#allocation16_spill]]  ;;  %v9848_v32 = vstv %s9839_s15 }
 0x2fb   :  { %9840 = sst [smem:[#allocation54_spill]] %s7238_s29  ;;  %v1822_v10 = vmul.f32 %v9848_v32, %v7027_v58  ;;  %v1819_v6 = vadd.f32 %v1818_v54, %v1815_v63  ;;  %v2442_v32 = vmul.f32 %v2441_v21, %v6687_v1  ;;  %v2824_v21 = vmul.f32 %v2823_v28, %v6825_v41 }
 0x2fc   :  { %s9846_s29 = sld [smem:[#allocation109_spill]] }
 0x2fd   :  { %s7263_s9 = sld [smem:[#allocation6 + $0x188]]  ;;  %v1823_v54 = vadd.f32 %v1822_v10, %v1819_v6  ;;  %v2439_v10 = vadd.f32 %v2438_v7, %v2435_v49  ;;  %v2825_v38 = vadd.f32 %v2824_v21, %v2821_v12  ;;  %v2832_v21 = vmul.f32 %v2831_v11, %v6865_v46 }
 0x2fe   :  { %9847 = sst [smem:[#allocation86_spill]] %s7256_s11  ;;  %v2465_v6 = vstv %s6772_s20 }
 0x2ff   :  { %s9850_s0 = sld [smem:[#allocation118_spill]]  ;;  %v2443_v27 = vadd.f32 %v2442_v32, %v2439_v10  ;;  %v2829_v12 = vadd.f32 %v2828_v0, %v2825_v38 }
 0x300   :  { %s9851_s22 = sld [smem:[#allocation119_spill]]  ;;  %v2867_v30 = vstv %s9844_s6 }
 0x301   :  { %s9852_s12 = sld [smem:[#allocation18_spill]]  ;;  %v2833_v38 = vadd.f32 %v2832_v21, %v2829_v12 }
 0x302   :  { %s7268_s4 = sld [smem:[#allocation6 + $0x189]] }
 0x303   :  { %9849 = sst [smem:[#allocation56_spill]] %s7263_s9  ;;  %v2837_v21 = vadd.f32 %v7219_v23, %v2833_v38  ;;  %v2852_v23 = vmul.f32 %v2851_v17, %v6986_v4  ;;  %v9886_v38 = vstv %s9846_s29 }
 0x304   :  { %s9854_s15 = sld [smem:[#allocation110_spill]]  ;;  %v7392_v17 = vmul.f32 %v9886_v38, %v7062_v50  ;;  %v3479_v38 = vstv %s7002_s21 }
 0x305   :  { %s7275_s16 = sld [smem:[#allocation6 + $0x18a]]  ;;  %v9859_v59 = vstv %s9850_s0 }
 0x306   :  { %s9856_s23 = sld [smem:[#allocation111_spill]]  ;;  %v1826_v63 = vmul.f32 %v9859_v59, %v7023_v29  ;;  %v9860_v8 = vstv %s9851_s22 }
 0x307   :  { %s9857_s3 = sld [smem:[#allocation24_spill]]  ;;  %v1830_v51 = vmul.f32 %v9860_v8, %v7066_v53  ;;  %v2445_v20 = vstv %s9852_s12 }
 0x308   :  { %9853 = sst [smem:[#allocation58_spill]] %s7268_s4  ;;  %v1827_v47 = vadd.f32 %v1826_v63, %v1823_v54  ;;  %v2446_v49 = vmul.f32 %v2445_v20, %v6683_v37 }
 0x309   :  { %s7280_s4 = sld [smem:[#allocation6 + $0x18b]] }
 0x30a   :  { %s7289_s24 = sld [smem:[#allocation6 + $0x18c]]  ;;  %v2875_v16 = vstv %s9854_s15  ;;  %v1831_v7 = vadd.f32 %v1830_v51, %v1827_v47  ;;  %v2447_v42 = vadd.f32 %v2446_v49, %v2443_v27 }
 0x30b   :  { %9855 = sst [smem:[#allocation23_spill]] %s7275_s16 }
 0x30c   :  { %s9862_s16 = sld [smem:[#allocation120_spill]] }
 0x30d   :  { %s9863_s19 = sld [smem:[#allocation26_spill]]  ;;  %v2449_v59 = vstv %s9857_s3 }
 0x30e   :  { %s7296_s9 = sld [smem:[#allocation6 + $0x18d]]  ;;  %v2450_v32 = vmul.f32 %v2449_v59, %v6472_v33 }
 0x30f   :  { %9858 = sst [smem:[#allocation87_spill]] %s7280_s4 }
 0x310   :  { %9861 = sst [smem:[#allocation57_spill]] %s7289_s24  ;;  %v2451_v27 = vadd.f32 %v2450_v32, %v2447_v42 }
 0x311   :  { %s9864_s4 = sld [smem:[#allocation19_spill]] }
 0x312   :  { %s9866_s0 = sld [smem:[#allocation112_spill]]  ;;  %v9870_v54 = vstv %s9862_s16 }
 0x313   :  { %s7303_s12 = sld [smem:[#allocation6 + $0x18e]]  ;;  %v1834_v28 = vmul.f32 %v9870_v54, %v7062_v50  ;;  %v2453_v63 = vstv %s9863_s19 }
 0x314   :  { %9865 = sst [smem:[#allocation59_spill]] %s7296_s9  ;;  %v2454_v59 = vmul.f32 %v2453_v63, %v6724_v26 }
 0x315   :  { %s9868_s22 = sld [smem:[#allocation121_spill]]  ;;  %v1835_v20 = vadd.f32 %v1834_v28, %v1831_v7 }
 0x316   :  { %s9869_s24 = sld [smem:[#allocation122_spill]]  ;;  %v2455_v42 = vadd.f32 %v2454_v59, %v2451_v27  ;;  %v2466_v27 = vmul.f32 %v2465_v6, %v6792_v57 }
 0x317   :  { %s7309_s9 = sld [smem:[#allocation6 + $0x18f]]  ;;  %v2457_v8 = vstv %s9864_s4 }
 0x318   :  { %s7316_s30 = sld [smem:[#allocation6 + $0x190]]  ;;  %v2883_v31 = vstv %s9866_s0  ;;  %v2458_v49 = vmul.f32 %v2457_v8, %v6753_v13 }
 0x319   :  { %9867 = sst [smem:[#allocation88_spill]] %s7303_s12 }
 0x31a   :  { %s9871_s3 = sld [smem:[#allocation123_spill]]  ;;  %v2459_v12 = vadd.f32 %v2458_v49, %v2455_v42  ;;  %v2860_v49 = vmul.f32 %v2859_v34, %v7027_v58 }
 0x31b   :  { %s9872_s10 = sld [smem:[#allocation25_spill]]  ;;  %v9874_v51 = vstv %s9868_s22 }
 0x31c   :  { %s7320_s12 = sld [smem:[#allocation6 + $0x191]]  ;;  %v1838_v10 = vmul.f32 %v9874_v51, %v7073_v25  ;;  %v9875_v47 = vstv %s9869_s24 }
 0x31d   :  { %s9873_s11 = sld [smem:[#allocation124_spill]]  ;;  %v1842_v54 = vmul.f32 %v9875_v47, %v7101_v5 }
 0x31e   :  { %s9876_s19 = sld [smem:[#allocation113_spill]]  ;;  %v1839_v7 = vadd.f32 %v1838_v10, %v1835_v20  ;;  %v2840_v10 = vmul.f32 %v2839_v55, %v6904_v56  ;;  %v2848_v55 = vmul.f32 %v2847_v3, %v6949_v19  ;;  %v2864_v3 = vmul.f32 %v2863_v14, %v7023_v29 }
 0x31f   :  { %s7331_s4 = sld [smem:[#allocation6 + $0x192]] }
 0x320   :  { %s9878_s16 = sld [smem:[#allocation125_spill]]  ;;  %v9879_v28 = vstv %s9871_s3  ;;  %v1843_v8 = vadd.f32 %v1842_v54, %v1839_v7 }
 0x321   :  { %s7335_s0 = sld [smem:[#allocation6 + $0x193]]  ;;  %v1846_v51 = vmul.f32 %v9879_v28, %v7134_v36  ;;  %v2461_v47 = vstv %s9872_s10  ;;  %v2844_v28 = vmul.f32 %v2843_v62, %v6945_v24 }
 0x322   :  { %s7342_s7 = sld [smem:[#allocation6 + $0x194]]  ;;  %v2462_v54 = vmul.f32 %v2461_v47, %v6757_v44  ;;  %v7387_v47 = vmul.f32 %v2867_v30, %v7066_v53  ;;  %v7405_v30 = vmul.f32 %v2875_v16, %v7073_v25 }
 0x323   :  { %v9880_v11 = vstv %s9873_s11  ;;  %s9881_s24 = sld [smem:[#allocation34_spill]]  ;;  %v1847_v59 = vadd.f32 %v1846_v51, %v1843_v8 }
 0x324   :  { %v1850_v0 = vmul.f32 %v9880_v11, %v7137_v18  ;;  %v2887_v63 = vstv %s9876_s19  ;;  %s9882_s22 = sld [smem:[#allocation27_spill]]  ;;  %v2841_v11 = vadd.f32 %v2840_v10, %v2837_v21  ;;  %v2463_v6 = vadd.f32 %v2462_v54, %v2459_v12 }
 0x325   :  { %9877 = sst [smem:[#allocation60_spill]] %s7331_s4  ;;  %v9891_v21 = vstv %s9856_s23  ;;  %v7417_v54 = vmul.f32 %v2883_v31, %v7134_v36  ;;  %v7424_v16 = vmul.f32 %v2887_v63, %v7137_v18 }
 0x326   :  { %s7348_s4 = sld [smem:[#allocation6 + $0x195]]  ;;  %v9883_v32 = vstv %s9878_s16  ;;  %v1851_v51 = vadd.f32 %v1850_v0, %v1847_v59  ;;  %v2845_v34 = vadd.f32 %v2844_v28, %v2841_v11  ;;  %v2467_v42 = vadd.f32 %v2466_v27, %v2463_v6 }
 0x327   :  { %v1854_v20 = vmul.f32 %v9883_v32, %v7167_v2  ;;  %s7359_s20 = sld [smem:[#allocation6 + $0x196]]  ;;  %v7414_v12 = vmul.f32 %v9891_v21, %v7101_v5  ;;  %v3468_v59 = vstv %s6972_s1 }
 0x328   :  { %s7364_s11 = sld [smem:[#allocation6 + $0x197]]  ;;  %v2849_v28 = vadd.f32 %v2848_v55, %v2845_v34  ;;  %v3471_v55 = vstv %s6982_s2  ;;  %v3469_v6 = vmul.f32 %v3468_v59, %v6398_v39 }
 0x329   :  { %v2469_v7 = vstv %s9881_s24  ;;  %s7371_s14 = sld [smem:[#allocation6 + $0x198]]  ;;  %v7400_v14 = vadd.f32 %v1854_v20, %v1851_v51  ;;  %v3472_v63 = vmul.f32 %v3471_v55, %v6631_v45  ;;  %v3475_v51 = vstv %s6991_s18 }
 0x32a   :  { %v2473_v62 = vstv %s9882_s22  ;;  %s9884_s28 = sld [smem:[#allocation35_spill]]  ;;  %v2470_v8 = vmul.f32 %v2469_v7, %v6536_v35  ;;  %v2853_v31 = vadd.f32 %v2852_v23, %v2849_v28  ;;  %v3480_v28 = vmul.f32 %v3479_v38, %v6687_v1 }
 0x32b   :  { %s9885_s3 = sld [smem:[#allocation28_spill]]  ;;  %v2474_v0 = vmul.f32 %v2473_v62, %v6829_v43  ;;  %1857 = vrot.lane.b32.xlu0 %v7400_v14, %s9841_s17 }
 0x32c   :  { %s7379_s10 = sld [smem:[#allocation6 + $0x199]]  ;;  %v2471_v27 = vadd.f32 %v2470_v8, %v2467_v42  ;;  %v2857_v23 = vadd.f32 %v7293_v9, %v2853_v31 }
 0x32d   :  { %s7394_s5 = sld [smem:[#allocation6 + $0x19a]] }
 0x32e   :  { %s9888_s27 = sld [smem:[#allocation29_spill]]  ;;  %v2475_v7 = vadd.f32 %v2474_v0, %v2471_v27  ;;  %v2861_v21 = vadd.f32 %v2860_v49, %v2857_v23 }
 0x32f   :  { %s7398_s26 = sld [smem:[#allocation6 + $0x19b]] }
 0x330   :  { %v2477_v32 = vstv %s9884_s28  ;;  %s7409_s29 = sld [smem:[#allocation6 + $0x19c]] }
 0x331   :  { %v2481_v10 = vstv %s9885_s3  ;;  %s7419_s25 = sld [smem:[#allocation6 + $0x19d]]  ;;  %v2478_v62 = vmul.f32 %v2477_v32, %v6825_v41  ;;  %v3473_v32 = vadd.f32 %v3472_v63, %v3469_v6 }
 0x332   :  { %s9893_s6 = sld [smem:[#allocation30_spill]]  ;;  %v2482_v11 = vmul.f32 %v2481_v10, %v6869_v52  ;;  %v3476_v10 = vmul.f32 %v3475_v51, %v6627_v61 }
 0x333   :  { %9887 = sst [smem:[#allocation61_spill]] %s7394_s5  ;;  %v2479_v34 = vadd.f32 %v2478_v62, %v2475_v7  ;;  %v2865_v62 = vadd.f32 %v2864_v3, %v2861_v21 }
 0x334   :  { %v2485_v20 = vstv %s9888_s27  ;;  %s7429_s15 = sld [smem:[#allocation6 + $0x19e]]  ;;  %v3477_v7 = vadd.f32 %v3476_v10, %v3473_v32 }
 0x335   :  { %9889 = sst [smem:[#allocation89_spill]] %s7398_s26  ;;  %v2486_v42 = vmul.f32 %v2485_v20, %v6865_v46  ;;  %v2483_v27 = vadd.f32 %v2482_v11, %v2479_v34  ;;  %v2869_v34 = vadd.f32 %v7387_v47, %v2865_v62 }
 0x336   :  { %9890 = sst [smem:[#allocation107_spill]] %s7409_s29  ;;  %v3481_v38 = vadd.f32 %v3480_v28, %v3477_v7 }
 0x337   :  { %9892 = sst [smem:[#allocation64_spill]] %s7419_s25  ;;  %v2487_v6 = vadd.f32 %v2486_v42, %v2483_v27  ;;  %v2873_v21 = vadd.f32 %v7392_v17, %v2869_v34 }
 0x338   :  { %s9895_s23 = sld [smem:[#allocation42_spill]]  ;;  %v2489_v8 = vstv %s9893_s6 }
 0x339   :  { %s7433_s19 = sld [smem:[#allocation6 + $0x19f]]  ;;  %v2490_v55 = vmul.f32 %v2489_v8, %v6606_v40  ;;  %v2877_v62 = vadd.f32 %v7405_v30, %v2873_v21 }
 0x33a   :  { %9894 = sst [smem:[#allocation66_spill]] %s7429_s15 }
 0x33b   :  { %s9897_s16 = sld [smem:[#allocation31_spill]]  ;;  %v2491_v3 = vadd.f32 %v2490_v55, %v2487_v6  ;;  %v2881_v34 = vadd.f32 %v7414_v12, %v2877_v62 }
 0x33c   :  { %s9898_s1 = sld [smem:[#allocation39_spill]] }
 0x33d   :  { %s7439_s2 = sld [smem:[#allocation6 + $0x1a0]]  ;;  %v2885_v12 = vadd.f32 %v7417_v54, %v2881_v34 }
 0x33e   :  { %s9900_s24 = sld [smem:[#allocation17_spill]]  ;;  %v2493_v0 = vstv %s9895_s23 }
 0x33f   :  { %9896 = sst [smem:[#allocation108_spill]] %s7433_s19  ;;  %v2494_v49 = vmul.f32 %v2493_v0, %v6904_v56 }
 0x340   :  { %s9901_s22 = sld [smem:[#allocation43_spill]] }
 0x341   :  { %s7444_s28 = sld [smem:[#allocation6 + $0x1a1]]  ;;  %v2497_v9 = vstv %s9897_s16  ;;  %v2495_v27 = vadd.f32 %v2494_v49, %v2491_v3 }
 0x342   :  { %s9903_s18 = sld [smem:[#allocation74_spill]]  ;;  %v3483_v59 = vstv %s9898_s1  ;;  %v2498_v11 = vmul.f32 %v2497_v9, %v6945_v24 }
 0x343   :  { %9899 = sst [smem:[#allocation65_spill]] %s7439_s2  ;;  %v3484_v23 = vmul.f32 %v3483_v59, %v6683_v37 }
 0x344   :  { %s7449_s21 = sld [smem:[#allocation6 + $0x1a2]]  ;;  %v2891_v20 = vstv %s9900_s24  ;;  %v2499_v6 = vadd.f32 %v2498_v11, %v2495_v27 }
 0x345   :  { %s9905_s3 = sld [smem:[#allocation126_spill]]  ;;  %v3485_v10 = vadd.f32 %v3484_v23, %v3481_v38  ;;  %v2892_v49 = vmul.f32 %v2891_v20, %v7167_v2 }
 0x346   :  { %s7453_s27 = sld [smem:[#allocation6 + $0x1a3]]  ;;  %v2501_v31 = vstv %s9901_s22 }
 0x347   :  { %9902 = sst [smem:[#allocation90_spill]] %s7444_s28  ;;  %v2502_v0 = vmul.f32 %v2501_v31, %v6949_v19 }
 0x348   :  { %s9907_s6 = sld [smem:[#allocation40_spill]]  ;;  %v3487_v63 = vstv %s9903_s18 }
 0x349   :  { %s9908_s23 = sld [smem:[#allocation41_spill]]  ;;  %v3488_v28 = vmul.f32 %v3487_v63, %v6472_v33  ;;  %v2503_v30 = vadd.f32 %v2502_v0, %v2499_v6 }
 0x34a   :  { %9904 = sst [smem:[#allocation67_spill]] %s7449_s21 }
 0x34b   :  { %s7458_s28 = sld [smem:[#allocation6 + $0x3c]]  ;;  %v2505_v51 = vstv %s9905_s3  ;;  %v3489_v55 = vadd.f32 %v3488_v28, %v3485_v10  ;;  %v3511_v28 = vstv %s7081_s13 }
 0x34c   :  { %9906 = sst [smem:[#allocation91_spill]] %s7453_s27  ;;  %v2506_v47 = vmul.f32 %v2505_v51, %v6986_v4  ;;  %v3512_v62 = vmul.f32 %v3511_v28, %v6829_v43 }
 0x34d   :  { %s9909_s2 = sld [smem:[#allocation32_spill]] }
 0x34e   :  { %s7462_s21 = sld [smem:[#allocation6 + $0x3d]]  ;;  %v3491_v8 = vstv %s9907_s6  ;;  %v2507_v10 = vadd.f32 %v2506_v47, %v2503_v30 }
 0x34f   :  { %s9910_s16 = sld [smem:[#allocation127_spill]]  ;;  %v3495_v42 = vstv %s9908_s23  ;;  %v3492_v31 = vmul.f32 %v3491_v8, %v6724_v26 }
 0x350   :  { %s7467_s1 = sld [smem:[#allocation6 + $0x3e]]  ;;  %v3496_v7 = vmul.f32 %v3495_v42, %v6753_v13 }
 0x351   :  { %s9911_s24 = sld [smem:[#allocation33_spill]]  ;;  %v3493_v23 = vadd.f32 %v3492_v31, %v3489_v55  ;;  %v2889_v55 = vadd.f32 %v7424_v16, %v2885_v12  ;;  %v3122_v12 = vstv %s7243_s8 }
 0x352   :  { %s7472_s22 = sld [smem:[#allocation6 + $0x3f]] }
 0x353   :  { %v2509_v32 = vstv %s9909_s2  ;;  %s9912_s18 = sld [smem:[#allocation75_spill]]  ;;  %v3497_v20 = vadd.f32 %v3496_v7, %v3493_v23 }
 0x354   :  { %s9913_s3 = sld [smem:[#allocation20_spill]]  ;;  %v2510_v51 = vmul.f32 %v2509_v32, %v6885_v22 }
 0x355   :  { %s7477_s27 = sld [smem:[#allocation6 + $0x40]]  ;;  %v2513_v9 = vstv %s9910_s16 }
 0x356   :  { %s9914_s19 = sld [smem:[#allocation62_spill]]  ;;  %v2514_v11 = vmul.f32 %v2513_v9, %v7027_v58  ;;  %v2511_v31 = vadd.f32 %v2510_v51, %v2507_v10 }
 0x357   :  { %s7482_s6 = sld [smem:[#allocation6 + $0x41]]  ;;  %v2517_v59 = vstv %s9911_s24 }
 0x358   :  { %s7487_s2 = sld [smem:[#allocation6 + $0x42]]  ;;  %v2518_v3 = vmul.f32 %v2517_v59, %v7023_v29 }
 0x359   :  { %v3499_v63 = vstv %s9912_s18  ;;  %s9915_s23 = sld [smem:[#allocation128_spill]] }
 0x35a   :  { %v3503_v17 = vstv %s9913_s3  ;;  %s7492_s15 = sld [smem:[#allocation6 + $0x43]]  ;;  %v3500_v8 = vmul.f32 %v3499_v63, %v6757_v44 }
 0x35b   :  { %s7497_s16 = sld [smem:[#allocation6 + $0x44]]  ;;  %v3504_v42 = vmul.f32 %v3503_v17, %v6792_v57  ;;  %v7529_v17 = vadd.f32 %v2892_v49, %v2889_v55 }
 0x35c   :  { %v2521_v38 = vstv %s9914_s19  ;;  %s9917_s24 = sld [smem:[#allocation36_spill]]  ;;  %v3501_v59 = vadd.f32 %v3500_v8, %v3497_v20 }
 0x35d   :  { %s9918_s25 = sld [smem:[#allocation38_spill]]  ;;  %v2522_v0 = vmul.f32 %v2521_v38, %v7066_v53  ;;  %9931 = vst [vmem:[#allocation129_spill] sm:$0xff] %v7529_v17  ;;  %v2515_v38 = vadd.f32 %v2514_v11, %v2511_v31  ;;  %2895 = vrot.lane.b32.xlu1 %v7529_v17, %s9841_s17 }
 0x35e   :  { %s9919_s18 = sld [smem:[#allocation102_spill]]  ;;  %v3505_v47 = vadd.f32 %v3504_v42, %v3501_v59 }
 0x35f   :  { %s7502_s3 = sld [smem:[#allocation6 + $0x45]]  ;;  %v3507_v32 = vstv %s9915_s23  ;;  %v2519_v49 = vadd.f32 %v2518_v3, %v2515_v38  ;;  %v3123_v3 = vmul.f32 %v3122_v12, %v6398_v39 }
 0x360   :  { %s9921_s19 = sld [smem:[#allocation63_spill]]  ;;  %v3508_v54 = vmul.f32 %v3507_v32, %v6536_v35 }
 0x361   :  { %9916 = sst [smem:[#allocation68_spill]] %s7497_s16 }
 0x362   :  { %s7507_s29 = sld [smem:[#allocation6 + $0x46]]  ;;  %v2525_v21 = vstv %s9917_s24  ;;  %v3509_v20 = vadd.f32 %v3508_v54, %v3505_v47 }
 0x363   :  { %s9923_s16 = sld [smem:[#allocation44_spill]]  ;;  %v2529_v27 = vstv %s9918_s25  ;;  %v2526_v16 = vmul.f32 %v2525_v21, %v7062_v50  ;;  %v2523_v21 = vadd.f32 %v2522_v0, %v2519_v49 }
 0x364   :  { %s9924_s26 = sld [smem:[#allocation46_spill]]  ;;  %v2533_v9 = vstv %s9919_s18  ;;  %v2530_v51 = vmul.f32 %v2529_v27, %v7073_v25  ;;  %v3513_v32 = vadd.f32 %v3512_v62, %v3509_v20 }
 0x365   :  { %9920 = sst [smem:[#allocation70_spill]] %s7502_s3  ;;  %v2534_v23 = vmul.f32 %v2533_v9, %v7101_v5  ;;  %v2527_v54 = vadd.f32 %v2526_v16, %v2523_v21 }
 0x366   :  { %s7512_s5 = sld [smem:[#allocation6 + $0x47]]  ;;  %v2537_v7 = vstv %s9921_s19 }
 0x367   :  { %s7517_s3 = sld [smem:[#allocation6 + $0x48]]  ;;  %v2538_v34 = vmul.f32 %v2537_v7, %v7134_v36  ;;  %v2531_v49 = vadd.f32 %v2530_v51, %v2527_v54 }
 0x368   :  { %9922 = sst [smem:[#allocation92_spill]] %s7507_s29 }
 0x369   :  { %s9927_s23 = sld [smem:[#allocation12_spill]]  ;;  %v3515_v6 = vstv %s9923_s16 }
 0x36a   :  { %s7522_s29 = sld [smem:[#allocation6 + $0x49]]  ;;  %v3519_v63 = vstv %s9924_s26  ;;  %v3516_v8 = vmul.f32 %v3515_v6, %v6825_v41 }
 0x36b   :  { %s9929_s13 = sld [smem:[#allocation37_spill]]  ;;  %v3520_v42 = vmul.f32 %v3519_v63, %v6869_v52 }
 0x36c   :  { %9925 = sst [smem:[#allocation69_spill]] %s7512_s5  ;;  %v3517_v59 = vadd.f32 %v3516_v8, %v3513_v32 }
 0x36d   :  { %9926 = sst [smem:[#allocation71_spill]] %s7517_s3 }
 0x36e   :  { %s7527_s25 = sld [smem:[#allocation6 + $0x4a]]  ;;  %v3521_v63 = vadd.f32 %v3520_v42, %v3517_v59 }
 0x36f   :  { %s9932_s24 = sld [smem:[#allocation86_spill]]  ;;  %v2541_v30 = vstv %s9927_s23 }
 0x370   :  { %9928 = sst [smem:[#allocation93_spill]] %s7522_s29  ;;  %v2542_v6 = vmul.f32 %v2541_v30, %v7137_v18 }
 0x371   :  { %s9933_s18 = sld [smem:[#allocation56_spill]]  ;;  %v2545_v11 = vstv %s9929_s13 }
 0x372   :  { %s7533_s19 = sld [smem:[#allocation6 + $0x4b]]  ;;  %v2546_v16 = vmul.f32 %v2545_v11, %v7167_v2 }
 0x373   :  { %s9935_s16 = sld [smem:[#allocation104_spill]] }
 0x374   :  { %9930 = sst [smem:[#allocation53_spill]] %s7527_s25 }
 0x375   :  { %s7538_s26 = sld [smem:[#allocation6 + $0x4c]]  ;;  %v3125_v10 = vstv %s9932_s24 }
 0x376   :  { %s9937_s25 = sld [smem:[#allocation45_spill]]  ;;  %v3126_v9 = vmul.f32 %v3125_v10, %v6631_v45 }
 0x377   :  { %s9938_s29 = sld [smem:[#allocation82_spill]]  ;;  %v3129_v28 = vstv %s9933_s18 }
 0x378   :  { %9934 = sst [smem:[#allocation55_spill]] %s7533_s19  ;;  %v3127_v47 = vadd.f32 %v3126_v9, %v3123_v3  ;;  %v3130_v62 = vmul.f32 %v3129_v28, %v6627_v61  ;;  %v2535_v28 = vadd.f32 %v2534_v23, %v2531_v49 }
 0x379   :  { %s9939_s19 = sld [smem:[#allocation58_spill]]  ;;  %v3523_v27 = vstv %s9935_s16 }
 0x37a   :  { %s7545_s3 = sld [smem:[#allocation6 + $0x4d]]  ;;  %v3524_v38 = vmul.f32 %v3523_v27, %v6865_v46  ;;  %v3131_v32 = vadd.f32 %v3130_v62, %v3127_v47 }
 0x37b   :  { %9936 = sst [smem:[#allocation72_spill]] %s7538_s26 }
 0x37c   :  { %s7550_s23 = sld [smem:[#allocation6 + $0x4e]]  ;;  %v3527_v55 = vstv %s9937_s25  ;;  %v3525_v12 = vadd.f32 %v3524_v38, %v3521_v63 }
 0x37d   :  { %s9941_s13 = sld [smem:[#allocation23_spill]]  ;;  %v3531_v31 = vstv %s9938_s29  ;;  %v3528_v30 = vmul.f32 %v3527_v55, %v6606_v40  ;;  %v2539_v55 = vadd.f32 %v2538_v34, %v2535_v28 }
 0x37e   :  { %s7555_s26 = sld [smem:[#allocation6 + $0x4f]]  ;;  %v3532_v42 = vmul.f32 %v3531_v31, %v6904_v56 }
 0x37f   :  { %s9942_s5 = sld [smem:[#allocation47_spill]]  ;;  %v3133_v7 = vstv %s9939_s19  ;;  %v3529_v27 = vadd.f32 %v3528_v30, %v3525_v12  ;;  %v2543_v63 = vadd.f32 %v2542_v6, %v2539_v55  ;;  %v3157_v12 = vstv %s7309_s9 }
 0x380   :  { %9940 = sst [smem:[#allocation94_spill]] %s7545_s3  ;;  %v3134_v0 = vmul.f32 %v3133_v7, %v6687_v1 }
 0x381   :  { %s7560_s3 = sld [smem:[#allocation6 + $0x50]]  ;;  %v3533_v54 = vadd.f32 %v3532_v42, %v3529_v27  ;;  %v7607_v30 = vadd.f32 %v2546_v16, %v2543_v63 }
 0x382   :  { %s9944_s8 = sld [smem:[#allocation87_spill]]  ;;  %v3135_v51 = vadd.f32 %v3134_v0, %v3131_v32 }
 0x383   :  { %s7564_s24 = sld [smem:[#allocation6 + $0x51]]  ;;  %v3137_v20 = vstv %s9941_s13  ;;  %2549 = vrot.lane.b32.xlu0 %v7607_v30, %s9841_s17 }
 0x384   :  { %s9946_s18 = sld [smem:[#allocation83_spill]]  ;;  %v3138_v11 = vmul.f32 %v3137_v20, %v6683_v37 }
 0x385   :  { %s7569_s29 = sld [smem:[#allocation6 + $0x52]]  ;;  %v3535_v8 = vstv %s9942_s5 }
 0x386   :  { %s9948_s25 = sld [smem:[#allocation57_spill]]  ;;  %v3536_v3 = vmul.f32 %v3535_v8, %v6945_v24  ;;  %v3139_v7 = vadd.f32 %v3138_v11, %v3135_v51 }
 0x387   :  { %9943 = sst [smem:[#allocation73_spill]] %s7560_s3 }
 0x388   :  { %s9949_s19 = sld [smem:[#allocation59_spill]]  ;;  %v3141_v10 = vstv %s9944_s8  ;;  %v3537_v49 = vadd.f32 %v3536_v3, %v3533_v54 }
 0x389   :  { %9945 = sst [smem:[#allocation95_spill]] %s7564_s24  ;;  %v3142_v23 = vmul.f32 %v3141_v10, %v6472_v33 }
 0x38a   :  { %s7573_s16 = sld [smem:[#allocation6 + $0x53]]  ;;  %v3539_v21 = vstv %s9946_s18 }
 0x38b   :  { %9947 = sst [smem:[#allocation76_spill]] %s7569_s29  ;;  %v3540_v47 = vmul.f32 %v3539_v21, %v6949_v19  ;;  %v3143_v38 = vadd.f32 %v3142_v23, %v3139_v7  ;;  %v3165_v7 = vstv %s7320_s12 }
 0x38c   :  { %s9951_s24 = sld [smem:[#allocation48_spill]]  ;;  %v3145_v9 = vstv %s9948_s25 }
 0x38d   :  { %s7578_s3 = sld [smem:[#allocation6 + $0x54]]  ;;  %v3146_v34 = vmul.f32 %v3145_v9, %v6724_v26  ;;  %v3541_v28 = vadd.f32 %v3540_v47, %v3537_v49  ;;  %v3158_v9 = vmul.f32 %v3157_v12, %v6792_v57 }
 0x38e   :  { %s9953_s13 = sld [smem:[#allocation50_spill]]  ;;  %v3149_v59 = vstv %s9949_s19 }
 0x38f   :  { %s9954_s29 = sld [smem:[#allocation101_spill]]  ;;  %v3150_v20 = vmul.f32 %v3149_v59, %v6753_v13  ;;  %v3147_v10 = vadd.f32 %v3146_v34, %v3143_v38 }
 0x390   :  { %9950 = sst [smem:[#allocation78_spill]] %s7573_s16 }
 0x391   :  { %s7582_s5 = sld [smem:[#allocation6 + $0x55]]  ;;  %v3151_v27 = vadd.f32 %v3150_v20, %v3147_v10 }
 0x392   :  { %s7587_s16 = sld [smem:[#allocation6 + $0x56]]  ;;  %v3543_v31 = vstv %s9951_s24 }
 0x393   :  { %9952 = sst [smem:[#allocation96_spill]] %s7578_s3  ;;  %v3544_v8 = vmul.f32 %v3543_v31, %v6986_v4  ;;  %v3161_v31 = vstv %s7316_s30 }
 0x394   :  { %s9957_s8 = sld [smem:[#allocation88_spill]]  ;;  %v3547_v62 = vstv %s9953_s13 }
 0x395   :  { %s7591_s18 = sld [smem:[#allocation6 + $0x57]]  ;;  %v3551_v0 = vstv %s9954_s29  ;;  %v3548_v6 = vmul.f32 %v3547_v62, %v6885_v22  ;;  %v3545_v59 = vadd.f32 %v3544_v8, %v3541_v28  ;;  %v3162_v8 = vmul.f32 %v3161_v31, %v6536_v35 }
 0x396   :  { %s9960_s25 = sld [smem:[#allocation84_spill]]  ;;  %v3552_v42 = vmul.f32 %v3551_v0, %v7027_v58  ;;  %v3173_v28 = vstv %s7335_s0 }
 0x397   :  { %9955 = sst [smem:[#allocation77_spill]] %s7582_s5  ;;  %v3549_v0 = vadd.f32 %v3548_v6, %v3545_v59  ;;  %v1264_v59 = vstv %s7467_s1 }
 0x398   :  { %9956 = sst [smem:[#allocation79_spill]] %s7587_s16 }
 0x399   :  { %s7596_s5 = sld [smem:[#allocation6 + $0x58]]  ;;  %v3553_v12 = vadd.f32 %v3552_v42, %v3549_v0 }
 0x39a   :  { %s9961_s19 = sld [smem:[#allocation49_spill]]  ;;  %v3153_v32 = vstv %s9957_s8 }
 0x39b   :  { %9958 = sst [smem:[#allocation80_spill]] %s7591_s18  ;;  %v3154_v3 = vmul.f32 %v3153_v32, %v6757_v44  ;;  %v3166_v32 = vmul.f32 %v3165_v7, %v6829_v43 }
 0x39c   :  { %s9962_s24 = sld [smem:[#allocation51_spill]]  ;;  %v3555_v21 = vstv %s9960_s25 }
 0x39d   :  { %s7600_s16 = sld [smem:[#allocation6 + $0x59]]  ;;  %v3556_v23 = vmul.f32 %v3555_v21, %v7023_v29  ;;  %v3155_v62 = vadd.f32 %v3154_v3, %v3151_v27  ;;  %v1257_v3 = vstv %s7458_s28 }
 0x39e   :  { %s9964_s18 = sld [smem:[#allocation85_spill]]  ;;  %v1258_v31 = vmul.f32 %v1257_v3, %v6398_v39 }
 0x39f   :  { %9959 = sst [smem:[#allocation81_spill]] %s7596_s5  ;;  %v3159_v49 = vadd.f32 %v3158_v9, %v3155_v62  ;;  %v3557_v27 = vadd.f32 %v3556_v23, %v3553_v12  ;;  %v1260_v9 = vstv %s7462_s21  ;;  %v3181_v23 = vstv %s7348_s4 }
 0x3a0   :  { %s7605_s29 = sld [smem:[#allocation6]]  ;;  %v3559_v51 = vstv %s9961_s19  ;;  %v1261_v7 = vmul.f32 %v1260_v9, %v6631_v45 }
 0x3a1   :  { %s9965_s13 = sld [smem:[#allocation21_spill]]  ;;  %v3560_v54 = vmul.f32 %v3559_v51, %v7066_v53  ;;  %v3163_v51 = vadd.f32 %v3162_v8, %v3159_v49  ;;  %v1265_v8 = vmul.f32 %v1264_v59, %v6627_v61  ;;  %v3189_v59 = vstv %s7364_s11 }
 0x3a2   :  { %s7611_s5 = sld [smem:[#allocation6 + $0x1]]  ;;  %v3563_v11 = vstv %s9962_s24  ;;  %v1262_v49 = vadd.f32 %v1261_v7, %v1258_v31 }
 0x3a3   :  { %9963 = sst [smem:[#allocation97_spill]] %s7600_s16  ;;  %v3564_v47 = vmul.f32 %v3563_v11, %v7062_v50  ;;  %v3167_v42 = vadd.f32 %v3166_v32, %v3163_v51  ;;  %v3561_v62 = vadd.f32 %v3560_v54, %v3557_v27  ;;  %v3185_v27 = vstv %s7359_s20 }
 0x3a4   :  { %s7616_s8 = sld [smem:[#allocation6 + $0x2]]  ;;  %v3567_v16 = vstv %s9964_s18  ;;  %v1266_v3 = vadd.f32 %v1265_v8, %v1262_v49 }
 0x3a5   :  { %s9966_s9 = sld [smem:[#allocation22_spill]]  ;;  %v3568_v63 = vmul.f32 %v3567_v16, %v7073_v25  ;;  %v3177_v16 = vstv %s7342_s7  ;;  %v3565_v12 = vadd.f32 %v3564_v47, %v3561_v62  ;;  %v3193_v47 = vstv %s7371_s14 }
 0x3a6   :  { %s9967_s16 = sld [smem:[#allocation60_spill]]  ;;  %v3186_v62 = vmul.f32 %v3185_v27, %v6904_v56 }
 0x3a7   :  { %s7623_s3 = sld [smem:[#allocation6 + $0x3]]  ;;  %v3571_v55 = vstv %s9965_s13  ;;  %v3569_v9 = vadd.f32 %v3568_v63, %v3565_v12 }
 0x3a8   :  { %s7628_s25 = sld [smem:[#allocation6 + $0x4]]  ;;  %v3572_v20 = vmul.f32 %v3571_v55, %v7101_v5  ;;  %v3174_v55 = vmul.f32 %v3173_v28, %v6869_v52  ;;  %v1272_v28 = vstv %s7477_s27 }
 0x3a9   :  { %s9968_s19 = sld [smem:[#allocation52_spill]] }
 0x3aa   :  { %s9969_s18 = sld [smem:[#allocation54_spill]]  ;;  %v3573_v7 = vadd.f32 %v3572_v20, %v3569_v9  ;;  %v3194_v20 = vmul.f32 %v3193_v47, %v6949_v19 }
 0x3ab   :  { %s7633_s24 = sld [smem:[#allocation6 + $0x5]]  ;;  %v3575_v38 = vstv %s9966_s9 }
 0x3ac   :  { %v3169_v34 = vstv %s9967_s16  ;;  %s7638_s12 = sld [smem:[#allocation6 + $0x6]]  ;;  %v3576_v21 = vmul.f32 %v3575_v38, %v7134_v36  ;;  %v1268_v38 = vstv %s7472_s22 }
 0x3ad   :  { %s7643_s30 = sld [smem:[#allocation6 + $0x7]]  ;;  %v3170_v11 = vmul.f32 %v3169_v34, %v6825_v41  ;;  %v1269_v32 = vmul.f32 %v1268_v38, %v6687_v1  ;;  %v1284_v38 = vstv %s7492_s15 }
 0x3ae   :  { %s7648_s13 = sld [smem:[#allocation6 + $0x8]]  ;;  %v1285_v27 = vmul.f32 %v1284_v38, %v6753_v13 }
 0x3af   :  { %v3579_v6 = vstv %s9968_s19  ;;  %s7653_s16 = sld [smem:[#allocation6 + $0x9]]  ;;  %v3171_v34 = vadd.f32 %v3170_v11, %v3167_v42  ;;  %v3182_v11 = vmul.f32 %v3181_v23, %v6606_v40  ;;  %v1276_v42 = vstv %s7482_s6 }
 0x3b0   :  { %v3583_v10 = vstv %s9969_s18  ;;  %s7658_s9 = sld [smem:[#allocation6 + $0xa]]  ;;  %v3580_v0 = vmul.f32 %v3579_v6, %v7137_v18  ;;  %v3178_v6 = vmul.f32 %v3177_v16, %v6865_v46  ;;  %v3197_v16 = vstv %s7379_s10 }
 0x3b1   :  { %s7663_s0 = sld [smem:[#allocation6 + $0xb]]  ;;  %v3584_v54 = vmul.f32 %v3583_v10, %v7167_v2  ;;  %v3175_v51 = vadd.f32 %v3174_v55, %v3171_v34  ;;  %v1270_v31 = vadd.f32 %v1269_v32, %v1266_v3  ;;  %v1273_v55 = vmul.f32 %v1272_v28, %v6683_v37 }
 0x3b2   :  { %s7668_s7 = sld [smem:[#allocation6 + $0xc]]  ;;  %v1280_v23 = vstv %s7487_s2  ;;  %v3190_v34 = vmul.f32 %v3189_v59, %v6945_v24  ;;  %v1277_v8 = vmul.f32 %v1276_v42, %v6472_v33  ;;  %v3577_v32 = vadd.f32 %v3576_v21, %v3573_v7 }
 0x3b3   :  { %s7672_s28 = sld [smem:[#allocation6 + $0xd]]  ;;  %v3179_v10 = vadd.f32 %v3178_v6, %v3175_v51  ;;  %v1274_v49 = vadd.f32 %v1273_v55, %v1270_v31  ;;  %v3198_v12 = vmul.f32 %v3197_v16, %v6986_v4 }
 0x3b4   :  { %s7677_s4 = sld [smem:[#allocation6 + $0xe]]  ;;  %v3581_v21 = vadd.f32 %v3580_v0, %v3577_v32 }
 0x3b5   :  { %s7681_s21 = sld [smem:[#allocation6 + $0xf]]  ;;  %v3183_v63 = vadd.f32 %v3182_v11, %v3179_v10  ;;  %v1278_v51 = vadd.f32 %v1277_v8, %v1274_v49  ;;  %v1281_v11 = vmul.f32 %v1280_v23, %v6724_v26 }
 0x3b6   :  { %s7686_s1 = sld [smem:[#allocation6 + $0x10]]  ;;  %v7719_v31 = vadd.f32 %v3584_v54, %v3581_v21 }
 0x3b7   :  { %s9972_s27 = sld [smem:[#allocation61_spill]]  ;;  %v3187_v28 = vadd.f32 %v3186_v62, %v3183_v63  ;;  %v1282_v16 = vadd.f32 %v1281_v11, %v1278_v51 }
 0x3b8   :  { %s7690_s22 = sld [smem:[#allocation6 + $0x11]]  ;;  %9987 = vst [vmem:[#allocation130_spill] sm:$0xff] %v7719_v31  ;;  %3587 = vrot.lane.b32.xlu1 %v7719_v31, %s9841_s17 }
 0x3b9   :  { %s7695_s20 = sld [smem:[#allocation6 + $0x12]]  ;;  %v3191_v47 = vadd.f32 %v3190_v34, %v3187_v28  ;;  %v1286_v23 = vadd.f32 %v1285_v27, %v1282_v16 }
 0x3ba   :  { %s9975_s11 = sld [smem:[#allocation89_spill]] }
 0x3bb   :  { %9970 = sst [smem:[#allocation98_spill]] %s7681_s21  ;;  %v3195_v0 = vadd.f32 %v3194_v20, %v3191_v47 }
 0x3bc   :  { %9971 = sst [smem:[#allocation99_spill]] %s7686_s1 }
 0x3bd   :  { %s9976_s14 = sld [smem:[#allocation68_spill]]  ;;  %v3201_v6 = vstv %s9972_s27  ;;  %v3199_v32 = vadd.f32 %v3198_v12, %v3195_v0 }
 0x3be   :  { %9973 = sst [smem:[#allocation100_spill]] %s7690_s22  ;;  %v3202_v54 = vmul.f32 %v3201_v6, %v6885_v22 }
 0x3bf   :  { %9974 = sst [smem:[#allocation114_spill]] %s7695_s20 }
 0x3c0   :  { %s9977_s10 = sld [smem:[#allocation70_spill]]  ;;  %v3205_v3 = vstv %s9975_s11  ;;  %v3203_v12 = vadd.f32 %v3202_v54, %v3199_v32  ;;  %v918_v54 = vstv %s7616_s8 }
 0x3c1   :  { %s7699_s6 = sld [smem:[#allocation6 + $0x13]]  ;;  %v3206_v34 = vmul.f32 %v3205_v3, %v7027_v58 }
 0x3c2   :  { %s9979_s19 = sld [smem:[#allocation107_spill]] }
 0x3c3   :  { %s9980_s2 = sld [smem:[#allocation64_spill]]  ;;  %v1288_v9 = vstv %s9976_s14 }
 0x3c4   :  { %s7704_s15 = sld [smem:[#allocation6 + $0x14]]  ;;  %v1289_v38 = vmul.f32 %v1288_v9, %v6757_v44 }
 0x3c5   :  { %s9982_s18 = sld [smem:[#allocation66_spill]] }
 0x3c6   :  { %s9983_s20 = sld [smem:[#allocation108_spill]]  ;;  %v1292_v59 = vstv %s9977_s10  ;;  %v1290_v51 = vadd.f32 %v1289_v38, %v1286_v23  ;;  %v911_v38 = vstv %s7605_s29 }
 0x3c7   :  { %9978 = sst [smem:[#allocation115_spill]] %s7699_s6  ;;  %v1293_v63 = vmul.f32 %v1292_v59, %v6792_v57 }
 0x3c8   :  { %s9984_s22 = sld [smem:[#allocation92_spill]]  ;;  %v3209_v42 = vstv %s9979_s19 }
 0x3c9   :  { %s7708_s6 = sld [smem:[#allocation6 + $0x15]]  ;;  %v3213_v10 = vstv %s9980_s2  ;;  %v3210_v49 = vmul.f32 %v3209_v42, %v7023_v29  ;;  %v1294_v3 = vadd.f32 %v1293_v63, %v1290_v51  ;;  %v914_v63 = vstv %s7611_s5 }
 0x3ca   :  { %9981 = sst [smem:[#allocation103_spill]] %s7704_s15  ;;  %v3214_v20 = vmul.f32 %v3213_v10, %v7066_v53 }
 0x3cb   :  { %s7713_s1 = sld [smem:[#allocation6 + $0x16]]  ;;  %v3217_v55 = vstv %s9982_s18 }
 0x3cc   :  { %s9986_s27 = sld [smem:[#allocation69_spill]]  ;;  %v3221_v7 = vstv %s9983_s20  ;;  %v3218_v6 = vmul.f32 %v3217_v55, %v7062_v50  ;;  %v3207_v55 = vadd.f32 %v3206_v34, %v3203_v12  ;;  %v915_v34 = vmul.f32 %v914_v63, %v6631_v45 }
 0x3cd   :  { %s7717_s15 = sld [smem:[#allocation6 + $0x17]]  ;;  %v3222_v11 = vmul.f32 %v3221_v7, %v7073_v25  ;;  %v926_v12 = vstv %s7628_s25 }
 0x3ce   :  { %s9988_s21 = sld [smem:[#allocation65_spill]]  ;;  %v1296_v62 = vstv %s9984_s22 }
 0x3cf   :  { %9985 = sst [smem:[#allocation105_spill]] %s7708_s6  ;;  %v1297_v27 = vmul.f32 %v1296_v62, %v6536_v35 }
 0x3d0   :  { %s7724_s6 = sld [smem:[#allocation6 + $0x18]] }
 0x3d1   :  { %s9989_s11 = sld [smem:[#allocation71_spill]]  ;;  %v1298_v7 = vadd.f32 %v1297_v27, %v1294_v3  ;;  %v919_v27 = vmul.f32 %v918_v54, %v6627_v61 }
 0x3d2   :  { %s7728_s14 = sld [smem:[#allocation6 + $0x19]]  ;;  %v1300_v8 = vstv %s9986_s27 }
 0x3d3   :  { %s9991_s22 = sld [smem:[#allocation93_spill]]  ;;  %v1301_v9 = vmul.f32 %v1300_v8, %v6829_v43  ;;  %v3211_v8 = vadd.f32 %v3210_v49, %v3207_v55 }
 0x3d4   :  { %s7736_s20 = sld [smem:[#allocation6 + $0x1a]]  ;;  %v3225_v28 = vstv %s9988_s21 }
 0x3d5   :  { %s9992_s10 = sld [smem:[#allocation90_spill]]  ;;  %v3226_v47 = vmul.f32 %v3225_v28, %v7101_v5  ;;  %v1302_v32 = vadd.f32 %v1301_v9, %v1298_v7  ;;  %v912_v28 = vmul.f32 %v911_v38, %v6398_v39  ;;  %v3215_v3 = vadd.f32 %v3214_v20, %v3211_v8 }
 0x3d6   :  { %s9993_s19 = sld [smem:[#allocation67_spill]] }
 0x3d7   :  { %s9994_s2 = sld [smem:[#allocation91_spill]]  ;;  %v1304_v21 = vstv %s9989_s11  ;;  %v916_v49 = vadd.f32 %v915_v34, %v912_v28  ;;  %v3219_v54 = vadd.f32 %v3218_v6, %v3215_v3  ;;  %v930_v28 = vstv %s7633_s24 }
 0x3d8   :  { %9990 = sst [smem:[#allocation13_spill]] %s7728_s14  ;;  %v1305_v62 = vmul.f32 %v1304_v21, %v6825_v41  ;;  %v922_v21 = vstv %s7623_s3  ;;  %v938_v6 = vstv %s7643_s30  ;;  %v1328_v3 = vstv %s7550_s23 }
 0x3d9   :  { %s7740_s18 = sld [smem:[#allocation6 + $0x1b]]  ;;  %v1308_v59 = vstv %s9991_s22  ;;  %v923_v9 = vmul.f32 %v922_v21, %v6687_v1  ;;  %v920_v8 = vadd.f32 %v919_v27, %v916_v49 }
 0x3da   :  { %s9996_s14 = sld [smem:[#allocation53_spill]]  ;;  %v1309_v23 = vmul.f32 %v1308_v59, %v6869_v52  ;;  %v1306_v59 = vadd.f32 %v1305_v62, %v1302_v32 }
 0x3db   :  { %s7746_s27 = sld [smem:[#allocation6 + $0x1c]]  ;;  %v3229_v42 = vstv %s9992_s10  ;;  %v924_v21 = vadd.f32 %v923_v9, %v920_v8  ;;  %v942_v8 = vstv %s7648_s13 }
 0x3dc   :  { %s7750_s21 = sld [smem:[#allocation6 + $0x1d]]  ;;  %v3233_v10 = vstv %s9993_s19  ;;  %v3230_v55 = vmul.f32 %v3229_v42, %v7134_v36  ;;  %v1310_v20 = vadd.f32 %v1309_v23, %v1306_v59  ;;  %v927_v42 = vmul.f32 %v926_v12, %v6683_v37 }
 0x3dd   :  { %v3237_v16 = vstv %s9994_s2  ;;  %s9999_s11 = sld [smem:[#allocation55_spill]]  ;;  %v3234_v7 = vmul.f32 %v3233_v10, %v7137_v18  ;;  %v934_v10 = vstv %s7638_s12 }
 0x3de   :  { %s7766_s22 = sld [smem:[#allocation6 + $0xb6]]  ;;  %v928_v49 = vadd.f32 %v927_v42, %v924_v21  ;;  %v3238_v9 = vmul.f32 %v3237_v16, %v7167_v2 }
 0x3df   :  { %9995 = sst [smem:[#allocation106_spill]] %s7740_s18 }
 0x3e0   :  { %s7756_s18 = sld [smem:[#allocation6 + $0xb4]]  ;;  %v1312_v0 = vstv %s9996_s14 }
 0x3e1   :  { %9997 = sst [smem:[#allocation14_spill]] %s7746_s27  ;;  %v1313_v38 = vmul.f32 %v1312_v0, %v6865_v46  ;;  %v3223_v0 = vadd.f32 %v3222_v11, %v3219_v54  ;;  %v931_v11 = vmul.f32 %v930_v28, %v6472_v33  ;;  %v939_v54 = vmul.f32 %v938_v6, %v6753_v13 }
 0x3e2   :  { %9998 = sst [smem:[#allocation15_spill]] %s7750_s21  ;;  %v946_v28 = vstv %s7653_s16 }
 0x3e3   :  { %s7760_s27 = sld [smem:[#allocation6 + $0xb5]]  ;;  %v1316_v51 = vstv %s9999_s11  ;;  %v1314_v34 = vadd.f32 %v1313_v38, %v1310_v20  ;;  %v3227_v12 = vadd.f32 %v3226_v47, %v3223_v0 }
 0x3e4   :  { %s10000_s10 = sld [smem:[#allocation72_spill]]  ;;  %v1317_v32 = vmul.f32 %v1316_v51, %v6606_v40  ;;  %v1332_v51 = vstv %s7555_s26 }
 0x3e5   :  { %s7770_s19 = sld [smem:[#allocation6 + $0xb7]]  ;;  %v3231_v47 = vadd.f32 %v3230_v55, %v3227_v12  ;;  %v1333_v16 = vmul.f32 %v1332_v51, %v6986_v4 }
 0x3e6   :  { %s10001_s14 = sld [smem:[#allocation94_spill]]  ;;  %v1318_v59 = vadd.f32 %v1317_v32, %v1314_v34  ;;  %v1329_v32 = vmul.f32 %v1328_v3, %v6949_v19  ;;  %v950_v3 = vstv %s7658_s9 }
 0x3e7   :  { %s7776_s29 = sld [smem:[#allocation6 + $0xb8]] }
 0x3e8   :  { %s7779_s5 = sld [smem:[#allocation6 + $0xb9]] }
 0x3e9   :  { %s7785_s3 = sld [smem:[#allocation6 + $0xba]] }
 0x3ea   :  { %v1320_v63 = vstv %s10000_s10  ;;  %s7788_s8 = sld [smem:[#allocation6 + $0xbb]] }
 0x3eb   :  { %s7794_s25 = sld [smem:[#allocation6 + $0xbc]]  ;;  %v1321_v23 = vmul.f32 %v1320_v63, %v6904_v56  ;;  %v935_v63 = vmul.f32 %v934_v10, %v6724_v26  ;;  %v3235_v10 = vadd.f32 %v3234_v7, %v3231_v47  ;;  %v947_v7 = vmul.f32 %v946_v28, %v6792_v57 }
 0x3ec   :  { %v1324_v62 = vstv %s10001_s14  ;;  %s10002_s2 = sld [smem:[#allocation73_spill]] }
 0x3ed   :  { %s7797_s11 = sld [smem:[#allocation6 + $0xbd]]  ;;  %v1325_v27 = vmul.f32 %v1324_v62, %v6945_v24  ;;  %v1322_v20 = vadd.f32 %v1321_v23, %v1318_v59  ;;  %v932_v62 = vadd.f32 %v931_v11, %v928_v49  ;;  %v943_v23 = vmul.f32 %v942_v8, %v6757_v44 }
 0x3ee   :  { %s7803_s10 = sld [smem:[#allocation6 + $0xbe]]  ;;  %v7832_v51 = vadd.f32 %v3238_v9, %v3235_v10  ;;  %v958_v10 = vstv %s7668_s7 }
 0x3ef   :  { %s10003_s24 = sld [smem:[#allocation95_spill]]  ;;  %v1326_v0 = vadd.f32 %v1325_v27, %v1322_v20  ;;  %v936_v55 = vadd.f32 %v935_v63, %v932_v62  ;;  %v954_v63 = vstv %s7663_s0 }
 0x3f0   :  { %s7806_s12 = sld [smem:[#allocation6 + $0xbf]]  ;;  %3241 = vrot.lane.b32.xlu0 %v7832_v51, %s9841_s17  ;;  %v955_v28 = vmul.f32 %v954_v63, %v6829_v43  ;;  %v1952_v63 = vstv %s7760_s27 }
 0x3f1   :  { %s10005_s30 = sld [smem:[#allocation76_spill]]  ;;  %v1330_v12 = vadd.f32 %v1329_v32, %v1326_v0  ;;  %v940_v59 = vadd.f32 %v939_v54, %v936_v55  ;;  %v951_v32 = vmul.f32 %v950_v3, %v6536_v35 }
 0x3f2   :  { %v1336_v38 = vstv %s10002_s2  ;;  %s7812_s26 = sld [smem:[#allocation6 + $0xc0]] }
 0x3f3   :  { %s10007_s23 = sld [smem:[#allocation78_spill]]  ;;  %v1337_v27 = vmul.f32 %v1336_v38, %v6885_v22  ;;  %v1334_v9 = vadd.f32 %v1333_v16, %v1330_v12  ;;  %v944_v20 = vadd.f32 %v943_v23, %v940_v59  ;;  %v959_v59 = vmul.f32 %v958_v10, %v6825_v41 }
 0x3f4   :  { %s10008_s14 = sld [smem:[#allocation96_spill]] }
 0x3f5   :  { %s7815_s21 = sld [smem:[#allocation6 + $0xc1]]  ;;  %v1340_v42 = vstv %s10003_s24  ;;  %v948_v16 = vadd.f32 %v947_v7, %v944_v20  ;;  %v966_v7 = vstv %s7677_s4 }
 0x3f6   :  { %10004 = sst [smem:[#allocation116_spill]] %s7806_s12  ;;  %v1341_v49 = vmul.f32 %v1340_v42, %v7027_v58  ;;  %v1338_v42 = vadd.f32 %v1337_v27, %v1334_v9  ;;  %v1949_v27 = vstv %s7756_s18 }
 0x3f7   :  { %s7821_s2 = sld [smem:[#allocation6 + $0xc2]]  ;;  %v1344_v34 = vstv %s10005_s30  ;;  %v952_v12 = vadd.f32 %v951_v32, %v948_v16  ;;  %v1953_v32 = vmul.f32 %v1952_v63, %v6631_v45 }
 0x3f8   :  { %10006 = sst [smem:[#allocation117_spill]] %s7812_s26  ;;  %v1345_v11 = vmul.f32 %v1344_v34, %v7023_v29 }
 0x3f9   :  { %s7824_s26 = sld [smem:[#allocation6 + $0xc3]]  ;;  %v1348_v21 = vstv %s10007_s23 }
 0x3fa   :  { %v1352_v6 = vstv %s10008_s14  ;;  %s10010_s13 = sld [smem:[#allocation77_spill]]  ;;  %v1349_v38 = vmul.f32 %v1348_v21, %v7066_v53  ;;  %v962_v21 = vstv %s7672_s28 }
 0x3fb   :  { %10009 = sst [smem:[#allocation16_spill]] %s7815_s21  ;;  %v1353_v62 = vmul.f32 %v1352_v6, %v7062_v50  ;;  %v1342_v6 = vadd.f32 %v1341_v49, %v1338_v42  ;;  %v963_v49 = vmul.f32 %v962_v21, %v6869_v52  ;;  %v1960_v42 = vstv %s7770_s19 }
 0x3fc   :  { %s10011_s21 = sld [smem:[#allocation79_spill]] }
 0x3fd   :  { %s7830_s12 = sld [smem:[#allocation6 + $0xc4]]  ;;  %v1346_v9 = vadd.f32 %v1345_v11, %v1342_v6  ;;  %v1961_v6 = vmul.f32 %v1960_v42, %v6687_v1 }
 0x3fe   :  { %s10012_s16 = sld [smem:[#allocation80_spill]] }
 0x3ff   :  { %s7835_s24 = sld [smem:[#allocation6 + $0xc5]]  ;;  %v1350_v16 = vadd.f32 %v1349_v38, %v1346_v9 }
 0x400   :  { %s7841_s9 = sld [smem:[#allocation6 + $0xc6]]  ;;  %v1356_v54 = vstv %s10010_s13 }
 0x401   :  { %s10013_s30 = sld [smem:[#allocation81_spill]]  ;;  %v1357_v0 = vmul.f32 %v1356_v54, %v7073_v25  ;;  %v956_v54 = vadd.f32 %v955_v28, %v952_v12  ;;  %v1354_v12 = vadd.f32 %v1353_v62, %v1350_v16  ;;  %v1972_v16 = vstv %s7785_s3 }
 0x402   :  { %v1360_v47 = vstv %s10011_s21  ;;  %s7847_s23 = sld [smem:[#allocation6 + $0xc7]] }
 0x403   :  { %s10014_s14 = sld [smem:[#allocation97_spill]]  ;;  %v1361_v34 = vmul.f32 %v1360_v47, %v7101_v5  ;;  %v1956_v47 = vstv %s7766_s22  ;;  %v960_v10 = vadd.f32 %v959_v59, %v956_v54  ;;  %v967_v59 = vmul.f32 %v966_v7, %v6865_v46 }
 0x404   :  { %v1364_v8 = vstv %s10012_s16  ;;  %s7853_s0 = sld [smem:[#allocation6 + $0xc8]]  ;;  %v1957_v21 = vmul.f32 %v1956_v47, %v6627_v61  ;;  %v1358_v47 = vadd.f32 %v1357_v0, %v1354_v12 }
 0x405   :  { %s7857_s21 = sld [smem:[#allocation6 + $0xc9]]  ;;  %v1365_v23 = vmul.f32 %v1364_v8, %v7134_v36  ;;  %v1950_v8 = vmul.f32 %v1949_v27, %v6398_v39  ;;  %v964_v38 = vadd.f32 %v963_v49, %v960_v10  ;;  %v1964_v27 = vstv %s7776_s29 }
 0x406   :  { %s7863_s13 = sld [smem:[#allocation6 + $0xca]]  ;;  %v1968_v49 = vstv %s7779_s5  ;;  %v1976_v10 = vstv %s7788_s8 }
 0x407   :  { %v1368_v55 = vstv %s10013_s30  ;;  %s10017_s16 = sld [smem:[#allocation98_spill]]  ;;  %v1954_v28 = vadd.f32 %v1953_v32, %v1950_v8  ;;  %v968_v62 = vadd.f32 %v967_v59, %v964_v38 }
 0x408   :  { %s10018_s7 = sld [smem:[#allocation99_spill]]  ;;  %v1369_v11 = vmul.f32 %v1368_v55, %v7137_v18 }
 0x409   :  { %v1372_v3 = vstv %s10014_s14  ;;  %s7873_s30 = sld [smem:[#allocation6 + $0xcc]]  ;;  %v1958_v54 = vadd.f32 %v1957_v21, %v1954_v28 }
 0x40a   :  { %10015 = sst [smem:[#allocation109_spill]] %s7853_s0  ;;  %v1373_v0 = vmul.f32 %v1372_v3, %v7167_v2 }
 0x40b   :  { %10016 = sst [smem:[#allocation118_spill]] %s7857_s21  ;;  %v1962_v42 = vadd.f32 %v1961_v6, %v1958_v54  ;;  %v1969_v6 = vmul.f32 %v1968_v49, %v6472_v33  ;;  %v1977_v54 = vmul.f32 %v1976_v10, %v6753_v13  ;;  %v998_v49 = vstv %s7713_s1 }
 0x40c   :  { %s7867_s0 = sld [smem:[#allocation6 + $0xcb]] }
 0x40d   :  { %s10019_s21 = sld [smem:[#allocation100_spill]]  ;;  %v970_v20 = vstv %s10017_s16 }
 0x40e   :  { %s7877_s28 = sld [smem:[#allocation6 + $0xcd]]  ;;  %v974_v31 = vstv %s10018_s7  ;;  %v971_v55 = vmul.f32 %v970_v20, %v6606_v40  ;;  %v1965_v20 = vmul.f32 %v1964_v27, %v6683_v37 }
 0x40f   :  { %s7883_s4 = sld [smem:[#allocation6 + $0xce]]  ;;  %v975_v63 = vmul.f32 %v974_v31, %v6904_v56  ;;  %v1362_v31 = vadd.f32 %v1361_v34, %v1358_v47  ;;  %v1980_v47 = vstv %s7794_s25 }
 0x410   :  { %s7887_s18 = sld [smem:[#allocation6 + $0xcf]]  ;;  %v1966_v21 = vadd.f32 %v1965_v20, %v1962_v42 }
 0x411   :  { %s10022_s27 = sld [smem:[#allocation114_spill]]  ;;  %v1366_v12 = vadd.f32 %v1365_v23, %v1362_v31  ;;  %v1006_v31 = vstv %s7724_s6 }
 0x412   :  { %s7892_s22 = sld [smem:[#allocation6 + $0xd0]]  ;;  %v1970_v27 = vadd.f32 %v1969_v6, %v1966_v21  ;;  %v1988_v21 = vstv %s7803_s10 }
 0x413   :  { %v978_v17 = vstv %s10019_s21  ;;  %s10024_s19 = sld [smem:[#allocation115_spill]]  ;;  %v1370_v23 = vadd.f32 %v1369_v11, %v1366_v12 }
 0x414   :  { %s10025_s14 = sld [smem:[#allocation103_spill]]  ;;  %v979_v9 = vmul.f32 %v978_v17, %v6945_v24  ;;  %v972_v17 = vadd.f32 %v971_v55, %v968_v62  ;;  %v1973_v55 = vmul.f32 %v1972_v16, %v6724_v26  ;;  %v1984_v62 = vstv %s7797_s11 }
 0x415   :  { %10020 = sst [smem:[#allocation119_spill]] %s7883_s4  ;;  %v7939_v42 = vadd.f32 %v1373_v0, %v1370_v23  ;;  %v1981_v16 = vmul.f32 %v1980_v47, %v6757_v44  ;;  %v1985_v10 = vmul.f32 %v1984_v62, %v6792_v57  ;;  %v1989_v62 = vmul.f32 %v1988_v21, %v6536_v35 }
 0x416   :  { %10021 = sst [smem:[#allocation18_spill]] %s7887_s18  ;;  %v976_v38 = vadd.f32 %v975_v63, %v972_v17 }
 0x417   :  { %s7896_s21 = sld [smem:[#allocation6 + $0xd1]]  ;;  %v982_v8 = vstv %s10022_s27  ;;  %1376 = vrot.lane.b32.xlu1 %v7939_v42, %s9841_s17 }
 0x418   :  { %10023 = sst [smem:[#allocation110_spill]] %s7892_s22  ;;  %v983_v28 = vmul.f32 %v982_v8, %v6949_v19  ;;  %v980_v63 = vadd.f32 %v979_v9, %v976_v38  ;;  %v1014_v9 = vstv %s7736_s20  ;;  %v1007_v38 = vmul.f32 %v1006_v31, %v7062_v50 }
 0x419   :  { %s7901_s16 = sld [smem:[#allocation6 + $0x78]]  ;;  %v986_v7 = vstv %s10024_s19 }
 0x41a   :  { %s7905_s7 = sld [smem:[#allocation6 + $0x79]]  ;;  %v990_v32 = vstv %s10025_s14  ;;  %v987_v34 = vmul.f32 %v986_v7, %v6986_v4  ;;  %v1002_v7 = vstv %s7717_s15  ;;  %v984_v20 = vadd.f32 %v983_v28, %v980_v63 }
 0x41b   :  { %s10027_s29 = sld [smem:[#allocation105_spill]]  ;;  %v991_v3 = vmul.f32 %v990_v32, %v6885_v22  ;;  %v1974_v32 = vadd.f32 %v1973_v55, %v1970_v27  ;;  %v999_v28 = vmul.f32 %v998_v49, %v7023_v29  ;;  %v1003_v12 = vmul.f32 %v1002_v7, %v7066_v53 }
 0x41c   :  { %s7914_s22 = sld [smem:[#allocation6 + $0x7b]]  ;;  %v988_v0 = vadd.f32 %v987_v34, %v984_v20  ;;  %v1015_v34 = vmul.f32 %v1014_v9, %v7101_v5 }
 0x41d   :  { %10026 = sst [smem:[#allocation111_spill]] %s7896_s21  ;;  %v1978_v17 = vadd.f32 %v1977_v54, %v1974_v32 }
 0x41e   :  { %s7910_s21 = sld [smem:[#allocation6 + $0x7a]]  ;;  %v992_v55 = vadd.f32 %v991_v3, %v988_v0 }
 0x41f   :  { %s7919_s5 = sld [smem:[#allocation6 + $0x7c]]  ;;  %v1982_v27 = vadd.f32 %v1981_v16, %v1978_v17  ;;  %v1603_v9 = vstv %s7901_s16 }
 0x420   :  { %s7923_s3 = sld [smem:[#allocation6 + $0x7d]]  ;;  %v1606_v17 = vstv %s7905_s7 }
 0x421   :  { %v994_v59 = vstv %s10027_s29  ;;  %s10028_s8 = sld [smem:[#allocation13_spill]]  ;;  %v1986_v47 = vadd.f32 %v1985_v10, %v1982_v27  ;;  %v2004_v10 = vstv %s7821_s2  ;;  %v1607_v0 = vmul.f32 %v1606_v17, %v6631_v45 }
 0x422   :  { %s7928_s27 = sld [smem:[#allocation6 + $0x7e]]  ;;  %v995_v8 = vmul.f32 %v994_v59, %v7027_v58  ;;  %v1614_v27 = vstv %s7914_s22 }
 0x423   :  { %s7932_s19 = sld [smem:[#allocation6 + $0x7f]]  ;;  %v1990_v31 = vadd.f32 %v1989_v62, %v1986_v47  ;;  %v1615_v47 = vmul.f32 %v1614_v27, %v6687_v1 }
 0x424   :  { %s10029_s14 = sld [smem:[#allocation116_spill]]  ;;  %v996_v7 = vadd.f32 %v995_v8, %v992_v55  ;;  %v1604_v8 = vmul.f32 %v1603_v9, %v6398_v39 }
 0x425   :  { %s7937_s29 = sld [smem:[#allocation6 + $0x80]] }
 0x426   :  { %s10030_s18 = sld [smem:[#allocation106_spill]]  ;;  %v1000_v16 = vadd.f32 %v999_v28, %v996_v7  ;;  %v2008_v7 = vstv %s7824_s26 }
 0x427   :  { %v1010_v11 = vstv %s10028_s8  ;;  %s7943_s4 = sld [smem:[#allocation6 + $0x81]] }
 0x428   :  { %s10031_s1 = sld [smem:[#allocation117_spill]]  ;;  %v1011_v54 = vmul.f32 %v1010_v11, %v7073_v25  ;;  %v1004_v55 = vadd.f32 %v1003_v12, %v1000_v16  ;;  %v2012_v12 = vstv %s7830_s12  ;;  %v1626_v27 = vstv %s7928_s27 }
 0x429   :  { %s7948_s15 = sld [smem:[#allocation6 + $0x82]] }
 0x42a   :  { %s10032_s25 = sld [smem:[#allocation14_spill]]  ;;  %v1992_v6 = vstv %s10029_s14 }
 0x42b   :  { %s7955_s6 = sld [smem:[#allocation6 + $0x83]]  ;;  %v1993_v49 = vmul.f32 %v1992_v6, %v6829_v43 }
 0x42c   :  { %s10033_s20 = sld [smem:[#allocation15_spill]]  ;;  %v1018_v59 = vstv %s10030_s18 }
 0x42d   :  { %s10034_s11 = sld [smem:[#allocation16_spill]]  ;;  %v1019_v3 = vmul.f32 %v1018_v59, %v7134_v36  ;;  %v1994_v21 = vadd.f32 %v1993_v49, %v1990_v31  ;;  %v1610_v59 = vstv %s7910_s21  ;;  %v1008_v31 = vadd.f32 %v1007_v38, %v1004_v55 }
 0x42e   :  { %s7960_s8 = sld [smem:[#allocation6 + $0x84]]  ;;  %v1996_v23 = vstv %s10031_s1  ;;  %v1611_v28 = vmul.f32 %v1610_v59, %v6627_v61  ;;  %v1630_v55 = vstv %s7932_s19 }
 0x42f   :  { %s7965_s10 = sld [smem:[#allocation6 + $0x85]]  ;;  %v1997_v11 = vmul.f32 %v1996_v23, %v6825_v41  ;;  %v1608_v23 = vadd.f32 %v1607_v0, %v1604_v8  ;;  %v2005_v8 = vmul.f32 %v2004_v10, %v6865_v46  ;;  %v2016_v0 = vstv %s7835_s24 }
 0x430   :  { %v1022_v63 = vstv %s10032_s25  ;;  %s7970_s18 = sld [smem:[#allocation6 + $0x86]] }
 0x431   :  { %s7975_s14 = sld [smem:[#allocation6 + $0x87]]  ;;  %v1023_v62 = vmul.f32 %v1022_v63, %v7137_v18  ;;  %v1998_v49 = vadd.f32 %v1997_v11, %v1994_v21  ;;  %v1612_v17 = vadd.f32 %v1611_v28, %v1608_v23  ;;  %v1622_v63 = vstv %s7923_s3 }
 0x432   :  { %v1026_v32 = vstv %s10033_s20  ;;  %s7980_s1 = sld [smem:[#allocation6 + $0x88]]  ;;  %v1012_v11 = vadd.f32 %v1011_v54, %v1008_v31  ;;  %v2009_v21 = vmul.f32 %v2008_v7, %v6606_v40  ;;  %v2020_v23 = vstv %s7841_s9 }
 0x433   :  { %v2000_v20 = vstv %s10034_s11  ;;  %s7985_s25 = sld [smem:[#allocation6 + $0x89]]  ;;  %v1027_v9 = vmul.f32 %v1026_v32, %v7167_v2  ;;  %v1616_v38 = vadd.f32 %v1615_v47, %v1612_v17  ;;  %v1623_v28 = vmul.f32 %v1622_v63, %v6472_v33 }
 0x434   :  { %v2001_v6 = vmul.f32 %v2000_v20, %v6869_v52  ;;  %s7990_s16 = sld [smem:[#allocation6 + $0x8a]]  ;;  %v1618_v20 = vstv %s7919_s5  ;;  %v1016_v10 = vadd.f32 %v1015_v34, %v1012_v11  ;;  %v2024_v7 = vstv %s7847_s23 }
 0x435   :  { %s7994_s2 = sld [smem:[#allocation6 + $0x8b]]  ;;  %v1619_v32 = vmul.f32 %v1618_v20, %v6683_v37  ;;  %v1627_v34 = vmul.f32 %v1626_v27, %v6724_v26  ;;  %v1631_v17 = vmul.f32 %v1630_v55, %v6753_v13  ;;  %v1634_v63 = vstv %s7937_s29 }
 0x436   :  { %s7999_s7 = sld [smem:[#allocation6 + $0x8c]]  ;;  %v2002_v16 = vadd.f32 %v2001_v6, %v1998_v49  ;;  %v2013_v6 = vmul.f32 %v2012_v12, %v6904_v56  ;;  %v2017_v49 = vmul.f32 %v2016_v0, %v6945_v24  ;;  %v1020_v31 = vadd.f32 %v1019_v3, %v1016_v10 }
 0x437   :  { %s8003_s22 = sld [smem:[#allocation6 + $0x8d]]  ;;  %v1620_v54 = vadd.f32 %v1619_v32, %v1616_v38  ;;  %v1638_v0 = vstv %s7943_s4  ;;  %v2040_v27 = vstv %s7867_s0  ;;  %v1635_v10 = vmul.f32 %v1634_v63, %v6757_v44 }
 0x438   :  { %s8008_s21 = sld [smem:[#allocation6 + $0x8e]]  ;;  %v2006_v59 = vadd.f32 %v2005_v8, %v2002_v16  ;;  %v2021_v8 = vmul.f32 %v2020_v23, %v6949_v19  ;;  %v1024_v11 = vadd.f32 %v1023_v62, %v1020_v31  ;;  %v1639_v23 = vmul.f32 %v1638_v0, %v6792_v57 }
 0x439   :  { %s10035_s26 = sld [smem:[#allocation109_spill]]  ;;  %v1624_v12 = vadd.f32 %v1623_v28, %v1620_v54 }
 0x43a   :  { %s8012_s12 = sld [smem:[#allocation6 + $0x8f]]  ;;  %v2010_v47 = vadd.f32 %v2009_v21, %v2006_v59  ;;  %v2025_v21 = vmul.f32 %v2024_v7, %v6986_v4  ;;  %v8046_v55 = vadd.f32 %v1027_v9, %v1024_v11  ;;  %v2044_v7 = vstv %s7873_s30 }
 0x43b   :  { %s8017_s5 = sld [smem:[#allocation6 + $0x90]]  ;;  %v1628_v38 = vadd.f32 %v1627_v34, %v1624_v12  ;;  %v2041_v34 = vmul.f32 %v2040_v27, %v7066_v53  ;;  %v1650_v11 = vstv %s7960_s8 }
 0x43c   :  { %s8021_s24 = sld [smem:[#allocation6 + $0x91]]  ;;  %v2014_v16 = vadd.f32 %v2013_v6, %v2010_v47  ;;  %v2036_v6 = vstv %s7863_s13  ;;  %v1642_v47 = vstv %s7948_s15  ;;  %1030 = vrot.lane.b32.xlu0 %v8046_v55, %s9841_s17 }
 0x43d   :  { %s10036_s3 = sld [smem:[#allocation118_spill]]  ;;  %v1632_v62 = vadd.f32 %v1631_v17, %v1628_v38  ;;  %v2037_v9 = vmul.f32 %v2036_v6, %v7023_v29  ;;  %v1643_v63 = vmul.f32 %v1642_v47, %v6536_v35 }
 0x43e   :  { %s8026_s20 = sld [smem:[#allocation6 + $0x92]]  ;;  %v2018_v32 = vadd.f32 %v2017_v49, %v2014_v16  ;;  %v1646_v49 = vstv %s7955_s6 }
 0x43f   :  { %v2028_v20 = vstv %s10035_s26  ;;  %s8030_s9 = sld [smem:[#allocation6 + $0x93]]  ;;  %v1636_v31 = vadd.f32 %v1635_v10, %v1632_v62  ;;  %v1647_v0 = vmul.f32 %v1646_v49, %v6829_v43 }
 0x440   :  { %s8035_s27 = sld [smem:[#allocation6 + $0x94]]  ;;  %v2029_v59 = vmul.f32 %v2028_v20, %v6885_v22  ;;  %v2022_v54 = vadd.f32 %v2021_v8, %v2018_v32  ;;  %v2048_v20 = vstv %s7877_s28  ;;  %v1654_v32 = vstv %s7965_s10 }
 0x441   :  { %s8039_s23 = sld [smem:[#allocation6 + $0x12c]]  ;;  %v1640_v8 = vadd.f32 %v1639_v23, %v1636_v31  ;;  %v2049_v38 = vmul.f32 %v2048_v20, %v7073_v25  ;;  %v1651_v23 = vmul.f32 %v1650_v11, %v6825_v41  ;;  %v1662_v11 = vstv %s7975_s14 }
 0x442   :  { %s8044_s19 = sld [smem:[#allocation6 + $0x12d]]  ;;  %v2026_v12 = vadd.f32 %v2025_v21, %v2022_v54  ;;  %v2045_v21 = vmul.f32 %v2044_v7, %v7062_v50  ;;  %v1658_v54 = vstv %s7970_s18  ;;  %v1655_v7 = vmul.f32 %v1654_v32, %v6869_v52 }
 0x443   :  { %v2032_v3 = vstv %s10036_s3  ;;  %s10037_s4 = sld [smem:[#allocation119_spill]]  ;;  %v1644_v10 = vadd.f32 %v1643_v63, %v1640_v8 }
 0x444   :  { %s10038_s29 = sld [smem:[#allocation18_spill]]  ;;  %v2033_v28 = vmul.f32 %v2032_v3, %v7027_v58  ;;  %v2030_v3 = vadd.f32 %v2029_v59, %v2026_v12 }
 0x445   :  { %s8050_s11 = sld [smem:[#allocation6 + $0x12e]]  ;;  %v1648_v49 = vadd.f32 %v1647_v0, %v1644_v10  ;;  %v1666_v0 = vstv %s7980_s1 }
 0x446   :  { %s8055_s0 = sld [smem:[#allocation6 + $0x12f]]  ;;  %v2034_v59 = vadd.f32 %v2033_v28, %v2030_v3 }
 0x447   :  { %s8062_s13 = sld [smem:[#allocation6 + $0x95]]  ;;  %v2641_v47 = vstv %s8039_s23  ;;  %v1652_v63 = vadd.f32 %v1651_v23, %v1648_v49  ;;  %v1659_v23 = vmul.f32 %v1658_v54, %v6865_v46 }
 0x448   :  { %s10039_s26 = sld [smem:[#allocation110_spill]]  ;;  %v2642_v20 = vmul.f32 %v2641_v47, %v6398_v39  ;;  %v2644_v31 = vstv %s8044_s19  ;;  %v2038_v12 = vadd.f32 %v2037_v9, %v2034_v59 }
 0x449   :  { %v2052_v17 = vstv %s10037_s4  ;;  %s8067_s15 = sld [smem:[#allocation6 + $0x130]]  ;;  %v1656_v47 = vadd.f32 %v1655_v7, %v1652_v63  ;;  %v1667_v7 = vmul.f32 %v1666_v0, %v6904_v56  ;;  %v1678_v0 = vstv %s7994_s2 }
 0x44a   :  { %v2056_v16 = vstv %s10038_s29  ;;  %s8072_s30 = sld [smem:[#allocation6 + $0x131]]  ;;  %v2053_v6 = vmul.f32 %v2052_v17, %v7101_v5  ;;  %v2645_v17 = vmul.f32 %v2644_v31, %v6631_v45  ;;  %v2042_v3 = vadd.f32 %v2041_v34, %v2038_v12 }
 0x44b   :  { %s8077_s28 = sld [smem:[#allocation6 + $0x132]]  ;;  %v8081_v27 = vmul.f32 %v2056_v16, %v7134_v36  ;;  %v2648_v28 = vstv %s8050_s11 }
 0x44c   :  { %s8084_s6 = sld [smem:[#allocation6 + $0x133]]  ;;  %v2652_v16 = vstv %s8055_s0  ;;  %v2646_v32 = vadd.f32 %v2645_v17, %v2642_v20  ;;  %v2649_v10 = vmul.f32 %v2648_v28, %v6627_v61  ;;  %v2046_v31 = vadd.f32 %v2045_v21, %v2042_v3 }
 0x44d   :  { %s10040_s8 = sld [smem:[#allocation111_spill]]  ;;  %v2653_v9 = vmul.f32 %v2652_v16, %v6687_v1  ;;  %v1670_v20 = vstv %s7985_s25  ;;  %v1660_v17 = vadd.f32 %v1659_v23, %v1656_v47  ;;  %v1674_v16 = vstv %s7990_s16 }
 0x44e   :  { %v2060_v62 = vstv %s10039_s26  ;;  %s8089_s10 = sld [smem:[#allocation6 + $0x134]]  ;;  %v2650_v12 = vadd.f32 %v2649_v10, %v2646_v32  ;;  %v2050_v54 = vadd.f32 %v2049_v38, %v2046_v31  ;;  %v1671_v3 = vmul.f32 %v1670_v20, %v6945_v24 }
 0x44f   :  { %s8094_s3 = sld [smem:[#allocation6 + $0x135]]  ;;  %v2061_v59 = vmul.f32 %v2060_v62, %v7137_v18  ;;  %v2656_v49 = vstv %s8067_s15  ;;  %v1663_v62 = vmul.f32 %v1662_v11, %v6606_v40  ;;  %v1675_v23 = vmul.f32 %v1674_v16, %v6949_v19 }
 0x450   :  { %s8099_s4 = sld [smem:[#allocation6 + $0x136]]  ;;  %v2660_v28 = vstv %s8072_s30  ;;  %v2654_v21 = vadd.f32 %v2653_v9, %v2650_v12  ;;  %v2054_v11 = vadd.f32 %v2053_v6, %v2050_v54  ;;  %v1686_v31 = vstv %s8003_s22 }
 0x451   :  { %s8104_s18 = sld [smem:[#allocation6 + $0x137]]  ;;  %v1664_v63 = vadd.f32 %v1663_v62, %v1660_v17  ;;  %v2664_v32 = vstv %s8077_s28  ;;  %v2661_v38 = vmul.f32 %v2660_v28, %v6472_v33 }
 0x452   :  { %s8108_s23 = sld [smem:[#allocation6 + $0x138]]  ;;  %v2668_v10 = vstv %s8084_s6  ;;  %v2058_v20 = vadd.f32 %v8081_v27, %v2054_v11  ;;  %v2665_v6 = vmul.f32 %v2664_v32, %v6724_v26  ;;  %v1694_v32 = vstv %s8012_s12 }
 0x453   :  { %v2064_v8 = vstv %s10040_s8  ;;  %s8113_s14 = sld [smem:[#allocation6 + $0x139]]  ;;  %v1668_v9 = vadd.f32 %v1667_v7, %v1664_v63  ;;  %v2669_v17 = vmul.f32 %v2668_v10, %v6753_v13  ;;  %v1679_v7 = vmul.f32 %v1678_v0, %v6986_v4 }
 0x454   :  { %v2065_v34 = vmul.f32 %v2064_v8, %v7167_v2  ;;  %s8117_s1 = sld [smem:[#allocation6 + $0x13a]]  ;;  %v2657_v8 = vmul.f32 %v2656_v49, %v6683_v37  ;;  %v1682_v49 = vstv %s7999_s7  ;;  %v2672_v28 = vstv %s8089_s10 }
 0x455   :  { %s8122_s19 = sld [smem:[#allocation6 + $0x13b]]  ;;  %v1672_v62 = vadd.f32 %v1671_v3, %v1668_v9  ;;  %v2676_v54 = vstv %s8094_s3  ;;  %v2062_v16 = vadd.f32 %v2061_v59, %v2058_v20  ;;  %v1683_v63 = vmul.f32 %v1682_v49, %v6885_v22 }
 0x456   :  { %s8126_s25 = sld [smem:[#allocation6 + $0x13c]]  ;;  %v2658_v47 = vadd.f32 %v2657_v8, %v2654_v21  ;;  %v1690_v21 = vstv %s8008_s21  ;;  %v1687_v3 = vmul.f32 %v1686_v31, %v7027_v58  ;;  %v2673_v11 = vmul.f32 %v2672_v28, %v6757_v44 }
 0x457   :  { %s8131_s29 = sld [smem:[#allocation6 + $0x13d]]  ;;  %v1676_v8 = vadd.f32 %v1675_v23, %v1672_v62  ;;  %v8160_v10 = vadd.f32 %v2065_v34, %v2062_v16  ;;  %v2677_v0 = vmul.f32 %v2676_v54, %v6792_v57  ;;  %v2680_v9 = vstv %s8099_s4 }
 0x458   :  { %s8135_s16 = sld [smem:[#allocation6 + $0x13e]]  ;;  %v2662_v12 = vadd.f32 %v2661_v38, %v2658_v47  ;;  %v1691_v38 = vmul.f32 %v1690_v21, %v7023_v29  ;;  %v2684_v23 = vstv %s8104_s18  ;;  %v1698_v34 = vstv %s8017_s5 }
 0x459   :  { %s8140_s11 = sld [smem:[#allocation6 + $0x13f]]  ;;  %10041 = vst [vmem:[#allocation131_spill] sm:$0xff] %v8160_v10  ;;  %v1680_v47 = vadd.f32 %v1679_v7, %v1676_v8  ;;  %2068 = vrot.lane.b32.xlu1 %v8160_v10, %s9841_s17  ;;  %v1702_v49 = vstv %s8021_s24  ;;  %v1706_v31 = vstv %s8026_s20  ;;  %v2688_v62 = vstv %s8108_s23 }
 0x45a   :  { %s8145_s2 = sld [smem:[#allocation6 + $0x140]]  ;;  %v2666_v27 = vadd.f32 %v2665_v6, %v2662_v12  ;;  %v1695_v6 = vmul.f32 %v1694_v32, %v7066_v53  ;;  %v2681_v28 = vmul.f32 %v2680_v9, %v6536_v35  ;;  %v2685_v54 = vmul.f32 %v2684_v23, %v6829_v43 }
 0x45b   :  { %s8150_s0 = sld [smem:[#allocation6 + $0x141]]  ;;  %v1684_v12 = vadd.f32 %v1683_v63, %v1680_v47  ;;  %v2692_v16 = vstv %s8113_s14  ;;  %v1703_v8 = vmul.f32 %v1702_v49, %v7073_v25  ;;  %v1707_v63 = vmul.f32 %v1706_v31, %v7101_v5 }
 0x45c   :  { %s8153_s7 = sld [smem:[#allocation6 + $0xf0]]  ;;  %v2670_v59 = vadd.f32 %v2669_v17, %v2666_v27  ;;  %v1710_v17 = vstv %s8030_s9  ;;  %v1699_v27 = vmul.f32 %v1698_v34, %v7062_v50  ;;  %v2693_v47 = vmul.f32 %v2692_v16, %v6869_v52 }
 0x45d   :  { %s8158_s22 = sld [smem:[#allocation6 + $0xf1]]  ;;  %v1688_v21 = vadd.f32 %v1687_v3, %v1684_v12  ;;  %v1711_v32 = vmul.f32 %v1710_v17, %v7134_v36  ;;  %v1718_v17 = vstv %s8062_s13 }
 0x45e   :  { %s8164_s21 = sld [smem:[#allocation6 + $0xf2]]  ;;  %v2674_v20 = vadd.f32 %v2673_v11, %v2670_v59  ;;  %v1714_v59 = vstv %s8035_s27 }
 0x45f   :  { %s8169_s12 = sld [smem:[#allocation6 + $0xf3]]  ;;  %v1692_v3 = vadd.f32 %v1691_v38, %v1688_v21  ;;  %v2696_v38 = vstv %s8117_s1 }
 0x460   :  { %s8176_s26 = sld [smem:[#allocation6 + $0x142]]  ;;  %v2678_v7 = vadd.f32 %v2677_v0, %v2674_v20  ;;  %v2689_v0 = vmul.f32 %v2688_v62, %v6825_v41 }
 0x461   :  { %s8181_s15 = sld [smem:[#allocation6 + $0xf4]]  ;;  %v1696_v12 = vadd.f32 %v1695_v6, %v1692_v3  ;;  %v2700_v6 = vstv %s8122_s19 }
 0x462   :  { %s8186_s5 = sld [smem:[#allocation6 + $0x143]]  ;;  %v2682_v11 = vadd.f32 %v2681_v28, %v2678_v7  ;;  %v2295_v9 = vstv %s8153_s7 }
 0x463   :  { %s8191_s24 = sld [smem:[#allocation6 + $0xf5]]  ;;  %v2298_v23 = vstv %s8158_s22  ;;  %v2296_v49 = vmul.f32 %v2295_v9, %v6398_v39  ;;  %v1700_v21 = vadd.f32 %v1699_v27, %v1696_v12  ;;  %v2701_v12 = vmul.f32 %v2700_v6, %v6606_v40 }
 0x464   :  { %s8196_s20 = sld [smem:[#allocation6 + $0xf6]]  ;;  %v2686_v34 = vadd.f32 %v2685_v54, %v2682_v11  ;;  %v2299_v31 = vmul.f32 %v2298_v23, %v6631_v45  ;;  %v2302_v20 = vstv %s8164_s21  ;;  %v1715_v11 = vmul.f32 %v1714_v59, %v7137_v18 }
 0x465   :  { %s8201_s9 = sld [smem:[#allocation6 + $0xf7]]  ;;  %v2306_v62 = vstv %s8169_s12  ;;  %v2303_v54 = vmul.f32 %v2302_v20, %v6627_v61  ;;  %v2697_v23 = vmul.f32 %v2696_v38, %v6865_v46  ;;  %v2708_v20 = vstv %s8131_s29 }
 0x466   :  { %s8203_s30 = sld [smem:[#allocation6 + $0x144]]  ;;  %v2690_v7 = vadd.f32 %v2689_v0, %v2686_v34  ;;  %v2300_v28 = vadd.f32 %v2299_v31, %v2296_v49  ;;  %v2307_v16 = vmul.f32 %v2306_v62, %v6687_v1  ;;  %v2704_v0 = vstv %s8126_s25 }
 0x467   :  { %s8210_s27 = sld [smem:[#allocation6 + $0x145]]  ;;  %v2310_v3 = vstv %s8181_s15  ;;  %v1704_v49 = vadd.f32 %v1703_v8, %v1700_v21  ;;  %v1719_v31 = vmul.f32 %v1718_v17, %v7167_v2  ;;  %v2705_v8 = vmul.f32 %v2704_v0, %v6904_v56 }
 0x468   :  { %s8215_s28 = sld [smem:[#allocation6 + $0xf8]]  ;;  %v2694_v9 = vadd.f32 %v2693_v47, %v2690_v7  ;;  %v2304_v34 = vadd.f32 %v2303_v54, %v2300_v28  ;;  %v2311_v38 = vmul.f32 %v2310_v3, %v6683_v37  ;;  %v2709_v54 = vmul.f32 %v2708_v20, %v6945_v24 }
 0x469   :  { %s8220_s13 = sld [smem:[#allocation6 + $0xf9]]  ;;  %v2314_v27 = vstv %s8191_s24  ;;  %v1708_v62 = vadd.f32 %v1707_v63, %v1704_v49  ;;  %v2712_v3 = vstv %s8135_s16  ;;  %v2720_v63 = vstv %s8145_s2 }
 0x46a   :  { %s8224_s6 = sld [smem:[#allocation6 + $0x146]]  ;;  %v2698_v59 = vadd.f32 %v2697_v23, %v2694_v9  ;;  %v2308_v47 = vadd.f32 %v2307_v16, %v2304_v34  ;;  %v2318_v7 = vstv %s8196_s20  ;;  %v2315_v21 = vmul.f32 %v2314_v27, %v6472_v33 }
 0x46b   :  { %s8228_s8 = sld [smem:[#allocation6 + $0x147]]  ;;  %v2322_v17 = vstv %s8201_s9  ;;  %v1712_v6 = vadd.f32 %v1711_v32, %v1708_v62  ;;  %v2716_v9 = vstv %s8140_s11  ;;  %v2319_v34 = vmul.f32 %v2318_v7, %v6724_v26 }
 0x46c   :  { %s8233_s10 = sld [smem:[#allocation6 + $0xfa]]  ;;  %v2702_v28 = vadd.f32 %v2701_v12, %v2698_v59  ;;  %v2312_v16 = vadd.f32 %v2311_v38, %v2308_v47  ;;  %v2323_v49 = vmul.f32 %v2322_v17, %v6753_v13  ;;  %v2713_v47 = vmul.f32 %v2712_v3, %v6949_v19 }
 0x46d   :  { %s8238_s3 = sld [smem:[#allocation6 + $0xfb]]  ;;  %v1716_v20 = vadd.f32 %v1715_v11, %v1712_v6  ;;  %v2717_v38 = vmul.f32 %v2716_v9, %v6986_v4  ;;  %v2724_v7 = vstv %s8150_s0  ;;  %v2721_v3 = vmul.f32 %v2720_v63, %v6885_v22 }
 0x46e   :  { %s8241_s4 = sld [smem:[#allocation6 + $0x148]]  ;;  %v2706_v23 = vadd.f32 %v2705_v8, %v2702_v28  ;;  %v2316_v0 = vadd.f32 %v2315_v21, %v2312_v16  ;;  %v2326_v59 = vstv %s8215_s28  ;;  %v5539_v8 = vmov 0.0  }
 0x46f   :  { %s8247_s18 = sld [smem:[#allocation6 + $0xfc]]  ;;  %v2330_v12 = vstv %s8220_s13  ;;  %5184 = vmatprep.subr.mxu1 %v5539_v8  ;;  %v8265_v11 = vadd.f32 %v1719_v31, %v1716_v20  ;;  %5214 = vmatprep.subr.mxu0 %v5539_v8  ;;  %v2327_v16 = vmul.f32 %v2326_v59, %v6757_v44  ;;  %v2728_v9 = vstv %s8176_s26 }
 0x470   :  { %s8249_s23 = sld [smem:[#allocation6 + $0x149]]  ;;  %v2710_v27 = vadd.f32 %v2709_v54, %v2706_v23  ;;  %v2320_v62 = vadd.f32 %v2319_v34, %v2316_v0  ;;  %v2331_v31 = vmul.f32 %v2330_v12, %v6792_v57  ;;  %v2732_v20 = vstv %s8186_s5  ;;  %5196 = vmatprep.mubr.msk.f32.mxu1 %vm5540_vm5, %v5539_v8  ;;  %5226 = vmatprep.mubr.msk.f32.mxu0 %vm5540_vm5, %v5539_v8 }
 0x471   :  { %s8255_s14 = sld [smem:[#allocation6 + $0xfd]]  ;;  %1722 = vrot.lane.b32.xlu0 %v8265_v11, %s9841_s17  ;;  %v2736_v12 = vstv %s8203_s30 }
 0x472   :  { %s10042_s25 = sld [smem:[#allocation132_spill]]  ;;  %v2714_v28 = vadd.f32 %v2713_v47, %v2710_v27  ;;  %v2324_v54 = vadd.f32 %v2323_v49, %v2320_v62  ;;  %v2334_v23 = vstv %s8233_s10  ;;  %v2725_v49 = vmul.f32 %v2724_v7, %v7027_v58 }
 0x473   :  { %s8262_s29 = sld [smem:[#allocation6 + $0xfe]]  ;;  %v2338_v0 = vstv %s8238_s3 }
 0x474   :  { %s8268_s16 = sld [smem:[#allocation6 + $0xff]]  ;;  %v2718_v34 = vadd.f32 %v2717_v38, %v2714_v28  ;;  %v2328_v59 = vadd.f32 %v2327_v16, %v2324_v54  ;;  %v2335_v38 = vmul.f32 %v2334_v23, %v6536_v35  ;;  %v2339_v62 = vmul.f32 %v2338_v0, %v6829_v43 }
 0x475   :  { %s8276_s7 = sld [smem:[#allocation6 + $0x100]]  ;;  %v2733_v28 = vmul.f32 %v2732_v20, %v7066_v53  ;;  %v2737_v23 = vmul.f32 %v2736_v12, %v7062_v50  ;;  %v2748_v0 = vstv %s8228_s8 }
 0x476   :  { %s8291_s15 = sld [smem:[#allocation6 + $0x101]]  ;;  %v2722_v27 = vadd.f32 %v2721_v3, %v2718_v34  ;;  %v2332_v47 = vadd.f32 %v2331_v31, %v2328_v59  ;;  %v2740_v31 = vstv %s8210_s27 }
 0x477   :  { %s8296_s24 = sld [smem:[#allocation6 + $0x102]]  ;;  %v2346_v54 = vstv %s8255_s14 }
 0x478   :  { %v4502_v32 = vld [vmem:[%s10042_s25 + $0x58] sm:$0x3f]  ;;  %v4501_v17 = vld [vmem:[%s10042_s25 + $0x50] sm:$0xff]  ;;  %v4500_v21 = vld [vmem:[%s10042_s25 + $0x48] sm:$0xff]  ;;  %s8300_s20 = sld [smem:[#allocation6 + $0x103]]  ;;  %v2726_v16 = vadd.f32 %v2725_v49, %v2722_v27  ;;  %v2347_v59 = vmul.f32 %v2346_v54, %v6869_v52 }
 0x479   :  { %5185 = vmatpush3.msk.msra.mxu1 %vm1182_vm4, %v4502_v32  ;;  %v4654_v6 = vld [vmem:[%s10042_s25 + $0x118] sm:$0x3f]  ;;  %v2342_v32 = vstv %s8247_s18  ;;  %v4499_v63 = vld [vmem:[%s10042_s25 + $0x40] sm:$0xff]  ;;  %s8309_s5 = sld [smem:[#allocation6 + $0x104]]  ;;  %v4653_v7 = vld [vmem:[%s10042_s25 + $0x110] sm:$0xff] }
 0x47a   :  { %5186 = vmatprep.subr.mxu1 %v5539_v8  ;;  %5215 = vmatpush3.msk.msra.mxu0 %vm1182_vm4, %v4654_v6  ;;  %s8317_s13 = sld [smem:[#allocation6 + $0x1a4]]  ;;  %v2336_v6 = vadd.f32 %v2335_v38, %v2332_v47  ;;  %v4498_v3 = vld [vmem:[%s10042_s25 + $0x38] sm:$0xff]  ;;  %v2343_v34 = vmul.f32 %v2342_v32, %v6825_v41  ;;  %v4497_v12 = vld [vmem:[%s10042_s25 + $0x30] sm:$0xff]  ;;  %v2741_v32 = vmul.f32 %v2740_v31, %v7073_v25  ;;  %v2752_v47 = vstv %s8241_s4 }
 0x47b   :  { %5187 = vmatpush3.msra.mxu1 %v4501_v17  ;;  %v2729_v17 = vmul.f32 %v2728_v9, %v7023_v29  ;;  %5216 = vmatprep.subr.mxu0 %v5539_v8  ;;  %s8323_s10 = sld [smem:[#allocation6 + $0x1a5]]  ;;  %v4652_v9 = vld [vmem:[%s10042_s25 + $0x108] sm:$0xff]  ;;  %v2354_v38 = vstv %s8268_s16  ;;  %v2358_v54 = vstv %s8276_s7  ;;  %v2756_v31 = vstv %s8249_s23 }
 0x47c   :  { %5188 = vmatprep.subr.mxu1 %v5539_v8  ;;  %s8334_s27 = sld [smem:[#allocation6 + $0x1a6]]  ;;  %5217 = vmatpush3.msra.mxu0 %v4653_v7  ;;  %v2340_v20 = vadd.f32 %v2339_v62, %v2336_v6  ;;  %v4651_v62 = vld [vmem:[%s10042_s25 + $0x100] sm:$0xff] }
 0x47d   :  { %5189 = vmatpush3.msra.mxu1 %v4500_v21  ;;  %v2744_v21 = vstv %s8224_s6  ;;  %v2730_v49 = vadd.f32 %v2729_v17, %v2726_v16  ;;  %s8339_s6 = sld [smem:[#allocation6 + $0x1a7]]  ;;  %5218 = vmatprep.subr.mxu0 %v5539_v8  ;;  %v2749_v16 = vmul.f32 %v2748_v0, %v7134_v36  ;;  %v4650_v0 = vld [vmem:[%s10042_s25 + $0xf8] sm:$0xff] }
 0x47e   :  { %5190 = vmatprep.subr.mxu1 %v5539_v8  ;;  %v2745_v27 = vmul.f32 %v2744_v21, %v7101_v5  ;;  %s8349_s8 = sld [smem:[#allocation6 + $0x1a8]]  ;;  %5219 = vmatpush3.msra.mxu0 %v4652_v9  ;;  %v2344_v17 = vadd.f32 %v2343_v34, %v2340_v20  ;;  %v2355_v9 = vmul.f32 %v2354_v38, %v6606_v40  ;;  %v2362_v34 = vstv %s8291_s15 }
 0x47f   :  { %5191 = vmatpush3.msra.mxu1 %v4499_v63  ;;  %v2350_v63 = vstv %s8262_s29  ;;  %v2734_v7 = vadd.f32 %v2733_v28, %v2730_v49  ;;  %s8355_s0 = sld [smem:[#allocation6 + $0x105]]  ;;  %5220 = vmatprep.subr.mxu0 %v5539_v8  ;;  %v2359_v49 = vmul.f32 %v2358_v54, %v6904_v56  ;;  %v2366_v20 = vstv %s8296_s24 }
 0x480   :  { %5192 = vmatprep.subr.mxu1 %v5539_v8  ;;  %v2351_v21 = vmul.f32 %v2350_v63, %v6865_v46  ;;  %v3333_v6 = vstv %s8317_s13  ;;  %s8362_s4 = sld [smem:[#allocation6 + $0x1a9]]  ;;  %5221 = vmatpush3.msra.mxu0 %v4651_v62  ;;  %v4649_v62 = vld [vmem:[%s10042_s25 + $0xf0] sm:$0xff] }
 0x481   :  { %5193 = vmatpush3.msra.mxu1 %v4498_v3  ;;  %v2738_v28 = vadd.f32 %v2737_v23, %v2734_v7  ;;  %v2348_v3 = vadd.f32 %v2347_v59, %v2344_v17  ;;  %s8367_s16 = sld [smem:[#allocation6 + $0x1aa]]  ;;  %v3336_v63 = vstv %s8323_s10  ;;  %5222 = vmatprep.subr.mxu0 %v5539_v8  ;;  %v2363_v7 = vmul.f32 %v2362_v34, %v6945_v24 }
 0x482   :  { %5194 = vmatprep.subr.mxu1 %v5539_v8  ;;  %v3340_v10 = vstv %s8334_s27  ;;  %s8376_s23 = sld [smem:[#allocation6 + $0x1ab]]  ;;  %v3337_v38 = vmul.f32 %v3336_v63, %v6631_v45  ;;  %v2370_v17 = vstv %s8300_s20  ;;  %5223 = vmatpush3.msra.mxu0 %v4650_v0  ;;  %v2753_v34 = vmul.f32 %v2752_v47, %v7137_v18 }
 0x483   :  { %5195 = vmatpush3.msra.mxu1 %v4497_v12  ;;  %v2742_v23 = vadd.f32 %v2741_v32, %v2738_v28  ;;  %v2352_v59 = vadd.f32 %v2351_v21, %v2348_v3  ;;  %s8381_s21 = sld [smem:[#allocation6 + $0x106]]  ;;  %v3334_v12 = vmul.f32 %v3333_v6, %v6398_v39  ;;  %v3341_v32 = vmul.f32 %v3340_v10, %v6627_v61 }
 0x484   :  { %5199 = vmatprep.subr.mxu1 %v5539_v8  ;;  %s8391_s24 = sld [smem:[#allocation6 + $0x107]]  ;;  %v3344_v54 = vstv %s8339_s6  ;;  %5224 = vmatprep.subr.mxu0 %v5539_v8  ;;  %v2757_v10 = vmul.f32 %v2756_v31, %v7167_v2  ;;  %v3348_v0 = vstv %s8349_s8  ;;  %v2367_v63 = vmul.f32 %v2366_v20, %v6949_v19 }
 0x485   :  { %v2746_v21 = vadd.f32 %v2745_v27, %v2742_v23  ;;  %v2356_v6 = vadd.f32 %v2355_v9, %v2352_v59  ;;  %v3338_v28 = vadd.f32 %v3337_v38, %v3334_v12  ;;  %v3345_v3 = vmul.f32 %v3344_v54, %v6687_v1  ;;  %s8398_s26 = sld [smem:[#allocation6 + $0x1ac]]  ;;  %5225 = vmatpush3.msra.mxu0 %v4649_v62 }
 0x486   :  { %s8404_s20 = sld [smem:[#allocation6 + $0x1ad]]  ;;  %5244 = vmatprep.subr.mxu0 %v5539_v8  ;;  %v2371_v59 = vmul.f32 %v2370_v17, %v6986_v4  ;;  %v2374_v47 = vstv %s8309_s5  ;;  %v2378_v12 = vstv %s8355_s0  ;;  %v3352_v31 = vstv %s8362_s4 }
 0x487   :  { %v2750_v27 = vadd.f32 %v2749_v16, %v2746_v21  ;;  %v2360_v9 = vadd.f32 %v2359_v49, %v2356_v6  ;;  %s8407_s9 = sld [smem:[#allocation6 + $0x108]]  ;;  %v3342_v23 = vadd.f32 %v3341_v32, %v3338_v28  ;;  %v3349_v62 = vmul.f32 %v3348_v0, %v6683_v37 }
 0x488   :  { %s8413_s30 = sld [smem:[#allocation6 + $0x109]]  ;;  %v3356_v20 = vstv %s8367_s16  ;;  %v3360_v32 = vstv %s8376_s23  ;;  %v3353_v6 = vmul.f32 %v3352_v31, %v6472_v33  ;;  %v2379_v28 = vmul.f32 %v2378_v12, %v7027_v58 }
 0x489   :  { %v2754_v38 = vadd.f32 %v2753_v34, %v2750_v27  ;;  %v2364_v16 = vadd.f32 %v2363_v7, %v2360_v9  ;;  %v3346_v49 = vadd.f32 %v3345_v3, %v3342_v23  ;;  %s8417_s28 = sld [smem:[#allocation6 + $0x1ae]]  ;;  %v2375_v7 = vmul.f32 %v2374_v47, %v6885_v22 }
 0x48a   :  { %s8421_s13 = sld [smem:[#allocation6 + $0x1af]]  ;;  %v2382_v3 = vstv %s8381_s21  ;;  %v2386_v34 = vstv %s8391_s24  ;;  %v3357_v27 = vmul.f32 %v3356_v20, %v6724_v26  ;;  %v3361_v9 = vmul.f32 %v3360_v32, %v6753_v13 }
 0x48b   :  { %v8423_v54 = vadd.f32 %v2757_v10, %v2754_v38  ;;  %v2368_v17 = vadd.f32 %v2367_v63, %v2364_v16  ;;  %s8425_s5 = sld [smem:[#allocation6 + $0x10a]]  ;;  %v3350_v21 = vadd.f32 %v3349_v62, %v3346_v49  ;;  %v3364_v63 = vstv %s8398_s26 }
 0x48c   :  { %s8432_s10 = sld [smem:[#allocation6 + $0x10b]]  ;;  %v3368_v23 = vstv %s8404_s20  ;;  %v2383_v31 = vmul.f32 %v2382_v3, %v7023_v29  ;;  %v3365_v62 = vmul.f32 %v3364_v63, %v6757_v44 }
 0x48d   :  { %2760 = vrot.lane.b32.xlu1 %v8423_v54, %s9841_s17  ;;  %v2372_v10 = vadd.f32 %v2371_v59, %v2368_v17  ;;  %v3354_v0 = vadd.f32 %v3353_v6, %v3350_v21  ;;  %s8438_s3 = sld [smem:[#allocation6 + $0x1b0]]  ;;  %v2387_v59 = vmul.f32 %v2386_v34, %v7066_v53  ;;  %v2390_v38 = vstv %s8407_s9 }
 0x48e   :  { %s8442_s18 = sld [smem:[#allocation6 + $0x1b1]]  ;;  %v3369_v20 = vmul.f32 %v3368_v23, %v6792_v57 }
 0x48f   :  { %v2376_v47 = vadd.f32 %v2375_v7, %v2372_v10  ;;  %s8444_s1 = sld [smem:[#allocation6 + $0x10c]]  ;;  %v3358_v12 = vadd.f32 %v3357_v27, %v3354_v0  ;;  %v3372_v32 = vstv %s8417_s28  ;;  %v2391_v7 = vmul.f32 %v2390_v38, %v7062_v50 }
 0x490   :  { %s8449_s14 = sld [smem:[#allocation6 + $0x10d]]  ;;  %v3376_v17 = vstv %s8421_s13  ;;  %v3373_v27 = vmul.f32 %v3372_v32, %v6536_v35 }
 0x491   :  { %v2380_v16 = vadd.f32 %v2379_v28, %v2376_v47  ;;  %v3362_v49 = vadd.f32 %v3361_v9, %v3358_v12  ;;  %s8453_s27 = sld [smem:[#allocation6 + $0x1b2]]  ;;  %v2394_v28 = vstv %s8413_s30  ;;  %v2398_v3 = vstv %s8425_s5 }
 0x492   :  { %s8457_s6 = sld [smem:[#allocation6 + $0x1b3]]  ;;  %v2402_v34 = vstv %s8432_s10  ;;  %v3377_v9 = vmul.f32 %v3376_v17, %v6829_v43  ;;  %v2395_v12 = vmul.f32 %v2394_v28, %v7073_v25 }
 0x493   :  { %v2384_v21 = vadd.f32 %v2383_v31, %v2380_v16  ;;  %v3366_v6 = vadd.f32 %v3365_v62, %v3362_v49  ;;  %s8459_s19 = sld [smem:[#allocation6 + $0x1b4]]  ;;  %v3380_v63 = vstv %s8438_s3  ;;  %v2403_v38 = vmul.f32 %v2402_v34, %v7134_v36 }
 0x494   :  { %s8465_s11 = sld [smem:[#allocation6 + $0x1b5]]  ;;  %v3384_v23 = vstv %s8442_s18  ;;  %v3381_v32 = vmul.f32 %v3380_v63, %v6825_v41 }
 0x495   :  { %v2388_v10 = vadd.f32 %v2387_v59, %v2384_v21  ;;  %v3370_v0 = vadd.f32 %v3369_v20, %v3366_v6  ;;  %s8469_s8 = sld [smem:[#allocation6 + $0x1b6]]  ;;  %v2399_v59 = vmul.f32 %v2398_v3, %v7101_v5  ;;  %v2406_v16 = vstv %s8444_s1 }
 0x496   :  { %s8473_s29 = sld [smem:[#allocation6 + $0x1b7]]  ;;  %v2410_v49 = vstv %s8449_s14  ;;  %v3385_v17 = vmul.f32 %v3384_v23, %v6869_v52  ;;  %v2407_v28 = vmul.f32 %v2406_v16, %v7137_v18 }
 0x497   :  { %v2392_v47 = vadd.f32 %v2391_v7, %v2388_v10  ;;  %v3374_v31 = vadd.f32 %v3373_v27, %v3370_v0  ;;  %s8476_s2 = sld [smem:[#allocation6 + $0x1b8]]  ;;  %v3388_v21 = vstv %s8453_s27  ;;  %v2411_v3 = vmul.f32 %v2410_v49, %v7167_v2 }
 0x498   :  { %s8482_s0 = sld [smem:[#allocation6 + $0x168]]  ;;  %v3392_v34 = vstv %s8457_s6 }
 0x499   :  { %v2396_v62 = vadd.f32 %v2395_v12, %v2392_v47  ;;  %v3378_v20 = vadd.f32 %v3377_v9, %v3374_v31  ;;  %s8486_s4 = sld [smem:[#allocation6 + $0x169]]  ;;  %v3396_v10 = vstv %s8459_s19  ;;  %v3389_v9 = vmul.f32 %v3388_v21, %v6865_v46 }
 0x49a   :  { %s8489_s16 = sld [smem:[#allocation6 + $0x16a]]  ;;  %v3400_v63 = vstv %s8465_s11  ;;  %v3393_v31 = vmul.f32 %v3392_v34, %v6606_v40 }
 0x49b   :  { %v2400_v6 = vadd.f32 %v2399_v59, %v2396_v62  ;;  %v3382_v7 = vadd.f32 %v3381_v32, %v3378_v20  ;;  %s8491_s7 = sld [smem:[#allocation6 + $0x16b]]  ;;  %v3397_v59 = vmul.f32 %v3396_v10, %v6904_v56  ;;  %v3404_v16 = vstv %s8469_s8 }
 0x49c   :  { %s8497_s22 = sld [smem:[#allocation6 + $0x16c]] }
 0x49d   :  { %v2404_v0 = vadd.f32 %v2403_v38, %v2400_v6  ;;  %v3386_v27 = vadd.f32 %v3385_v17, %v3382_v7  ;;  %s8501_s23 = sld [smem:[#allocation6 + $0x1b9]]  ;;  %v3401_v38 = vmul.f32 %v3400_v63, %v6945_v24  ;;  %v3408_v6 = vstv %s8473_s29 }
 0x49e   :  { %v2987_v23 = vstv %s8482_s0  ;;  %s8504_s21 = sld [smem:[#allocation6 + $0x16d]] }
 0x49f   :  { %v2408_v47 = vadd.f32 %v2407_v28, %v2404_v0  ;;  %v3390_v12 = vadd.f32 %v3389_v9, %v3386_v27  ;;  %s8508_s12 = sld [smem:[#allocation6 + $0x16e]]  ;;  %v2990_v49 = vstv %s8486_s4  ;;  %v2988_v17 = vmul.f32 %v2987_v23, %v6398_v39 }
 0x4a0   :  { %v2994_v62 = vstv %s8489_s16  ;;  %s8514_s15 = sld [smem:[#allocation6 + $0x16f]]  ;;  %v2991_v21 = vmul.f32 %v2990_v49, %v6631_v45  ;;  %v3405_v39 = vmul.f32 %v3404_v16, %v6949_v19  ;;  %v3409_v27 = vmul.f32 %v3408_v6, %v6986_v4 }
 0x4a1   :  { %v8516_v20 = vadd.f32 %v2411_v3, %v2408_v47  ;;  %v3394_v32 = vadd.f32 %v3393_v31, %v3390_v12  ;;  %s8518_s24 = sld [smem:[#allocation6 + $0x1ba]]  ;;  %v2998_v7 = vstv %s8491_s7  ;;  %v2995_v34 = vmul.f32 %v2994_v62, %v6627_v61 }
 0x4a2   :  { %s8523_s26 = sld [smem:[#allocation6 + $0x1bb]]  ;;  %v2992_v3 = vadd.f32 %v2991_v21, %v2988_v17  ;;  %v2999_v10 = vmul.f32 %v2998_v7, %v6687_v1  ;;  %v3002_v45 = vstv %s8497_s22  ;;  %v3412_v9 = vstv %s8476_s2 }
 0x4a3   :  { %2414 = vrot.lane.b32.xlu0 %v8516_v20, %s9841_s17  ;;  %v3398_v28 = vadd.f32 %v3397_v59, %v3394_v32  ;;  %s8530_s20 = sld [smem:[#allocation6 + $0x170]]  ;;  %v3416_v23 = vstv %s8501_s23  ;;  %v3003_v12 = vmul.f32 %v3002_v45, %v6683_v37  ;;  %v3413_v31 = vmul.f32 %v3412_v9, %v6885_v22 }
 0x4a4   :  { %s8534_s9 = sld [smem:[#allocation6 + $0x171]]  ;;  %v2996_v63 = vadd.f32 %v2995_v34, %v2992_v3  ;;  %v3006_v61 = vstv %s8504_s21  ;;  %v3417_v49 = vmul.f32 %v3416_v23, %v7027_v58 }
 0x4a5   :  { %v3402_v0 = vadd.f32 %v3401_v38, %v3398_v28  ;;  %s8538_s30 = sld [smem:[#allocation6 + $0x1bc]]  ;;  %v3010_v59 = vstv %s8508_s12  ;;  %v3007_v32 = vmul.f32 %v3006_v61, %v6472_v33 }
 0x4a6   :  { %s8541_s28 = sld [smem:[#allocation6 + $0x1bd]]  ;;  %v3000_v47 = vadd.f32 %v2999_v10, %v2996_v63  ;;  %v3014_v38 = vstv %s8514_s15  ;;  %v3011_v7 = vmul.f32 %v3010_v59, %v6724_v26 }
 0x4a7   :  { %v3406_v1 = vadd.f32 %v3405_v39, %v3402_v0  ;;  %s8545_s13 = sld [smem:[#allocation6 + $0x172]]  ;;  %v3420_v17 = vstv %s8518_s24  ;;  %v3015_v28 = vmul.f32 %v3014_v38, %v6753_v13 }
 0x4a8   :  { %s8550_s5 = sld [smem:[#allocation6 + $0x173]]  ;;  %v3004_v62 = vadd.f32 %v3003_v12, %v3000_v47  ;;  %v3424_v37 = vstv %s8523_s26  ;;  %v3421_v10 = vmul.f32 %v3420_v17, %v7023_v29  ;;  %v1165_v17 = vpop.permute.xlu0 %1164 }
 0x4a9   :  { %v3410_v16 = vadd.f32 %v3409_v27, %v3406_v1  ;;  %s8553_s10 = sld [smem:[#allocation6 + $0x1be]]  ;;  %v3018_v3 = vstv %s8530_s20  ;;  %v3425_v39 = vmul.f32 %v3424_v37, %v7066_v53 }
 0x4aa   :  { %s8558_s3 = sld [smem:[#allocation6 + $0x1bf]]  ;;  %v3008_v6 = vadd.f32 %v3007_v32, %v3004_v62  ;;  %v3022_v34 = vstv %s8534_s9  ;;  %v3019_v9 = vmul.f32 %v3018_v3, %v6757_v44 }
 0x4ab   :  { %v3414_v21 = vadd.f32 %v3413_v31, %v3410_v16  ;;  %s8562_s18 = sld [smem:[#allocation6 + $0x174]]  ;;  %v3428_v26 = vstv %s8538_s30  ;;  %v3023_v63 = vmul.f32 %v3022_v34, %v6792_v57 }
 0x4ac   :  { %s8566_s1 = sld [smem:[#allocation6 + $0x175]]  ;;  %v3012_v45 = vadd.f32 %v3011_v7, %v3008_v6  ;;  %v3432_v13 = vstv %s8541_s28  ;;  %v3429_v47 = vmul.f32 %v3428_v26, %v7062_v50 }
 0x4ad   :  { %v3418_v33 = vadd.f32 %v3417_v49, %v3414_v21  ;;  %s8570_s14 = sld [smem:[#allocation6 + $0x1c0]]  ;;  %v3026_v23 = vstv %s8545_s13  ;;  %v3433_v31 = vmul.f32 %v3432_v13, %v7073_v25 }
 0x4ae   :  { %s8574_s27 = sld [smem:[#allocation6 + $0x1c1]]  ;;  %v3016_v27 = vadd.f32 %v3015_v28, %v3012_v45  ;;  %v3030_v61 = vstv %s8550_s5  ;;  %v3027_v16 = vmul.f32 %v3026_v23, %v6536_v35 }
 0x4af   :  { %v3422_v0 = vadd.f32 %v3421_v10, %v3418_v33  ;;  %s8580_s6 = sld [smem:[#allocation6 + $0x176]]  ;;  %v3436_v59 = vstv %s8553_s10  ;;  %v3031_v49 = vmul.f32 %v3030_v61, %v6829_v43 }
 0x4b0   :  { %v3020_v12 = vadd.f32 %v3019_v9, %v3016_v27  ;;  %v3440_v38 = vstv %s8558_s3  ;;  %s8586_s19 = sld [smem:[#allocation6 + $0x177]]  ;;  %v3437_v21 = vmul.f32 %v3436_v59, %v7101_v5  ;;  %v1858_v27 = vpop.permute.xlu0 %1857 }
 0x4b1   :  { %v3426_v1 = vadd.f32 %v3425_v39, %v3422_v0  ;;  %s8590_s11 = sld [smem:[#allocation6 + $0x178]]  ;;  %v3034_v62 = vstv %s8562_s18  ;;  %v3441_v6 = vmul.f32 %v3440_v38, %v7134_v36 }
 0x4b2   :  { %v3024_v57 = vadd.f32 %v3023_v63, %v3020_v12  ;;  %v3038_v32 = vstv %s8566_s1  ;;  %s8594_s8 = sld [smem:[#allocation6 + $0x179]]  ;;  %v3035_v34 = vmul.f32 %v3034_v62, %v6825_v41 }
 0x4b3   :  { %v3430_v44 = vadd.f32 %v3429_v47, %v3426_v1  ;;  %v3444_v28 = vstv %s8570_s14  ;;  %s8600_s29 = sld [smem:[#allocation6 + $0x17a]]  ;;  %v3039_v33 = vmul.f32 %v3038_v32, %v6869_v52  ;;  %v1167_v52 = vmax.f32 %v7201_v48, %v1165_v17  ;;  %v4578_v32 = vld [vmem:[%s10042_s25 + $0xb8] sm:$0x3f] }
 0x4b4   :  { %v3028_v7 = vadd.f32 %v3027_v16, %v3024_v57  ;;  %v3448_v3 = vstv %s8574_s27  ;;  %s4496_s2 = sld [smem:[#allocation7 + $0x1]]  ;;  %v3445_v45 = vmul.f32 %v3444_v28, %v7137_v18 }
 0x4b5   :  { %v3434_v37 = vadd.f32 %v3433_v31, %v3430_v44  ;;  %v3042_v10 = vstv %s8580_s6  ;;  %s8605_s0 = sld [smem:[#allocation6 + $0x17b]]  ;;  %v3449_v26 = vmul.f32 %v3448_v3, %v7167_v2  ;;  %v1860_v31 = vmax.f32 %v7400_v14, %v1858_v27 }
 0x4b6   :  { %v3032_v43 = vadd.f32 %v3031_v49, %v3028_v7  ;;  %s4648_s4 = sld [smem:[#allocation7 + $0x5]]  ;;  %v3046_v0 = vstv %s8586_s19  ;;  %v3043_v41 = vmul.f32 %v3042_v10, %v6865_v46  ;;  %v4806_v7 = vld [vmem:[%s10042_s25 + $0x1d8] sm:$0x3f] }
 0x4b7   :  { %v3438_v35 = vadd.f32 %v3437_v21, %v3434_v37  ;;  %s8611_s16 = sld [smem:[#allocation6 + $0x17c]]  ;;  %v3050_v23 = vstv %s8590_s11  ;;  %v3047_v12 = vmul.f32 %v3046_v0, %v6606_v40 }
 0x4b8   :  { %v3036_v13 = vadd.f32 %v3035_v34, %v3032_v43  ;;  %v3054_v61 = vstv %s8594_s8  ;;  %s8616_s7 = sld [smem:[#allocation6 + $0x17d]]  ;;  %v3051_v59 = vmul.f32 %v3050_v23, %v6904_v56  ;;  %v1512_v56 = vpop.permute.xlu1 %1511  ;;  %v4805_v43 = vld [vmem:[%s10042_s25 + $0x1d0] sm:$0xff] }
 0x4b9   :  { %v3442_v39 = vadd.f32 %v3441_v6, %v3438_v35  ;;  %s8622_s22 = sld [smem:[#allocation7 + $0x3]]  ;;  %v3055_v38 = vmul.f32 %v3054_v61, %v6945_v24  ;;  %v3058_v57 = vstv %s8600_s29  ;;  %v4577_v6 = vld [vmem:[%s10042_s25 + $0xb0] sm:$0xff]  ;;  %v4576_v35 = vld [vmem:[%s10042_s25 + $0xa8] sm:$0xff] }
 0x4ba   :  { %v3040_v63 = vadd.f32 %v3039_v33, %v3036_v13  ;;  %v1169_v46 = vstv %s4496_s2  ;;  %s8628_s23 = sld [smem:[#allocation6 + $0x17e]]  ;;  %v3059_v17 = vmul.f32 %v3058_v57, %v6949_v19  ;;  %v2550_v33 = vpop.permute.xlu0 %2549  ;;  %v4573_v61 = vld [vmem:[%s10042_s25 + $0x90] sm:$0xff] }
 0x4bb   :  { %v3446_v9 = vadd.f32 %v3445_v45, %v3442_v39  ;;  %v1170_v44 = vadd.f32 %v1169_v46, %v1167_v52  ;;  %v3062_v16 = vstv %s8605_s0  ;;  %s8632_s21 = sld [smem:[#allocation6 + $0x17f]]  ;;  %v4575_v45 = vld [vmem:[%s10042_s25 + $0xa0] sm:$0xff]  ;;  %v2552_v27 = vmax.f32 %v7607_v30, %v2550_v33  ;;  %v4730_v46 = vld [vmem:[%s10042_s25 + $0x178] sm:$0x3f]  ;;  %v4725_v33 = vld [vmem:[%s10042_s25 + $0x150] sm:$0xff] }
 0x4bc   :  { %v3044_v47 = vadd.f32 %v3043_v41, %v3040_v63  ;;  %v1862_v40 = vstv %s4648_s4  ;;  %s8637_s24 = sld [smem:[#allocation7 + $0x9]]  ;;  %v3063_v37 = vmul.f32 %v3062_v16, %v6986_v4  ;;  %v1514_v4 = vmax.f32 %v7194_v60, %v1512_v56  ;;  %v4803_v63 = vld [vmem:[%s10042_s25 + $0x1c0] sm:$0xff]  ;;  %v2204_v57 = vpop.permute.xlu1 %2203  ;;  %v4729_v16 = vld [vmem:[%s10042_s25 + $0x170] sm:$0xff] }
 0x4bd   :  { %v8618_v1 = vadd.f32 %v3449_v26, %v3446_v9  ;;  %v1171_v49 = vmax.f32 %v1170_v44, 0.0  ;;  %v1863_v62 = vadd.f32 %v1862_v40, %v1860_v31  ;;  %v3066_v28 = vstv %s8611_s16  ;;  %s8650_s28 = sld [smem:[#allocation6 + $0x180]]  ;;  %v4804_v26 = vld [vmem:[%s10042_s25 + $0x1c8] sm:$0xff]  ;;  %v4574_v9 = vld [vmem:[%s10042_s25 + $0x98] sm:$0xff] }
 0x4be   :  { %v3048_v48 = vadd.f32 %v3047_v12, %v3044_v47  ;;  %v3070_v3 = vstv %s8616_s7  ;;  %s8664_s18 = sld [smem:[#allocation6 + $0x181]]  ;;  %v3067_v10 = vmul.f32 %v3066_v28, %v6885_v22  ;;  %v4802_v47 = vld [vmem:[%s10042_s25 + $0x1b8] sm:$0xff]  ;;  %v2206_v56 = vmax.f32 %v7234_v15, %v2204_v57  ;;  %v4727_v15 = vld [vmem:[%s10042_s25 + $0x160] sm:$0xff] }
 0x4bf   :  { %3452 = vrot.lane.b32.xlu1 %v8618_v1, %s9841_s17  ;;  %v1864_v21 = vmax.f32 %v1863_v62, 0.0  ;;  %5197 = vmatmul.mubr.msk.f32.vlgmr.msra.gmra.mxu1 %vm662_vm1, %v1171_v49  ;;  %v1516_v34 = vstv %s8622_s22  ;;  %v3071_v39 = vmul.f32 %v3070_v3, %v7027_v58  ;;  %s8670_s1 = sld [smem:[#allocation6 + $0x182]]  ;;  %v4726_v3 = vld [vmem:[%s10042_s25 + $0x158] sm:$0xff] }
 0x4c0   :  { %v3052_v14 = vadd.f32 %v3051_v59, %v3048_v48  ;;  %5200 = vmatpush3.msk.msra.mxu1 %vm1182_vm4, %v4578_v32  ;;  %5211 = vmatprep.mubr.msk.f32.mxu1 %vm5540_vm5, %v5539_v8  ;;  %v3074_v13 = vstv %s8628_s23  ;;  %s8682_s11 = sld [smem:[#allocation6 + $0x183]]  ;;  %v1517_v58 = vadd.f32 %v1516_v34, %v1514_v4  ;;  %v4801_v59 = vld [vmem:[%s10042_s25 + $0x1b0] sm:$0xff]  ;;  %v4728_v32 = vld [vmem:[%s10042_s25 + $0x168] sm:$0xff] }
 0x4c1   :  { %5201 = vmatprep.subr.mxu1 %v5539_v8  ;;  %5227 = vmatmul.mubr.msk.f32.vlgmr.msra.gmra.mxu0 %vm662_vm1, %v1864_v21  ;;  %v3078_v0 = vstv %s8632_s21  ;;  %s8693_s4 = sld [smem:[#allocation6 + $0x184]]  ;;  %v3075_v30 = vmul.f32 %v3074_v13, %v7023_v29  ;;  %v4956_v4 = vld [vmem:[%s10042_s25 + $0x288] sm:$0xff] }
 0x4c2   :  { %v3056_v24 = vadd.f32 %v3055_v38, %v3052_v14  ;;  %5202 = vmatpush3.msra.mxu1 %v4577_v6  ;;  %5245 = vmatpush3.msk.msra.mxu0 %vm1182_vm4, %v4806_v7  ;;  %v2554_v41 = vstv %s8637_s24  ;;  %v3079_v23 = vmul.f32 %v3078_v0, %v7066_v53  ;;  %s8698_s16 = sld [smem:[#allocation7 + $0x7]]  ;;  %v1518_v53 = vmax.f32 %v1517_v58, 0.0  ;;  %v2896_v0 = vpop.permute.xlu1 %2895  ;;  %v4953_v58 = vld [vmem:[%s10042_s25 + $0x270] sm:$0xff] }
 0x4c3   :  { %5203 = vmatprep.subr.mxu1 %v5539_v8  ;;  %5246 = vmatprep.subr.mxu0 %v5539_v8  ;;  %v3082_v12 = vstv %s8650_s28  ;;  %s8709_s12 = sld [smem:[#allocation6 + $0x185]]  ;;  %v2555_v31 = vadd.f32 %v2554_v41, %v2552_v27  ;;  %v10043_v27 = vld [vmem:[#allocation129_spill] sm:$0xff]  ;;  %v4880_v41 = vld [vmem:[%s10042_s25 + $0x228] sm:$0xff] }
 0x4c4   :  { %v3060_v19 = vadd.f32 %v3059_v17, %v3056_v24  ;;  %5204 = vmatpush3.msra.mxu1 %v4576_v35  ;;  %5247 = vmatpush3.msra.mxu0 %v4805_v43  ;;  %v3086_v48 = vstv %s8664_s18  ;;  %v3083_v44 = vmul.f32 %v3082_v12, %v7062_v50  ;;  %s8731_s28 = sld [smem:[#allocation7 + $0xd]] }
 0x4c5   :  { %5205 = vmatprep.subr.mxu1 %v5539_v8  ;;  %5248 = vmatprep.subr.mxu0 %v5539_v8  ;;  %v3090_v40 = vstv %s8670_s1  ;;  %v3087_v62 = vmul.f32 %v3086_v48, %v7073_v25  ;;  %v2556_v50 = vmax.f32 %v2555_v31, 0.0  ;;  %v4958_v25 = vld [vmem:[%s10042_s25 + $0x298] sm:$0x3f]  ;;  %s8804_s20 = sld [smem:[#allocation7]] }
 0x4c6   :  { %v3064_v60 = vadd.f32 %v3063_v37, %v3060_v19  ;;  %5206 = vmatpush3.msra.mxu1 %v4575_v45  ;;  %5249 = vmatpush3.msra.mxu0 %v4804_v26  ;;  %v3094_v14 = vstv %s8682_s11  ;;  %v3091_v17 = vmul.f32 %v3090_v40, %v7101_v5  ;;  %v4957_v5 = vld [vmem:[%s10042_s25 + $0x290] sm:$0xff]  ;;  %v4954_v26 = vld [vmem:[%s10042_s25 + $0x278] sm:$0xff]  ;;  %s8842_s11 = sld [smem:[#allocation7 + $0xf]] }
 0x4c7   :  { %5207 = vmatprep.subr.mxu1 %v5539_v8  ;;  %5250 = vmatprep.subr.mxu0 %v5539_v8  ;;  %v3095_v37 = vmul.f32 %v3094_v14, %v7134_v36  ;;  %v3098_v6 = vstv %s8693_s4  ;;  %v3242_v36 = vpop.permute.xlu0 %3241  ;;  %v5033_v40 = vld [vmem:[%s10042_s25 + $0x2f0] sm:$0xff]  ;;  %v1038_v14 = vld [vmem:[%s10042_s25] sm:$0xff]  ;;  %s8906_s14 = sld [smem:[#allocation7 + $0x2]] }
 0x4c8   :  { %v3068_v22 = vadd.f32 %v3067_v10, %v3064_v60  ;;  %5208 = vmatpush3.msra.mxu1 %v4574_v9  ;;  %5251 = vmatpush3.msra.mxu0 %v4803_v63  ;;  %v2208_v21 = vstv %s8698_s16  ;;  %v3099_v43 = vmul.f32 %v3098_v6, %v7137_v18  ;;  %v3244_v60 = vmax.f32 %v7832_v51, %v3242_v36  ;;  %v4955_v10 = vld [vmem:[%s10042_s25 + $0x280] sm:$0xff]  ;;  %s8777_s16 = sld [smem:[#allocation7 + $0xb]]  ;;  %v4882_v51 = vld [vmem:[%s10042_s25 + $0x238] sm:$0x3f]  ;;  %v4614_v36 = vld [vmem:[%s10042_s25 + $0xd0] sm:$0xff] }
 0x4c9   :  { %5209 = vmatprep.subr.mxu1 %v5539_v8  ;;  %5252 = vmatprep.subr.mxu0 %v5539_v8  ;;  %v3102_v7 = vstv %s8709_s12  ;;  %v2209_v19 = vadd.f32 %v2208_v21, %v2206_v56  ;;  %v2898_v9 = vmax.f32 %v10043_v27, %v2896_v0  ;;  %s8868_s12 = sld [smem:[#allocation7 + $0x4]]  ;;  %v4617_v56 = vld [vmem:[%s10042_s25 + $0xe8] sm:$0x3f]  ;;  %v4615_v6 = vld [vmem:[%s10042_s25 + $0xd8] sm:$0xff]  ;;  %v4536_v0 = vld [vmem:[%s10042_s25 + $0x60] sm:$0xff] }
 0x4ca   :  { %v3072_v52 = vadd.f32 %v3071_v39, %v3068_v22  ;;  %5210 = vmatpush3.msra.mxu1 %v4573_v61  ;;  %5253 = vmatpush3.msra.mxu0 %v4802_v47  ;;  %v3103_v34 = vmul.f32 %v3102_v7, %v7167_v2  ;;  %v3246_v18 = vstv %s8731_s28  ;;  %v4881_v22 = vld [vmem:[%s10042_s25 + $0x230] sm:$0xff]  ;;  %v1042_v61 = vld [vmem:[%s10042_s25 + $0x20] sm:$0xff]  ;;  %s8962_s28 = sld [smem:[#allocation7 + $0x6]]  ;;  %v4693_v27 = vld [vmem:[%s10042_s25 + $0x148] sm:$0x3f] }
 0x4cb   :  { %5212 = vmatmul.mubr.msk.f32.vlgmr.msra.gmra.mxu1 %vm662_vm1, %v1518_v53  ;;  %5229 = vmatprep.subr.mxu1 %v5539_v8  ;;  %v2210_v2 = vmax.f32 %v2209_v19, 0.0  ;;  %v3247_v13 = vadd.f32 %v3246_v18, %v3244_v60  ;;  %v1031_v47 = vpop.permute.xlu0 %1030  ;;  %v1041_v53 = vld [vmem:[%s10042_s25 + $0x18] sm:$0xff]  ;;  %v1035_v48 = vstv %s8804_s20  ;;  %v4613_v19 = vld [vmem:[%s10042_s25 + $0xc8] sm:$0xff]  ;;  %s4839_s23 = sld [smem:[#allocation7 + $0xa]] }
 0x4cc   :  { %v3076_v29 = vadd.f32 %v3075_v30, %v3072_v52  ;;  %5230 = vmatpush3.msk.msra.mxu1 %vm1182_vm4, %v4730_v46  ;;  %5254 = vmatprep.subr.mxu0 %v5539_v8  ;;  %v1043_v52 = vld [vmem:[%s10042_s25 + $0x28] sm:$0x3f]  ;;  %v1033_v31 = vmax.f32 %v8046_v55, %v1031_v47  ;;  %v4877_v46 = vld [vmem:[%s10042_s25 + $0x210] sm:$0xff]  ;;  %v5034_v55 = vld [vmem:[%s10042_s25 + $0x2f8] sm:$0x3f]  ;;  %s10046_s5 = sld [smem:[#allocation134_spill]] }
 0x4cd   :  { %5231 = vmatprep.subr.mxu1 %v5539_v8  ;;  %5255 = vmatpush3.msra.mxu0 %v4801_v59  ;;  %v3248_v63 = vmax.f32 %v3247_v13, 0.0  ;;  %v1040_v59 = vld [vmem:[%s10042_s25 + $0x10] sm:$0xff]  ;;  %v1381_v18 = vstv %s8906_s14  ;;  %v4767_v13 = vld [vmem:[%s10042_s25 + $0x198] sm:$0xff]  ;;  %s10047_s3 = sld [smem:[#allocation133_spill]] }
 0x4ce   :  { %v3080_v38 = vadd.f32 %v3079_v23, %v3076_v29  ;;  %5232 = vmatpush3.msra.mxu1 %v4729_v16  ;;  %5256 = vmatprep.mubr.msk.f32.mxu0 %vm5540_vm5, %v5539_v8  ;;  %v2900_v30 = vstv %s8777_s16  ;;  %v4879_v23 = vld [vmem:[%s10042_s25 + $0x220] sm:$0xff]  ;;  %v4878_v29 = vld [vmem:[%s10042_s25 + $0x218] sm:$0xff]  ;;  %v1036_v57 = vadd.f32 %v1035_v48, %v1033_v31  ;;  %v3588_v16 = vpop.permute.xlu1 %3587  ;;  %s4763_s16 = sld [smem:[#allocation7 + $0x8]]  ;;  %v4845_v48 = vld [vmem:[%s10042_s25 + $0x208] sm:$0x3f] }
 0x4cf   :  { %5233 = vmatprep.subr.mxu1 %v5539_v8  ;;  %5257 = vmatmul.mubr.msk.f32.vlgmr.msra.gmra.mxu0 %vm662_vm1, %v2556_v50  ;;  %v2901_v12 = vadd.f32 %v2900_v30, %v2898_v9  ;;  %v4765_v9 = vld [vmem:[%s10042_s25 + $0x188] sm:$0xff]  ;;  %v10045_v30 = vld [vmem:[#allocation131_spill] sm:$0xff]  ;;  %v4688_v31 = vld [vmem:[%s10042_s25 + $0x120] sm:$0xff]  ;;  %s10048_s14 = sld [smem:[#allocation135_spill]] }
 0x4d0   :  { %v3084_v49 = vadd.f32 %v3083_v44, %v3080_v38  ;;  %5274 = vmatprep.subr.mxu0 %v5539_v8  ;;  %5234 = vmatpush3.msra.mxu1 %v4728_v32  ;;  %v1039_v44 = vld [vmem:[%s10042_s25 + $0x8] sm:$0xff]  ;;  %v1037_v50 = vmax.f32 %v1036_v57, 0.0  ;;  %v2073_v47 = vstv %s8962_s28  ;;  %v4843_v57 = vld [vmem:[%s10042_s25 + $0x1f8] sm:$0xff]  ;;  %s4915_s28 = sld [smem:[#allocation7 + $0xc]] }
 0x4d1   :  { %5275 = vmatpush3.msk.msra.mxu0 %vm1182_vm4, %v4958_v25  ;;  %5235 = vmatprep.subr.mxu1 %v5539_v8  ;;  %v2902_v38 = vmax.f32 %v2901_v12, 0.0  ;;  %v5032_v32 = vld [vmem:[%s10042_s25 + $0x2e8] sm:$0xff]  ;;  %v3592_v25 = vstv %s8842_s11  ;;  %v4690_v12 = vld [vmem:[%s10042_s25 + $0x130] sm:$0xff]  ;;  %s10049_s19 = sld [smem:[#allocation136_spill]] }
 0x4d2   :  { %v3088_v24 = vadd.f32 %v3087_v62, %v3084_v49  ;;  %5276 = vmatprep.subr.mxu0 %v5539_v8  ;;  %5236 = vmatpush3.msra.mxu1 %v4727_v15  ;;  %v10044_v49 = vld [vmem:[#allocation130_spill] sm:$0xff]  ;;  %v5030_v15 = vld [vmem:[%s10042_s25 + $0x2d8] sm:$0xff] }
 0x4d3   :  { %5277 = vmatpush3.msra.mxu0 %v4957_v5  ;;  %5237 = vmatprep.subr.mxu1 %v5539_v8  ;;  %v3590_v62 = vmax.f32 %v10044_v49, %v3588_v16  ;;  %v5029_v5 = vld [vmem:[%s10042_s25 + $0x2d0] sm:$0xff] }
 0x4d4   :  { %v3092_v28 = vadd.f32 %v3091_v17, %v3088_v24  ;;  %5278 = vmatprep.subr.mxu0 %v5539_v8  ;;  %5238 = vmatpush3.msra.mxu1 %v4726_v3  ;;  %v5031_v24 = vld [vmem:[%s10042_s25 + $0x2e0] sm:$0xff]  ;;  %v4842_v49 = vld [vmem:[%s10042_s25 + $0x1f0] sm:$0xff] }
 0x4d5   :  { %5279 = vmatpush3.msra.mxu0 %v4956_v4  ;;  %5239 = vmatprep.subr.mxu1 %v5539_v8  ;;  %v4616_v17 = vld [vmem:[%s10042_s25 + $0xe0] sm:$0xff]  ;;  %v3593_v21 = vadd.f32 %v3592_v25, %v3590_v62 }
 0x4d6   :  { %v3096_v35 = vadd.f32 %v3095_v37, %v3092_v28  ;;  %5280 = vmatprep.subr.mxu0 %v5539_v8  ;;  %5240 = vmatpush3.msra.mxu1 %v4725_v33  ;;  %v1727_v28 = vstv %s8868_s12  ;;  %v4840_v25 = vld [vmem:[%s10042_s25 + $0x1e0] sm:$0xff] }
 0x4d7   :  { %5241 = vmatprep.mubr.msk.f32.mxu1 %vm5540_vm5, %v5539_v8  ;;  %5281 = vmatpush3.msra.mxu0 %v4955_v10  ;;  %v3594_v3 = vmax.f32 %v3593_v21, 0.0  ;;  %v4539_v10 = vld [vmem:[%s10042_s25 + $0x78] sm:$0xff]  ;;  %v4918_v21 = vld [vmem:[%s10042_s25 + $0x250] sm:$0xff] }
 0x4d8   :  { %v3100_v39 = vadd.f32 %v3099_v43, %v3096_v35  ;;  %5242 = vmatmul.mubr.msk.f32.vlgmr.msra.gmra.mxu1 %vm662_vm1, %v2210_v2  ;;  %5259 = vmatprep.subr.mxu1 %v5539_v8  ;;  %v1377_v35 = vpop.permute.xlu1 %1376  ;;  %v4540_v43 = vld [vmem:[%s10042_s25 + $0x80] sm:$0xff] }
 0x4d9   :  { %5282 = vmatprep.subr.mxu0 %v5539_v8  ;;  %5260 = vmatpush3.msk.msra.mxu1 %vm1182_vm4, %v4882_v51  ;;  %v1379_v33 = vmax.f32 %v7939_v42, %v1377_v35  ;;  %v4538_v42 = vld [vmem:[%s10042_s25 + $0x70] sm:$0xff]  ;;  %v4768_v2 = vld [vmem:[%s10042_s25 + $0x1a0] sm:$0xff] }
 0x4da   :  { %v8782_v45 = vadd.f32 %v3103_v34, %v3100_v39  ;;  %5283 = vmatpush3.msra.mxu0 %v4954_v26  ;;  %5261 = vmatprep.subr.mxu1 %v5539_v8  ;;  %v4612_v34 = vld [vmem:[%s10042_s25 + $0xc0] sm:$0xff]  ;;  %v4769_v39 = vld [vmem:[%s10042_s25 + $0x1a8] sm:$0x3f] }
 0x4db   :  { %5284 = vmatprep.subr.mxu0 %v5539_v8  ;;  %5262 = vmatpush3.msra.mxu1 %v4881_v22  ;;  %v1382_v51 = vadd.f32 %v1381_v18, %v1379_v33  ;;  %v4537_v26 = vld [vmem:[%s10042_s25 + $0x68] sm:$0xff]  ;;  %v4766_v22 = vld [vmem:[%s10042_s25 + $0x190] sm:$0xff] }
 0x4dc   :  { %3106 = vrot.lane.b32.xlu0 %v8782_v45, %s9841_s17  ;;  %5285 = vmatpush3.msra.mxu0 %v4953_v58  ;;  %s4991_s17 = sld [smem:[#allocation7 + $0xe]] }
 0x4dd   :  { %5286 = vmatprep.mubr.msk.f32.mxu0 %vm5540_vm5, %v5539_v8  ;;  %5263 = vmatprep.subr.mxu1 %v5539_v8  ;;  %v1383_v58 = vmax.f32 %v1382_v51, 0.0 }
 0x4de   :  { %5287 = vmatmul.mubr.msk.f32.vlgmr.msra.gmra.mxu0 %vm662_vm1, %v3248_v63  ;;  %5304 = vmatprep.subr.mxu0 %v5539_v8  ;;  %v2069_v63 = vpop.permute.xlu1 %2068 }
 0x4df   :  { %5264 = vmatpush3.msra.mxu1 %v4880_v41  ;;  %5305 = vmatpush3.msk.msra.mxu0 %vm1182_vm4, %v1043_v52  ;;  %v4692_v41 = vld [vmem:[%s10042_s25 + $0x140] sm:$0xff] }
 0x4e0   :  { %5265 = vmatprep.subr.mxu1 %v5539_v8  ;;  %5306 = vmatprep.subr.mxu0 %v5539_v8  ;;  %v4764_v52 = vld [vmem:[%s10042_s25 + $0x180] sm:$0xff] }
 0x4e1   :  { %5266 = vmatpush3.msra.mxu1 %v4879_v23  ;;  %5307 = vmatpush3.msra.mxu0 %v1042_v61  ;;  %v2071_v23 = vmax.f32 %v10045_v30, %v2069_v63  ;;  %v4691_v61 = vld [vmem:[%s10042_s25 + $0x138] sm:$0xff] }
 0x4e2   :  { %5267 = vmatprep.subr.mxu1 %v5539_v8  ;;  %5308 = vmatprep.subr.mxu0 %v5539_v8 }
 0x4e3   :  { %5268 = vmatpush3.msra.mxu1 %v4878_v29  ;;  %5309 = vmatpush3.msra.mxu0 %v1041_v53  ;;  %v1723_v37 = vpop.permute.xlu0 %1722  ;;  %v2074_v29 = vadd.f32 %v2073_v47, %v2071_v23  ;;  %v4689_v53 = vld [vmem:[%s10042_s25 + $0x128] sm:$0xff]  ;;  %v4310_v47 = vld [vmem:[%s10046_s5 + $0x40] sm:$0xff] }
 0x4e4   :  { %5269 = vmatprep.subr.mxu1 %v5539_v8  ;;  %5310 = vmatprep.subr.mxu0 %v5539_v8  ;;  %v1725_v7 = vmax.f32 %v8265_v11, %v1723_v37  ;;  %v4541_v11 = vld [vmem:[%s10042_s25 + $0x88] sm:$0x3f] }
 0x4e5   :  { %5270 = vmatpush3.msra.mxu1 %v4877_v46  ;;  %5271 = vmatprep.mubr.msk.f32.mxu1 %vm5540_vm5, %v5539_v8  ;;  %v2075_v46 = vmax.f32 %v2074_v29, 0.0  ;;  %v4997_v37 = vld [vmem:[%s10042_s25 + $0x2c8] sm:$0x3f]  ;;  %v4308_v29 = vld [vmem:[%s10046_s5 + $0x30] sm:$0xff] }
 0x4e6   :  { %5311 = vmatpush3.msra.mxu0 %v1040_v59  ;;  %5272 = vmatmul.mubr.msk.f32.vlgmr.msra.gmra.mxu1 %vm662_vm1, %v2902_v38  ;;  %v1728_v4 = vadd.f32 %v1727_v28, %v1725_v7  ;;  %v4844_v38 = vld [vmem:[%s10042_s25 + $0x200] sm:$0xff]  ;;  %v4995_v7 = vld [vmem:[%s10042_s25 + $0x2b8] sm:$0xff]  ;;  %v4994_v28 = vld [vmem:[%s10042_s25 + $0x2b0] sm:$0xff] }
 0x4e7   :  { %5289 = vmatprep.subr.mxu1 %v5539_v8  ;;  %5312 = vmatprep.subr.mxu0 %v5539_v8  ;;  %v4311_v23 = vld [vmem:[%s10046_s5 + $0x48] sm:$0xff] }
 0x4e8   :  { %5290 = vmatpush3.msk.msra.mxu1 %vm1182_vm4, %v5034_v55  ;;  %5313 = vmatpush3.msra.mxu0 %v1039_v44  ;;  %v1729_v60 = vmax.f32 %v1728_v4, 0.0  ;;  %v2419_v55 = vstv %s4763_s16 }
 0x4e9   :  { %5291 = vmatprep.subr.mxu1 %v5539_v8  ;;  %5314 = vmatprep.subr.mxu0 %v5539_v8 }
 0x4ea   :  { %5292 = vmatpush3.msra.mxu1 %v5033_v40  ;;  %5315 = vmatpush3.msra.mxu0 %v1038_v14  ;;  %v2765_v14 = vstv %s4839_s23 }
 0x4eb   :  { %5316 = vmatprep.mubr.msk.f32.mxu0 %vm5540_vm5, %v5539_v8  ;;  %5293 = vmatprep.subr.mxu1 %v5539_v8 }
 0x4ec   :  { %5317 = vmatmul.mubr.msk.f32.vlgmr.msra.gmra.mxu0 %vm662_vm1, %v1037_v50  ;;  %5334 = vmatprep.subr.mxu0 %v5539_v8  ;;  %v4841_v50 = vld [vmem:[%s10042_s25 + $0x1e8] sm:$0xff] }
 0x4ed   :  { %5294 = vmatpush3.msra.mxu1 %v5032_v32  ;;  %5335 = vmatpush3.msk.msra.mxu0 %vm1182_vm4, %v4617_v56  ;;  %v4920_v56 = vld [vmem:[%s10042_s25 + $0x260] sm:$0xff] }
 0x4ee   :  { %5295 = vmatprep.subr.mxu1 %v5539_v8  ;;  %5336 = vmatprep.subr.mxu0 %v5539_v8 }
 0x4ef   :  { %5296 = vmatpush3.msra.mxu1 %v5031_v24  ;;  %5337 = vmatpush3.msra.mxu0 %v4616_v17  ;;  %v4919_v17 = vld [vmem:[%s10042_s25 + $0x258] sm:$0xff] }
 0x4f0   :  { %5297 = vmatprep.subr.mxu1 %v5539_v8  ;;  %5338 = vmatprep.subr.mxu0 %v5539_v8 }
 0x4f1   :  { %5298 = vmatpush3.msra.mxu1 %v5030_v15  ;;  %5339 = vmatpush3.msra.mxu0 %v4615_v6  ;;  %v4996_v15 = vld [vmem:[%s10042_s25 + $0x2c0] sm:$0xff]  ;;  %v4917_v6 = vld [vmem:[%s10042_s25 + $0x248] sm:$0xff] }
 0x4f2   :  { %5299 = vmatprep.subr.mxu1 %v5539_v8  ;;  %5340 = vmatprep.subr.mxu0 %v5539_v8 }
 0x4f3   :  { %5300 = vmatpush3.msra.mxu1 %v5029_v5  ;;  %5301 = vmatprep.mubr.msk.f32.mxu1 %vm5540_vm5, %v5539_v8  ;;  %v4916_v5 = vld [vmem:[%s10042_s25 + $0x240] sm:$0xff] }
 0x4f4   :  { %5341 = vmatpush3.msra.mxu0 %v4614_v36  ;;  %5302 = vmatmul.mubr.msk.f32.vlgmr.msra.gmra.mxu1 %vm662_vm1, %v3594_v3  ;;  %v4993_v36 = vld [vmem:[%s10042_s25 + $0x2a8] sm:$0xff]  ;;  %v4992_v3 = vld [vmem:[%s10042_s25 + $0x2a0] sm:$0xff] }
 0x4f5   :  { %5319 = vmatprep.subr.mxu1 %v5539_v8  ;;  %5342 = vmatprep.subr.mxu0 %v5539_v8 }
 0x4f6   :  { %5320 = vmatpush3.msk.msra.mxu1 %vm1182_vm4, %v4541_v11  ;;  %5343 = vmatpush3.msra.mxu0 %v4613_v19  ;;  %v3457_v11 = vstv %s4991_s17 }
 0x4f7   :  { %5321 = vmatprep.subr.mxu1 %v5539_v8  ;;  %5344 = vmatprep.subr.mxu0 %v5539_v8 }
 0x4f8   :  { %5322 = vmatpush3.msra.mxu1 %v4540_v43  ;;  %5345 = vmatpush3.msra.mxu0 %v4612_v34  ;;  %v3111_v34 = vstv %s4915_s28 }
 0x4f9   :  { %5346 = vmatprep.mubr.msk.f32.mxu0 %vm5540_vm5, %v5539_v8  ;;  %5323 = vmatprep.subr.mxu1 %v5539_v8 }
 0x4fa   :  { %5347 = vmatmul.mubr.msk.f32.vlgmr.msra.gmra.mxu0 %vm662_vm1, %v1729_v60  ;;  %5364 = vmatprep.subr.mxu0 %v5539_v8 }
 0x4fb   :  { %5324 = vmatpush3.msra.mxu1 %v4539_v10  ;;  %5365 = vmatpush3.msk.msra.mxu0 %vm1182_vm4, %v4769_v39 }
 0x4fc   :  { %5325 = vmatprep.subr.mxu1 %v5539_v8  ;;  %5366 = vmatprep.subr.mxu0 %v5539_v8 }
 0x4fd   :  { %5326 = vmatpush3.msra.mxu1 %v4538_v42  ;;  %5367 = vmatpush3.msra.mxu0 %v4768_v2 }
 0x4fe   :  { %5327 = vmatprep.subr.mxu1 %v5539_v8  ;;  %5368 = vmatprep.subr.mxu0 %v5539_v8 }
 0x4ff   :  { %5328 = vmatpush3.msra.mxu1 %v4537_v26  ;;  %5369 = vmatpush3.msra.mxu0 %v4767_v13  ;;  %v2761_v59 = vpop.permute.xlu1 %2760 }
 0x500   :  { %5329 = vmatprep.subr.mxu1 %v5539_v8  ;;  %5370 = vmatprep.subr.mxu0 %v5539_v8  ;;  %v2763_v16 = vmax.f32 %v8423_v54, %v2761_v59  ;;  %v4305_v59 = vld [vmem:[%s10046_s5 + $0x18] sm:$0xff] }
 0x501   :  { %5330 = vmatpush3.msra.mxu1 %v4536_v0  ;;  %5331 = vmatprep.mubr.msk.f32.mxu1 %vm5540_vm5, %v5539_v8 }
 0x502   :  { %5371 = vmatpush3.msra.mxu0 %v4766_v22  ;;  %5332 = vmatmul.mubr.msk.f32.vlgmr.msra.gmra.mxu1 %vm662_vm1, %v1383_v58  ;;  %v2766_v32 = vadd.f32 %v2765_v14, %v2763_v16  ;;  %v4316_v22 = vld [vmem:[%s10046_s5 + $0x70] sm:$0xff]  ;;  %v4315_v58 = vld [vmem:[%s10046_s5 + $0x68] sm:$0xff] }
 0x503   :  { %5349 = vmatprep.subr.mxu1 %v5539_v8  ;;  %5372 = vmatprep.subr.mxu0 %v5539_v8  ;;  %v4303_v16 = vld [vmem:[%s10046_s5 + $0x8] sm:$0xff] }
 0x504   :  { %5350 = vmatpush3.msk.msra.mxu1 %vm1182_vm4, %v4693_v27  ;;  %5373 = vmatpush3.msra.mxu0 %v4765_v9  ;;  %v2767_v24 = vmax.f32 %v2766_v32, 0.0  ;;  %v4314_v9 = vld [vmem:[%s10046_s5 + $0x60] sm:$0xff] }
 0x505   :  { %5351 = vmatprep.subr.mxu1 %v5539_v8  ;;  %5374 = vmatprep.subr.mxu0 %v5539_v8 }
 0x506   :  { %5352 = vmatpush3.msra.mxu1 %v4692_v41  ;;  %5375 = vmatpush3.msra.mxu0 %v4764_v52  ;;  %v4313_v41 = vld [vmem:[%s10046_s5 + $0x58] sm:$0xff]  ;;  %v4312_v52 = vld [vmem:[%s10046_s5 + $0x50] sm:$0xff] }
 0x507   :  { %5376 = vmatprep.mubr.msk.f32.mxu0 %vm5540_vm5, %v5539_v8  ;;  %5353 = vmatprep.subr.mxu1 %v5539_v8 }
 0x508   :  { %5394 = vmatprep.subr.mxu0 %v5539_v8  ;;  %5354 = vmatpush3.msra.mxu1 %v4691_v61 }
 0x509   :  { %5355 = vmatprep.subr.mxu1 %v5539_v8  ;;  %5361 = vmatprep.mubr.msk.f32.mxu1 %vm5540_vm5, %v5539_v8 }
 0x50a   :  { %5356 = vmatpush3.msra.mxu1 %v4690_v12  ;;  %v4309_v12 = vld [vmem:[%s10046_s5 + $0x38] sm:$0xff] }
 0x50b   :  { %5357 = vmatprep.subr.mxu1 %v5539_v8 }
 0x50c   :  { %5358 = vmatpush3.msra.mxu1 %v4689_v53 }
 0x50d   :  { %5359 = vmatprep.subr.mxu1 %v5539_v8 }
 0x50e   :  { %5360 = vmatpush3.msra.mxu1 %v4688_v31  ;;  %v4307_v31 = vld [vmem:[%s10046_s5 + $0x28] sm:$0xff] }
 0x50f   :  { %5362 = vmatmul.mubr.msk.f32.vlgmr.msra.gmra.mxu1 %vm662_vm1, %v2075_v46  ;;  %5379 = vmatprep.subr.mxu1 %v5539_v8 }
 0x510   :  { %5380 = vmatpush3.msk.msra.mxu1 %vm1182_vm4, %v4845_v48  ;;  %5391 = vmatprep.mubr.msk.f32.mxu1 %vm5540_vm5, %v5539_v8  ;;  %v4306_v48 = vld [vmem:[%s10046_s5 + $0x20] sm:$0xff] }
 0x511   :  { %5381 = vmatprep.subr.mxu1 %v5539_v8 }
 0x512   :  { %5382 = vmatpush3.msra.mxu1 %v4844_v38 }
 0x513   :  { %5383 = vmatprep.subr.mxu1 %v5539_v8 }
 0x514   :  { %5384 = vmatpush3.msra.mxu1 %v4843_v57 }
 0x515   :  { %v2415_v44 = vpop.permute.xlu0 %2414  ;;  %5385 = vmatprep.subr.mxu1 %v5539_v8 }
 0x516   :  { %v2417_v40 = vmax.f32 %v8516_v20, %v2415_v44  ;;  %v4921_v20 = vld [vmem:[%s10042_s25 + $0x268] sm:$0x3f]  ;;  %5386 = vmatpush3.msra.mxu1 %v4842_v49 }
 0x517   :  { %5387 = vmatprep.subr.mxu1 %v5539_v8 }
 0x518   :  { %v2420_v62 = vadd.f32 %v2419_v55, %v2417_v40  ;;  %5388 = vmatpush3.msra.mxu1 %v4841_v50  ;;  %v4304_v55 = vld [vmem:[%s10046_s5 + $0x10] sm:$0xff]  ;;  %v4302_v40 = vld [vmem:[%s10046_s5] sm:$0xff] }
 0x519   :  { %5389 = vmatprep.subr.mxu1 %v5539_v8 }
 0x51a   :  { %v2421_v54 = vmax.f32 %v2420_v62, 0.0  ;;  %5390 = vmatpush3.msra.mxu1 %v4840_v25 }
 0x51b   :  { %5392 = vmatmul.mubr.msk.f32.vlgmr.msra.gmra.mxu1 %vm662_vm1, %v2767_v24  ;;  %5409 = vmatprep.subr.mxu1 %v5539_v8 }
 0x51c   :  { %5377 = vmatmul.mubr.msk.f32.vlgmr.msra.gmra.mxu0 %vm662_vm1, %v2421_v54  ;;  %5410 = vmatpush3.msk.msra.mxu1 %vm1182_vm4, %v4997_v37 }
 0x51d   :  { %5395 = vmatpush3.msk.msra.mxu0 %vm1182_vm4, %v4921_v20  ;;  %5406 = vmatprep.mubr.msk.f32.mxu0 %vm5540_vm5, %v5539_v8 }
 0x51e   :  { %5396 = vmatprep.subr.mxu0 %v5539_v8  ;;  %5411 = vmatprep.subr.mxu1 %v5539_v8 }
 0x51f   :  { %5397 = vmatpush3.msra.mxu0 %v4920_v56  ;;  %5412 = vmatpush3.msra.mxu1 %v4996_v15 }
 0x520   :  { %5398 = vmatprep.subr.mxu0 %v5539_v8  ;;  %5413 = vmatprep.subr.mxu1 %v5539_v8 }
 0x521   :  { %5399 = vmatpush3.msra.mxu0 %v4919_v17  ;;  %5414 = vmatpush3.msra.mxu1 %v4995_v7 }
 0x522   :  { %5400 = vmatprep.subr.mxu0 %v5539_v8  ;;  %5415 = vmatprep.subr.mxu1 %v5539_v8 }
 0x523   :  { %5401 = vmatpush3.msra.mxu0 %v4918_v21  ;;  %5416 = vmatpush3.msra.mxu1 %v4994_v28 }
 0x524   :  { %5402 = vmatprep.subr.mxu0 %v5539_v8  ;;  %5421 = vmatprep.mubr.msk.f32.mxu1 %vm5540_vm5, %v5539_v8 }
 0x525   :  { %5403 = vmatpush3.msra.mxu0 %v4917_v6  ;;  %5417 = vmatprep.subr.mxu1 %v5539_v8 }
 0x526   :  { %5404 = vmatprep.subr.mxu0 %v5539_v8  ;;  %5418 = vmatpush3.msra.mxu1 %v4993_v36 }
 0x527   :  { %5405 = vmatpush3.msra.mxu0 %v4916_v5  ;;  %5419 = vmatprep.subr.mxu1 %v5539_v8 }
 0x528   :  { %5424 = vmatprep.subr.mxu0 %v5539_v8  ;;  %5420 = vmatpush3.msra.mxu1 %v4992_v3 }
 0x531   :  { %v3453_v19 = vpop.permute.xlu1 %3452 }
 0x532   :  { %v3455_v4 = vmax.f32 %v8618_v1, %v3453_v19 }
 0x534   :  { %v3458_v35 = vadd.f32 %v3457_v11, %v3455_v4 }
 0x536   :  { %v3459_v43 = vmax.f32 %v3458_v35, 0.0 }
 0x538   :  { %5422 = vmatmul.mubr.msk.f32.vlgmr.msra.gmra.mxu1 %vm662_vm1, %v3459_v43 }
 0x54e   :  { %v3107_v33 = vpop.permute.xlu0 %3106 }
 0x54f   :  { %v3109_v60 = vmax.f32 %v8782_v45, %v3107_v33  ;;  %v4317_v45 = vld [vmem:[%s10046_s5 + $0x78] sm:$0xff] }
 0x551   :  { %v3112_v10 = vadd.f32 %v3111_v34, %v3109_v60 }
 0x553   :  { %v3113_v39 = vmax.f32 %v3112_v10, 0.0  ;;  %v5053_v10 = vld [vmem:[%s10047_s3] ss:$0 sm:$0xff] }
 0x555   :  { %5407 = vmatmul.mubr.msk.f32.vlgmr.msra.gmra.mxu0 %vm662_vm1, %v3113_v39 }
 0x556   :  { %5456 = vmatprep.mubr.msk.f32.mxu0 %vm5540_vm5, %v5539_v8  ;;  %5425 = vmatpush3.msra.mxu0 %v4317_v45 }
 0x557   :  { %5426 = vmatprep.subr.mxu0 %v5539_v8 }
 0x558   :  { %5427 = vmatpush3.msra.mxu0 %v4316_v22 }
 0x559   :  { %5428 = vmatprep.subr.mxu0 %v5539_v8 }
 0x55a   :  { %5429 = vmatpush3.msra.mxu0 %v4315_v58 }
 0x55b   :  { %5430 = vmatprep.subr.mxu0 %v5539_v8 }
 0x55c   :  { %5431 = vmatpush3.msra.mxu0 %v4314_v9 }
 0x55d   :  { %5432 = vmatprep.subr.mxu0 %v5539_v8 }
 0x55e   :  { %5433 = vmatpush3.msra.mxu0 %v4313_v41 }
 0x55f   :  { %5434 = vmatprep.subr.mxu0 %v5539_v8 }
 0x560   :  { %5435 = vmatpush3.msra.mxu0 %v4312_v52 }
 0x561   :  { %5436 = vmatprep.subr.mxu0 %v5539_v8 }
 0x562   :  { %5437 = vmatpush3.msra.mxu0 %v4311_v23 }
 0x563   :  { %5438 = vmatprep.subr.mxu0 %v5539_v8 }
 0x564   :  { %5439 = vmatpush3.msra.mxu0 %v4310_v47 }
 0x565   :  { %5440 = vmatprep.subr.mxu0 %v5539_v8 }
 0x566   :  { %5441 = vmatpush3.msra.mxu0 %v4309_v12 }
 0x567   :  { %5442 = vmatprep.subr.mxu0 %v5539_v8 }
 0x568   :  { %5443 = vmatpush3.msra.mxu0 %v4308_v29 }
 0x569   :  { %5444 = vmatprep.subr.mxu0 %v5539_v8 }
 0x56a   :  { %5445 = vmatpush3.msra.mxu0 %v4307_v31 }
 0x56b   :  { %5446 = vmatprep.subr.mxu0 %v5539_v8 }
 0x56c   :  { %5447 = vmatpush3.msra.mxu0 %v4306_v48 }
 0x56d   :  { %5448 = vmatprep.subr.mxu0 %v5539_v8 }
 0x56e   :  { %5449 = vmatpush3.msra.mxu0 %v4305_v59 }
 0x56f   :  { %5450 = vmatprep.subr.mxu0 %v5539_v8 }
 0x570   :  { %5451 = vmatpush3.msra.mxu0 %v4304_v55 }
 0x571   :  { %5452 = vmatprep.subr.mxu0 %v5539_v8 }
 0x572   :  { %5453 = vmatpush3.msra.mxu0 %v4303_v16 }
 0x573   :  { %5454 = vmatprep.subr.mxu0 %v5539_v8 }
 0x574   :  { %5455 = vmatpush3.msra.mxu0 %v4302_v40 }
 0x57f   :  { %v1252_v18 = vpop.f32.mrf.mxu1 }
 0x581   :  { %v5198_v42 = vpop.f32.mrf.mxu1  ;;  %v9109_v2 = vpop.f32.mrf.mxu0 }
 0x583   :  { %v5228_v1 = vpop.f32.mrf.mxu0 }
 0x58b   :  { %v9111_v51 = vpop.f32.mrf.mxu1 }
 0x58d   :  { %v5213_v26 = vpop.f32.mrf.mxu1 }
 0x58f   :  { %v9113_v13 = vpop.f32.mrf.mxu0 }
 0x591   :  { %v5258_v0 = vpop.f32.mrf.mxu0 }
 0x598   :  { %v2290_v27 = vpop.f32.mrf.mxu1 }
 0x59a   :  { %v5243_v63 = vpop.f32.mrf.mxu1 }
 0x59e   :  { %v9137_v30 = vpop.f32.mrf.mxu0 }
 0x5a0   :  { %v5288_v61 = vpop.f32.mrf.mxu0 }
 0x5a6   :  { %v2982_v53 = vpop.f32.mrf.mxu1 }
 0x5a8   :  { %v5273_v46 = vpop.f32.mrf.mxu1 }
 0x5ac   :  { %v3750_v38 = vpop.f32.mrf.mxu0 }
 0x5ad   :  { %v3751_v44 = vadd.f32 %v3750_v38, %v1252_v18 }
 0x5ae   :  { %v5318_v57 = vpop.f32.mrf.mxu0 }
 0x5b4   :  { %v3674_v14 = vpop.f32.mrf.mxu1 }
 0x5b6   :  { %v5303_v49 = vpop.f32.mrf.mxu1 }
 0x5ba   :  { %v3902_v62 = vpop.f32.mrf.mxu0 }
 0x5bb   :  { %v3903_v50 = vadd.f32 %v3902_v62, %v9109_v2  ;;  %v5054_v2 = vld [vmem:[%s10048_s14] ss:$0 sm:$0xff] }
 0x5bc   :  { %v5348_v32 = vpop.f32.mrf.mxu0 }
 0x5c2   :  { %v3826_v54 = vpop.f32.mrf.mxu1 }
 0x5c3   :  { %v3827_v20 = vadd.f32 %v3826_v54, %v9111_v51 }
 0x5c4   :  { %v5333_v56 = vpop.f32.mrf.mxu1 }
 0x5c5   :  { %v4286_v25 = vadd.f32 %v3827_v20, %v3751_v44 }
 0x5cf   :  { %v3978_v24 = vpop.f32.mrf.mxu1 }
 0x5d0   :  { %v3979_v17 = vadd.f32 %v3978_v24, %v2290_v27 }
 0x5d1   :  { %v5363_v37 = vpop.f32.mrf.mxu1 }
 0x5d2   :  { %v4287_v21 = vadd.f32 %v3979_v17, %v3903_v50 }
 0x5d4   :  { %v4290_v15 = vadd.f32 %v4287_v21, %v4286_v25 }
 0x5db   :  { %v4130_v8 = vpop.f32.mrf.mxu1 }
 0x5dc   :  { %v4054_v6 = vpop.f32.mrf.mxu0  ;;  %v4131_v3 = vadd.f32 %v4130_v8, %v2982_v53 }
 0x5dd   :  { %v5393_v5 = vpop.f32.mrf.mxu1  ;;  %v4055_v4 = vadd.f32 %v4054_v6, %v9113_v13 }
 0x5de   :  { %v5378_v7 = vpop.f32.mrf.mxu0 }
 0x5df   :  { %v4288_v34 = vadd.f32 %v4131_v3, %v4055_v4 }
 0x5f8   :  { %v4282_v28 = vpop.f32.mrf.mxu1 }
 0x5f9   :  { %v4283_v11 = vadd.f32 %v4282_v28, %v3674_v14 }
 0x5fa   :  { %v5423_v36 = vpop.f32.mrf.mxu1 }
 0x615   :  { %v4206_v19 = vpop.f32.mrf.mxu0 }
 0x616   :  { %v4207_v35 = vadd.f32 %v4206_v19, %v9137_v30 }
 0x617   :  { %v5408_v43 = vpop.f32.mrf.mxu0 }
 0x618   :  { %v4289_v33 = vadd.f32 %v4283_v11, %v4207_v35 }
 0x61a   :  { %v4291_v60 = vadd.f32 %v4289_v33, %v4288_v34 }
 0x61c   :  { %v4292_v39 = vadd.f32 %v4291_v60, %v4290_v15 }
 0x61e   :  { %v4300_v18 = vadd.f32 %v5053_v10, %v4292_v39 }
 0x620   :  { %v4301_v42 = vmax.f32 %v4300_v18, 0.0 }
 0x622   :  { %5457 = vmatmul.mubr.f32.vlgmr.msra.gmra.mxu0 %v4301_v42 }
 0x6e2   :  { %v4391_v1 = vpop.f32.mrf.mxu0 }
 0x6e3   :  { %v4392_v51 = vadd.f32 %v5054_v2, %v4391_v1 }
 0x6e4   :  { %v5458_v26 = vpop.f32.mrf.mxu0 }
 0x6e5   :  { %4395 = vst [vmem:[%s10049_s19] sm:$0xff] %v4392_v51 }
 0x6e6   :  { %4400 = vsyncpa [#allocation3], 1 }
 0x6e7   :  { %4401 = vsyncpa [#allocation5], 1 }
 0x6e8   :  { %4402 = vsyncpa [#allocation8], 1 }

</bundles_post_ra>
